<compile_context>
chip_gen: v7x
topology: tpu7x:2x2x1
jax: 0.10.0
libtpu: 0.0.40
codegen_flags: <defaults>
</compile_context>

<pallas_src>
import functools

import jax
import jax.numpy as jnp
from jax.experimental import pallas as pl
from jax.experimental.pallas import tpu as pltpu


def _round_up(x, m):
    return ((x + m - 1) // m) * m


# ----------------------------------------------------------------------------
# Pallas kernel 1: tiled matmul on the MXU (bf16 operands, f32 accumulator),
# optional fused bias add and elementwise activation in the epilogue.
# ----------------------------------------------------------------------------

def _matmul_kernel(a_ref, b_ref, o_ref, acc_ref, *, activation):
    @pl.when(pl.program_id(2) == 0)
    def _():
        acc_ref[...] = jnp.zeros_like(acc_ref)

    acc_ref[...] += jnp.dot(a_ref[...], b_ref[...],
                            preferred_element_type=jnp.float32)

    @pl.when(pl.program_id(2) == pl.num_programs(2) - 1)
    def _():
        y = acc_ref[...]
        if activation is not None:
            y = activation(y)
        o_ref[...] = y.astype(o_ref.dtype)


def _matmul_bias_kernel(a_ref, b_ref, bias_ref, o_ref, acc_ref, *, activation):
    @pl.when(pl.program_id(2) == 0)
    def _():
        acc_ref[...] = jnp.zeros_like(acc_ref)

    acc_ref[...] += jnp.dot(a_ref[...], b_ref[...],
                            preferred_element_type=jnp.float32)

    @pl.when(pl.program_id(2) == pl.num_programs(2) - 1)
    def _():
        y = acc_ref[...] + bias_ref[...].astype(jnp.float32)
        if activation is not None:
            y = activation(y)
        o_ref[...] = y.astype(o_ref.dtype)


def pallas_matmul(a, b, bias=None, activation=None, out_dtype=jnp.bfloat16):
    """(M, K) @ (K, N) on the MXU.  bf16 operands, f32 accumulation.
    Optional fused bias (N,) add and elementwise activation in the epilogue.
    Avoids padding the (potentially huge) activation matrix: full-extent K/N
    blocks are used whenever a single tile covers the dimension."""
    M, K = a.shape
    K2, N = b.shape
    assert K == K2

    # M: big tiles to amortize the ~0.35us per-grid-step overhead.
    tm = min(512, _round_up(M, 8))
    Mp = _round_up(M, tm)

    # K: single full-extent block whenever it fits (no HBM rewrite of `a`).
    if K <= 2048:
        tk, Kp = K, K
    else:
        tk = next((c for c in (512, 256, 128) if K % c == 0), None)
        if tk is None:
            tk, Kp = 512, _round_up(K, 512)
        else:
            Kp = K

    # N: full-extent block for small N (Cout is tiny here), tiled otherwise.
    if N <= 512:
        tn, Np = N, N
    else:
        tn = next((c for c in (512, 256, 128) if N % c == 0), None)
        if tn is None:
            tn, Np = 128, _round_up(N, 128)
        else:
            Np = N

    a_p = a.astype(jnp.bfloat16)
    b_p = b.astype(jnp.bfloat16)
    if (Mp, Kp) != (M, K):
        a_p = jnp.pad(a_p, ((0, Mp - M), (0, Kp - K)))
    if (Kp, Np) != (K, N):
        b_p = jnp.pad(b_p, ((0, Kp - K), (0, Np - N)))

    grid = (Mp // tm, Np // tn, Kp // tk)
    a_spec = pl.BlockSpec((tm, tk), lambda i, j, k: (i, k))
    b_spec = pl.BlockSpec((tk, tn), lambda i, j, k: (k, j))
    o_spec = pl.BlockSpec((tm, tn), lambda i, j, k: (i, j))
    scratch = [pltpu.VMEM((tm, tn), jnp.float32)]
    cparams = pltpu.CompilerParams(
        dimension_semantics=("parallel", "parallel", "arbitrary"))

    if bias is None:
        out = pl.pallas_call(
            functools.partial(_matmul_kernel, activation=activation),
            out_shape=jax.ShapeDtypeStruct((Mp, Np), out_dtype),
            grid_spec=pltpu.PrefetchScalarGridSpec(
                num_scalar_prefetch=0, grid=grid,
                in_specs=[a_spec, b_spec], out_specs=o_spec,
                scratch_shapes=scratch),
            compiler_params=cparams,
        )(a_p, b_p)
    else:
        bias_p = bias.reshape(1, N).astype(jnp.float32)
        if Np != N:
            bias_p = jnp.pad(bias_p, ((0, 0), (0, Np - N)))
        bias_spec = pl.BlockSpec((1, tn), lambda i, j, k: (0, j))
        out = pl.pallas_call(
            functools.partial(_matmul_bias_kernel, activation=activation),
            out_shape=jax.ShapeDtypeStruct((Mp, Np), out_dtype),
            grid_spec=pltpu.PrefetchScalarGridSpec(
                num_scalar_prefetch=0, grid=grid,
                in_specs=[a_spec, b_spec, bias_spec], out_specs=o_spec,
                scratch_shapes=scratch),
            compiler_params=cparams,
        )(a_p, b_p, bias_p)

    if (Mp, Np) != (M, N):
        out = out[:M, :N]
    return out


# ----------------------------------------------------------------------------
# Pallas kernel 2: row-tiled per-column sum / sum-of-squares reduction.
# Produces the BatchNorm batch statistics with a tiny (1, C) output, so the
# BN *apply* never needs its own activation round trip (it fuses into the
# plain-JAX layout glue feeding the next matmul).
# ----------------------------------------------------------------------------

def _colstats_kernel(x_ref, s_ref, q_ref, s_acc, q_acc):
    @pl.when(pl.program_id(0) == 0)
    def _():
        s_acc[...] = jnp.zeros_like(s_acc)
        q_acc[...] = jnp.zeros_like(q_acc)

    x = x_ref[...].astype(jnp.float32)
    s_acc[...] += jnp.sum(x, axis=0, keepdims=True)
    q_acc[...] += jnp.sum(x * x, axis=0, keepdims=True)

    @pl.when(pl.program_id(0) == pl.num_programs(0) - 1)
    def _():
        s_ref[...] = s_acc[...]
        q_ref[...] = q_acc[...]


def pallas_colstats(x2d, row_tile=512):
    """Per-column sum and sum-of-squares of x2d (P, C), f32.  Row-tiled so
    arbitrarily large activations never have to fit a single VMEM block."""
    P, C = x2d.shape
    tp = min(row_tile, _round_up(P, 8))
    Pp = _round_up(P, tp)
    xp = x2d
    if Pp != P:
        xp = jnp.pad(x2d, ((0, Pp - P), (0, 0)))   # zero rows do not change sums
    s, q = pl.pallas_call(
        _colstats_kernel,
        out_shape=(jax.ShapeDtypeStruct((1, C), jnp.float32),
                   jax.ShapeDtypeStruct((1, C), jnp.float32)),
        grid=(Pp // tp,),
        in_specs=[pl.BlockSpec((tp, C), lambda i: (i, 0))],
        out_specs=(pl.BlockSpec((1, C), lambda i: (0, 0)),
                   pl.BlockSpec((1, C), lambda i: (0, 0))),
        scratch_shapes=[pltpu.VMEM((1, C), jnp.float32),
                        pltpu.VMEM((1, C), jnp.float32)],
        compiler_params=pltpu.CompilerParams(
            dimension_semantics=("arbitrary",)),
    )(xp)
    return s.reshape(C), q.reshape(C)


def _bn_scale_shift(col_sum, col_sumsq, count, gamma, beta, eps=1e-5):
    mean = col_sum / count
    var = jnp.maximum(col_sumsq / count - mean * mean, 0.0)
    scale = gamma * jax.lax.rsqrt(var + eps)
    shift = beta - mean * scale
    return scale, shift


# ----------------------------------------------------------------------------
# im2col / weight-layout glue (plain JAX; XLA fuses it with the neighboring
# elementwise ops -- no Pallas equivalent needed).
# ----------------------------------------------------------------------------

def _im2col_3x3_p1(x):
    """x: (N, H, W, C) -> (N*H*W, 9*C); patch ordering (dh, dw, c)."""
    N, H, W, C = x.shape
    xp = jnp.pad(x, ((0, 0), (1, 1), (1, 1), (0, 0)))
    cols = [xp[:, dh:dh + H, dw:dw + W, :] for dh in range(3) for dw in range(3)]
    return jnp.concatenate(cols, axis=-1).reshape(N * H * W, 9 * C)


# Sub-pixel taps of ConvTranspose2d(k=4, s=2, p=1): (output parity, patch pos) -> k
_DECONV_TAPS = {(0, 0): 3, (0, 1): 1, (1, 1): 2, (1, 2): 0}


def _deconv_weight_as_conv3x3(w_t):
    """(Cin, Cout, 4, 4) transposed-conv weight -> (9*Cin, 4*Cout) matrix for the
    equivalent 3x3 conv producing the four output-parity channel groups."""
    Cin, Cout = w_t.shape[0], w_t.shape[1]
    W = jnp.zeros((3, 3, Cin, 2, 2, Cout), w_t.dtype)
    for (rh, dh), kh in _DECONV_TAPS.items():
        for (rw, dw), kw in _DECONV_TAPS.items():
            W = W.at[dh, dw, :, rh, rw, :].set(w_t[:, :, kh, kw])
    return W.reshape(9 * Cin, 4 * Cout)


# ----------------------------------------------------------------------------
# Layer blocks (Pallas matmul + Pallas BN statistics; BN affine + ReLU +
# depth-to-space + pad all fuse into one XLA pass feeding the next im2col).
# ----------------------------------------------------------------------------

def deconv_bn_relu(x, w_t, gamma, beta):
    """ConvTranspose2d(4, s=2, p=1, bias=False) + BatchNorm2d (batch stats) + ReLU.
    x: (N, H, W, Cin) NHWC bf16 -> (N, 2H, 2W, Cout) NHWC bf16."""
    N, H, W, Cin = x.shape
    Cout = w_t.shape[1]
    col = _im2col_3x3_p1(x)                               # (N*H*W, 9*Cin)
    wmat = _deconv_weight_as_conv3x3(w_t)                 # (9*Cin, 4*Cout)
    out2d = pallas_matmul(col, wmat)                      # (N*H*W, 4*Cout) bf16
    # BN stats on the parity-packed layout; fold the 4 parity groups / channel.
    s, q = pallas_colstats(out2d)
    s = s.reshape(4, Cout).sum(axis=0)
    q = q.reshape(4, Cout).sum(axis=0)
    count = 4.0 * out2d.shape[0]                          # = N * 2H * 2W
    scale, shift = _bn_scale_shift(s, q, count, gamma, beta)
    # depth-to-space + BN affine + ReLU (fused by XLA with the next pad/im2col).
    y = out2d.reshape(N, H, W, 2, 2, Cout)
    y = y.transpose(0, 1, 3, 2, 4, 5).reshape(N, 2 * H, 2 * W, Cout)
    y = jnp.maximum(y.astype(jnp.float32) * scale + shift, 0.0)
    return y.astype(jnp.bfloat16)


def conv_bn_relu(x, w, gamma, beta):
    """Conv2d(3, s=1, p=1, bias=False) + BatchNorm2d (batch stats) + ReLU."""
    N, H, W, Cin = x.shape
    Cout = w.shape[0]
    col = _im2col_3x3_p1(x)
    wmat = jnp.transpose(w, (2, 3, 1, 0)).reshape(9 * Cin, Cout)
    out2d = pallas_matmul(col, wmat)                      # (N*H*W, Cout) bf16
    s, q = pallas_colstats(out2d)
    scale, shift = _bn_scale_shift(s, q, float(out2d.shape[0]), gamma, beta)
    y = out2d.reshape(N, H, W, Cout).astype(jnp.float32)
    y = jnp.maximum(y * scale + shift, 0.0)
    return y.astype(jnp.bfloat16)


def conv_tanh(x, w):
    """Final Conv2d(3, s=1, p=1, bias=False) with tanh fused in the matmul epilogue."""
    N, H, W, Cin = x.shape
    Cout = w.shape[0]
    col = _im2col_3x3_p1(x)
    wmat = jnp.transpose(w, (2, 3, 1, 0)).reshape(9 * Cin, Cout)
    out2d = pallas_matmul(col, wmat, activation=jnp.tanh, out_dtype=jnp.float32)
    return out2d.reshape(N, H, W, Cout)


# ----------------------------------------------------------------------------
# cond_cnn_generator
# ----------------------------------------------------------------------------

def init_params(key, nz, ngf, nc, num_classes):
    ks = jax.random.split(key, 16)
    sd = 0.05
    p = {}
    p["emb"] = jax.random.normal(ks[0], (num_classes, num_classes), jnp.float32) * sd
    p["lin_w"] = jax.random.normal(ks[1], (4 * 4 * ngf * 8, nz + num_classes), jnp.float32) * sd
    p["lin_b"] = jax.random.normal(ks[2], (4 * 4 * ngf * 8,), jnp.float32) * sd
    # ConvTranspose2d weights: (Cin, Cout, 4, 4)
    p["ct1_w"] = jax.random.normal(ks[3], (ngf * 8, ngf * 8, 4, 4), jnp.float32) * sd
    p["ct2_w"] = jax.random.normal(ks[4], (ngf * 8, ngf * 4, 4, 4), jnp.float32) * sd
    p["ct3_w"] = jax.random.normal(ks[5], (ngf * 4, ngf * 2, 4, 4), jnp.float32) * sd
    p["ct4_w"] = jax.random.normal(ks[6], (ngf * 2, ngf, 4, 4), jnp.float32) * sd
    # Conv2d weights: (Cout, Cin, 3, 3)
    p["c5_w"] = jax.random.normal(ks[7], (ngf, ngf, 3, 3), jnp.float32) * sd
    p["c6_w"] = jax.random.normal(ks[8], (nc, ngf, 3, 3), jnp.float32) * sd
    # BatchNorm affine params
    for name, ch, k1, k2 in [("bn1", ngf * 8, 9, 10), ("bn2", ngf * 4, 10, 11),
                             ("bn3", ngf * 2, 11, 12), ("bn4", ngf, 12, 13),
                             ("bn5", ngf, 13, 14)]:
        p[name + "_g"] = 1.0 + 0.1 * jax.random.normal(ks[k1], (ch,), jnp.float32)
        p[name + "_b"] = 0.1 * jax.random.normal(ks[k2], (ch,), jnp.float32)
    return p


def cond_cnn_generator_forward(params, z, labels, nz, ngf, nc):
    B = z.shape[0]
    z = z.reshape(-1, nz)
    # TODO(synk): the embedding lookup is a tiny gather; left to XLA glue.
    emb = params["emb"][labels]                                  # (B, num_classes)
    x = jnp.concatenate([emb, z], axis=1)                        # (B, nz + num_classes)

    # Linear with fused bias (Pallas matmul epilogue).
    h = pallas_matmul(x, params["lin_w"].T, bias=params["lin_b"])
    # PyTorch views the linear output as (B, 8*ngf, 4, 4) NCHW; convert once to
    # NHWC (tiny 4x4 tensor) and stay channels-last from here on.
    C0 = 8 * ngf
    h = h.reshape(B, C0, 4, 4).transpose(0, 2, 3, 1)             # (B, 4, 4, 8ngf)

    h = deconv_bn_relu(h, params["ct1_w"], params["bn1_g"], params["bn1_b"])  # (B, 8, 8, 8ngf)
    h = deconv_bn_relu(h, params["ct2_w"], params["bn2_g"], params["bn2_b"])  # (B, 16, 16, 4ngf)
    h = deconv_bn_relu(h, params["ct3_w"], params["bn3_g"], params["bn3_b"])  # (B, 32, 32, 2ngf)
    h = deconv_bn_relu(h, params["ct4_w"], params["bn4_g"], params["bn4_b"])  # (B, 64, 64, ngf)
    h = conv_bn_relu(h, params["c5_w"], params["bn5_g"], params["bn5_b"])     # (B, 64, 64, ngf)
    img = conv_tanh(h, params["c6_w"])                                        # (B, 64, 64, nc)
    return img.transpose(0, 3, 1, 2)                             # NCHW, as in PyTorch


if __name__ == "__main__":
    # Small shapes consistent with the module (spatial 4->64 is fixed by arch).
    NZ, NGF, NC, NUM_CLASSES, B = 16, 8, 1, 4, 2

    key = jax.random.PRNGKey(0)
    kp, kz, kl = jax.random.split(key, 3)
    params = init_params(kp, NZ, NGF, NC, NUM_CLASSES)
    z = jax.random.normal(kz, (B, NZ), jnp.float32)
    labels = jax.random.randint(kl, (B,), 0, NUM_CLASSES)

    fwd = jax.jit(functools.partial(cond_cnn_generator_forward,
                                    nz=NZ, ngf=NGF, nc=NC))
    img = fwd(params, z, labels)
    jax.block_until_ready(img)
    assert img.shape == (B, NC, 64, 64), img.shape
    assert bool(jnp.all(jnp.isfinite(img)))
    print("KERNEL_OK")
</pallas_src>

<mosaic_0001>
module attributes {stable_mosaic.version = 11 : i64} {
  func.func @_matmul_bias_kernel(%arg0: i32, %arg1: i32, %arg2: i32, %arg3: memref<8x20xbf16, #tpu.memory_space<vmem>>, %arg4: memref<20x512xbf16, #tpu.memory_space<vmem>>, %arg5: memref<1x512xf32, #tpu.memory_space<vmem>>, %arg6: memref<8x512xbf16, #tpu.memory_space<vmem>>, %arg7: memref<8x512xf32, #tpu.memory_space<vmem>>) attributes {dimension_semantics = [#tpu.dimension_semantics<parallel>, #tpu.dimension_semantics<parallel>, #tpu.dimension_semantics<arbitrary>], iteration_bounds = array<i64: 1, 2, 1>, scalar_prefetch = 0 : i64, scratch_operands = 1 : i64, tpu.core_type = #tpu.core_type<tc>, window_params = [{transform_indices = @transform_0, window_bounds = array<i64: 8, 20>}, {transform_indices = @transform_1, window_bounds = array<i64: 20, 512>}, {transform_indices = @transform_2, window_bounds = array<i64: 1, 512>}, {transform_indices = @transform_3, window_bounds = array<i64: 8, 512>}]} {
    %c0_i32 = arith.constant 0 : i32
    %0 = arith.cmpi eq, %arg2, %c0_i32 : i32
    %1 = arith.extui %0 : i1 to i32
    %c0_i32_0 = arith.constant 0 : i32
    %2 = arith.cmpi ne, %1, %c0_i32_0 : i32
    scf.if %2 {
      %cst_10 = arith.constant 0.000000e+00 : f32
      %12 = vector.broadcast %cst_10 : f32 to vector<8x512xf32>
      %c0_11 = arith.constant 0 : index
      %c0_12 = arith.constant 0 : index
      %13 = vector.load %arg7[%c0_11, %c0_12] : memref<8x512xf32, #tpu.memory_space<vmem>>, vector<8x512xf32>
      tpu.vector_store %arg7[%c0_11, %c0_12], %12 {strides = array<i32>} : memref<8x512xf32, #tpu.memory_space<vmem>>, vector<8x512xf32>,
    } else {
    }
    %c0 = arith.constant 0 : index
    %c0_1 = arith.constant 0 : index
    %3 = vector.load %arg7[%c0, %c0_1] : memref<8x512xf32, #tpu.memory_space<vmem>>, vector<8x512xf32>
    %c0_2 = arith.constant 0 : index
    %c0_3 = arith.constant 0 : index
    %4 = vector.load %arg3[%c0_2, %c0_3] : memref<8x20xbf16, #tpu.memory_space<vmem>>, vector<8x20xbf16>
    %c0_4 = arith.constant 0 : index
    %c0_5 = arith.constant 0 : index
    %5 = vector.load %arg4[%c0_4, %c0_5] : memref<20x512xbf16, #tpu.memory_space<vmem>>, vector<20x512xbf16>
    %cst = arith.constant dense<0.000000e+00> : vector<8x512xf32>
    %6 = tpu.matmul %4, %5, %cst {dimension_numbers = #tpu.dot_dimension_numbers<[1], [0], [0], [1], [0, 0, 1, 1], [], []>} : vector<8x20xbf16>, vector<20x512xbf16>, vector<8x512xf32> -> vector<8x512xf32>
    %7 = arith.addf %3, %6 : vector<8x512xf32>
    %c0_6 = arith.constant 0 : index
    %c0_7 = arith.constant 0 : index
    %8 = vector.load %arg7[%c0_6, %c0_7] : memref<8x512xf32, #tpu.memory_space<vmem>>, vector<8x512xf32>
    tpu.vector_store %arg7[%c0_6, %c0_7], %7 {strides = array<i32>} : memref<8x512xf32, #tpu.memory_space<vmem>>, vector<8x512xf32>,
    %c0_i32_8 = arith.constant 0 : i32
    %9 = arith.cmpi eq, %arg2, %c0_i32_8 : i32
    %10 = arith.extui %9 : i1 to i32
    %c0_i32_9 = arith.constant 0 : i32
    %11 = arith.cmpi ne, %10, %c0_i32_9 : i32
    scf.if %11 {
      %c0_10 = arith.constant 0 : index
      %c0_11 = arith.constant 0 : index
      %12 = vector.load %arg7[%c0_10, %c0_11] : memref<8x512xf32, #tpu.memory_space<vmem>>, vector<8x512xf32>
      %c0_12 = arith.constant 0 : index
      %c0_13 = arith.constant 0 : index
      %13 = vector.load %arg5[%c0_12, %c0_13] : memref<1x512xf32, #tpu.memory_space<vmem>>, vector<1x512xf32>
      %14 = vector.broadcast %13 : vector<1x512xf32> to vector<8x512xf32>
      %15 = arith.addf %12, %14 : vector<8x512xf32>
      %16 = arith.truncf %15 : vector<8x512xf32> to vector<8x512xbf16>
      %c0_14 = arith.constant 0 : index
      %c0_15 = arith.constant 0 : index
      %17 = vector.load %arg6[%c0_14, %c0_15] : memref<8x512xbf16, #tpu.memory_space<vmem>>, vector<8x512xbf16>
      tpu.vector_store %arg6[%c0_14, %c0_15], %16 {strides = array<i32>} : memref<8x512xbf16, #tpu.memory_space<vmem>>, vector<8x512xbf16>,
    } else {
    }
    return
  }
  func.func @transform_0(%arg0: i32, %arg1: i32, %arg2: i32) -> (i32, i32) {
    %c0_i32 = arith.constant 0 : i32
    return %arg0, %arg2 : i32, i32
  }
  func.func @transform_1(%arg0: i32, %arg1: i32, %arg2: i32) -> (i32, i32) {
    %c0_i32 = arith.constant 0 : i32
    return %arg2, %arg1 : i32, i32
  }
  func.func @transform_2(%arg0: i32, %arg1: i32, %arg2: i32) -> (i32, i32) {
    %c0_i32 = arith.constant 0 : i32
    %c0_i32_0 = arith.constant 0 : i32
    return %c0_i32, %arg1 : i32, i32
  }
  func.func @transform_3(%arg0: i32, %arg1: i32, %arg2: i32) -> (i32, i32) {
    %c0_i32 = arith.constant 0 : i32
    return %arg0, %arg1 : i32, i32
  }
}

module attributes {stable_mosaic.version = 11 : i64} {
  func.func @_matmul_kernel(%arg0: i32, %arg1: i32, %arg2: i32, %arg3: memref<32x576xbf16, #tpu.memory_space<vmem>>, %arg4: memref<576x256xbf16, #tpu.memory_space<vmem>>, %arg5: memref<32x256xbf16, #tpu.memory_space<vmem>>, %arg6: memref<32x256xf32, #tpu.memory_space<vmem>>) attributes {dimension_semantics = [#tpu.dimension_semantics<parallel>, #tpu.dimension_semantics<parallel>, #tpu.dimension_semantics<arbitrary>], iteration_bounds = array<i64: 1, 1, 1>, scalar_prefetch = 0 : i64, scratch_operands = 1 : i64, tpu.core_type = #tpu.core_type<tc>, window_params = [{transform_indices = @transform_0, window_bounds = array<i64: 32, 576>}, {transform_indices = @transform_1, window_bounds = array<i64: 576, 256>}, {transform_indices = @transform_2, window_bounds = array<i64: 32, 256>}]} {
    %c0_i32 = arith.constant 0 : i32
    %0 = arith.cmpi eq, %arg2, %c0_i32 : i32
    %1 = arith.extui %0 : i1 to i32
    %c0_i32_0 = arith.constant 0 : i32
    %2 = arith.cmpi ne, %1, %c0_i32_0 : i32
    scf.if %2 {
      %cst_10 = arith.constant 0.000000e+00 : f32
      %12 = vector.broadcast %cst_10 : f32 to vector<32x256xf32>
      %c0_11 = arith.constant 0 : index
      %c0_12 = arith.constant 0 : index
      %13 = vector.load %arg6[%c0_11, %c0_12] : memref<32x256xf32, #tpu.memory_space<vmem>>, vector<32x256xf32>
      tpu.vector_store %arg6[%c0_11, %c0_12], %12 {strides = array<i32>} : memref<32x256xf32, #tpu.memory_space<vmem>>, vector<32x256xf32>,
    } else {
    }
    %c0 = arith.constant 0 : index
    %c0_1 = arith.constant 0 : index
    %3 = vector.load %arg6[%c0, %c0_1] : memref<32x256xf32, #tpu.memory_space<vmem>>, vector<32x256xf32>
    %c0_2 = arith.constant 0 : index
    %c0_3 = arith.constant 0 : index
    %4 = vector.load %arg3[%c0_2, %c0_3] : memref<32x576xbf16, #tpu.memory_space<vmem>>, vector<32x576xbf16>
    %c0_4 = arith.constant 0 : index
    %c0_5 = arith.constant 0 : index
    %5 = vector.load %arg4[%c0_4, %c0_5] : memref<576x256xbf16, #tpu.memory_space<vmem>>, vector<576x256xbf16>
    %cst = arith.constant dense<0.000000e+00> : vector<32x256xf32>
    %6 = tpu.matmul %4, %5, %cst {dimension_numbers = #tpu.dot_dimension_numbers<[1], [0], [0], [1], [0, 0, 1, 1], [], []>} : vector<32x576xbf16>, vector<576x256xbf16>, vector<32x256xf32> -> vector<32x256xf32>
    %7 = arith.addf %3, %6 : vector<32x256xf32>
    %c0_6 = arith.constant 0 : index
    %c0_7 = arith.constant 0 : index
    %8 = vector.load %arg6[%c0_6, %c0_7] : memref<32x256xf32, #tpu.memory_space<vmem>>, vector<32x256xf32>
    tpu.vector_store %arg6[%c0_6, %c0_7], %7 {strides = array<i32>} : memref<32x256xf32, #tpu.memory_space<vmem>>, vector<32x256xf32>,
    %c0_i32_8 = arith.constant 0 : i32
    %9 = arith.cmpi eq, %arg2, %c0_i32_8 : i32
    %10 = arith.extui %9 : i1 to i32
    %c0_i32_9 = arith.constant 0 : i32
    %11 = arith.cmpi ne, %10, %c0_i32_9 : i32
    scf.if %11 {
      %c0_10 = arith.constant 0 : index
      %c0_11 = arith.constant 0 : index
      %12 = vector.load %arg6[%c0_10, %c0_11] : memref<32x256xf32, #tpu.memory_space<vmem>>, vector<32x256xf32>
      %13 = arith.truncf %12 : vector<32x256xf32> to vector<32x256xbf16>
      %c0_12 = arith.constant 0 : index
      %c0_13 = arith.constant 0 : index
      %14 = vector.load %arg5[%c0_12, %c0_13] : memref<32x256xbf16, #tpu.memory_space<vmem>>, vector<32x256xbf16>
      tpu.vector_store %arg5[%c0_12, %c0_13], %13 {strides = array<i32>} : memref<32x256xbf16, #tpu.memory_space<vmem>>, vector<32x256xbf16>,
    } else {
    }
    return
  }
  func.func @transform_0(%arg0: i32, %arg1: i32, %arg2: i32) -> (i32, i32) {
    %c0_i32 = arith.constant 0 : i32
    return %arg0, %arg2 : i32, i32
  }
  func.func @transform_1(%arg0: i32, %arg1: i32, %arg2: i32) -> (i32, i32) {
    %c0_i32 = arith.constant 0 : i32
    return %arg2, %arg1 : i32, i32
  }
  func.func @transform_2(%arg0: i32, %arg1: i32, %arg2: i32) -> (i32, i32) {
    %c0_i32 = arith.constant 0 : i32
    return %arg0, %arg1 : i32, i32
  }
}

module attributes {stable_mosaic.version = 11 : i64} {
  func.func @_colstats_kernel(%arg0: i32, %arg1: memref<32x256xbf16, #tpu.memory_space<vmem>>, %arg2: memref<1x256xf32, #tpu.memory_space<vmem>>, %arg3: memref<1x256xf32, #tpu.memory_space<vmem>>, %arg4: memref<1x256xf32, #tpu.memory_space<vmem>>, %arg5: memref<1x256xf32, #tpu.memory_space<vmem>>) attributes {dimension_semantics = [#tpu.dimension_semantics<arbitrary>], iteration_bounds = array<i64: 1>, scalar_prefetch = 0 : i64, scratch_operands = 2 : i64, tpu.core_type = #tpu.core_type<tc>, window_params = [{transform_indices = @transform_0, window_bounds = array<i64: 32, 256>}, {pipeline_mode = #tpu.pipeline_mode<synchronous>, transform_indices = @transform_1, window_bounds = array<i64: 1, 256>}, {pipeline_mode = #tpu.pipeline_mode<synchronous>, transform_indices = @transform_2, window_bounds = array<i64: 1, 256>}]} {
    %c0_i32 = arith.constant 0 : i32
    %0 = arith.cmpi eq, %arg0, %c0_i32 : i32
    %1 = arith.extui %0 : i1 to i32
    %c0_i32_0 = arith.constant 0 : i32
    %2 = arith.cmpi ne, %1, %c0_i32_0 : i32
    scf.if %2 {
      %cst_13 = arith.constant 0.000000e+00 : f32
      %19 = vector.broadcast %cst_13 : f32 to vector<1x256xf32>
      %c0_14 = arith.constant 0 : index
      %c0_15 = arith.constant 0 : index
      %20 = vector.load %arg4[%c0_14, %c0_15] : memref<1x256xf32, #tpu.memory_space<vmem>>, vector<1x256xf32>
      tpu.vector_store %arg4[%c0_14, %c0_15], %19 {strides = array<i32>} : memref<1x256xf32, #tpu.memory_space<vmem>>, vector<1x256xf32>,
      %cst_16 = arith.constant 0.000000e+00 : f32
      %21 = vector.broadcast %cst_16 : f32 to vector<1x256xf32>
      %c0_17 = arith.constant 0 : index
      %c0_18 = arith.constant 0 : index
      %22 = vector.load %arg5[%c0_17, %c0_18] : memref<1x256xf32, #tpu.memory_space<vmem>>, vector<1x256xf32>
      tpu.vector_store %arg5[%c0_17, %c0_18], %21 {strides = array<i32>} : memref<1x256xf32, #tpu.memory_space<vmem>>, vector<1x256xf32>,
    } else {
    }
    %c0 = arith.constant 0 : index
    %c0_1 = arith.constant 0 : index
    %3 = vector.load %arg1[%c0, %c0_1] : memref<32x256xbf16, #tpu.memory_space<vmem>>, vector<32x256xbf16>
    %4 = arith.extf %3 : vector<32x256xbf16> to vector<32x256xf32>
    %c0_2 = arith.constant 0 : index
    %c0_3 = arith.constant 0 : index
    %5 = vector.load %arg4[%c0_2, %c0_3] : memref<1x256xf32, #tpu.memory_space<vmem>>, vector<1x256xf32>
    %cst = arith.constant dense<0.000000e+00> : vector<256xf32>
    %6 = vector.multi_reduction <add>, %4, %cst [0] : vector<32x256xf32> to vector<256xf32>
    %7 = vector.shape_cast %6 : vector<256xf32> to vector<1x256xf32>
    %8 = arith.addf %5, %7 : vector<1x256xf32>
    %c0_4 = arith.constant 0 : index
    %c0_5 = arith.constant 0 : index
    %9 = vector.load %arg4[%c0_4, %c0_5] : memref<1x256xf32, #tpu.memory_space<vmem>>, vector<1x256xf32>
    tpu.vector_store %arg4[%c0_4, %c0_5], %8 {strides = array<i32>} : memref<1x256xf32, #tpu.memory_space<vmem>>, vector<1x256xf32>,
    %c0_6 = arith.constant 0 : index
    %c0_7 = arith.constant 0 : index
    %10 = vector.load %arg5[%c0_6, %c0_7] : memref<1x256xf32, #tpu.memory_space<vmem>>, vector<1x256xf32>
    %11 = arith.mulf %4, %4 : vector<32x256xf32>
    %cst_8 = arith.constant dense<0.000000e+00> : vector<256xf32>
    %12 = vector.multi_reduction <add>, %11, %cst_8 [0] : vector<32x256xf32> to vector<256xf32>
    %13 = vector.shape_cast %12 : vector<256xf32> to vector<1x256xf32>
    %14 = arith.addf %10, %13 : vector<1x256xf32>
    %c0_9 = arith.constant 0 : index
    %c0_10 = arith.constant 0 : index
    %15 = vector.load %arg5[%c0_9, %c0_10] : memref<1x256xf32, #tpu.memory_space<vmem>>, vector<1x256xf32>
    tpu.vector_store %arg5[%c0_9, %c0_10], %14 {strides = array<i32>} : memref<1x256xf32, #tpu.memory_space<vmem>>, vector<1x256xf32>,
    %c0_i32_11 = arith.constant 0 : i32
    %16 = arith.cmpi eq, %arg0, %c0_i32_11 : i32
    %17 = arith.extui %16 : i1 to i32
    %c0_i32_12 = arith.constant 0 : i32
    %18 = arith.cmpi ne, %17, %c0_i32_12 : i32
    scf.if %18 {
      %c0_13 = arith.constant 0 : index
      %c0_14 = arith.constant 0 : index
      %19 = vector.load %arg4[%c0_13, %c0_14] : memref<1x256xf32, #tpu.memory_space<vmem>>, vector<1x256xf32>
      %c0_15 = arith.constant 0 : index
      %c0_16 = arith.constant 0 : index
      %20 = vector.load %arg2[%c0_15, %c0_16] : memref<1x256xf32, #tpu.memory_space<vmem>>, vector<1x256xf32>
      tpu.vector_store %arg2[%c0_15, %c0_16], %19 {strides = array<i32>} : memref<1x256xf32, #tpu.memory_space<vmem>>, vector<1x256xf32>,
      %c0_17 = arith.constant 0 : index
      %c0_18 = arith.constant 0 : index
      %21 = vector.load %arg5[%c0_17, %c0_18] : memref<1x256xf32, #tpu.memory_space<vmem>>, vector<1x256xf32>
      %c0_19 = arith.constant 0 : index
      %c0_20 = arith.constant 0 : index
      %22 = vector.load %arg3[%c0_19, %c0_20] : memref<1x256xf32, #tpu.memory_space<vmem>>, vector<1x256xf32>
      tpu.vector_store %arg3[%c0_19, %c0_20], %21 {strides = array<i32>} : memref<1x256xf32, #tpu.memory_space<vmem>>, vector<1x256xf32>,
    } else {
    }
    return
  }
  func.func @transform_0(%arg0: i32) -> (i32, i32) {
    %c0_i32 = arith.constant 0 : i32
    %c0_i32_0 = arith.constant 0 : i32
    return %arg0, %c0_i32 : i32, i32
  }
  func.func @transform_1(%arg0: i32) -> (i32, i32) {
    %c0_i32 = arith.constant 0 : i32
    %c0_i32_0 = arith.constant 0 : i32
    %c0_i32_1 = arith.constant 0 : i32
    return %c0_i32, %c0_i32_0 : i32, i32
  }
  func.func @transform_2(%arg0: i32) -> (i32, i32) {
    %c0_i32 = arith.constant 0 : i32
    %c0_i32_0 = arith.constant 0 : i32
    %c0_i32_1 = arith.constant 0 : i32
    return %c0_i32, %c0_i32_0 : i32, i32
  }
}

module attributes {stable_mosaic.version = 11 : i64} {
  func.func @_matmul_kernel(%arg0: i32, %arg1: i32, %arg2: i32, %arg3: memref<128x576xbf16, #tpu.memory_space<vmem>>, %arg4: memref<576x128xbf16, #tpu.memory_space<vmem>>, %arg5: memref<128x128xbf16, #tpu.memory_space<vmem>>, %arg6: memref<128x128xf32, #tpu.memory_space<vmem>>) attributes {dimension_semantics = [#tpu.dimension_semantics<parallel>, #tpu.dimension_semantics<parallel>, #tpu.dimension_semantics<arbitrary>], iteration_bounds = array<i64: 1, 1, 1>, scalar_prefetch = 0 : i64, scratch_operands = 1 : i64, tpu.core_type = #tpu.core_type<tc>, window_params = [{transform_indices = @transform_0, window_bounds = array<i64: 128, 576>}, {transform_indices = @transform_1, window_bounds = array<i64: 576, 128>}, {transform_indices = @transform_2, window_bounds = array<i64: 128, 128>}]} {
    %c0_i32 = arith.constant 0 : i32
    %0 = arith.cmpi eq, %arg2, %c0_i32 : i32
    %1 = arith.extui %0 : i1 to i32
    %c0_i32_0 = arith.constant 0 : i32
    %2 = arith.cmpi ne, %1, %c0_i32_0 : i32
    scf.if %2 {
      %cst_10 = arith.constant 0.000000e+00 : f32
      %12 = vector.broadcast %cst_10 : f32 to vector<128x128xf32>
      %c0_11 = arith.constant 0 : index
      %c0_12 = arith.constant 0 : index
      %13 = vector.load %arg6[%c0_11, %c0_12] : memref<128x128xf32, #tpu.memory_space<vmem>>, vector<128x128xf32>
      tpu.vector_store %arg6[%c0_11, %c0_12], %12 {strides = array<i32>} : memref<128x128xf32, #tpu.memory_space<vmem>>, vector<128x128xf32>,
    } else {
    }
    %c0 = arith.constant 0 : index
    %c0_1 = arith.constant 0 : index
    %3 = vector.load %arg6[%c0, %c0_1] : memref<128x128xf32, #tpu.memory_space<vmem>>, vector<128x128xf32>
    %c0_2 = arith.constant 0 : index
    %c0_3 = arith.constant 0 : index
    %4 = vector.load %arg3[%c0_2, %c0_3] : memref<128x576xbf16, #tpu.memory_space<vmem>>, vector<128x576xbf16>
    %c0_4 = arith.constant 0 : index
    %c0_5 = arith.constant 0 : index
    %5 = vector.load %arg4[%c0_4, %c0_5] : memref<576x128xbf16, #tpu.memory_space<vmem>>, vector<576x128xbf16>
    %cst = arith.constant dense<0.000000e+00> : vector<128x128xf32>
    %6 = tpu.matmul %4, %5, %cst {dimension_numbers = #tpu.dot_dimension_numbers<[1], [0], [0], [1], [0, 0, 1, 1], [], []>} : vector<128x576xbf16>, vector<576x128xbf16>, vector<128x128xf32> -> vector<128x128xf32>
    %7 = arith.addf %3, %6 : vector<128x128xf32>
    %c0_6 = arith.constant 0 : index
    %c0_7 = arith.constant 0 : index
    %8 = vector.load %arg6[%c0_6, %c0_7] : memref<128x128xf32, #tpu.memory_space<vmem>>, vector<128x128xf32>
    tpu.vector_store %arg6[%c0_6, %c0_7], %7 {strides = array<i32>} : memref<128x128xf32, #tpu.memory_space<vmem>>, vector<128x128xf32>,
    %c0_i32_8 = arith.constant 0 : i32
    %9 = arith.cmpi eq, %arg2, %c0_i32_8 : i32
    %10 = arith.extui %9 : i1 to i32
    %c0_i32_9 = arith.constant 0 : i32
    %11 = arith.cmpi ne, %10, %c0_i32_9 : i32
    scf.if %11 {
      %c0_10 = arith.constant 0 : index
      %c0_11 = arith.constant 0 : index
      %12 = vector.load %arg6[%c0_10, %c0_11] : memref<128x128xf32, #tpu.memory_space<vmem>>, vector<128x128xf32>
      %13 = arith.truncf %12 : vector<128x128xf32> to vector<128x128xbf16>
      %c0_12 = arith.constant 0 : index
      %c0_13 = arith.constant 0 : index
      %14 = vector.load %arg5[%c0_12, %c0_13] : memref<128x128xbf16, #tpu.memory_space<vmem>>, vector<128x128xbf16>
      tpu.vector_store %arg5[%c0_12, %c0_13], %13 {strides = array<i32>} : memref<128x128xbf16, #tpu.memory_space<vmem>>, vector<128x128xbf16>,
    } else {
    }
    return
  }
  func.func @transform_0(%arg0: i32, %arg1: i32, %arg2: i32) -> (i32, i32) {
    %c0_i32 = arith.constant 0 : i32
    return %arg0, %arg2 : i32, i32
  }
  func.func @transform_1(%arg0: i32, %arg1: i32, %arg2: i32) -> (i32, i32) {
    %c0_i32 = arith.constant 0 : i32
    return %arg2, %arg1 : i32, i32
  }
  func.func @transform_2(%arg0: i32, %arg1: i32, %arg2: i32) -> (i32, i32) {
    %c0_i32 = arith.constant 0 : i32
    return %arg0, %arg1 : i32, i32
  }
}

module attributes {stable_mosaic.version = 11 : i64} {
  func.func @_colstats_kernel(%arg0: i32, %arg1: memref<128x128xbf16, #tpu.memory_space<vmem>>, %arg2: memref<1x128xf32, #tpu.memory_space<vmem>>, %arg3: memref<1x128xf32, #tpu.memory_space<vmem>>, %arg4: memref<1x128xf32, #tpu.memory_space<vmem>>, %arg5: memref<1x128xf32, #tpu.memory_space<vmem>>) attributes {dimension_semantics = [#tpu.dimension_semantics<arbitrary>], iteration_bounds = array<i64: 1>, scalar_prefetch = 0 : i64, scratch_operands = 2 : i64, tpu.core_type = #tpu.core_type<tc>, window_params = [{transform_indices = @transform_0, window_bounds = array<i64: 128, 128>}, {pipeline_mode = #tpu.pipeline_mode<synchronous>, transform_indices = @transform_1, window_bounds = array<i64: 1, 128>}, {pipeline_mode = #tpu.pipeline_mode<synchronous>, transform_indices = @transform_2, window_bounds = array<i64: 1, 128>}]} {
    %c0_i32 = arith.constant 0 : i32
    %0 = arith.cmpi eq, %arg0, %c0_i32 : i32
    %1 = arith.extui %0 : i1 to i32
    %c0_i32_0 = arith.constant 0 : i32
    %2 = arith.cmpi ne, %1, %c0_i32_0 : i32
    scf.if %2 {
      %cst_13 = arith.constant 0.000000e+00 : f32
      %19 = vector.broadcast %cst_13 : f32 to vector<1x128xf32>
      %c0_14 = arith.constant 0 : index
      %c0_15 = arith.constant 0 : index
      %20 = vector.load %arg4[%c0_14, %c0_15] : memref<1x128xf32, #tpu.memory_space<vmem>>, vector<1x128xf32>
      tpu.vector_store %arg4[%c0_14, %c0_15], %19 {strides = array<i32>} : memref<1x128xf32, #tpu.memory_space<vmem>>, vector<1x128xf32>,
      %cst_16 = arith.constant 0.000000e+00 : f32
      %21 = vector.broadcast %cst_16 : f32 to vector<1x128xf32>
      %c0_17 = arith.constant 0 : index
      %c0_18 = arith.constant 0 : index
      %22 = vector.load %arg5[%c0_17, %c0_18] : memref<1x128xf32, #tpu.memory_space<vmem>>, vector<1x128xf32>
      tpu.vector_store %arg5[%c0_17, %c0_18], %21 {strides = array<i32>} : memref<1x128xf32, #tpu.memory_space<vmem>>, vector<1x128xf32>,
    } else {
    }
    %c0 = arith.constant 0 : index
    %c0_1 = arith.constant 0 : index
    %3 = vector.load %arg1[%c0, %c0_1] : memref<128x128xbf16, #tpu.memory_space<vmem>>, vector<128x128xbf16>
    %4 = arith.extf %3 : vector<128x128xbf16> to vector<128x128xf32>
    %c0_2 = arith.constant 0 : index
    %c0_3 = arith.constant 0 : index
    %5 = vector.load %arg4[%c0_2, %c0_3] : memref<1x128xf32, #tpu.memory_space<vmem>>, vector<1x128xf32>
    %cst = arith.constant dense<0.000000e+00> : vector<128xf32>
    %6 = vector.multi_reduction <add>, %4, %cst [0] : vector<128x128xf32> to vector<128xf32>
    %7 = vector.shape_cast %6 : vector<128xf32> to vector<1x128xf32>
    %8 = arith.addf %5, %7 : vector<1x128xf32>
    %c0_4 = arith.constant 0 : index
    %c0_5 = arith.constant 0 : index
    %9 = vector.load %arg4[%c0_4, %c0_5] : memref<1x128xf32, #tpu.memory_space<vmem>>, vector<1x128xf32>
    tpu.vector_store %arg4[%c0_4, %c0_5], %8 {strides = array<i32>} : memref<1x128xf32, #tpu.memory_space<vmem>>, vector<1x128xf32>,
    %c0_6 = arith.constant 0 : index
    %c0_7 = arith.constant 0 : index
    %10 = vector.load %arg5[%c0_6, %c0_7] : memref<1x128xf32, #tpu.memory_space<vmem>>, vector<1x128xf32>
    %11 = arith.mulf %4, %4 : vector<128x128xf32>
    %cst_8 = arith.constant dense<0.000000e+00> : vector<128xf32>
    %12 = vector.multi_reduction <add>, %11, %cst_8 [0] : vector<128x128xf32> to vector<128xf32>
    %13 = vector.shape_cast %12 : vector<128xf32> to vector<1x128xf32>
    %14 = arith.addf %10, %13 : vector<1x128xf32>
    %c0_9 = arith.constant 0 : index
    %c0_10 = arith.constant 0 : index
    %15 = vector.load %arg5[%c0_9, %c0_10] : memref<1x128xf32, #tpu.memory_space<vmem>>, vector<1x128xf32>
    tpu.vector_store %arg5[%c0_9, %c0_10], %14 {strides = array<i32>} : memref<1x128xf32, #tpu.memory_space<vmem>>, vector<1x128xf32>,
    %c0_i32_11 = arith.constant 0 : i32
    %16 = arith.cmpi eq, %arg0, %c0_i32_11 : i32
    %17 = arith.extui %16 : i1 to i32
    %c0_i32_12 = arith.constant 0 : i32
    %18 = arith.cmpi ne, %17, %c0_i32_12 : i32
    scf.if %18 {
      %c0_13 = arith.constant 0 : index
      %c0_14 = arith.constant 0 : index
      %19 = vector.load %arg4[%c0_13, %c0_14] : memref<1x128xf32, #tpu.memory_space<vmem>>, vector<1x128xf32>
      %c0_15 = arith.constant 0 : index
      %c0_16 = arith.constant 0 : index
      %20 = vector.load %arg2[%c0_15, %c0_16] : memref<1x128xf32, #tpu.memory_space<vmem>>, vector<1x128xf32>
      tpu.vector_store %arg2[%c0_15, %c0_16], %19 {strides = array<i32>} : memref<1x128xf32, #tpu.memory_space<vmem>>, vector<1x128xf32>,
      %c0_17 = arith.constant 0 : index
      %c0_18 = arith.constant 0 : index
      %21 = vector.load %arg5[%c0_17, %c0_18] : memref<1x128xf32, #tpu.memory_space<vmem>>, vector<1x128xf32>
      %c0_19 = arith.constant 0 : index
      %c0_20 = arith.constant 0 : index
      %22 = vector.load %arg3[%c0_19, %c0_20] : memref<1x128xf32, #tpu.memory_space<vmem>>, vector<1x128xf32>
      tpu.vector_store %arg3[%c0_19, %c0_20], %21 {strides = array<i32>} : memref<1x128xf32, #tpu.memory_space<vmem>>, vector<1x128xf32>,
    } else {
    }
    return
  }
  func.func @transform_0(%arg0: i32) -> (i32, i32) {
    %c0_i32 = arith.constant 0 : i32
    %c0_i32_0 = arith.constant 0 : i32
    return %arg0, %c0_i32 : i32, i32
  }
  func.func @transform_1(%arg0: i32) -> (i32, i32) {
    %c0_i32 = arith.constant 0 : i32
    %c0_i32_0 = arith.constant 0 : i32
    %c0_i32_1 = arith.constant 0 : i32
    return %c0_i32, %c0_i32_0 : i32, i32
  }
  func.func @transform_2(%arg0: i32) -> (i32, i32) {
    %c0_i32 = arith.constant 0 : i32
    %c0_i32_0 = arith.constant 0 : i32
    %c0_i32_1 = arith.constant 0 : i32
    return %c0_i32, %c0_i32_0 : i32, i32
  }
}

module attributes {stable_mosaic.version = 11 : i64} {
  func.func @_matmul_kernel(%arg0: i32, %arg1: i32, %arg2: i32, %arg3: memref<512x288xbf16, #tpu.memory_space<vmem>>, %arg4: memref<288x64xbf16, #tpu.memory_space<vmem>>, %arg5: memref<512x64xbf16, #tpu.memory_space<vmem>>, %arg6: memref<512x64xf32, #tpu.memory_space<vmem>>) attributes {dimension_semantics = [#tpu.dimension_semantics<parallel>, #tpu.dimension_semantics<parallel>, #tpu.dimension_semantics<arbitrary>], iteration_bounds = array<i64: 1, 1, 1>, scalar_prefetch = 0 : i64, scratch_operands = 1 : i64, tpu.core_type = #tpu.core_type<tc>, window_params = [{transform_indices = @transform_0, window_bounds = array<i64: 512, 288>}, {transform_indices = @transform_1, window_bounds = array<i64: 288, 64>}, {transform_indices = @transform_2, window_bounds = array<i64: 512, 64>}]} {
    %c0_i32 = arith.constant 0 : i32
    %0 = arith.cmpi eq, %arg2, %c0_i32 : i32
    %1 = arith.extui %0 : i1 to i32
    %c0_i32_0 = arith.constant 0 : i32
    %2 = arith.cmpi ne, %1, %c0_i32_0 : i32
    scf.if %2 {
      %cst_10 = arith.constant 0.000000e+00 : f32
      %12 = vector.broadcast %cst_10 : f32 to vector<512x64xf32>
      %c0_11 = arith.constant 0 : index
      %c0_12 = arith.constant 0 : index
      %13 = vector.load %arg6[%c0_11, %c0_12] : memref<512x64xf32, #tpu.memory_space<vmem>>, vector<512x64xf32>
      tpu.vector_store %arg6[%c0_11, %c0_12], %12 {strides = array<i32>} : memref<512x64xf32, #tpu.memory_space<vmem>>, vector<512x64xf32>,
    } else {
    }
    %c0 = arith.constant 0 : index
    %c0_1 = arith.constant 0 : index
    %3 = vector.load %arg6[%c0, %c0_1] : memref<512x64xf32, #tpu.memory_space<vmem>>, vector<512x64xf32>
    %c0_2 = arith.constant 0 : index
    %c0_3 = arith.constant 0 : index
    %4 = vector.load %arg3[%c0_2, %c0_3] : memref<512x288xbf16, #tpu.memory_space<vmem>>, vector<512x288xbf16>
    %c0_4 = arith.constant 0 : index
    %c0_5 = arith.constant 0 : index
    %5 = vector.load %arg4[%c0_4, %c0_5] : memref<288x64xbf16, #tpu.memory_space<vmem>>, vector<288x64xbf16>
    %cst = arith.constant dense<0.000000e+00> : vector<512x64xf32>
    %6 = tpu.matmul %4, %5, %cst {dimension_numbers = #tpu.dot_dimension_numbers<[1], [0], [0], [1], [0, 0, 1, 1], [], []>} : vector<512x288xbf16>, vector<288x64xbf16>, vector<512x64xf32> -> vector<512x64xf32>
    %7 = arith.addf %3, %6 : vector<512x64xf32>
    %c0_6 = arith.constant 0 : index
    %c0_7 = arith.constant 0 : index
    %8 = vector.load %arg6[%c0_6, %c0_7] : memref<512x64xf32, #tpu.memory_space<vmem>>, vector<512x64xf32>
    tpu.vector_store %arg6[%c0_6, %c0_7], %7 {strides = array<i32>} : memref<512x64xf32, #tpu.memory_space<vmem>>, vector<512x64xf32>,
    %c0_i32_8 = arith.constant 0 : i32
    %9 = arith.cmpi eq, %arg2, %c0_i32_8 : i32
    %10 = arith.extui %9 : i1 to i32
    %c0_i32_9 = arith.constant 0 : i32
    %11 = arith.cmpi ne, %10, %c0_i32_9 : i32
    scf.if %11 {
      %c0_10 = arith.constant 0 : index
      %c0_11 = arith.constant 0 : index
      %12 = vector.load %arg6[%c0_10, %c0_11] : memref<512x64xf32, #tpu.memory_space<vmem>>, vector<512x64xf32>
      %13 = arith.truncf %12 : vector<512x64xf32> to vector<512x64xbf16>
      %c0_12 = arith.constant 0 : index
      %c0_13 = arith.constant 0 : index
      %14 = vector.load %arg5[%c0_12, %c0_13] : memref<512x64xbf16, #tpu.memory_space<vmem>>, vector<512x64xbf16>
      tpu.vector_store %arg5[%c0_12, %c0_13], %13 {strides = array<i32>} : memref<512x64xbf16, #tpu.memory_space<vmem>>, vector<512x64xbf16>,
    } else {
    }
    return
  }
  func.func @transform_0(%arg0: i32, %arg1: i32, %arg2: i32) -> (i32, i32) {
    %c0_i32 = arith.constant 0 : i32
    return %arg0, %arg2 : i32, i32
  }
  func.func @transform_1(%arg0: i32, %arg1: i32, %arg2: i32) -> (i32, i32) {
    %c0_i32 = arith.constant 0 : i32
    return %arg2, %arg1 : i32, i32
  }
  func.func @transform_2(%arg0: i32, %arg1: i32, %arg2: i32) -> (i32, i32) {
    %c0_i32 = arith.constant 0 : i32
    return %arg0, %arg1 : i32, i32
  }
}

module attributes {stable_mosaic.version = 11 : i64} {
  func.func @_colstats_kernel(%arg0: i32, %arg1: memref<512x64xbf16, #tpu.memory_space<vmem>>, %arg2: memref<1x64xf32, #tpu.memory_space<vmem>>, %arg3: memref<1x64xf32, #tpu.memory_space<vmem>>, %arg4: memref<1x64xf32, #tpu.memory_space<vmem>>, %arg5: memref<1x64xf32, #tpu.memory_space<vmem>>) attributes {dimension_semantics = [#tpu.dimension_semantics<arbitrary>], iteration_bounds = array<i64: 1>, scalar_prefetch = 0 : i64, scratch_operands = 2 : i64, tpu.core_type = #tpu.core_type<tc>, window_params = [{transform_indices = @transform_0, window_bounds = array<i64: 512, 64>}, {pipeline_mode = #tpu.pipeline_mode<synchronous>, transform_indices = @transform_1, window_bounds = array<i64: 1, 64>}, {pipeline_mode = #tpu.pipeline_mode<synchronous>, transform_indices = @transform_2, window_bounds = array<i64: 1, 64>}]} {
    %c0_i32 = arith.constant 0 : i32
    %0 = arith.cmpi eq, %arg0, %c0_i32 : i32
    %1 = arith.extui %0 : i1 to i32
    %c0_i32_0 = arith.constant 0 : i32
    %2 = arith.cmpi ne, %1, %c0_i32_0 : i32
    scf.if %2 {
      %cst_13 = arith.constant 0.000000e+00 : f32
      %19 = vector.broadcast %cst_13 : f32 to vector<1x64xf32>
      %c0_14 = arith.constant 0 : index
      %c0_15 = arith.constant 0 : index
      %20 = vector.load %arg4[%c0_14, %c0_15] : memref<1x64xf32, #tpu.memory_space<vmem>>, vector<1x64xf32>
      tpu.vector_store %arg4[%c0_14, %c0_15], %19 {strides = array<i32>} : memref<1x64xf32, #tpu.memory_space<vmem>>, vector<1x64xf32>,
      %cst_16 = arith.constant 0.000000e+00 : f32
      %21 = vector.broadcast %cst_16 : f32 to vector<1x64xf32>
      %c0_17 = arith.constant 0 : index
      %c0_18 = arith.constant 0 : index
      %22 = vector.load %arg5[%c0_17, %c0_18] : memref<1x64xf32, #tpu.memory_space<vmem>>, vector<1x64xf32>
      tpu.vector_store %arg5[%c0_17, %c0_18], %21 {strides = array<i32>} : memref<1x64xf32, #tpu.memory_space<vmem>>, vector<1x64xf32>,
    } else {
    }
    %c0 = arith.constant 0 : index
    %c0_1 = arith.constant 0 : index
    %3 = vector.load %arg1[%c0, %c0_1] : memref<512x64xbf16, #tpu.memory_space<vmem>>, vector<512x64xbf16>
    %4 = arith.extf %3 : vector<512x64xbf16> to vector<512x64xf32>
    %c0_2 = arith.constant 0 : index
    %c0_3 = arith.constant 0 : index
    %5 = vector.load %arg4[%c0_2, %c0_3] : memref<1x64xf32, #tpu.memory_space<vmem>>, vector<1x64xf32>
    %cst = arith.constant dense<0.000000e+00> : vector<64xf32>
    %6 = vector.multi_reduction <add>, %4, %cst [0] : vector<512x64xf32> to vector<64xf32>
    %7 = vector.shape_cast %6 : vector<64xf32> to vector<1x64xf32>
    %8 = arith.addf %5, %7 : vector<1x64xf32>
    %c0_4 = arith.constant 0 : index
    %c0_5 = arith.constant 0 : index
    %9 = vector.load %arg4[%c0_4, %c0_5] : memref<1x64xf32, #tpu.memory_space<vmem>>, vector<1x64xf32>
    tpu.vector_store %arg4[%c0_4, %c0_5], %8 {strides = array<i32>} : memref<1x64xf32, #tpu.memory_space<vmem>>, vector<1x64xf32>,
    %c0_6 = arith.constant 0 : index
    %c0_7 = arith.constant 0 : index
    %10 = vector.load %arg5[%c0_6, %c0_7] : memref<1x64xf32, #tpu.memory_space<vmem>>, vector<1x64xf32>
    %11 = arith.mulf %4, %4 : vector<512x64xf32>
    %cst_8 = arith.constant dense<0.000000e+00> : vector<64xf32>
    %12 = vector.multi_reduction <add>, %11, %cst_8 [0] : vector<512x64xf32> to vector<64xf32>
    %13 = vector.shape_cast %12 : vector<64xf32> to vector<1x64xf32>
    %14 = arith.addf %10, %13 : vector<1x64xf32>
    %c0_9 = arith.constant 0 : index
    %c0_10 = arith.constant 0 : index
    %15 = vector.load %arg5[%c0_9, %c0_10] : memref<1x64xf32, #tpu.memory_space<vmem>>, vector<1x64xf32>
    tpu.vector_store %arg5[%c0_9, %c0_10], %14 {strides = array<i32>} : memref<1x64xf32, #tpu.memory_space<vmem>>, vector<1x64xf32>,
    %c0_i32_11 = arith.constant 0 : i32
    %16 = arith.cmpi eq, %arg0, %c0_i32_11 : i32
    %17 = arith.extui %16 : i1 to i32
    %c0_i32_12 = arith.constant 0 : i32
    %18 = arith.cmpi ne, %17, %c0_i32_12 : i32
    scf.if %18 {
      %c0_13 = arith.constant 0 : index
      %c0_14 = arith.constant 0 : index
      %19 = vector.load %arg4[%c0_13, %c0_14] : memref<1x64xf32, #tpu.memory_space<vmem>>, vector<1x64xf32>
      %c0_15 = arith.constant 0 : index
      %c0_16 = arith.constant 0 : index
      %20 = vector.load %arg2[%c0_15, %c0_16] : memref<1x64xf32, #tpu.memory_space<vmem>>, vector<1x64xf32>
      tpu.vector_store %arg2[%c0_15, %c0_16], %19 {strides = array<i32>} : memref<1x64xf32, #tpu.memory_space<vmem>>, vector<1x64xf32>,
      %c0_17 = arith.constant 0 : index
      %c0_18 = arith.constant 0 : index
      %21 = vector.load %arg5[%c0_17, %c0_18] : memref<1x64xf32, #tpu.memory_space<vmem>>, vector<1x64xf32>
      %c0_19 = arith.constant 0 : index
      %c0_20 = arith.constant 0 : index
      %22 = vector.load %arg3[%c0_19, %c0_20] : memref<1x64xf32, #tpu.memory_space<vmem>>, vector<1x64xf32>
      tpu.vector_store %arg3[%c0_19, %c0_20], %21 {strides = array<i32>} : memref<1x64xf32, #tpu.memory_space<vmem>>, vector<1x64xf32>,
    } else {
    }
    return
  }
  func.func @transform_0(%arg0: i32) -> (i32, i32) {
    %c0_i32 = arith.constant 0 : i32
    %c0_i32_0 = arith.constant 0 : i32
    return %arg0, %c0_i32 : i32, i32
  }
  func.func @transform_1(%arg0: i32) -> (i32, i32) {
    %c0_i32 = arith.constant 0 : i32
    %c0_i32_0 = arith.constant 0 : i32
    %c0_i32_1 = arith.constant 0 : i32
    return %c0_i32, %c0_i32_0 : i32, i32
  }
  func.func @transform_2(%arg0: i32) -> (i32, i32) {
    %c0_i32 = arith.constant 0 : i32
    %c0_i32_0 = arith.constant 0 : i32
    %c0_i32_1 = arith.constant 0 : i32
    return %c0_i32, %c0_i32_0 : i32, i32
  }
}

module attributes {stable_mosaic.version = 11 : i64} {
  func.func @_matmul_kernel(%arg0: i32, %arg1: i32, %arg2: i32, %arg3: memref<512x144xbf16, #tpu.memory_space<vmem>>, %arg4: memref<144x32xbf16, #tpu.memory_space<vmem>>, %arg5: memref<512x32xbf16, #tpu.memory_space<vmem>>, %arg6: memref<512x32xf32, #tpu.memory_space<vmem>>) attributes {dimension_semantics = [#tpu.dimension_semantics<parallel>, #tpu.dimension_semantics<parallel>, #tpu.dimension_semantics<arbitrary>], iteration_bounds = array<i64: 4, 1, 1>, scalar_prefetch = 0 : i64, scratch_operands = 1 : i64, tpu.core_type = #tpu.core_type<tc>, window_params = [{transform_indices = @transform_0, window_bounds = array<i64: 512, 144>}, {transform_indices = @transform_1, window_bounds = array<i64: 144, 32>}, {transform_indices = @transform_2, window_bounds = array<i64: 512, 32>}]} {
    %c0_i32 = arith.constant 0 : i32
    %0 = arith.cmpi eq, %arg2, %c0_i32 : i32
    %1 = arith.extui %0 : i1 to i32
    %c0_i32_0 = arith.constant 0 : i32
    %2 = arith.cmpi ne, %1, %c0_i32_0 : i32
    scf.if %2 {
      %cst_10 = arith.constant 0.000000e+00 : f32
      %12 = vector.broadcast %cst_10 : f32 to vector<512x32xf32>
      %c0_11 = arith.constant 0 : index
      %c0_12 = arith.constant 0 : index
      %13 = vector.load %arg6[%c0_11, %c0_12] : memref<512x32xf32, #tpu.memory_space<vmem>>, vector<512x32xf32>
      tpu.vector_store %arg6[%c0_11, %c0_12], %12 {strides = array<i32>} : memref<512x32xf32, #tpu.memory_space<vmem>>, vector<512x32xf32>,
    } else {
    }
    %c0 = arith.constant 0 : index
    %c0_1 = arith.constant 0 : index
    %3 = vector.load %arg6[%c0, %c0_1] : memref<512x32xf32, #tpu.memory_space<vmem>>, vector<512x32xf32>
    %c0_2 = arith.constant 0 : index
    %c0_3 = arith.constant 0 : index
    %4 = vector.load %arg3[%c0_2, %c0_3] : memref<512x144xbf16, #tpu.memory_space<vmem>>, vector<512x144xbf16>
    %c0_4 = arith.constant 0 : index
    %c0_5 = arith.constant 0 : index
    %5 = vector.load %arg4[%c0_4, %c0_5] : memref<144x32xbf16, #tpu.memory_space<vmem>>, vector<144x32xbf16>
    %cst = arith.constant dense<0.000000e+00> : vector<512x32xf32>
    %6 = tpu.matmul %4, %5, %cst {dimension_numbers = #tpu.dot_dimension_numbers<[1], [0], [0], [1], [0, 0, 1, 1], [], []>} : vector<512x144xbf16>, vector<144x32xbf16>, vector<512x32xf32> -> vector<512x32xf32>
    %7 = arith.addf %3, %6 : vector<512x32xf32>
    %c0_6 = arith.constant 0 : index
    %c0_7 = arith.constant 0 : index
    %8 = vector.load %arg6[%c0_6, %c0_7] : memref<512x32xf32, #tpu.memory_space<vmem>>, vector<512x32xf32>
    tpu.vector_store %arg6[%c0_6, %c0_7], %7 {strides = array<i32>} : memref<512x32xf32, #tpu.memory_space<vmem>>, vector<512x32xf32>,
    %c0_i32_8 = arith.constant 0 : i32
    %9 = arith.cmpi eq, %arg2, %c0_i32_8 : i32
    %10 = arith.extui %9 : i1 to i32
    %c0_i32_9 = arith.constant 0 : i32
    %11 = arith.cmpi ne, %10, %c0_i32_9 : i32
    scf.if %11 {
      %c0_10 = arith.constant 0 : index
      %c0_11 = arith.constant 0 : index
      %12 = vector.load %arg6[%c0_10, %c0_11] : memref<512x32xf32, #tpu.memory_space<vmem>>, vector<512x32xf32>
      %13 = arith.truncf %12 : vector<512x32xf32> to vector<512x32xbf16>
      %c0_12 = arith.constant 0 : index
      %c0_13 = arith.constant 0 : index
      %14 = vector.load %arg5[%c0_12, %c0_13] : memref<512x32xbf16, #tpu.memory_space<vmem>>, vector<512x32xbf16>
      tpu.vector_store %arg5[%c0_12, %c0_13], %13 {strides = array<i32>} : memref<512x32xbf16, #tpu.memory_space<vmem>>, vector<512x32xbf16>,
    } else {
    }
    return
  }
  func.func @transform_0(%arg0: i32, %arg1: i32, %arg2: i32) -> (i32, i32) {
    %c0_i32 = arith.constant 0 : i32
    return %arg0, %arg2 : i32, i32
  }
  func.func @transform_1(%arg0: i32, %arg1: i32, %arg2: i32) -> (i32, i32) {
    %c0_i32 = arith.constant 0 : i32
    return %arg2, %arg1 : i32, i32
  }
  func.func @transform_2(%arg0: i32, %arg1: i32, %arg2: i32) -> (i32, i32) {
    %c0_i32 = arith.constant 0 : i32
    return %arg0, %arg1 : i32, i32
  }
}

module attributes {stable_mosaic.version = 11 : i64} {
  func.func @_colstats_kernel(%arg0: i32, %arg1: memref<512x32xbf16, #tpu.memory_space<vmem>>, %arg2: memref<1x32xf32, #tpu.memory_space<vmem>>, %arg3: memref<1x32xf32, #tpu.memory_space<vmem>>, %arg4: memref<1x32xf32, #tpu.memory_space<vmem>>, %arg5: memref<1x32xf32, #tpu.memory_space<vmem>>) attributes {dimension_semantics = [#tpu.dimension_semantics<arbitrary>], iteration_bounds = array<i64: 4>, scalar_prefetch = 0 : i64, scratch_operands = 2 : i64, tpu.core_type = #tpu.core_type<tc>, window_params = [{transform_indices = @transform_0, window_bounds = array<i64: 512, 32>}, {pipeline_mode = #tpu.pipeline_mode<synchronous>, transform_indices = @transform_1, window_bounds = array<i64: 1, 32>}, {pipeline_mode = #tpu.pipeline_mode<synchronous>, transform_indices = @transform_2, window_bounds = array<i64: 1, 32>}]} {
    %c0_i32 = arith.constant 0 : i32
    %0 = arith.cmpi eq, %arg0, %c0_i32 : i32
    %1 = arith.extui %0 : i1 to i32
    %c0_i32_0 = arith.constant 0 : i32
    %2 = arith.cmpi ne, %1, %c0_i32_0 : i32
    scf.if %2 {
      %cst_12 = arith.constant 0.000000e+00 : f32
      %19 = vector.broadcast %cst_12 : f32 to vector<1x32xf32>
      %c0_13 = arith.constant 0 : index
      %c0_14 = arith.constant 0 : index
      %20 = vector.load %arg4[%c0_13, %c0_14] : memref<1x32xf32, #tpu.memory_space<vmem>>, vector<1x32xf32>
      tpu.vector_store %arg4[%c0_13, %c0_14], %19 {strides = array<i32>} : memref<1x32xf32, #tpu.memory_space<vmem>>, vector<1x32xf32>,
      %cst_15 = arith.constant 0.000000e+00 : f32
      %21 = vector.broadcast %cst_15 : f32 to vector<1x32xf32>
      %c0_16 = arith.constant 0 : index
      %c0_17 = arith.constant 0 : index
      %22 = vector.load %arg5[%c0_16, %c0_17] : memref<1x32xf32, #tpu.memory_space<vmem>>, vector<1x32xf32>
      tpu.vector_store %arg5[%c0_16, %c0_17], %21 {strides = array<i32>} : memref<1x32xf32, #tpu.memory_space<vmem>>, vector<1x32xf32>,
    } else {
    }
    %c0 = arith.constant 0 : index
    %c0_1 = arith.constant 0 : index
    %3 = vector.load %arg1[%c0, %c0_1] : memref<512x32xbf16, #tpu.memory_space<vmem>>, vector<512x32xbf16>
    %4 = arith.extf %3 : vector<512x32xbf16> to vector<512x32xf32>
    %c0_2 = arith.constant 0 : index
    %c0_3 = arith.constant 0 : index
    %5 = vector.load %arg4[%c0_2, %c0_3] : memref<1x32xf32, #tpu.memory_space<vmem>>, vector<1x32xf32>
    %cst = arith.constant dense<0.000000e+00> : vector<32xf32>
    %6 = vector.multi_reduction <add>, %4, %cst [0] : vector<512x32xf32> to vector<32xf32>
    %7 = vector.shape_cast %6 : vector<32xf32> to vector<1x32xf32>
    %8 = arith.addf %5, %7 : vector<1x32xf32>
    %c0_4 = arith.constant 0 : index
    %c0_5 = arith.constant 0 : index
    %9 = vector.load %arg4[%c0_4, %c0_5] : memref<1x32xf32, #tpu.memory_space<vmem>>, vector<1x32xf32>
    tpu.vector_store %arg4[%c0_4, %c0_5], %8 {strides = array<i32>} : memref<1x32xf32, #tpu.memory_space<vmem>>, vector<1x32xf32>,
    %c0_6 = arith.constant 0 : index
    %c0_7 = arith.constant 0 : index
    %10 = vector.load %arg5[%c0_6, %c0_7] : memref<1x32xf32, #tpu.memory_space<vmem>>, vector<1x32xf32>
    %11 = arith.mulf %4, %4 : vector<512x32xf32>
    %cst_8 = arith.constant dense<0.000000e+00> : vector<32xf32>
    %12 = vector.multi_reduction <add>, %11, %cst_8 [0] : vector<512x32xf32> to vector<32xf32>
    %13 = vector.shape_cast %12 : vector<32xf32> to vector<1x32xf32>
    %14 = arith.addf %10, %13 : vector<1x32xf32>
    %c0_9 = arith.constant 0 : index
    %c0_10 = arith.constant 0 : index
    %15 = vector.load %arg5[%c0_9, %c0_10] : memref<1x32xf32, #tpu.memory_space<vmem>>, vector<1x32xf32>
    tpu.vector_store %arg5[%c0_9, %c0_10], %14 {strides = array<i32>} : memref<1x32xf32, #tpu.memory_space<vmem>>, vector<1x32xf32>,
    %c3_i32 = arith.constant 3 : i32
    %16 = arith.cmpi eq, %arg0, %c3_i32 : i32
    %17 = arith.extui %16 : i1 to i32
    %c0_i32_11 = arith.constant 0 : i32
    %18 = arith.cmpi ne, %17, %c0_i32_11 : i32
    scf.if %18 {
      %c0_12 = arith.constant 0 : index
      %c0_13 = arith.constant 0 : index
      %19 = vector.load %arg4[%c0_12, %c0_13] : memref<1x32xf32, #tpu.memory_space<vmem>>, vector<1x32xf32>
      %c0_14 = arith.constant 0 : index
      %c0_15 = arith.constant 0 : index
      %20 = vector.load %arg2[%c0_14, %c0_15] : memref<1x32xf32, #tpu.memory_space<vmem>>, vector<1x32xf32>
      tpu.vector_store %arg2[%c0_14, %c0_15], %19 {strides = array<i32>} : memref<1x32xf32, #tpu.memory_space<vmem>>, vector<1x32xf32>,
      %c0_16 = arith.constant 0 : index
      %c0_17 = arith.constant 0 : index
      %21 = vector.load %arg5[%c0_16, %c0_17] : memref<1x32xf32, #tpu.memory_space<vmem>>, vector<1x32xf32>
      %c0_18 = arith.constant 0 : index
      %c0_19 = arith.constant 0 : index
      %22 = vector.load %arg3[%c0_18, %c0_19] : memref<1x32xf32, #tpu.memory_space<vmem>>, vector<1x32xf32>
      tpu.vector_store %arg3[%c0_18, %c0_19], %21 {strides = array<i32>} : memref<1x32xf32, #tpu.memory_space<vmem>>, vector<1x32xf32>,
    } else {
    }
    return
  }
  func.func @transform_0(%arg0: i32) -> (i32, i32) {
    %c0_i32 = arith.constant 0 : i32
    %c0_i32_0 = arith.constant 0 : i32
    return %arg0, %c0_i32 : i32, i32
  }
  func.func @transform_1(%arg0: i32) -> (i32, i32) {
    %c0_i32 = arith.constant 0 : i32
    %c0_i32_0 = arith.constant 0 : i32
    %c0_i32_1 = arith.constant 0 : i32
    return %c0_i32, %c0_i32_0 : i32, i32
  }
  func.func @transform_2(%arg0: i32) -> (i32, i32) {
    %c0_i32 = arith.constant 0 : i32
    %c0_i32_0 = arith.constant 0 : i32
    %c0_i32_1 = arith.constant 0 : i32
    return %c0_i32, %c0_i32_0 : i32, i32
  }
}

module attributes {stable_mosaic.version = 11 : i64} {
  func.func @_matmul_kernel(%arg0: i32, %arg1: i32, %arg2: i32, %arg3: memref<512x72xbf16, #tpu.memory_space<vmem>>, %arg4: memref<72x8xbf16, #tpu.memory_space<vmem>>, %arg5: memref<512x8xbf16, #tpu.memory_space<vmem>>, %arg6: memref<512x8xf32, #tpu.memory_space<vmem>>) attributes {dimension_semantics = [#tpu.dimension_semantics<parallel>, #tpu.dimension_semantics<parallel>, #tpu.dimension_semantics<arbitrary>], iteration_bounds = array<i64: 16, 1, 1>, scalar_prefetch = 0 : i64, scratch_operands = 1 : i64, tpu.core_type = #tpu.core_type<tc>, window_params = [{transform_indices = @transform_0, window_bounds = array<i64: 512, 72>}, {transform_indices = @transform_1, window_bounds = array<i64: 72, 8>}, {transform_indices = @transform_2, window_bounds = array<i64: 512, 8>}]} {
    %c0_i32 = arith.constant 0 : i32
    %0 = arith.cmpi eq, %arg2, %c0_i32 : i32
    %1 = arith.extui %0 : i1 to i32
    %c0_i32_0 = arith.constant 0 : i32
    %2 = arith.cmpi ne, %1, %c0_i32_0 : i32
    scf.if %2 {
      %cst_10 = arith.constant 0.000000e+00 : f32
      %12 = vector.broadcast %cst_10 : f32 to vector<512x8xf32>
      %c0_11 = arith.constant 0 : index
      %c0_12 = arith.constant 0 : index
      %13 = vector.load %arg6[%c0_11, %c0_12] : memref<512x8xf32, #tpu.memory_space<vmem>>, vector<512x8xf32>
      tpu.vector_store %arg6[%c0_11, %c0_12], %12 {strides = array<i32>} : memref<512x8xf32, #tpu.memory_space<vmem>>, vector<512x8xf32>,
    } else {
    }
    %c0 = arith.constant 0 : index
    %c0_1 = arith.constant 0 : index
    %3 = vector.load %arg6[%c0, %c0_1] : memref<512x8xf32, #tpu.memory_space<vmem>>, vector<512x8xf32>
    %c0_2 = arith.constant 0 : index
    %c0_3 = arith.constant 0 : index
    %4 = vector.load %arg3[%c0_2, %c0_3] : memref<512x72xbf16, #tpu.memory_space<vmem>>, vector<512x72xbf16>
    %c0_4 = arith.constant 0 : index
    %c0_5 = arith.constant 0 : index
    %5 = vector.load %arg4[%c0_4, %c0_5] : memref<72x8xbf16, #tpu.memory_space<vmem>>, vector<72x8xbf16>
    %cst = arith.constant dense<0.000000e+00> : vector<512x8xf32>
    %6 = tpu.matmul %4, %5, %cst {dimension_numbers = #tpu.dot_dimension_numbers<[1], [0], [0], [1], [0, 0, 1, 1], [], []>} : vector<512x72xbf16>, vector<72x8xbf16>, vector<512x8xf32> -> vector<512x8xf32>
    %7 = arith.addf %3, %6 : vector<512x8xf32>
    %c0_6 = arith.constant 0 : index
    %c0_7 = arith.constant 0 : index
    %8 = vector.load %arg6[%c0_6, %c0_7] : memref<512x8xf32, #tpu.memory_space<vmem>>, vector<512x8xf32>
    tpu.vector_store %arg6[%c0_6, %c0_7], %7 {strides = array<i32>} : memref<512x8xf32, #tpu.memory_space<vmem>>, vector<512x8xf32>,
    %c0_i32_8 = arith.constant 0 : i32
    %9 = arith.cmpi eq, %arg2, %c0_i32_8 : i32
    %10 = arith.extui %9 : i1 to i32
    %c0_i32_9 = arith.constant 0 : i32
    %11 = arith.cmpi ne, %10, %c0_i32_9 : i32
    scf.if %11 {
      %c0_10 = arith.constant 0 : index
      %c0_11 = arith.constant 0 : index
      %12 = vector.load %arg6[%c0_10, %c0_11] : memref<512x8xf32, #tpu.memory_space<vmem>>, vector<512x8xf32>
      %13 = arith.truncf %12 : vector<512x8xf32> to vector<512x8xbf16>
      %c0_12 = arith.constant 0 : index
      %c0_13 = arith.constant 0 : index
      %14 = vector.load %arg5[%c0_12, %c0_13] : memref<512x8xbf16, #tpu.memory_space<vmem>>, vector<512x8xbf16>
      tpu.vector_store %arg5[%c0_12, %c0_13], %13 {strides = array<i32>} : memref<512x8xbf16, #tpu.memory_space<vmem>>, vector<512x8xbf16>,
    } else {
    }
    return
  }
  func.func @transform_0(%arg0: i32, %arg1: i32, %arg2: i32) -> (i32, i32) {
    %c0_i32 = arith.constant 0 : i32
    return %arg0, %arg2 : i32, i32
  }
  func.func @transform_1(%arg0: i32, %arg1: i32, %arg2: i32) -> (i32, i32) {
    %c0_i32 = arith.constant 0 : i32
    return %arg2, %arg1 : i32, i32
  }
  func.func @transform_2(%arg0: i32, %arg1: i32, %arg2: i32) -> (i32, i32) {
    %c0_i32 = arith.constant 0 : i32
    return %arg0, %arg1 : i32, i32
  }
}

module attributes {stable_mosaic.version = 11 : i64} {
  func.func @_colstats_kernel(%arg0: i32, %arg1: memref<512x8xbf16, #tpu.memory_space<vmem>>, %arg2: memref<1x8xf32, #tpu.memory_space<vmem>>, %arg3: memref<1x8xf32, #tpu.memory_space<vmem>>, %arg4: memref<1x8xf32, #tpu.memory_space<vmem>>, %arg5: memref<1x8xf32, #tpu.memory_space<vmem>>) attributes {dimension_semantics = [#tpu.dimension_semantics<arbitrary>], iteration_bounds = array<i64: 16>, scalar_prefetch = 0 : i64, scratch_operands = 2 : i64, tpu.core_type = #tpu.core_type<tc>, window_params = [{transform_indices = @transform_0, window_bounds = array<i64: 512, 8>}, {pipeline_mode = #tpu.pipeline_mode<synchronous>, transform_indices = @transform_1, window_bounds = array<i64: 1, 8>}, {pipeline_mode = #tpu.pipeline_mode<synchronous>, transform_indices = @transform_2, window_bounds = array<i64: 1, 8>}]} {
    %c0_i32 = arith.constant 0 : i32
    %0 = arith.cmpi eq, %arg0, %c0_i32 : i32
    %1 = arith.extui %0 : i1 to i32
    %c0_i32_0 = arith.constant 0 : i32
    %2 = arith.cmpi ne, %1, %c0_i32_0 : i32
    scf.if %2 {
      %cst_12 = arith.constant 0.000000e+00 : f32
      %19 = vector.broadcast %cst_12 : f32 to vector<1x8xf32>
      %c0_13 = arith.constant 0 : index
      %c0_14 = arith.constant 0 : index
      %20 = vector.load %arg4[%c0_13, %c0_14] : memref<1x8xf32, #tpu.memory_space<vmem>>, vector<1x8xf32>
      tpu.vector_store %arg4[%c0_13, %c0_14], %19 {strides = array<i32>} : memref<1x8xf32, #tpu.memory_space<vmem>>, vector<1x8xf32>,
      %cst_15 = arith.constant 0.000000e+00 : f32
      %21 = vector.broadcast %cst_15 : f32 to vector<1x8xf32>
      %c0_16 = arith.constant 0 : index
      %c0_17 = arith.constant 0 : index
      %22 = vector.load %arg5[%c0_16, %c0_17] : memref<1x8xf32, #tpu.memory_space<vmem>>, vector<1x8xf32>
      tpu.vector_store %arg5[%c0_16, %c0_17], %21 {strides = array<i32>} : memref<1x8xf32, #tpu.memory_space<vmem>>, vector<1x8xf32>,
    } else {
    }
    %c0 = arith.constant 0 : index
    %c0_1 = arith.constant 0 : index
    %3 = vector.load %arg1[%c0, %c0_1] : memref<512x8xbf16, #tpu.memory_space<vmem>>, vector<512x8xbf16>
    %4 = arith.extf %3 : vector<512x8xbf16> to vector<512x8xf32>
    %c0_2 = arith.constant 0 : index
    %c0_3 = arith.constant 0 : index
    %5 = vector.load %arg4[%c0_2, %c0_3] : memref<1x8xf32, #tpu.memory_space<vmem>>, vector<1x8xf32>
    %cst = arith.constant dense<0.000000e+00> : vector<8xf32>
    %6 = vector.multi_reduction <add>, %4, %cst [0] : vector<512x8xf32> to vector<8xf32>
    %7 = vector.shape_cast %6 : vector<8xf32> to vector<1x8xf32>
    %8 = arith.addf %5, %7 : vector<1x8xf32>
    %c0_4 = arith.constant 0 : index
    %c0_5 = arith.constant 0 : index
    %9 = vector.load %arg4[%c0_4, %c0_5] : memref<1x8xf32, #tpu.memory_space<vmem>>, vector<1x8xf32>
    tpu.vector_store %arg4[%c0_4, %c0_5], %8 {strides = array<i32>} : memref<1x8xf32, #tpu.memory_space<vmem>>, vector<1x8xf32>,
    %c0_6 = arith.constant 0 : index
    %c0_7 = arith.constant 0 : index
    %10 = vector.load %arg5[%c0_6, %c0_7] : memref<1x8xf32, #tpu.memory_space<vmem>>, vector<1x8xf32>
    %11 = arith.mulf %4, %4 : vector<512x8xf32>
    %cst_8 = arith.constant dense<0.000000e+00> : vector<8xf32>
    %12 = vector.multi_reduction <add>, %11, %cst_8 [0] : vector<512x8xf32> to vector<8xf32>
    %13 = vector.shape_cast %12 : vector<8xf32> to vector<1x8xf32>
    %14 = arith.addf %10, %13 : vector<1x8xf32>
    %c0_9 = arith.constant 0 : index
    %c0_10 = arith.constant 0 : index
    %15 = vector.load %arg5[%c0_9, %c0_10] : memref<1x8xf32, #tpu.memory_space<vmem>>, vector<1x8xf32>
    tpu.vector_store %arg5[%c0_9, %c0_10], %14 {strides = array<i32>} : memref<1x8xf32, #tpu.memory_space<vmem>>, vector<1x8xf32>,
    %c15_i32 = arith.constant 15 : i32
    %16 = arith.cmpi eq, %arg0, %c15_i32 : i32
    %17 = arith.extui %16 : i1 to i32
    %c0_i32_11 = arith.constant 0 : i32
    %18 = arith.cmpi ne, %17, %c0_i32_11 : i32
    scf.if %18 {
      %c0_12 = arith.constant 0 : index
      %c0_13 = arith.constant 0 : index
      %19 = vector.load %arg4[%c0_12, %c0_13] : memref<1x8xf32, #tpu.memory_space<vmem>>, vector<1x8xf32>
      %c0_14 = arith.constant 0 : index
      %c0_15 = arith.constant 0 : index
      %20 = vector.load %arg2[%c0_14, %c0_15] : memref<1x8xf32, #tpu.memory_space<vmem>>, vector<1x8xf32>
      tpu.vector_store %arg2[%c0_14, %c0_15], %19 {strides = array<i32>} : memref<1x8xf32, #tpu.memory_space<vmem>>, vector<1x8xf32>,
      %c0_16 = arith.constant 0 : index
      %c0_17 = arith.constant 0 : index
      %21 = vector.load %arg5[%c0_16, %c0_17] : memref<1x8xf32, #tpu.memory_space<vmem>>, vector<1x8xf32>
      %c0_18 = arith.constant 0 : index
      %c0_19 = arith.constant 0 : index
      %22 = vector.load %arg3[%c0_18, %c0_19] : memref<1x8xf32, #tpu.memory_space<vmem>>, vector<1x8xf32>
      tpu.vector_store %arg3[%c0_18, %c0_19], %21 {strides = array<i32>} : memref<1x8xf32, #tpu.memory_space<vmem>>, vector<1x8xf32>,
    } else {
    }
    return
  }
  func.func @transform_0(%arg0: i32) -> (i32, i32) {
    %c0_i32 = arith.constant 0 : i32
    %c0_i32_0 = arith.constant 0 : i32
    return %arg0, %c0_i32 : i32, i32
  }
  func.func @transform_1(%arg0: i32) -> (i32, i32) {
    %c0_i32 = arith.constant 0 : i32
    %c0_i32_0 = arith.constant 0 : i32
    %c0_i32_1 = arith.constant 0 : i32
    return %c0_i32, %c0_i32_0 : i32, i32
  }
  func.func @transform_2(%arg0: i32) -> (i32, i32) {
    %c0_i32 = arith.constant 0 : i32
    %c0_i32_0 = arith.constant 0 : i32
    %c0_i32_1 = arith.constant 0 : i32
    return %c0_i32, %c0_i32_0 : i32, i32
  }
}

module attributes {stable_mosaic.version = 11 : i64} {
  func.func @_matmul_kernel(%arg0: i32, %arg1: i32, %arg2: i32, %arg3: memref<512x72xbf16, #tpu.memory_space<vmem>>, %arg4: memref<72x1xbf16, #tpu.memory_space<vmem>>, %arg5: memref<512x1xf32, #tpu.memory_space<vmem>>, %arg6: memref<512x1xf32, #tpu.memory_space<vmem>>) attributes {dimension_semantics = [#tpu.dimension_semantics<parallel>, #tpu.dimension_semantics<parallel>, #tpu.dimension_semantics<arbitrary>], iteration_bounds = array<i64: 16, 1, 1>, scalar_prefetch = 0 : i64, scratch_operands = 1 : i64, tpu.core_type = #tpu.core_type<tc>, window_params = [{transform_indices = @transform_0, window_bounds = array<i64: 512, 72>}, {transform_indices = @transform_1, window_bounds = array<i64: 72, 1>}, {transform_indices = @transform_2, window_bounds = array<i64: 512, 1>}]} {
    %c0_i32 = arith.constant 0 : i32
    %0 = arith.cmpi eq, %arg2, %c0_i32 : i32
    %1 = arith.extui %0 : i1 to i32
    %c0_i32_0 = arith.constant 0 : i32
    %2 = arith.cmpi ne, %1, %c0_i32_0 : i32
    scf.if %2 {
      %cst_10 = arith.constant 0.000000e+00 : f32
      %12 = vector.broadcast %cst_10 : f32 to vector<512x1xf32>
      %c0_11 = arith.constant 0 : index
      %c0_12 = arith.constant 0 : index
      %13 = vector.load %arg6[%c0_11, %c0_12] : memref<512x1xf32, #tpu.memory_space<vmem>>, vector<512x1xf32>
      tpu.vector_store %arg6[%c0_11, %c0_12], %12 {strides = array<i32>} : memref<512x1xf32, #tpu.memory_space<vmem>>, vector<512x1xf32>,
    } else {
    }
    %c0 = arith.constant 0 : index
    %c0_1 = arith.constant 0 : index
    %3 = vector.load %arg6[%c0, %c0_1] : memref<512x1xf32, #tpu.memory_space<vmem>>, vector<512x1xf32>
    %c0_2 = arith.constant 0 : index
    %c0_3 = arith.constant 0 : index
    %4 = vector.load %arg3[%c0_2, %c0_3] : memref<512x72xbf16, #tpu.memory_space<vmem>>, vector<512x72xbf16>
    %c0_4 = arith.constant 0 : index
    %c0_5 = arith.constant 0 : index
    %5 = vector.load %arg4[%c0_4, %c0_5] : memref<72x1xbf16, #tpu.memory_space<vmem>>, vector<72x1xbf16>
    %cst = arith.constant dense<0.000000e+00> : vector<512x1xf32>
    %6 = tpu.matmul %4, %5, %cst {dimension_numbers = #tpu.dot_dimension_numbers<[1], [0], [0], [1], [0, 0, 1, 1], [], []>} : vector<512x72xbf16>, vector<72x1xbf16>, vector<512x1xf32> -> vector<512x1xf32>
    %7 = arith.addf %3, %6 : vector<512x1xf32>
    %c0_6 = arith.constant 0 : index
    %c0_7 = arith.constant 0 : index
    %8 = vector.load %arg6[%c0_6, %c0_7] : memref<512x1xf32, #tpu.memory_space<vmem>>, vector<512x1xf32>
    tpu.vector_store %arg6[%c0_6, %c0_7], %7 {strides = array<i32>} : memref<512x1xf32, #tpu.memory_space<vmem>>, vector<512x1xf32>,
    %c0_i32_8 = arith.constant 0 : i32
    %9 = arith.cmpi eq, %arg2, %c0_i32_8 : i32
    %10 = arith.extui %9 : i1 to i32
    %c0_i32_9 = arith.constant 0 : i32
    %11 = arith.cmpi ne, %10, %c0_i32_9 : i32
    scf.if %11 {
      %c0_10 = arith.constant 0 : index
      %c0_11 = arith.constant 0 : index
      %12 = vector.load %arg6[%c0_10, %c0_11] : memref<512x1xf32, #tpu.memory_space<vmem>>, vector<512x1xf32>
      %13 = math.tanh %12 : vector<512x1xf32>
      %c0_12 = arith.constant 0 : index
      %c0_13 = arith.constant 0 : index
      %14 = vector.load %arg5[%c0_12, %c0_13] : memref<512x1xf32, #tpu.memory_space<vmem>>, vector<512x1xf32>
      tpu.vector_store %arg5[%c0_12, %c0_13], %13 {strides = array<i32>} : memref<512x1xf32, #tpu.memory_space<vmem>>, vector<512x1xf32>,
    } else {
    }
    return
  }
  func.func @transform_0(%arg0: i32, %arg1: i32, %arg2: i32) -> (i32, i32) {
    %c0_i32 = arith.constant 0 : i32
    return %arg0, %arg2 : i32, i32
  }
  func.func @transform_1(%arg0: i32, %arg1: i32, %arg2: i32) -> (i32, i32) {
    %c0_i32 = arith.constant 0 : i32
    return %arg2, %arg1 : i32, i32
  }
  func.func @transform_2(%arg0: i32, %arg1: i32, %arg2: i32) -> (i32, i32) {
    %c0_i32 = arith.constant 0 : i32
    return %arg0, %arg1 : i32, i32
  }
}

</mosaic_0001>

<bundles_post_ra>
// kernel: cond_cnn_generator_forward.12
= control target key start
LH: loop header
LB: loop body
LE: loop exit
PB: predicated region body
PF: predicated region fallthrough
CT: control target
= control target key end

     0   :  { %s757_s12 = smov 0   ;;  %s759_s13 = smov 0   ;;  %s832_s0 = inlined_call_operand.vmem [shape: bf16[8,20], index: 0, kind: input, shape index: {}]   ;;  %s833_s1 = inlined_call_operand.vmem [shape: bf16[20,1024], index: 1, kind: input, shape index: {}]   ;;  %s834_s2 = inlined_call_operand.vmem [shape: f32[1,1024], index: 2, kind: input, shape index: {}]   ;;  %s835_s3 = inlined_call_operand.vmem [shape: bf16[8,1024], index: 3, kind: output, shape index: {}]  }
   0x1   :  { %s761_s14 = smov 0   ;;  %s763_s15 = smov 0  }
   0x2   :  { %s765_s16 = smov 0  }
   0x3 LB: > { %s28_s17 = sadd.s32 1, %s730_s15  ;;  %p76_p1 = scmp.ne.s32.totalorder %s722_s13, %s718_s12  ;;  %s734_s16 = sphi %s765_s16, %s13_s16   ;;  %s730_s15 = sphi %s763_s15, %s839_s15   ;;  %s726_s14 = sphi %s761_s14, %s838_s14   ;;  %s722_s13 = sphi %s759_s13, %s837_s13   ;;  %s718_s12 = sphi %s757_s12, %s836_s12  }
   0x4   : > { %p30_p0 = scmp.ge.s32.totalorder %s28_s17, 2  ;;  %p77_p2 = scmp.eq.s32.totalorder %s734_s16, 0 }
   0x5   : > { %s69_s19 = sadd.s32 1, %s722_s13  ;;  %p617_p5 = scmp.ge.s32.totalorder %s734_s16, 2 }
   0x6   : > { %s841_s17 = smov (%p30_p0, %s28_s17), 0  ;;  %p78_p3 = por %p77_p2, %p76_p1 }
   0x7   : > { %s65_s18 = ssub.s32 %s730_s15, %s841_s17  ;;  %166 = sbr.rel (%p617_p5) target bundleno = 21 (0x15), region = 20 }
   0x8   : > { %p67_p4 = scmp.eq.s32.totalorder %s65_s18, 0 }
   0xa   : > { %s792_s20 = scalar_select %p67_p4, %s722_s13, %s69_s19  }
   0xe   : > { %169 = sbr.rel (!%p78_p3) target bundleno = 21 (0x15), region = 24  ;;  %s171_s21 = sand.u32 (%p78_p3), 1, %s722_s13  }
   0xf   : > { %s640_s22 = sshll.u32 (%p78_p3), %s730_s15, 4  ;;  %s643_s23 = smul.u32 (%p78_p3), 48, %s171_s21 }
  0x10   : > { %s179_s26 = scalar_lea.vmem (%p78_p3), %s833_s1, %s640_s22 }
  0x11   : > { %v192_v0 = vld [vmem:[%s179_s26] sm:$0xff] (%p78_p3)  ;;  %v194_v1 = vld [vmem:[%s179_s26 + $0x8] sm:$0xff] (%p78_p3)  ;;  %s173_s27 = scalar_lea.vmem (%p78_p3), [#allocation3], %s643_s23 }
  0x12   : > { %v196_v2 = vld [vmem:[%s179_s26 + $0x20] sm:$0xff] (%p78_p3)  ;;  %v198_v3 = vld [vmem:[%s179_s26 + $0x28] sm:$0xff] (%p78_p3)  ;;  %193 = vst [vmem:[%s173_s27] sm:$0xff] (%p78_p3), %v192_v0  ;;  %195 = vst [vmem:[%s173_s27 + $0x8] sm:$0xff] (%p78_p3), %v194_v1 }
  0x13   : > { %v200_v4 = vld [vmem:[%s179_s26 + $0x40] sm:$0xff] (%p78_p3)  ;;  %v202_v5 = vld [vmem:[%s179_s26 + $0x48] sm:$0xff] (%p78_p3)  ;;  %197 = vst [vmem:[%s173_s27 + $0x10] sm:$0xff] (%p78_p3), %v196_v2  ;;  %199 = vst [vmem:[%s173_s27 + $0x18] sm:$0xff] (%p78_p3), %v198_v3 }
  0x14   : > { %201 = vst [vmem:[%s173_s27 + $0x20] sm:$0xff] (%p78_p3), %v200_v4  ;;  %203 = vst [vmem:[%s173_s27 + $0x28] sm:$0xff] (%p78_p3), %v202_v5 }
  0x15 PF: > { %p620_p6 = scmp.ge.s32.totalorder %s734_s16, 1  ;;  %p216_p7 = scmp.lt.s32.totalorder %s734_s16, 3 }
  0x17   : > { %p217_p8 = pnand %p620_p6, %p216_p7 }
  0x18   : > { %s223_s28 = sand.u32 (!%p217_p8), 1, %s718_s12   ;;  %v736_v6 = vmov (!%p217_p8), 0   ;;  %vm339_vm0 = vcmask (!%p217_p8), 1041408   ;;  %v298_v19 = vld [vmem:[%s832_s0] sm:$0xf] (!%p217_p8)  ;;  %vm335_vm1 = vcmask (!%p217_p8), 162816   ;;  %v451_v20 = vlaneseq (!%p217_p8) }
  0x19   : > { %220 = sbr.rel (%p217_p8) target bundleno = 256 (0x100), region = 51  ;;  %384 = vmatprep.mubr.bf16.mxu0 (!%p217_p8), %v736_v6  ;;  %425 = vmatprep.mubr.bf16.mxu1 (!%p217_p8), %v736_v6  ;;  %s621_s6 = sshll.u32 (!%p217_p8), %s726_s14, 2 }
  0x1a   : > { %s644_s29 = smul.u32 (!%p217_p8), 48, %s223_s28  ;;  %p271_p9 = scmp.lt.s32.totalorder (!%p217_p8), %s621_s6, 7  ;;  %v452_v21 = vshrl.u32 (!%p217_p8), %v451_v20, 7 }
  0x1c   : > { %s225_s30 = scalar_lea.vmem (!%p217_p8), [#allocation3], %s644_s29  ;;  %v453_v22 = vsub.s32 (!%p217_p8), 0, %v452_v21  ;;  %v461_v23 = vsub.s32 (!%p217_p8), 2, %v452_v21  ;;  %v457_v25 = vsub.s32 (!%p217_p8), 1, %v452_v21  ;;  %v465_v26 = vsub.s32 (!%p217_p8), 3, %v452_v21 }
  0x1d   : > { %v686_v7 = vld [vmem:[%s225_s30 + $0x4] ss:$16 sps:$4 sm:$0xff] (!%p217_p8)   ;;  %v688_v8 = vld [vmem:[%s225_s30 + $0xc] ss:$16 sps:$4 sm:$0xff] (!%p217_p8)   ;;  %v690_v9 = vld [vmem:[%s225_s30] ss:$16 sps:$4 sm:$0xff] (!%p217_p8)  }
  0x1e   : > { %352 = vmatprep.subr.bf16.mxu0 (!%p217_p8), %v686_v7  ;;  %v691_v10 = vld [vmem:[%s225_s30 + $0x8] ss:$16 sps:$4 sm:$0xff] (!%p217_p8)   ;;  %v303_v11 = vld [vmem:[%s225_s30 + $0x20] sm:$0x33] (!%p217_p8)  ;;  %393 = vmatprep.subr.bf16.mxu1 (!%p217_p8), %v688_v8 }
  0x1f   : > { %v629_v12 = vcombine.high (!%p217_p8), %v303_v11, %v303_v11  ;;  %v304_v13 = vld [vmem:[%s225_s30 + $0x28] sm:$0x33] (!%p217_p8)  ;;  %v628_v14 = vcombine.low (!%p217_p8), %v303_v11, %v303_v11  ;;  %353 = vmatpush1.bf16.msra.mxu0 (!%p217_p8), %v690_v9  ;;  %394 = vmatpush1.bf16.msra.mxu1 (!%p217_p8), %v691_v10 }
  0x20   : > { %v631_v15 = vcombine.high %v304_v13, %v304_v13  ;;  %v630_v16 = vcombine.low %v304_v13, %v304_v13  ;;  %s843_s6 = smov (!%p271_p9, %s621_s6), 7 }
  0x21   : > { %632 = vmatprep.subr.msk.bf16.mxu0 %vm339_vm0, %v629_v12  ;;  %v341_v17 = vsel %vm339_vm0, %v628_v14, 0  ;;  %s273_s9 = scalar_lea.vmem %s834_s2, %s843_s6  ;;  %s623_s10 = sshll.u32 %s843_s6, 2 }
  0x22   : > { %634 = vmatprep.subr.msk.bf16.mxu1 %vm339_vm0, %v631_v15  ;;  %v347_v18 = vsel %vm339_vm0, %v630_v16, 0  ;;  %v449_v24 = vld [vmem:[%s273_s9] sm:$0xf]  ;;  %s283_s14 = scalar_lea.vmem %s835_s3, %s623_s10 }
  0x23   : > { %355 = vmatpush1.bf16.msra.mxu0 %v341_v17  ;;  %396 = vmatpush1.bf16.msra.mxu1 %v347_v18  ;;  %v454_v27 = vrot.slane %v449_v24, %v453_v22  ;;  %v462_v28 = vrot.slane %v449_v24, %v461_v23  ;;  %v458_v29 = vrot.slane %v449_v24, %v457_v25 }
  0x24   : > { %v466_v30 = vrot.slane %v449_v24, %v465_v26 }
  0x26   : > { %633 = vmatmul.mubr.msk.bf16.vlgmr.msra.gmra.mrb[0].mxu0 %vm335_vm1, %v298_v19  ;;  %635 = vmatmul.mubr.msk.bf16.vlgmr.msra.gmra.mrb[0].mxu1 %vm335_vm1, %v298_v19 }
  0xf9   : > { %v386_v31 = vpop.f32.mrb[0].mxu0  ;;  %v427_v32 = vpop.f32.mrb[0].mxu1 }
  0xfa   : > { %v471_v33 = vadd.f32 %v454_v27, %v386_v31  ;;  %v473_v34 = vadd.f32 %v462_v28, %v427_v32  ;;  %v388_v35 = vpop.f32.mrb[1].mxu0  ;;  %v429_v36 = vpop.f32.mrb[1].mxu1 }
  0xfb   : > { %v472_v37 = vadd.f32 %v458_v29, %v388_v35  ;;  %v474_v38 = vadd.f32 %v466_v30, %v429_v36  ;;  %v390_v39 = vpop.f32.mrb[2].mxu0  ;;  %v431_v40 = vpop.f32.mrb[2].mxu1 }
  0xfc   : > { %v391_v41 = vpop.f32.mrb[3].mxu0  ;;  %v432_v42 = vpop.f32.mrb[3].mxu1 }
  0xfd   : > { %v641_v43 = vpack.c.bf16 %v472_v37, %v471_v33  ;;  %v642_v44 = vpack.c.bf16 %v474_v38, %v473_v34 }
  0xff   : > { %491 = vst [vmem:[%s283_s14] sm:$0xff] %v641_v43  ;;  %492 = vst [vmem:[%s283_s14 + $0x8] sm:$0xff] %v642_v44 }
 0x100 PF: > { %s13_s16 = sadd.s32 1, %s734_s16   ;;  %s836_s12 = smov %s722_s13 }
 0x101   : > { %p10_p10 = scmp.ge.s32.totalorder %s13_s16, 4   ;;  %s837_s13 = smov %s792_s20 }
 0x102   : > { %s838_s14 = smov %s730_s15  ;;  %s839_s15 = smov %s841_s17 }
 0x103   :  { %12 = sbr.rel (!%p10_p10) target bundleno = 3 (0x3), region = 104 }

// kernel: cond_cnn_generator_forward.13
= control target key start
LH: loop header
LB: loop body
LE: loop exit
PB: predicated region body
PF: predicated region fallthrough
CT: control target
= control target key end

     0   :  { %vm526_vm0 = vcmask 523264   ;;  %s1264_s1 = inlined_call_operand.vmem [shape: bf16[576,256], index: 1, kind: input, shape index: {}]   ;;  %s1265_s0 = inlined_call_operand.vmem [shape: bf16[32,576], index: 0, kind: input, shape index: {}]   ;;  %s1266_s2 = inlined_call_operand.vmem [shape: bf16[32,256], index: 2, kind: output, shape index: {}]  }
   0x1   :  { %v868_v0 = vld [vmem:[%s1264_s1 + $0x4] ss:$8 sps:$4 sm:$0xff]   ;;  %v872_v2 = vld [vmem:[%s1264_s1] ss:$8 sps:$4 sm:$0xff]   ;;  %v874_v4 = vld [vmem:[%s1264_s1 + $0x14] ss:$8 sps:$4 sm:$0xff]  }
   0x2   :  { %v870_v1 = vld [vmem:[%s1264_s1 + $0x104] ss:$8 sps:$4 sm:$0xff]   ;;  %533 = vmatprep.subr.bf16.mxu1 %v868_v0  ;;  %v873_v3 = vld [vmem:[%s1264_s1 + $0x100] ss:$8 sps:$4 sm:$0xff]   ;;  %v876_v5 = vld [vmem:[%s1264_s1 + $0x114] ss:$8 sps:$4 sm:$0xff]  }
   0x3   :  { %586 = vmatprep.subr.bf16.mxu0 %v870_v1  ;;  %534 = vmatpush1.bf16.msra.mxu1 %v872_v2  ;;  %v878_v6 = vld [vmem:[%s1264_s1 + $0x10] ss:$8 sps:$4 sm:$0xff]   ;;  %v880_v8 = vld [vmem:[%s1264_s1 + $0x24] ss:$8 sps:$4 sm:$0xff]   ;;  %v884_v10 = vld [vmem:[%s1264_s1 + $0x20] ss:$8 sps:$4 sm:$0xff]  }
   0x4   :  { %587 = vmatpush1.bf16.msra.mxu0 %v873_v3  ;;  %535 = vmatprep.subr.bf16.mxu1 %v874_v4  ;;  %v879_v7 = vld [vmem:[%s1264_s1 + $0x110] ss:$8 sps:$4 sm:$0xff]   ;;  %v882_v9 = vld [vmem:[%s1264_s1 + $0x124] ss:$8 sps:$4 sm:$0xff]   ;;  %v885_v11 = vld [vmem:[%s1264_s1 + $0x120] ss:$8 sps:$4 sm:$0xff]  }
   0x5   :  { %588 = vmatprep.subr.bf16.mxu0 %v876_v5  ;;  %v886_v12 = vld [vmem:[%s1264_s1 + $0x34] ss:$8 sps:$4 sm:$0xff]   ;;  %v890_v14 = vld [vmem:[%s1264_s1 + $0x30] ss:$8 sps:$4 sm:$0xff]   ;;  %v892_v16 = vld [vmem:[%s1264_s1 + $0x44] ss:$8 sps:$4 sm:$0xff]  }
   0x6   :  { %v888_v13 = vld [vmem:[%s1264_s1 + $0x134] ss:$8 sps:$4 sm:$0xff]   ;;  %v891_v15 = vld [vmem:[%s1264_s1 + $0x130] ss:$8 sps:$4 sm:$0xff]   ;;  %v894_v17 = vld [vmem:[%s1264_s1 + $0x144] ss:$8 sps:$4 sm:$0xff]  }
   0x7   :  { %536 = vmatpush1.bf16.msra.mxu1 %v878_v6  ;;  %v896_v18 = vld [vmem:[%s1264_s1 + $0x40] ss:$8 sps:$4 sm:$0xff]   ;;  %v898_v20 = vld [vmem:[%s1264_s1 + $0x54] ss:$8 sps:$4 sm:$0xff]   ;;  %v902_v22 = vld [vmem:[%s1264_s1 + $0x50] ss:$8 sps:$4 sm:$0xff]  }
   0x8   :  { %589 = vmatpush1.bf16.msra.mxu0 %v879_v7  ;;  %537 = vmatprep.subr.bf16.mxu1 %v880_v8  ;;  %v897_v19 = vld [vmem:[%s1264_s1 + $0x140] ss:$8 sps:$4 sm:$0xff]   ;;  %v900_v21 = vld [vmem:[%s1264_s1 + $0x154] ss:$8 sps:$4 sm:$0xff]   ;;  %v903_v23 = vld [vmem:[%s1264_s1 + $0x150] ss:$8 sps:$4 sm:$0xff]  }
   0x9   :  { %590 = vmatprep.subr.bf16.mxu0 %v882_v9  ;;  %v904_v24 = vld [vmem:[%s1264_s1 + $0x64] ss:$8 sps:$4 sm:$0xff]   ;;  %v908_v26 = vld [vmem:[%s1264_s1 + $0x60] ss:$8 sps:$4 sm:$0xff]   ;;  %v910_v28 = vld [vmem:[%s1264_s1 + $0x74] ss:$8 sps:$4 sm:$0xff]  }
   0xa   :  { %v906_v25 = vld [vmem:[%s1264_s1 + $0x164] ss:$8 sps:$4 sm:$0xff]   ;;  %v909_v27 = vld [vmem:[%s1264_s1 + $0x160] ss:$8 sps:$4 sm:$0xff]   ;;  %v912_v29 = vld [vmem:[%s1264_s1 + $0x174] ss:$8 sps:$4 sm:$0xff]  }
   0xb   :  { %538 = vmatpush1.bf16.msra.mxu1 %v884_v10  ;;  %v914_v30 = vld [vmem:[%s1264_s1 + $0x70] ss:$8 sps:$4 sm:$0xff]   ;;  %v916_v32 = vld [vmem:[%s1264_s1 + $0x84] ss:$8 sps:$4 sm:$0xff]   ;;  %v920_v34 = vld [vmem:[%s1264_s1 + $0x80] ss:$8 sps:$4 sm:$0xff]  }
   0xc   :  { %591 = vmatpush1.bf16.msra.mxu0 %v885_v11  ;;  %539 = vmatprep.subr.bf16.mxu1 %v886_v12  ;;  %v915_v31 = vld [vmem:[%s1264_s1 + $0x170] ss:$8 sps:$4 sm:$0xff]   ;;  %v918_v33 = vld [vmem:[%s1264_s1 + $0x184] ss:$8 sps:$4 sm:$0xff]   ;;  %v921_v35 = vld [vmem:[%s1264_s1 + $0x180] ss:$8 sps:$4 sm:$0xff]  }
   0xd   :  { %592 = vmatprep.subr.bf16.mxu0 %v888_v13  ;;  %v922_v36 = vld [vmem:[%s1264_s1 + $0x94] ss:$8 sps:$4 sm:$0xff]   ;;  %v926_v38 = vld [vmem:[%s1264_s1 + $0x90] ss:$8 sps:$4 sm:$0xff]   ;;  %v928_v40 = vld [vmem:[%s1264_s1 + $0xa4] ss:$8 sps:$4 sm:$0xff]  }
   0xe   :  { %v924_v37 = vld [vmem:[%s1264_s1 + $0x194] ss:$8 sps:$4 sm:$0xff]   ;;  %v927_v39 = vld [vmem:[%s1264_s1 + $0x190] ss:$8 sps:$4 sm:$0xff]   ;;  %v930_v41 = vld [vmem:[%s1264_s1 + $0x1a4] ss:$8 sps:$4 sm:$0xff]  }
   0xf   :  { %540 = vmatpush1.bf16.msra.mxu1 %v890_v14  ;;  %v932_v42 = vld [vmem:[%s1264_s1 + $0xa0] ss:$8 sps:$4 sm:$0xff]   ;;  %v934_v44 = vld [vmem:[%s1264_s1 + $0xb4] ss:$8 sps:$4 sm:$0xff]   ;;  %v938_v46 = vld [vmem:[%s1264_s1 + $0xb0] ss:$8 sps:$4 sm:$0xff]  }
  0x10   :  { %593 = vmatpush1.bf16.msra.mxu0 %v891_v15  ;;  %541 = vmatprep.subr.bf16.mxu1 %v892_v16  ;;  %v933_v43 = vld [vmem:[%s1264_s1 + $0x1a0] ss:$8 sps:$4 sm:$0xff]   ;;  %v936_v45 = vld [vmem:[%s1264_s1 + $0x1b4] ss:$8 sps:$4 sm:$0xff]   ;;  %v939_v47 = vld [vmem:[%s1264_s1 + $0x1b0] ss:$8 sps:$4 sm:$0xff]  }
  0x11   :  { %594 = vmatprep.subr.bf16.mxu0 %v894_v17  ;;  %v940_v48 = vld [vmem:[%s1264_s1 + $0xc4] ss:$8 sps:$4 sm:$0xff]   ;;  %v944_v52 = vld [vmem:[%s1264_s1 + $0xc0] ss:$8 sps:$4 sm:$0xff]   ;;  %v946_v54 = vld [vmem:[%s1264_s1 + $0xd4] ss:$8 sps:$4 sm:$0xff]  }
  0x12   :  { %v966_v49 = vld [vmem:[%s1265_s0 + $0x4] ss:$20 sps:$4 sm:$0xff]   ;;  %v969_v51 = vld [vmem:[%s1265_s0 + $0xc] ss:$20 sps:$4 sm:$0xff]   ;;  %v948_v55 = vld [vmem:[%s1264_s1 + $0x1d4] ss:$8 sps:$4 sm:$0xff]  }
  0x13   :  { %542 = vmatpush1.bf16.msra.mxu1 %v896_v18  ;;  %v942_v50 = vld [vmem:[%s1264_s1 + $0x1c4] ss:$8 sps:$4 sm:$0xff]   ;;  %565 = vmatprep.mubr.bf16.mxu1 %v966_v49  ;;  %v945_v53 = vld [vmem:[%s1264_s1 + $0x1c0] ss:$8 sps:$4 sm:$0xff]   ;;  %v950_v56 = vld [vmem:[%s1264_s1 + $0xd0] ss:$8 sps:$4 sm:$0xff]  }
  0x14   :  { %595 = vmatpush1.bf16.msra.mxu0 %v897_v19  ;;  %543 = vmatprep.subr.bf16.mxu1 %v898_v20  ;;  %v951_v57 = vld [vmem:[%s1264_s1 + $0x1d0] ss:$8 sps:$4 sm:$0xff]   ;;  %v952_v58 = vld [vmem:[%s1264_s1 + $0xe4] ss:$8 sps:$4 sm:$0xff]   ;;  %v956_v60 = vld [vmem:[%s1264_s1 + $0xe0] ss:$8 sps:$4 sm:$0xff]  }
  0x15   :  { %596 = vmatprep.subr.bf16.mxu0 %v900_v21  ;;  %618 = vmatprep.mubr.bf16.mxu0 %v969_v51  ;;  %v954_v59 = vld [vmem:[%s1264_s1 + $0x1e4] ss:$8 sps:$4 sm:$0xff]   ;;  %v957_v61 = vld [vmem:[%s1264_s1 + $0x1e0] ss:$8 sps:$4 sm:$0xff]   ;;  %v958_v62 = vld [vmem:[%s1264_s1 + $0xf4] ss:$8 sps:$4 sm:$0xff]  }
  0x16   :  { %v960_v63 = vld [vmem:[%s1264_s1 + $0x1f4] ss:$8 sps:$4 sm:$0xff]   ;;  %v962_v0 = vld [vmem:[%s1264_s1 + $0xf0] ss:$8 sps:$4 sm:$0xff]   ;;  %v972_v2 = vld [vmem:[%s1264_s1 + $0x204] ss:$8 sps:$4 sm:$0xff]  }
  0x17   :  { %544 = vmatpush1.bf16.msra.mxu1 %v902_v22  ;;  %v963_v1 = vld [vmem:[%s1264_s1 + $0x1f0] ss:$8 sps:$4 sm:$0xff]   ;;  %v964_v3 = vld [vmem:[%s1265_s0] ss:$20 sps:$4 sm:$0xff]   ;;  %v967_v4 = vld [vmem:[%s1265_s0 + $0x8] ss:$20 sps:$4 sm:$0xff]  }
  0x18   :  { %597 = vmatpush1.bf16.msra.mxu0 %v903_v23  ;;  %545 = vmatprep.subr.bf16.mxu1 %v904_v24  ;;  %v970_v5 = vld [vmem:[%s1264_s1 + $0x200] ss:$8 sps:$4 sm:$0xff]   ;;  %v975_v6 = vld [vmem:[%s1264_s1 + $0x214] ss:$8 sps:$4 sm:$0xff]   ;;  %v973_v9 = vld [vmem:[%s1264_s1 + $0x210] ss:$8 sps:$4 sm:$0xff]  }
  0x19   :  { %598 = vmatprep.subr.bf16.mxu0 %v906_v25  ;;  %v976_v7 = vld [vmem:[%s1265_s0 + $0x2c] ss:$20 sps:$4 sm:$0xff]   ;;  %v978_v8 = vld [vmem:[%s1265_s0 + $0x34] ss:$20 sps:$4 sm:$0xff]   ;;  %v981_v12 = vld [vmem:[%s1265_s0 + $0x30] ss:$20 sps:$4 sm:$0xff]  }
  0x1a   :  { %v984_v10 = vld [vmem:[%s1264_s1 + $0x224] ss:$8 sps:$4 sm:$0xff]   ;;  %v980_v11 = vld [vmem:[%s1265_s0 + $0x28] ss:$20 sps:$4 sm:$0xff]   ;;  %v985_v15 = vld [vmem:[%s1264_s1 + $0x230] ss:$8 sps:$4 sm:$0xff]  }
  0x1b   :  { %546 = vmatpush1.bf16.msra.mxu1 %v908_v26  ;;  %v982_v13 = vld [vmem:[%s1264_s1 + $0x220] ss:$8 sps:$4 sm:$0xff]   ;;  %v987_v14 = vld [vmem:[%s1264_s1 + $0x234] ss:$8 sps:$4 sm:$0xff]   ;;  %v990_v16 = vmov 0  }
  0x1c   :  { %599 = vmatpush1.bf16.msra.mxu0 %v909_v27  ;;  %547 = vmatprep.subr.bf16.mxu1 %v910_v28  ;;  %v988_v17 = vld [vmem:[%s1265_s0 + $0x10] ss:$20 sps:$4 sm:$0xff]   ;;  %v989_v18 = vld [vmem:[%s1265_s0 + $0x38] ss:$20 sps:$4 sm:$0xff]  }
  0x1d   :  { %600 = vmatprep.subr.bf16.mxu0 %v912_v29 }
  0x1f   :  { %548 = vmatpush1.bf16.msra.mxu1 %v914_v30 }
  0x20   :  { %601 = vmatpush1.bf16.msra.mxu0 %v915_v31  ;;  %549 = vmatprep.subr.bf16.mxu1 %v916_v32 }
  0x21   :  { %602 = vmatprep.subr.bf16.mxu0 %v918_v33 }
  0x23   :  { %550 = vmatpush1.bf16.msra.mxu1 %v920_v34 }
  0x24   :  { %603 = vmatpush1.bf16.msra.mxu0 %v921_v35  ;;  %551 = vmatprep.subr.bf16.mxu1 %v922_v36 }
  0x25   :  { %604 = vmatprep.subr.bf16.mxu0 %v924_v37 }
  0x27   :  { %552 = vmatpush1.bf16.msra.mxu1 %v926_v38 }
  0x28   :  { %605 = vmatpush1.bf16.msra.mxu0 %v927_v39  ;;  %553 = vmatprep.subr.bf16.mxu1 %v928_v40 }
  0x29   :  { %606 = vmatprep.subr.bf16.mxu0 %v930_v41 }
  0x2b   :  { %554 = vmatpush1.bf16.msra.mxu1 %v932_v42 }
  0x2c   :  { %607 = vmatpush1.bf16.msra.mxu0 %v933_v43  ;;  %555 = vmatprep.subr.bf16.mxu1 %v934_v44 }
  0x2d   :  { %608 = vmatprep.subr.bf16.mxu0 %v936_v45 }
  0x2f   :  { %556 = vmatpush1.bf16.msra.mxu1 %v938_v46 }
  0x30   :  { %609 = vmatpush1.bf16.msra.mxu0 %v939_v47  ;;  %557 = vmatprep.subr.bf16.mxu1 %v940_v48 }
  0x31   :  { %610 = vmatprep.subr.bf16.mxu0 %v942_v50 }
  0x33   :  { %558 = vmatpush1.bf16.msra.mxu1 %v944_v52 }
  0x34   :  { %611 = vmatpush1.bf16.msra.mxu0 %v945_v53  ;;  %559 = vmatprep.subr.bf16.mxu1 %v946_v54 }
  0x35   :  { %612 = vmatprep.subr.bf16.mxu0 %v948_v55 }
  0x37   :  { %560 = vmatpush1.bf16.msra.mxu1 %v950_v56 }
  0x38   :  { %613 = vmatpush1.bf16.msra.mxu0 %v951_v57  ;;  %561 = vmatprep.subr.bf16.mxu1 %v952_v58 }
  0x39   :  { %614 = vmatprep.subr.bf16.mxu0 %v954_v59 }
  0x3b   :  { %562 = vmatpush1.bf16.msra.mxu1 %v956_v60 }
  0x3c   :  { %615 = vmatpush1.bf16.msra.mxu0 %v957_v61  ;;  %563 = vmatprep.subr.bf16.mxu1 %v958_v62 }
  0x3d   :  { %616 = vmatprep.subr.bf16.mxu0 %v960_v63 }
  0x3f   :  { %564 = vmatpush1.bf16.msra.mxu1 %v962_v0 }
  0x40   :  { %617 = vmatpush1.bf16.msra.mxu0 %v963_v1  ;;  %843 = vmatprep.subr.bf16.mxu1 %v972_v2 }
  0x41   :  { %639 = vmatprep.subr.bf16.mxu0 %v972_v2 }
  0x42   :  { %566 = vmatmul.mubr.bf16.vlgmr.msra.gmra.mrb[0].mxu1 %v964_v3 }
  0x43   :  { %619 = vmatmul.mubr.bf16.vlgmr.msra.gmra.mrb[0].mxu0 %v967_v4  ;;  %847 = vmatpush1.bf16.msra.mxu1 %v970_v5 }
  0x44   :  { %640 = vmatpush1.bf16.msra.mxu0 %v970_v5  ;;  %844 = vmatprep.subr.bf16.mxu1 %v975_v6 }
  0x45   :  { %641 = vmatprep.subr.bf16.mxu0 %v975_v6  ;;  %575 = vmatprep.mubr.bf16.mxu1 %v976_v7 }
  0x46   :  { %628 = vmatprep.mubr.bf16.mxu0 %v978_v8 }
  0x47   :  { %848 = vmatpush1.bf16.msra.mxu1 %v973_v9 }
  0x48   :  { %642 = vmatpush1.bf16.msra.mxu0 %v973_v9  ;;  %845 = vmatprep.subr.bf16.mxu1 %v984_v10 }
  0x49   :  { %643 = vmatprep.subr.bf16.mxu0 %v984_v10 }
  0x4a   :  { %576 = vmatmul.mubr.bf16.gmra.mrb[4].mxu1 %v980_v11 }
  0x4b   :  { %629 = vmatmul.mubr.bf16.gmra.mrb[4].mxu0 %v981_v12  ;;  %849 = vmatpush1.bf16.msra.mxu1 %v982_v13 }
  0x4c   :  { %644 = vmatpush1.bf16.msra.mxu0 %v982_v13  ;;  %846 = vmatprep.subr.bf16.mxu1 %v987_v14 }
  0x4d   :  { %645 = vmatprep.subr.bf16.mxu0 %v987_v14  ;;  %671 = vmatprep.mubr.bf16.mxu0 %v990_v16 }
  0x4e   :  { %681 = vmatprep.mubr.bf16.mxu1 %v990_v16 }
  0x4f   :  { %850 = vmatpush1.bf16.msra.mxu1 %v985_v15 }
  0x50   :  { %646 = vmatpush1.bf16.msra.mxu0 %v985_v15 }
  0x52   :  { %834 = vmatmul.mubr.msk.bf16.vlgmr.msra.gmra.mrb[8].mxu1 %vm526_vm0, %v989_v18 }
  0x53   :  { %833 = vmatmul.mubr.msk.bf16.vlgmr.msra.gmra.mrb[0].mxu0 %vm526_vm0, %v988_v17 }
 0x115   :  { %v567_v19 = vpop.f32.mrb[0].mxu1 }
 0x116   :  { %v569_v20 = vpop.f32.mrb[1].mxu1 }
 0x117   :  { %v571_v21 = vpop.f32.mrb[2].mxu1 }
 0x118   :  { %v573_v22 = vpop.f32.mrb[3].mxu1 }
 0x11d   :  { %v577_v23 = vpop.f32.mrb[4].mxu1 }
 0x11e   :  { %v630_v24 = vpop.f32.mrb[4].mxu0  ;;  %v579_v26 = vpop.f32.mrb[5].mxu1 }
 0x11f   :  { %v631_v25 = vadd.f32 %v630_v24, %v577_v23  ;;  %v632_v27 = vpop.f32.mrb[5].mxu0  ;;  %v581_v29 = vpop.f32.mrb[6].mxu1 }
 0x120   :  { %v633_v28 = vadd.f32 %v632_v27, %v579_v26  ;;  %v634_v30 = vpop.f32.mrb[6].mxu0  ;;  %v583_v32 = vpop.f32.mrb[7].mxu1 }
 0x121   :  { %v635_v31 = vadd.f32 %v634_v30, %v581_v29  ;;  %v636_v33 = vpop.f32.mrb[7].mxu0 }
 0x122   :  { %v637_v34 = vadd.f32 %v636_v33, %v583_v32 }
 0x125   :  { %v683_v36 = vpop.f32.mrb[8].mxu1 }
 0x126   :  { %v673_v35 = vpop.f32.mrb[0].mxu0  ;;  %v684_v38 = vadd.f32 %v683_v36, %v631_v25  ;;  %v685_v40 = vpop.f32.mrb[9].mxu1 }
 0x127   :  { %v851_v37 = vadd.f32 %v673_v35, %v567_v19  ;;  %v675_v39 = vpop.f32.mrb[1].mxu0  ;;  %v686_v42 = vadd.f32 %v685_v40, %v633_v28  ;;  %v687_v44 = vpop.f32.mrb[10].mxu1 }
 0x128   :  { %v852_v41 = vadd.f32 %v675_v39, %v569_v20  ;;  %v677_v43 = vpop.f32.mrb[2].mxu0  ;;  %v688_v46 = vadd.f32 %v687_v44, %v635_v31  ;;  %v689_v48 = vpop.f32.mrb[11].mxu1 }
 0x129   :  { %v853_v45 = vadd.f32 %v677_v43, %v571_v21  ;;  %v679_v47 = vpop.f32.mrb[3].mxu0  ;;  %v841_v50 = vpack.c.bf16 %v686_v42, %v684_v38  ;;  %v690_v52 = vadd.f32 %v689_v48, %v637_v34 }
 0x12a   :  { %v839_v49 = vpack.c.bf16 %v852_v41, %v851_v37  ;;  %v854_v51 = vadd.f32 %v679_v47, %v573_v22 }
 0x12b   :  { %745 = vst [vmem:[%s1266_s2 + $0x10] sm:$0xff] %v841_v50  ;;  %v842_v54 = vpack.c.bf16 %v690_v52, %v688_v46 }
 0x12c   :  { %743 = vst [vmem:[%s1266_s2] sm:$0xff] %v839_v49  ;;  %v840_v53 = vpack.c.bf16 %v854_v51, %v853_v45 }
 0x12d   :  { %746 = vst [vmem:[%s1266_s2 + $0x18] sm:$0xff] %v842_v54 }
 0x12e   :  { %744 = vst [vmem:[%s1266_s2 + $0x8] sm:$0xff] %v840_v53 }

// kernel: cond_cnn_generator_forward.14
= control target key start
LH: loop header
LB: loop body
LE: loop exit
PB: predicated region body
PF: predicated region fallthrough
CT: control target
= control target key end

     0   :  { %v14_v0 = vlaneseq  ;;  %v159_v8 = vmov 0.0   ;;  %v160_v27 = vmov 1935823168   ;;  %v161_v36 = vmov 1966171168   ;;  %s211_s0 = inlined_call_operand.vmem [shape: bf16[32,256], index: 0, kind: input, shape index: {}]   ;;  %s212_s1 = inlined_call_operand.vmem [shape: f32[1,256], index: 1, kind: output, shape index: {0}]   ;;  %s213_s2 = inlined_call_operand.vmem [shape: f32[1,256], index: 2, kind: output, shape index: {1}]  }
   0x1   :  { %v20_v1 = vld [vmem:[%s211_s0] sm:$0xff]  ;;  %v21_v2 = vld [vmem:[%s211_s0 + $0x8] sm:$0xff]  ;;  %v22_v3 = vld [vmem:[%s211_s0 + $0x10] sm:$0xff]  ;;  %v147_v28 = vunpack.c.l.s4 %v160_v27  ;;  %v55_v37 = vunpack.c.l.s4 %v161_v36 }
   0x2   :  { %vm186_vm0 = vcmp.lt.s32.totalorder %v14_v0, 256  ;;  %v23_v5 = vld [vmem:[%s211_s0 + $0x18] sm:$0xff]  ;;  %v24_v6 = vunpack.c.l.bf16 %v20_v1  ;;  %v25_v7 = vunpack.c.h.bf16 %v20_v1  ;;  %v26_v9 = vunpack.c.l.bf16 %v21_v2 }
   0x3   :  { %18 = vst.msk [vmem:[#allocation2] sm:$0x3] %vm186_vm0, %v159_v8  ;;  %19 = vst.msk [vmem:[#allocation3] sm:$0x3] %vm186_vm0, %v159_v8  ;;  %v27_v10 = vunpack.c.h.bf16 %v21_v2  ;;  %v28_v11 = vunpack.c.l.bf16 %v22_v3  ;;  %v29_v12 = vunpack.c.h.bf16 %v22_v3  ;;  %v30_v13 = vunpack.c.l.bf16 %v23_v5 }
   0x4   :  { %v31_v14 = vunpack.c.h.bf16 %v23_v5  ;;  %v33_v15 = vadd.f32 %v26_v9, %v24_v6  ;;  %139 = vmul.bf16.f32.vacc0 %v20_v1, %v20_v1  ;;  %v148_v29 = vunpack.c.0.s8 %v147_v28 }
   0x5   :  { %v42_v16 = vadd.f32 %v27_v10, %v25_v7  ;;  %140 = vmac.bf16.f32.vacc0 %v21_v2, %v21_v2  ;;  %v150_v30 = vshrl.u32 %v14_v0, 7  ;;  %v56_v46 = vunpack.c.0.s8 %v55_v37 }
   0x6   :  { %v34_v17 = vadd.f32 %v33_v15, %v28_v11  ;;  %141 = vmac.bf16.f32.vacc0 %v22_v3, %v22_v3 }
   0x7   :  { %v43_v18 = vadd.f32 %v42_v16, %v29_v12  ;;  %142 = vmac.bf16.f32.vacc0 %v23_v5, %v23_v5  ;;  %v151_v31 = vsub.s32 %v148_v29, %v150_v30  ;;  %v59_v55 = vsub.s32 %v56_v46, %v150_v30 }
   0x8   :  { %v35_v19 = vadd.f32 %v34_v17, %v30_v13 }
   0x9   :  { %v44_v20 = vadd.f32 %v43_v18, %v31_v14  ;;  %v143_v23 = vmovacc.add.low.vacc0 }
   0xa   :  { %v36_v21 = vrot.slane %v35_v19, 4  ;;  %v144_v24 = vmovacc.add.high.vacc0  ;;  %v32_v62 = vld [vmem:[#allocation2] sm:$0x3]  ;;  %v75_v3 = vld [vmem:[#allocation3] sm:$0x3] }
   0xb   :  { %v45_v22 = vrot.slane %v44_v20, 4 }
   0xc   :  { %v145_v25 = vcombine.low %v143_v23, %v144_v24  ;;  %v146_v26 = vcombine.high %v143_v23, %v144_v24  ;;  %v37_v34 = vadd.f32 %v36_v21, %v35_v19 }
   0xd   :  { %v46_v35 = vadd.f32 %v45_v22, %v44_v20 }
   0xe   :  { %v152_v32 = vrot.slane %v145_v25, %v151_v31  ;;  %v158_v33 = vrot.slane %v146_v26, %v151_v31  ;;  %v38_v40 = vrot.slane %v37_v34, 2 }
   0xf   :  { %v47_v41 = vrot.slane %v46_v35, 2 }
  0x10   :  { %v87_v38 = vrot.slane %v152_v32, 4  ;;  %v96_v39 = vrot.slane %v158_v33, 4  ;;  %v39_v44 = vadd.f32 %v38_v40, %v37_v34 }
  0x11   :  { %v48_v45 = vadd.f32 %v47_v41, %v46_v35 }
  0x12   :  { %v88_v42 = vadd.f32 %v152_v32, %v87_v38  ;;  %v97_v43 = vadd.f32 %v158_v33, %v96_v39  ;;  %v40_v49 = vrot.slane %v39_v44, 1 }
  0x13   :  { %v49_v50 = vrot.slane %v48_v45, 1 }
  0x14   :  { %v89_v47 = vrot.slane %v88_v42, 2  ;;  %v98_v48 = vrot.slane %v97_v43, 2  ;;  %v41_v53 = vadd.f32 %v40_v49, %v39_v44 }
  0x15   :  { %v50_v54 = vadd.f32 %v49_v50, %v48_v45 }
  0x16   :  { %v90_v51 = vadd.f32 %v89_v47, %v88_v42  ;;  %v99_v52 = vadd.f32 %v98_v48, %v97_v43 }
  0x17   :  { %v53_v58 = vcombine.low %v41_v53, %v50_v54 }
  0x18   :  { %v91_v56 = vrot.slane %v90_v51, 1  ;;  %v100_v57 = vrot.slane %v99_v52, 1 }
  0x19   :  { %v60_v61 = vrot.slane %v53_v58, %v59_v55 }
  0x1a   :  { %v92_v59 = vadd.f32 %v91_v56, %v90_v51  ;;  %v101_v60 = vadd.f32 %v100_v57, %v99_v52 }
  0x1b   :  { %v67_v0 = vrot.slane %v60_v61, %v59_v55 }
  0x1c   :  { %v104_v63 = vcombine.low %v92_v59, %v101_v60 }
  0x1d   :  { %v69_v2 = vadd.f32 %v67_v0, %v32_v62 }
  0x1e   :  { %v111_v1 = vrot.slane %v104_v63, %v59_v55 }
  0x1f   :  { %74 = vst.msk [vmem:[#allocation2] sm:$0x3] %vm186_vm0, %v69_v2 }
  0x20   :  { %v118_v5 = vrot.slane %v111_v1, %v59_v55 }
  0x22   :  { %v120_v6 = vadd.f32 %v118_v5, %v75_v3 }
  0x24   :  { %121 = vst.msk [vmem:[#allocation3] sm:$0x3] %vm186_vm0, %v120_v6 }
  0x26   :  { %v125_v7 = vld [vmem:[#allocation2] sm:$0x3] }
  0x27   :  { %126 = vst.msk [vmem:[%s212_s1] sm:$0x3] %vm186_vm0, %v125_v7 }
  0x2b   :  { %v127_v8 = vld [vmem:[#allocation3] sm:$0x3] }
  0x2c   :  { %128 = vst.msk [vmem:[%s213_s2] sm:$0x3] %vm186_vm0, %v127_v8 }

// kernel: cond_cnn_generator_forward.15
= control target key start
LH: loop header
LB: loop body
LE: loop exit
PB: predicated region body
PF: predicated region fallthrough
CT: control target
= control target key end

     0   :  { %vm584_vm0 = vcmask 523264   ;;  %s1761_s1 = inlined_call_operand.vmem [shape: bf16[576,128], index: 1, kind: input, shape index: {}]   ;;  %s1762_s0 = inlined_call_operand.vmem [shape: bf16[128,576], index: 0, kind: input, shape index: {}]   ;;  %s1763_s2 = inlined_call_operand.vmem [shape: bf16[128,128], index: 2, kind: output, shape index: {}]  }
   0x1   :  { %v1370_v0 = vld [vmem:[%s1761_s1 + $0x40] sm:$0xff]   ;;  %v1374_v4 = vld [vmem:[%s1761_s1 + $0x48] sm:$0xff]   ;;  %v1378_v8 = vld [vmem:[%s1761_s1 + $0x50] sm:$0xff]  }
   0x2   :  { %v1371_v1 = vld [vmem:[%s1761_s1 + $0xc0] sm:$0xff]   ;;  %1198 = vmatprep.subr.bf16.mxu0 %v1370_v0  ;;  %v1375_v5 = vld [vmem:[%s1761_s1 + $0xc8] sm:$0xff]   ;;  %v1379_v9 = vld [vmem:[%s1761_s1 + $0xd0] sm:$0xff]  }
   0x3   :  { %v1372_v2 = vld [vmem:[%s1761_s1] sm:$0xff]   ;;  %1262 = vmatprep.subr.bf16.mxu1 %v1371_v1  ;;  %v1376_v6 = vld [vmem:[%s1761_s1 + $0x8] sm:$0xff]   ;;  %v1380_v10 = vld [vmem:[%s1761_s1 + $0x10] sm:$0xff]  }
   0x4   :  { %v1373_v3 = vld [vmem:[%s1761_s1 + $0x80] sm:$0xff]   ;;  %1199 = vmatpush3.bf16.msra.mxu0 %v1372_v2  ;;  %v1377_v7 = vld [vmem:[%s1761_s1 + $0x88] sm:$0xff]   ;;  %v1381_v11 = vld [vmem:[%s1761_s1 + $0x90] sm:$0xff]  }
   0x5   :  { %1263 = vmatpush3.bf16.msra.mxu1 %v1373_v3  ;;  %1200 = vmatprep.subr.bf16.mxu0 %v1374_v4  ;;  %v1382_v12 = vld [vmem:[%s1761_s1 + $0x58] sm:$0xff]   ;;  %v1386_v16 = vld [vmem:[%s1761_s1 + $0x60] sm:$0xff]   ;;  %v1390_v20 = vld [vmem:[%s1761_s1 + $0x68] sm:$0xff]  }
   0x6   :  { %1264 = vmatprep.subr.bf16.mxu1 %v1375_v5  ;;  %v1383_v13 = vld [vmem:[%s1761_s1 + $0xd8] sm:$0xff]   ;;  %v1387_v17 = vld [vmem:[%s1761_s1 + $0xe0] sm:$0xff]   ;;  %v1391_v21 = vld [vmem:[%s1761_s1 + $0xe8] sm:$0xff]  }
   0x7   :  { %v1384_v14 = vld [vmem:[%s1761_s1 + $0x18] sm:$0xff]   ;;  %v1388_v18 = vld [vmem:[%s1761_s1 + $0x20] sm:$0xff]   ;;  %v1392_v22 = vld [vmem:[%s1761_s1 + $0x28] sm:$0xff]  }
   0x8   :  { %1201 = vmatpush3.bf16.msra.mxu0 %v1376_v6  ;;  %v1385_v15 = vld [vmem:[%s1761_s1 + $0x98] sm:$0xff]   ;;  %v1389_v19 = vld [vmem:[%s1761_s1 + $0xa0] sm:$0xff]   ;;  %v1393_v23 = vld [vmem:[%s1761_s1 + $0xa8] sm:$0xff]  }
   0x9   :  { %1265 = vmatpush3.bf16.msra.mxu1 %v1377_v7  ;;  %1202 = vmatprep.subr.bf16.mxu0 %v1378_v8  ;;  %v1394_v24 = vld [vmem:[%s1761_s1 + $0x70] sm:$0xff]   ;;  %v1398_v28 = vld [vmem:[%s1761_s1 + $0x78] sm:$0xff]   ;;  %v1407_v35 = vld [vmem:[%s1762_s0 + $0xc] ss:$20 sps:$4 sm:$0xff]  }
   0xa   :  { %1266 = vmatprep.subr.bf16.mxu1 %v1379_v9  ;;  %v1395_v25 = vld [vmem:[%s1761_s1 + $0xf0] sm:$0xff]   ;;  %v1399_v29 = vld [vmem:[%s1761_s1 + $0xf8] sm:$0xff]   ;;  %v1408_v36 = vld [vmem:[%s1761_s1 + $0x100] sm:$0xff]   ;;  %738 = vmatprep.mubr.bf16.mxu1 %v1407_v35 }
   0xb   :  { %v1396_v26 = vld [vmem:[%s1761_s1 + $0x30] sm:$0xff]   ;;  %v1400_v30 = vld [vmem:[%s1761_s1 + $0x38] sm:$0xff]   ;;  %v1409_v37 = vld [vmem:[%s1762_s0 + $0x2c] ss:$20 sps:$4 sm:$0xff]  }
   0xc   :  { %1203 = vmatpush3.bf16.msra.mxu0 %v1380_v10  ;;  %v1397_v27 = vld [vmem:[%s1761_s1 + $0xb0] sm:$0xff]   ;;  %v1401_v31 = vld [vmem:[%s1761_s1 + $0xb8] sm:$0xff]   ;;  %v1421_v42 = vld [vmem:[%s1761_s1 + $0x108] sm:$0xff]  }
   0xd   :  { %1267 = vmatpush3.bf16.msra.mxu1 %v1381_v11  ;;  %1204 = vmatprep.subr.bf16.mxu0 %v1382_v12  ;;  %v1402_v32 = vld [vmem:[%s1762_s0] ss:$20 sps:$4 sm:$0xff]   ;;  %v1404_v33 = vld [vmem:[%s1762_s0 + $0x4] ss:$20 sps:$4 sm:$0xff]   ;;  %v1405_v34 = vld [vmem:[%s1762_s0 + $0x8] ss:$20 sps:$4 sm:$0xff]  }
   0xe   :  { %1268 = vmatprep.subr.bf16.mxu1 %v1383_v13  ;;  %641 = vmatprep.mubr.bf16.mxu0 %v1404_v33  ;;  %v1411_v38 = vld [vmem:[%s1762_s0 + $0x34] ss:$20 sps:$4 sm:$0xff]   ;;  %v1414_v40 = vld [vmem:[%s1762_s0 + $0x30] ss:$20 sps:$4 sm:$0xff]   ;;  %v1420_v45 = vld [vmem:[%s1762_s0 + $0x58] ss:$20 sps:$4 sm:$0xff]  }
   0xf   :  { %v1413_v39 = vld [vmem:[%s1762_s0 + $0x28] ss:$20 sps:$4 sm:$0xff]   ;;  %v1419_v44 = vld [vmem:[%s1762_s0 + $0x50] ss:$20 sps:$4 sm:$0xff]   ;;  %v1426_v50 = vld [vmem:[%s1762_s0 + $0x78] ss:$20 sps:$4 sm:$0xff]  }
  0x10   :  { %1205 = vmatpush3.bf16.msra.mxu0 %v1384_v14  ;;  %v1415_v41 = vld [vmem:[%s1762_s0 + $0x54] ss:$20 sps:$4 sm:$0xff]   ;;  %v1417_v43 = vld [vmem:[%s1762_s0 + $0x5c] ss:$20 sps:$4 sm:$0xff]   ;;  %v1424_v48 = vld [vmem:[%s1762_s0 + $0x84] ss:$20 sps:$4 sm:$0xff]  }
  0x11   :  { %1269 = vmatpush3.bf16.msra.mxu1 %v1385_v15  ;;  %1206 = vmatprep.subr.bf16.mxu0 %v1386_v16  ;;  %v1434_v46 = vld [vmem:[%s1761_s1 + $0x110] sm:$0xff]   ;;  %v1447_v49 = vld [vmem:[%s1761_s1 + $0x118] sm:$0xff]   ;;  %v1430_v53 = vld [vmem:[%s1762_s0 + $0xac] ss:$20 sps:$4 sm:$0xff]  }
  0x12   :  { %1270 = vmatprep.subr.bf16.mxu1 %v1387_v17  ;;  %v1422_v47 = vld [vmem:[%s1762_s0 + $0x7c] ss:$20 sps:$4 sm:$0xff]   ;;  %v1427_v51 = vld [vmem:[%s1762_s0 + $0x80] ss:$20 sps:$4 sm:$0xff]   ;;  %v1428_v52 = vld [vmem:[%s1762_s0 + $0xa4] ss:$20 sps:$4 sm:$0xff]  }
  0x13   :  { %v1432_v54 = vld [vmem:[%s1762_s0 + $0xa0] ss:$20 sps:$4 sm:$0xff]   ;;  %v1433_v55 = vld [vmem:[%s1762_s0 + $0xa8] ss:$20 sps:$4 sm:$0xff]   ;;  %v1440_v59 = vld [vmem:[%s1762_s0 + $0xd0] ss:$20 sps:$4 sm:$0xff]  }
  0x14   :  { %1207 = vmatpush3.bf16.msra.mxu0 %v1388_v18  ;;  %v1435_v56 = vld [vmem:[%s1762_s0 + $0xcc] ss:$20 sps:$4 sm:$0xff]   ;;  %v1437_v57 = vld [vmem:[%s1762_s0 + $0xd4] ss:$20 sps:$4 sm:$0xff]   ;;  %v1443_v61 = vld [vmem:[%s1762_s0 + $0xfc] ss:$20 sps:$4 sm:$0xff]  }
  0x15   :  { %1271 = vmatpush3.bf16.msra.mxu1 %v1389_v19  ;;  %1208 = vmatprep.subr.bf16.mxu0 %v1390_v20  ;;  %v1439_v58 = vld [vmem:[%s1762_s0 + $0xc8] ss:$20 sps:$4 sm:$0xff]   ;;  %v1445_v62 = vld [vmem:[%s1762_s0 + $0xf0] ss:$20 sps:$4 sm:$0xff]   ;;  %v1446_v63 = vld [vmem:[%s1762_s0 + $0xf8] ss:$20 sps:$4 sm:$0xff]  }
  0x16   :  { %1272 = vmatprep.subr.bf16.mxu1 %v1391_v21  ;;  %v1441_v60 = vld [vmem:[%s1762_s0 + $0xf4] ss:$20 sps:$4 sm:$0xff]   ;;  %v1448_v0 = vld [vmem:[%s1762_s0 + $0x11c] ss:$20 sps:$4 sm:$0xff]   ;;  %v1450_v1 = vld [vmem:[%s1762_s0 + $0x124] ss:$20 sps:$4 sm:$0xff]  }
  0x17   :  { %v1452_v2 = vld [vmem:[%s1762_s0 + $0x118] ss:$20 sps:$4 sm:$0xff]   ;;  %v1453_v3 = vld [vmem:[%s1762_s0 + $0x120] ss:$20 sps:$4 sm:$0xff]   ;;  %v1454_v4 = vld [vmem:[%s1762_s0 + $0x10] ss:$20 sps:$4 sm:$0xff]  }
  0x18   :  { %1209 = vmatpush3.bf16.msra.mxu0 %v1392_v22  ;;  %v1455_v5 = vld [vmem:[%s1762_s0 + $0xb0] ss:$20 sps:$4 sm:$0xff]   ;;  %v1456_v6 = vld [vmem:[%s1762_s0 + $0x38] ss:$20 sps:$4 sm:$0xff]   ;;  %v1458_v8 = vld [vmem:[%s1762_s0 + $0x60] ss:$20 sps:$4 sm:$0xff]  }
  0x19   :  { %1273 = vmatpush3.bf16.msra.mxu1 %v1393_v23  ;;  %1210 = vmatprep.subr.bf16.mxu0 %v1394_v24  ;;  %v1457_v7 = vld [vmem:[%s1762_s0 + $0xd8] ss:$20 sps:$4 sm:$0xff]   ;;  %v1459_v9 = vld [vmem:[%s1762_s0 + $0x100] ss:$20 sps:$4 sm:$0xff]   ;;  %v1460_v10 = vld [vmem:[%s1762_s0 + $0x88] ss:$20 sps:$4 sm:$0xff]  }
  0x1a   :  { %1274 = vmatprep.subr.bf16.mxu1 %v1395_v25  ;;  %v1461_v11 = vld [vmem:[%s1762_s0 + $0x128] ss:$20 sps:$4 sm:$0xff]  }
  0x1c   :  { %1211 = vmatpush3.bf16.msra.mxu0 %v1396_v26 }
  0x1d   :  { %1275 = vmatpush3.bf16.msra.mxu1 %v1397_v27  ;;  %1212 = vmatprep.subr.bf16.mxu0 %v1398_v28 }
  0x1e   :  { %1276 = vmatprep.subr.bf16.mxu1 %v1399_v29 }
  0x20   :  { %1213 = vmatpush3.bf16.msra.mxu0 %v1400_v30 }
  0x21   :  { %1277 = vmatpush3.bf16.msra.mxu1 %v1401_v31  ;;  %1338 = vmatprep.subr.bf16.mxu0 %v1408_v36 }
  0x22   :  { %1362 = vmatprep.subr.bf16.mxu1 %v1408_v36 }
  0x23   :  { %642 = vmatmul.mubr.bf16.vlgmr.msra.gmra.mrb[0].mxu0 %v1402_v32 }
  0x24   :  { %739 = vmatmul.mubr.bf16.vlgmr.msra.gmra.mrb[0].mxu1 %v1405_v34  ;;  %1339 = vmatpush3.bf16.msra.mxu0 %v1408_v36 }
  0x25   :  { %1366 = vmatpush3.bf16.msra.mxu1 %v1408_v36  ;;  %649 = vmatprep.mubr.bf16.mxu0 %v1409_v37 }
  0x26   :  { %746 = vmatprep.mubr.bf16.mxu1 %v1411_v38  ;;  %1340 = vmatprep.subr.bf16.mxu0 %v1421_v42 }
  0x27   :  { %1363 = vmatprep.subr.bf16.mxu1 %v1421_v42 }
  0x28   :  { %1341 = vmatpush3.bf16.msra.mxu0 %v1421_v42 }
  0x29   :  { %1367 = vmatpush3.bf16.msra.mxu1 %v1421_v42  ;;  %1342 = vmatprep.subr.bf16.mxu0 %v1434_v46 }
  0x2a   :  { %1364 = vmatprep.subr.bf16.mxu1 %v1434_v46 }
  0x2b   :  { %650 = vmatmul.mubr.bf16.gmra.mrb[4].mxu0 %v1413_v39 }
  0x2c   :  { %747 = vmatmul.mubr.bf16.gmra.mrb[4].mxu1 %v1414_v40  ;;  %657 = vmatprep.mubr.bf16.mxu0 %v1415_v41 }
  0x2d   :  { %754 = vmatprep.mubr.bf16.mxu1 %v1417_v43  ;;  %1343 = vmatpush3.bf16.msra.mxu0 %v1434_v46 }
  0x2e   :  { %1368 = vmatpush3.bf16.msra.mxu1 %v1434_v46  ;;  %1344 = vmatprep.subr.bf16.mxu0 %v1447_v49 }
  0x2f   :  { %1365 = vmatprep.subr.bf16.mxu1 %v1447_v49 }
  0x31   :  { %1345 = vmatpush3.bf16.msra.mxu0 %v1447_v49 }
  0x32   :  { %1369 = vmatpush3.bf16.msra.mxu1 %v1447_v49 }
  0x33   :  { %658 = vmatmul.mubr.bf16.gmra.mrb[8].mxu0 %v1419_v44 }
  0x34   :  { %755 = vmatmul.mubr.bf16.gmra.mrb[8].mxu1 %v1420_v45  ;;  %665 = vmatprep.mubr.bf16.mxu0 %v1422_v47 }
  0x35   :  { %762 = vmatprep.mubr.bf16.mxu1 %v1424_v48 }
  0x3b   :  { %666 = vmatmul.mubr.bf16.gmra.mrb[12].mxu0 %v1426_v50 }
  0x3c   :  { %763 = vmatmul.mubr.bf16.gmra.mrb[12].mxu1 %v1427_v51  ;;  %673 = vmatprep.mubr.bf16.mxu0 %v1428_v52 }
  0x3d   :  { %770 = vmatprep.mubr.bf16.mxu1 %v1430_v53 }
  0x43   :  { %674 = vmatmul.mubr.bf16.gmra.mrb[16].mxu0 %v1432_v54 }
  0x44   :  { %771 = vmatmul.mubr.bf16.gmra.mrb[16].mxu1 %v1433_v55  ;;  %681 = vmatprep.mubr.bf16.mxu0 %v1435_v56 }
  0x45   :  { %778 = vmatprep.mubr.bf16.mxu1 %v1437_v57 }
  0x4b   :  { %682 = vmatmul.mubr.bf16.gmra.mrb[20].mxu0 %v1439_v58 }
  0x4c   :  { %779 = vmatmul.mubr.bf16.gmra.mrb[20].mxu1 %v1440_v59  ;;  %689 = vmatprep.mubr.bf16.mxu0 %v1441_v60 }
  0x4d   :  { %786 = vmatprep.mubr.bf16.mxu1 %v1443_v61 }
  0x53   :  { %690 = vmatmul.mubr.bf16.gmra.mrb[24].mxu0 %v1445_v62 }
  0x54   :  { %787 = vmatmul.mubr.bf16.gmra.mrb[24].mxu1 %v1446_v63  ;;  %697 = vmatprep.mubr.bf16.mxu0 %v1448_v0 }
  0x55   :  { %794 = vmatprep.mubr.bf16.mxu1 %v1450_v1 }
  0x5b   :  { %698 = vmatmul.mubr.bf16.gmra.mrb[28].mxu0 %v1452_v2 }
  0x5c   :  { %795 = vmatmul.mubr.bf16.gmra.mrb[28].mxu1 %v1453_v3  ;;  %1346 = vmatprep.mubr.msk.bf16.mxu0 %vm584_vm0, %v1454_v4 }
  0x5d   :  { %1354 = vmatprep.mubr.msk.bf16.mxu1 %vm584_vm0, %v1455_v5 }
  0x63   :  { %1347 = vmatmul.mubr.msk.bf16.vlgmr.msra.gmra.mrb[32].mxu0 %vm584_vm0, %v1456_v6 }
  0x64   :  { %1355 = vmatmul.mubr.msk.bf16.vlgmr.msra.gmra.mrb[32].mxu1 %vm584_vm0, %v1457_v7  ;;  %1350 = vmatprep.mubr.msk.bf16.mxu0 %vm584_vm0, %v1458_v8 }
  0x65   :  { %1358 = vmatprep.mubr.msk.bf16.mxu1 %vm584_vm0, %v1459_v9 }
  0x6b   :  { %1351 = vmatmul.mubr.msk.bf16.gmra.mrb[36].mxu0 %vm584_vm0, %v1460_v10 }
  0x6c   :  { %1359 = vmatmul.mubr.msk.bf16.gmra.mrb[36].mxu1 %vm584_vm0, %v1461_v11 }
  0xf6   :  { %v1214_v12 = vpop.f32.mrb[0].mxu0 }
  0xf7   :  { %v1278_v13 = vpop.f32.mrb[0].mxu1  ;;  %v1215_v14 = vpop.f32.mrb[1].mxu0 }
  0xf8   :  { %v1216_v15 = vadd.f32 %v1215_v14, %v1214_v12  ;;  %v1279_v16 = vpop.f32.mrb[1].mxu1  ;;  %v1217_v17 = vpop.f32.mrb[2].mxu0 }
  0xf9   :  { %v1280_v18 = vadd.f32 %v1279_v16, %v1278_v13  ;;  %v1281_v19 = vpop.f32.mrb[2].mxu1  ;;  %v1218_v20 = vpop.f32.mrb[3].mxu0 }
  0xfa   :  { %v1219_v21 = vadd.f32 %v1218_v20, %v1217_v17  ;;  %v1282_v22 = vpop.f32.mrb[3].mxu1 }
  0xfb   :  { %v1283_v23 = vadd.f32 %v1282_v22, %v1281_v19  ;;  %v1713_v24 = vadd.f32 %v1280_v18, %v1216_v15 }
  0xfd   :  { %v1715_v25 = vadd.f32 %v1283_v23, %v1219_v21 }
  0xfe   :  { %v1220_v26 = vpop.f32.mrb[4].mxu0 }
  0xff   :  { %v1284_v27 = vpop.f32.mrb[4].mxu1  ;;  %v1221_v28 = vpop.f32.mrb[5].mxu0 }
 0x100   :  { %v1222_v29 = vadd.f32 %v1221_v28, %v1220_v26  ;;  %v1285_v30 = vpop.f32.mrb[5].mxu1  ;;  %v1223_v31 = vpop.f32.mrb[6].mxu0 }
 0x101   :  { %v1286_v32 = vadd.f32 %v1285_v30, %v1284_v27  ;;  %v1287_v33 = vpop.f32.mrb[6].mxu1  ;;  %v1224_v34 = vpop.f32.mrb[7].mxu0 }
 0x102   :  { %v1225_v35 = vadd.f32 %v1224_v34, %v1223_v31  ;;  %v1288_v36 = vpop.f32.mrb[7].mxu1 }
 0x103   :  { %v1289_v37 = vadd.f32 %v1288_v36, %v1287_v33  ;;  %v1717_v38 = vadd.f32 %v1286_v32, %v1222_v29 }
 0x105   :  { %v1719_v39 = vadd.f32 %v1289_v37, %v1225_v35 }
 0x106   :  { %v1226_v40 = vpop.f32.mrb[8].mxu0 }
 0x107   :  { %v1290_v41 = vpop.f32.mrb[8].mxu1  ;;  %v1227_v42 = vpop.f32.mrb[9].mxu0 }
 0x108   :  { %v1228_v43 = vadd.f32 %v1227_v42, %v1226_v40  ;;  %v1291_v44 = vpop.f32.mrb[9].mxu1  ;;  %v1229_v45 = vpop.f32.mrb[10].mxu0 }
 0x109   :  { %v1292_v46 = vadd.f32 %v1291_v44, %v1290_v41  ;;  %v1293_v47 = vpop.f32.mrb[10].mxu1  ;;  %v1230_v48 = vpop.f32.mrb[11].mxu0 }
 0x10a   :  { %v1231_v49 = vadd.f32 %v1230_v48, %v1229_v45  ;;  %v1294_v50 = vpop.f32.mrb[11].mxu1 }
 0x10b   :  { %v1295_v51 = vadd.f32 %v1294_v50, %v1293_v47  ;;  %v1721_v52 = vadd.f32 %v1292_v46, %v1228_v43 }
 0x10d   :  { %v1723_v53 = vadd.f32 %v1295_v51, %v1231_v49 }
 0x10e   :  { %v1232_v54 = vpop.f32.mrb[12].mxu0 }
 0x10f   :  { %v1296_v55 = vpop.f32.mrb[12].mxu1  ;;  %v1233_v56 = vpop.f32.mrb[13].mxu0 }
 0x110   :  { %v1234_v57 = vadd.f32 %v1233_v56, %v1232_v54  ;;  %v1297_v58 = vpop.f32.mrb[13].mxu1  ;;  %v1235_v59 = vpop.f32.mrb[14].mxu0 }
 0x111   :  { %v1298_v60 = vadd.f32 %v1297_v58, %v1296_v55  ;;  %v1299_v61 = vpop.f32.mrb[14].mxu1  ;;  %v1236_v62 = vpop.f32.mrb[15].mxu0 }
 0x112   :  { %v1237_v63 = vadd.f32 %v1236_v62, %v1235_v59  ;;  %v1300_v0 = vpop.f32.mrb[15].mxu1 }
 0x113   :  { %v1301_v1 = vadd.f32 %v1300_v0, %v1299_v61  ;;  %v1725_v2 = vadd.f32 %v1298_v60, %v1234_v57 }
 0x115   :  { %v1727_v3 = vadd.f32 %v1301_v1, %v1237_v63 }
 0x116   :  { %v1238_v4 = vpop.f32.mrb[16].mxu0 }
 0x117   :  { %v1302_v5 = vpop.f32.mrb[16].mxu1  ;;  %v1239_v6 = vpop.f32.mrb[17].mxu0 }
 0x118   :  { %v1240_v7 = vadd.f32 %v1239_v6, %v1238_v4  ;;  %v1303_v8 = vpop.f32.mrb[17].mxu1  ;;  %v1241_v9 = vpop.f32.mrb[18].mxu0 }
 0x119   :  { %v1304_v10 = vadd.f32 %v1303_v8, %v1302_v5  ;;  %v1305_v11 = vpop.f32.mrb[18].mxu1  ;;  %v1242_v12 = vpop.f32.mrb[19].mxu0 }
 0x11a   :  { %v1243_v13 = vadd.f32 %v1242_v12, %v1241_v9  ;;  %v1306_v14 = vpop.f32.mrb[19].mxu1 }
 0x11b   :  { %v1307_v15 = vadd.f32 %v1306_v14, %v1305_v11  ;;  %v773_v16 = vadd.f32 %v1304_v10, %v1240_v7 }
 0x11d   :  { %v776_v17 = vadd.f32 %v1307_v15, %v1243_v13 }
 0x11e   :  { %v1244_v18 = vpop.f32.mrb[20].mxu0 }
 0x11f   :  { %v1308_v19 = vpop.f32.mrb[20].mxu1  ;;  %v1245_v20 = vpop.f32.mrb[21].mxu0 }
 0x120   :  { %v1246_v21 = vadd.f32 %v1245_v20, %v1244_v18  ;;  %v1309_v22 = vpop.f32.mrb[21].mxu1  ;;  %v1247_v23 = vpop.f32.mrb[22].mxu0 }
 0x121   :  { %v1310_v26 = vadd.f32 %v1309_v22, %v1308_v19  ;;  %v1311_v27 = vpop.f32.mrb[22].mxu1  ;;  %v1248_v28 = vpop.f32.mrb[23].mxu0 }
 0x122   :  { %v1249_v29 = vadd.f32 %v1248_v28, %v1247_v23  ;;  %v1312_v30 = vpop.f32.mrb[23].mxu1 }
 0x123   :  { %v1313_v31 = vadd.f32 %v1312_v30, %v1311_v27  ;;  %v781_v32 = vadd.f32 %v1310_v26, %v1246_v21 }
 0x125   :  { %v784_v33 = vadd.f32 %v1313_v31, %v1249_v29 }
 0x126   :  { %v1250_v34 = vpop.f32.mrb[24].mxu0 }
 0x127   :  { %v1314_v35 = vpop.f32.mrb[24].mxu1  ;;  %v1251_v36 = vpop.f32.mrb[25].mxu0 }
 0x128   :  { %v1252_v37 = vadd.f32 %v1251_v36, %v1250_v34  ;;  %v1315_v40 = vpop.f32.mrb[25].mxu1  ;;  %v1253_v41 = vpop.f32.mrb[26].mxu0 }
 0x129   :  { %v1316_v42 = vadd.f32 %v1315_v40, %v1314_v35  ;;  %v1317_v43 = vpop.f32.mrb[26].mxu1  ;;  %v1254_v44 = vpop.f32.mrb[27].mxu0 }
 0x12a   :  { %v1255_v45 = vadd.f32 %v1254_v44, %v1253_v41  ;;  %v1318_v46 = vpop.f32.mrb[27].mxu1 }
 0x12b   :  { %v1319_v47 = vadd.f32 %v1318_v46, %v1317_v43  ;;  %v789_v48 = vadd.f32 %v1316_v42, %v1252_v37 }
 0x12d   :  { %v792_v49 = vadd.f32 %v1319_v47, %v1255_v45 }
 0x12e   :  { %v1256_v50 = vpop.f32.mrb[28].mxu0 }
 0x12f   :  { %v1320_v51 = vpop.f32.mrb[28].mxu1  ;;  %v1257_v54 = vpop.f32.mrb[29].mxu0 }
 0x130   :  { %v1258_v55 = vadd.f32 %v1257_v54, %v1256_v50  ;;  %v1321_v56 = vpop.f32.mrb[29].mxu1  ;;  %v1259_v57 = vpop.f32.mrb[30].mxu0 }
 0x131   :  { %v1322_v58 = vadd.f32 %v1321_v56, %v1320_v51  ;;  %v1323_v59 = vpop.f32.mrb[30].mxu1  ;;  %v1260_v60 = vpop.f32.mrb[31].mxu0 }
 0x132   :  { %v1261_v61 = vadd.f32 %v1260_v60, %v1259_v57  ;;  %v1324_v62 = vpop.f32.mrb[31].mxu1 }
 0x133   :  { %v1325_v63 = vadd.f32 %v1324_v62, %v1323_v59  ;;  %v797_v0 = vadd.f32 %v1322_v58, %v1258_v55 }
 0x135   :  { %v800_v1 = vadd.f32 %v1325_v63, %v1261_v61 }
 0x136   :  { %v1348_v4 = vpop.f32.mrb[32].mxu0 }
 0x137   :  { %v846_v5 = vadd.f32 %v1348_v4, %v1717_v38  ;;  %v1356_v6 = vpop.f32.mrb[32].mxu1  ;;  %v837_v7 = vpop.f32.mrb[33].mxu0 }
 0x138   :  { %v878_v8 = vadd.f32 %v1356_v6, %v781_v32  ;;  %v838_v9 = vadd.f32 %v837_v7, %v1713_v24  ;;  %v869_v10 = vpop.f32.mrb[33].mxu1  ;;  %v1349_v11 = vpop.f32.mrb[34].mxu0 }
 0x139   :  { %v870_v12 = vadd.f32 %v869_v10, %v773_v16  ;;  %v849_v13 = vadd.f32 %v1349_v11, %v1719_v39  ;;  %v1357_v14 = vpop.f32.mrb[34].mxu1  ;;  %v840_v15 = vpop.f32.mrb[35].mxu0 }
 0x13a   :  { %v881_v18 = vadd.f32 %v1357_v14, %v784_v33  ;;  %v841_v19 = vadd.f32 %v840_v15, %v1715_v25  ;;  %v872_v20 = vpop.f32.mrb[35].mxu1 }
 0x13b   :  { %v1159_v21 = vpack.c.bf16 %v849_v13, %v846_v5  ;;  %v873_v22 = vadd.f32 %v872_v20, %v776_v17 }
 0x13c   :  { %v1179_v23 = vpack.c.bf16 %v881_v18, %v878_v8  ;;  %v1154_v38 = vpack.c.bf16 %v841_v19, %v838_v9 }
 0x13d   :  { %1191 = vst [vmem:[%s1763_s2 + $0x8] sm:$0xff] %v1159_v21   ;;  %v1174_v24 = vpack.c.bf16 %v873_v22, %v870_v12 }
 0x13e   :  { %1195 = vst [vmem:[%s1763_s2 + $0x28] sm:$0xff] %v1179_v23   ;;  %1155 = vst [vmem:[%s1763_s2] sm:$0xff] %v1154_v38   ;;  %v1352_v39 = vpop.f32.mrb[36].mxu0 }
 0x13f   :  { %1194 = vst [vmem:[%s1763_s2 + $0x20] sm:$0xff] %v1174_v24   ;;  %v862_v25 = vadd.f32 %v1352_v39, %v1725_v2  ;;  %v1360_v16 = vpop.f32.mrb[36].mxu1  ;;  %v853_v17 = vpop.f32.mrb[37].mxu0 }
 0x140   :  { %v894_v26 = vadd.f32 %v1360_v16, %v797_v0  ;;  %v854_v27 = vadd.f32 %v853_v17, %v1721_v52  ;;  %v885_v28 = vpop.f32.mrb[37].mxu1  ;;  %v1353_v29 = vpop.f32.mrb[38].mxu0 }
 0x141   :  { %v886_v30 = vadd.f32 %v885_v28, %v789_v48  ;;  %v865_v31 = vadd.f32 %v1353_v29, %v1727_v3  ;;  %v1361_v32 = vpop.f32.mrb[38].mxu1  ;;  %v856_v33 = vpop.f32.mrb[39].mxu0 }
 0x142   :  { %v897_v34 = vadd.f32 %v1361_v32, %v800_v1  ;;  %v857_v35 = vadd.f32 %v856_v33, %v1723_v53  ;;  %v888_v36 = vpop.f32.mrb[39].mxu1 }
 0x143   :  { %v1169_v37 = vpack.c.bf16 %v865_v31, %v862_v25  ;;  %v889_v40 = vadd.f32 %v888_v36, %v792_v49 }
 0x144   :  { %v1189_v41 = vpack.c.bf16 %v897_v34, %v894_v26  ;;  %v1164_v2 = vpack.c.bf16 %v857_v35, %v854_v27 }
 0x145   :  { %1193 = vst [vmem:[%s1763_s2 + $0x18] sm:$0xff] %v1169_v37   ;;  %v1184_v52 = vpack.c.bf16 %v889_v40, %v886_v30 }
 0x146   :  { %1197 = vst [vmem:[%s1763_s2 + $0x38] sm:$0xff] %v1189_v41   ;;  %1192 = vst [vmem:[%s1763_s2 + $0x10] sm:$0xff] %v1164_v2  }
 0x147   :  { %1196 = vst [vmem:[%s1763_s2 + $0x30] sm:$0xff] %v1184_v52  }

// kernel: cond_cnn_generator_forward.16
= control target key start
LH: loop header
LB: loop body
LE: loop exit
PB: predicated region body
PF: predicated region fallthrough
CT: control target
= control target key end

     0   :  { %v167_v0 = vmov 0.0   ;;  %s213_s0 = inlined_call_operand.vmem [shape: bf16[128,128], index: 0, kind: input, shape index: {}]   ;;  %s214_s1 = inlined_call_operand.vmem [shape: f32[1,128], index: 1, kind: output, shape index: {0}]   ;;  %s215_s2 = inlined_call_operand.vmem [shape: f32[1,128], index: 2, kind: output, shape index: {1}]  }
   0x1   :  { %14 = vst [vmem:[#allocation2] sm:$0x1] %v167_v0  ;;  %15 = vst [vmem:[#allocation3] sm:$0x1] %v167_v0  ;;  %v128_v1 = vld [vmem:[%s213_s0] sm:$0xff]   ;;  %v159_v2 = vld [vmem:[%s213_s0 + $0x8] sm:$0xff]  }
   0x2   :  { %v129_v3 = vunpack.c.l.bf16 %v128_v1  ;;  %v130_v4 = vunpack.c.h.bf16 %v128_v1  ;;  %v133_v5 = vunpack.c.l.bf16 %v159_v2  ;;  %v160_v6 = vld [vmem:[%s213_s0 + $0x10] sm:$0xff]   ;;  %v134_v7 = vunpack.c.h.bf16 %v159_v2  ;;  %v161_v14 = vld [vmem:[%s213_s0 + $0x18] sm:$0xff]   ;;  %v162_v23 = vld [vmem:[%s213_s0 + $0x20] sm:$0xff]  }
   0x3   :  { %v137_v11 = vunpack.c.l.bf16 %v160_v6  ;;  %v138_v15 = vunpack.c.h.bf16 %v160_v6  ;;  %v141_v19 = vunpack.c.l.bf16 %v161_v14  ;;  %v142_v24 = vunpack.c.h.bf16 %v161_v14  ;;  %v163_v32 = vld [vmem:[%s213_s0 + $0x28] sm:$0xff]   ;;  %v164_v41 = vld [vmem:[%s213_s0 + $0x30] sm:$0xff]   ;;  %v165_v50 = vld [vmem:[%s213_s0 + $0x38] sm:$0xff]  }
   0x4   :  { %v49_v8 = vadd.f32 %v130_v4, %v129_v3  ;;  %v73_v9 = vmul.f32 %v129_v3, %v129_v3  ;;  %v74_v10 = vmul.f32 %v130_v4, %v130_v4  ;;  %v75_v13 = vmul.f32 %v133_v5, %v133_v5 }
   0x5   :  { %v76_v17 = vmul.f32 %v134_v7, %v134_v7  ;;  %v77_v21 = vmul.f32 %v137_v11, %v137_v11  ;;  %v78_v26 = vmul.f32 %v138_v15, %v138_v15  ;;  %v145_v28 = vunpack.c.l.bf16 %v162_v23 }
   0x6   :  { %v50_v12 = vadd.f32 %v133_v5, %v49_v8  ;;  %v89_v18 = vadd.f32 %v74_v10, %v73_v9  ;;  %v79_v30 = vmul.f32 %v141_v19, %v141_v19  ;;  %v146_v33 = vunpack.c.h.bf16 %v162_v23 }
   0x7   :  { %v80_v35 = vmul.f32 %v142_v24, %v142_v24  ;;  %v149_v37 = vunpack.c.l.bf16 %v163_v32  ;;  %v81_v39 = vmul.f32 %v145_v28, %v145_v28  ;;  %v150_v42 = vunpack.c.h.bf16 %v163_v32 }
   0x8   :  { %v51_v16 = vadd.f32 %v134_v7, %v50_v12  ;;  %v90_v22 = vadd.f32 %v89_v18, %v75_v13  ;;  %v82_v44 = vmul.f32 %v146_v33, %v146_v33  ;;  %v153_v46 = vunpack.c.l.bf16 %v164_v41 }
   0x9   :  { %v83_v48 = vmul.f32 %v149_v37, %v149_v37  ;;  %v154_v51 = vunpack.c.h.bf16 %v164_v41  ;;  %v84_v53 = vmul.f32 %v150_v42, %v150_v42  ;;  %v157_v55 = vunpack.c.l.bf16 %v165_v50 }
   0xa   :  { %v52_v20 = vadd.f32 %v137_v11, %v51_v16  ;;  %v91_v27 = vadd.f32 %v90_v22, %v76_v17  ;;  %v85_v57 = vmul.f32 %v153_v46, %v153_v46  ;;  %v158_v59 = vunpack.c.h.bf16 %v165_v50 }
   0xb   :  { %v86_v61 = vmul.f32 %v154_v51, %v154_v51  ;;  %v87_v0 = vmul.f32 %v157_v55, %v157_v55 }
   0xc   :  { %v53_v25 = vadd.f32 %v138_v15, %v52_v20  ;;  %v92_v31 = vadd.f32 %v91_v27, %v77_v21  ;;  %v88_v3 = vmul.f32 %v158_v59, %v158_v59  ;;  %v48_v15 = vld [vmem:[#allocation2] sm:$0x1]  ;;  %v72_v20 = vld [vmem:[#allocation3] sm:$0x1] }
   0xe   :  { %v54_v29 = vadd.f32 %v141_v19, %v53_v25  ;;  %v93_v36 = vadd.f32 %v92_v31, %v78_v26 }
  0x10   :  { %v55_v34 = vadd.f32 %v142_v24, %v54_v29  ;;  %v94_v40 = vadd.f32 %v93_v36, %v79_v30 }
  0x12   :  { %v56_v38 = vadd.f32 %v145_v28, %v55_v34  ;;  %v95_v45 = vadd.f32 %v94_v40, %v80_v35 }
  0x14   :  { %v57_v43 = vadd.f32 %v146_v33, %v56_v38  ;;  %v96_v49 = vadd.f32 %v95_v45, %v81_v39 }
  0x16   :  { %v58_v47 = vadd.f32 %v149_v37, %v57_v43  ;;  %v97_v54 = vadd.f32 %v96_v49, %v82_v44 }
  0x18   :  { %v59_v52 = vadd.f32 %v150_v42, %v58_v47  ;;  %v98_v58 = vadd.f32 %v97_v54, %v83_v48 }
  0x1a   :  { %v60_v56 = vadd.f32 %v153_v46, %v59_v52  ;;  %v99_v62 = vadd.f32 %v98_v58, %v84_v53 }
  0x1c   :  { %v61_v60 = vadd.f32 %v154_v51, %v60_v56  ;;  %v100_v1 = vadd.f32 %v99_v62, %v85_v57 }
  0x1e   :  { %v62_v63 = vadd.f32 %v157_v55, %v61_v60  ;;  %v101_v4 = vadd.f32 %v100_v1, %v86_v61 }
  0x20   :  { %v63_v2 = vadd.f32 %v158_v59, %v62_v63  ;;  %v102_v6 = vadd.f32 %v101_v4, %v87_v0 }
  0x22   :  { %v64_v5 = vrot.slane %v63_v2, 4  ;;  %v103_v8 = vadd.f32 %v102_v6, %v88_v3 }
  0x24   :  { %v65_v7 = vadd.f32 %v64_v5, %v63_v2  ;;  %v104_v10 = vrot.slane %v103_v8, 4 }
  0x26   :  { %v66_v9 = vrot.slane %v65_v7, 2  ;;  %v105_v12 = vadd.f32 %v104_v10, %v103_v8 }
  0x28   :  { %v67_v11 = vadd.f32 %v66_v9, %v65_v7  ;;  %v106_v14 = vrot.slane %v105_v12, 2 }
  0x2a   :  { %v68_v13 = vrot.slane %v67_v11, 1  ;;  %v107_v17 = vadd.f32 %v106_v14, %v105_v12 }
  0x2c   :  { %v69_v16 = vadd.f32 %v68_v13, %v67_v11  ;;  %v108_v19 = vrot.slane %v107_v17, 1 }
  0x2e   :  { %v70_v18 = vadd.f32 %v69_v16, %v48_v15  ;;  %v109_v21 = vadd.f32 %v108_v19, %v107_v17 }
  0x30   :  { %71 = vst [vmem:[#allocation2] sm:$0x1] %v70_v18  ;;  %v110_v22 = vadd.f32 %v109_v21, %v72_v20 }
  0x32   :  { %111 = vst [vmem:[#allocation3] sm:$0x1] %v110_v22 }
  0x37   :  { %v115_v23 = vld [vmem:[#allocation2] sm:$0x1] }
  0x38   :  { %116 = vst [vmem:[%s214_s1] sm:$0x1] %v115_v23 }
  0x39   :  { %v117_v24 = vld [vmem:[#allocation3] sm:$0x1] }
  0x3a   :  { %118 = vst [vmem:[%s215_s2] sm:$0x1] %v117_v24 }

// kernel: cond_cnn_generator_forward.18
= control target key start
LH: loop header
LB: loop body
LE: loop exit
PB: predicated region body
PF: predicated region fallthrough
CT: control target
= control target key end

     0   :  { %vm14_vm0 = vcmask 516096   ;;  %v658_v0 = vmov 0.0   ;;  %vm146_vm1 = vcmask 523264   ;;  %s1443_s0 = inlined_call_operand.vmem [shape: bf16[512,64], index: 0, kind: input, shape index: {}]   ;;  %s1444_s1 = inlined_call_operand.vmem [shape: f32[1,64], index: 1, kind: output, shape index: {0}]   ;;  %s1445_s2 = inlined_call_operand.vmem [shape: f32[1,64], index: 2, kind: output, shape index: {1}]  }
   0x1   :  { %15 = vst.msk [vmem:[#allocation2] sm:$0x1] %vm14_vm0, %v658_v0  ;;  %16 = vst.msk [vmem:[#allocation3] sm:$0x1] %vm14_vm0, %v658_v0  ;;  %v499_v1 = vld [vmem:[%s1443_s0] sm:$0xff]   ;;  %v626_v2 = vld [vmem:[%s1443_s0 + $0x8] sm:$0xff]  }
   0x2   :  { %v627_v3 = vld [vmem:[%s1443_s0 + $0x10] sm:$0xff]   ;;  %v628_v4 = vld [vmem:[%s1443_s0 + $0x18] sm:$0xff]   ;;  %v629_v5 = vld [vmem:[%s1443_s0 + $0x20] sm:$0xff]   ;;  %v694_v7 = vunpack.c.l.bf16 %v499_v1  ;;  %v696_v8 = vunpack.c.h.bf16 %v499_v1  ;;  %v698_v9 = vunpack.c.l.bf16 %v626_v2  ;;  %v706_v12 = vunpack.c.h.bf16 %v626_v2 }
   0x3   :  { %v630_v6 = vld [vmem:[%s1443_s0 + $0x28] sm:$0xff]   ;;  %v643_v11 = vld [vmem:[%s1443_s0 + $0x90] sm:$0xff]   ;;  %v708_v13 = vunpack.c.l.bf16 %v627_v3  ;;  %v710_v14 = vunpack.c.h.bf16 %v627_v3  ;;  %v712_v15 = vunpack.c.l.bf16 %v628_v4  ;;  %v644_v16 = vld [vmem:[%s1443_s0 + $0x98] sm:$0xff]   ;;  %v720_v18 = vunpack.c.h.bf16 %v628_v4 }
   0x4   :  { %v642_v10 = vld [vmem:[%s1443_s0 + $0x88] sm:$0xff]   ;;  %v645_v17 = vld [vmem:[%s1443_s0 + $0xa0] sm:$0xff]   ;;  %v722_v19 = vunpack.c.l.bf16 %v629_v5  ;;  %v724_v20 = vunpack.c.h.bf16 %v629_v5  ;;  %v726_v21 = vunpack.c.l.bf16 %v630_v6  ;;  %v728_v22 = vunpack.c.h.bf16 %v630_v6  ;;  %v647_v27 = vld [vmem:[%s1443_s0 + $0xb0] sm:$0xff]  }
   0x5   :  { %v730_v23 = vunpack.c.l.bf16 %v642_v10  ;;  %v732_v24 = vunpack.c.h.bf16 %v642_v10  ;;  %v734_v25 = vunpack.c.l.bf16 %v643_v11  ;;  %v646_v26 = vld [vmem:[%s1443_s0 + $0xa8] sm:$0xff]   ;;  %v742_v28 = vunpack.c.h.bf16 %v643_v11  ;;  %v648_v32 = vld [vmem:[%s1443_s0 + $0xb8] sm:$0xff]   ;;  %v649_v34 = vld [vmem:[%s1443_s0 + $0xc0] sm:$0xff]  }
   0x6   :  { %v744_v29 = vunpack.c.l.bf16 %v644_v16  ;;  %v746_v30 = vunpack.c.h.bf16 %v644_v16  ;;  %v748_v31 = vunpack.c.l.bf16 %v645_v17  ;;  %v753_v33 = vunpack.c.h.bf16 %v645_v17  ;;  %v650_v35 = vld [vmem:[%s1443_s0 + $0xc8] sm:$0xff]   ;;  %v651_v42 = vld [vmem:[%s1443_s0 + $0xd0] sm:$0xff]   ;;  %v652_v47 = vld [vmem:[%s1443_s0 + $0xd8] sm:$0xff]  }
   0x7   :  { %v147_v36 = vsel %vm146_vm1, %v694_v7, 0.0  ;;  %v148_v37 = vsel %vm146_vm1, %v696_v8, 0.0  ;;  %v150_v38 = vsel %vm146_vm1, %v698_v9, 0.0  ;;  %v767_v39 = vunpack.c.l.bf16 %v646_v26  ;;  %v653_v48 = vld [vmem:[%s1443_s0 + $0xe0] sm:$0xff]   ;;  %v654_v53 = vld [vmem:[%s1443_s0 + $0xe8] sm:$0xff]   ;;  %v655_v58 = vld [vmem:[%s1443_s0 + $0xf0] sm:$0xff]  }
   0x8   :  { %v769_v40 = vunpack.c.h.bf16 %v646_v26  ;;  %v771_v41 = vunpack.c.l.bf16 %v647_v27  ;;  %v149_v43 = vadd.f32 %v148_v37, %v147_v36  ;;  %v776_v44 = vunpack.c.h.bf16 %v647_v27  ;;  %v656_v59 = vld [vmem:[%s1443_s0 + $0xf8] sm:$0xff]  }
   0x9   :  { %v778_v45 = vunpack.c.l.bf16 %v648_v32  ;;  %v780_v46 = vunpack.c.h.bf16 %v648_v32  ;;  %v152_v49 = vsel %vm146_vm1, %v706_v12, 0.0  ;;  %v790_v50 = vunpack.c.l.bf16 %v649_v34 }
   0xa   :  { %v792_v51 = vunpack.c.h.bf16 %v649_v34  ;;  %v794_v52 = vunpack.c.l.bf16 %v650_v35  ;;  %v151_v54 = vadd.f32 %v150_v38, %v149_v43  ;;  %v799_v55 = vunpack.c.h.bf16 %v650_v35 }
   0xb   :  { %v801_v56 = vunpack.c.l.bf16 %v651_v42  ;;  %v803_v57 = vunpack.c.h.bf16 %v651_v42  ;;  %v154_v60 = vsel %vm146_vm1, %v708_v13, 0.0  ;;  %v813_v61 = vunpack.c.l.bf16 %v652_v47 }
   0xc   :  { %v815_v62 = vunpack.c.h.bf16 %v652_v47  ;;  %v817_v63 = vunpack.c.l.bf16 %v653_v48  ;;  %v153_v0 = vadd.f32 %v152_v49, %v151_v54  ;;  %v819_v1 = vunpack.c.h.bf16 %v653_v48 }
   0xd   :  { %v821_v2 = vunpack.c.l.bf16 %v654_v53  ;;  %v823_v3 = vunpack.c.h.bf16 %v654_v53  ;;  %v156_v4 = vsel %vm146_vm1, %v710_v14, 0.0  ;;  %v827_v5 = vunpack.c.l.bf16 %v655_v58 }
   0xe   :  { %1468 = vst [vmem:[#allocation4_spill] sm:$0xff] %v815_v62  ;;  %1469 = vst [vmem:[#allocation5_spill] sm:$0xff] %v817_v63  ;;  %v829_v6 = vunpack.c.h.bf16 %v655_v58  ;;  %v831_v10 = vunpack.c.l.bf16 %v656_v59  ;;  %v155_v11 = vadd.f32 %v154_v60, %v153_v0  ;;  %v833_v16 = vunpack.c.h.bf16 %v656_v59 }
   0xf   :  { %1470 = vst [vmem:[#allocation6_spill] sm:$0xff] %v819_v1  ;;  %1471 = vst [vmem:[#allocation7_spill] sm:$0xff] %v821_v2  ;;  %v158_v17 = vsel %vm146_vm1, %v712_v15, 0.0  ;;  %v160_v26 = vsel %vm146_vm1, %v720_v18, 0.0  ;;  %v162_v27 = vsel %vm146_vm1, %v722_v19, 0.0  ;;  %v164_v34 = vsel %vm146_vm1, %v724_v20, 0.0 }
  0x10   :  { %1472 = vst [vmem:[#allocation8_spill] sm:$0xff] %v823_v3  ;;  %1473 = vst [vmem:[#allocation9_spill] sm:$0xff] %v827_v5  ;;  %v157_v32 = vadd.f32 %v156_v4, %v155_v11  ;;  %v166_v35 = vsel %vm146_vm1, %v726_v21, 0.0  ;;  %v847_v36 = vsel %vm146_vm1, %v730_v23, 0.0  ;;  %v851_v37 = vsel %vm146_vm1, %v732_v24, 0.0 }
  0x11   :  { %1474 = vst [vmem:[#allocation10_spill] sm:$0xff] %v829_v6  ;;  %1475 = vst [vmem:[#allocation11_spill] sm:$0xff] %v831_v10  ;;  %v855_v38 = vsel %vm146_vm1, %v734_v25, 0.0  ;;  %v859_v42 = vsel %vm146_vm1, %v742_v28, 0.0  ;;  %v863_v43 = vsel %vm146_vm1, %v744_v29, 0.0  ;;  %v867_v48 = vsel %vm146_vm1, %v746_v30, 0.0 }
  0x12   :  { %1476 = vst [vmem:[#allocation12_spill] sm:$0xff] %v833_v16  ;;  %1477 = vst [vmem:[#allocation13_spill] sm:$0xff] %v847_v36  ;;  %v159_v47 = vadd.f32 %v158_v17, %v157_v32  ;;  %v871_v49 = vsel %vm146_vm1, %v748_v31, 0.0  ;;  %v875_v53 = vsel %vm146_vm1, %v753_v33, 0.0  ;;  %v879_v54 = vsel %vm146_vm1, %v767_v39, 0.0 }
  0x13   :  { %1478 = vst [vmem:[#allocation14_spill] sm:$0xff] %v851_v37  ;;  %1479 = vst [vmem:[#allocation15_spill] sm:$0xff] %v855_v38  ;;  %v883_v58 = vsel %vm146_vm1, %v769_v40, 0.0  ;;  %v887_v59 = vsel %vm146_vm1, %v771_v41, 0.0  ;;  %v891_v60 = vsel %vm146_vm1, %v776_v44, 0.0  ;;  %v895_v4 = vsel %vm146_vm1, %v778_v45, 0.0 }
  0x14   :  { %1480 = vst [vmem:[#allocation16_spill] sm:$0xff] %v859_v42  ;;  %1481 = vst [vmem:[#allocation17_spill] sm:$0xff] %v863_v43  ;;  %v161_v0 = vadd.f32 %v160_v26, %v159_v47  ;;  %v899_v11 = vsel %vm146_vm1, %v780_v46, 0.0  ;;  %v903_v17 = vsel %vm146_vm1, %v790_v50, 0.0  ;;  %v907_v32 = vsel %vm146_vm1, %v792_v51, 0.0 }
  0x15   :  { %1482 = vst [vmem:[#allocation18_spill] sm:$0xff] %v867_v48  ;;  %1483 = vst [vmem:[#allocation19_spill] sm:$0xff] %v871_v49  ;;  %v915_v26 = vsel %vm146_vm1, %v799_v55, 0.0  ;;  %v919_v47 = vsel %vm146_vm1, %v801_v56, 0.0 }
  0x16   :  { %1484 = vst [vmem:[#allocation20_spill] sm:$0xff] %v875_v53  ;;  %1485 = vst [vmem:[#allocation21_spill] sm:$0xff] %v879_v54  ;;  %v637_v53 = vld [vmem:[%s1443_s0 + $0x60] sm:$0xff]  }
  0x17   :  { %1486 = vst [vmem:[#allocation22_spill] sm:$0xff] %v883_v58  ;;  %1487 = vst [vmem:[#allocation23_spill] sm:$0xff] %v887_v59 }
  0x18   :  { %1488 = vst [vmem:[#allocation24_spill] sm:$0xff] %v891_v60  ;;  %1489 = vst [vmem:[#allocation25_spill] sm:$0xff] %v895_v4  ;;  %v911_v60 = vsel %vm146_vm1, %v794_v52, 0.0  ;;  %v634_v4 = vld [vmem:[%s1443_s0 + $0x48] sm:$0xff]  }
  0x19   :  { %1490 = vst [vmem:[#allocation26_spill] sm:$0xff] %v899_v11  ;;  %1491 = vst [vmem:[#allocation27_spill] sm:$0xff] %v903_v17  ;;  %v631_v17 = vld [vmem:[%s1443_s0 + $0x30] sm:$0xff]   ;;  %v163_v11 = vadd.f32 %v162_v27, %v161_v0  ;;  %v633_v27 = vld [vmem:[%s1443_s0 + $0x40] sm:$0xff]   ;;  %v944_v0 = vsel %vm146_vm1, %v817_v63, 0.0  ;;  %v1000_v43 = vunpack.c.l.bf16 %v634_v4  ;;  %v1002_v42 = vunpack.c.h.bf16 %v634_v4 }
  0x1a   :  { %1492 = vst [vmem:[#allocation28_spill] sm:$0xff] %v907_v32  ;;  %1493 = vst [vmem:[#allocation29_spill] sm:$0xff] %v911_v60  ;;  %v926_v32 = vsel %vm146_vm1, %v803_v57, 0.0  ;;  %v930_v60 = vsel %vm146_vm1, %v813_v61, 0.0  ;;  %v973_v58 = vunpack.c.l.bf16 %v631_v17  ;;  %v998_v48 = vunpack.c.h.bf16 %v633_v27  ;;  %v640_v4 = vld [vmem:[%s1443_s0 + $0x78] sm:$0xff]  }
  0x1b   :  { %1494 = vst [vmem:[#allocation30_spill] sm:$0xff] %v915_v26  ;;  %1495 = vst [vmem:[#allocation31_spill] sm:$0xff] %v919_v47  ;;  %v934_v26 = vsel %vm146_vm1, %v815_v62, 0.0  ;;  %v632_v47 = vld [vmem:[%s1443_s0 + $0x38] sm:$0xff]   ;;  %v165_v59 = vadd.f32 %v164_v34, %v163_v11  ;;  %v635_v34 = vld [vmem:[%s1443_s0 + $0x50] sm:$0xff]   ;;  %v1037_v63 = vunpack.c.l.bf16 %v640_v4 }
  0x1c   :  { %1496 = vst [vmem:[#allocation32_spill] sm:$0xff] %v926_v32  ;;  %1497 = vst [vmem:[#allocation33_spill] sm:$0xff] %v930_v60  ;;  %v948_v32 = vsel %vm146_vm1, %v819_v1, 0.0  ;;  %v952_v60 = vsel %vm146_vm1, %v821_v2, 0.0  ;;  %v636_v11 = vld [vmem:[%s1443_s0 + $0x58] sm:$0xff]   ;;  %v991_v54 = vunpack.c.h.bf16 %v632_v47  ;;  %v170_v38 = vsel %vm146_vm1, %v973_v58, 0.0 }
  0x1d   :  { %1498 = vst [vmem:[#allocation34_spill] sm:$0xff] %v934_v26  ;;  %1499 = vst [vmem:[#allocation35_spill] sm:$0xff] %v944_v0  ;;  %v956_v26 = vsel %vm146_vm1, %v823_v3, 0.0  ;;  %v963_v0 = vsel %vm146_vm1, %v827_v5, 0.0  ;;  %v167_v49 = vadd.f32 %v166_v35, %v165_v59  ;;  %v1012_v37 = vunpack.c.l.bf16 %v635_v34 }
  0x1e   :  { %1500 = vst [vmem:[#allocation36_spill] sm:$0xff] %v948_v32  ;;  %1501 = vst [vmem:[#allocation37_spill] sm:$0xff] %v952_v60  ;;  %v967_v32 = vsel %vm146_vm1, %v829_v6, 0.0  ;;  %v971_v60 = vsel %vm146_vm1, %v831_v10, 0.0  ;;  %v1014_v35 = vunpack.c.h.bf16 %v635_v34  ;;  %v1016_v59 = vunpack.c.l.bf16 %v636_v11 }
  0x1f   :  { %1502 = vst [vmem:[#allocation38_spill] sm:$0xff] %v956_v26  ;;  %1503 = vst [vmem:[#allocation39_spill] sm:$0xff] %v963_v0  ;;  %v975_v26 = vunpack.c.h.bf16 %v631_v17  ;;  %v168_v0 = vsel %vm146_vm1, %v728_v22, 0.0  ;;  %v993_v17 = vunpack.c.l.bf16 %v633_v27  ;;  %v1021_v36 = vunpack.c.h.bf16 %v636_v11 }
  0x20   :  { %1504 = vst [vmem:[#allocation40_spill] sm:$0xff] %v967_v32  ;;  %1505 = vst [vmem:[#allocation41_spill] sm:$0xff] %v971_v60  ;;  %v987_v32 = vsel %vm146_vm1, %v833_v16, 0.0  ;;  %v989_v60 = vunpack.c.l.bf16 %v632_v47  ;;  %v639_v47 = vld [vmem:[%s1443_s0 + $0x70] sm:$0xff]   ;;  %v169_v27 = vadd.f32 %v168_v0, %v167_v49  ;;  %v1023_v16 = vunpack.c.l.bf16 %v637_v53 }
  0x21   :  { %1506 = vst [vmem:[#allocation42_spill] sm:$0xff] %v987_v32  ;;  %1507 = vst [vmem:[#allocation43_spill] sm:$0xff] %v998_v48  ;;  %v638_v32 = vld [vmem:[%s1443_s0 + $0x68] sm:$0xff]   ;;  %v1025_v10 = vunpack.c.h.bf16 %v637_v53  ;;  %v172_v6 = vsel %vm146_vm1, %v975_v26, 0.0  ;;  %v1033_v3 = vunpack.c.l.bf16 %v639_v47  ;;  %v1035_v1 = vunpack.c.h.bf16 %v639_v47 }
  0x22   :  { %1508 = vst [vmem:[#allocation44_spill] sm:$0xff] %v1000_v43  ;;  %1509 = vst [vmem:[#allocation45_spill] sm:$0xff] %v1002_v42  ;;  %v1029_v5 = vunpack.c.l.bf16 %v638_v32  ;;  %v1031_v34 = vunpack.c.h.bf16 %v638_v32  ;;  %v171_v2 = vadd.f32 %v170_v38, %v169_v27  ;;  %v1039_v49 = vunpack.c.h.bf16 %v640_v4 }
  0x23   :  { %1510 = vst [vmem:[#allocation46_spill] sm:$0xff] %v1014_v35  ;;  %1511 = vst [vmem:[#allocation47_spill] sm:$0xff] %v1016_v59  ;;  %v174_v53 = vsel %vm146_vm1, %v989_v60, 0.0  ;;  %v176_v11 = vsel %vm146_vm1, %v991_v54, 0.0  ;;  %v178_v32 = vsel %vm146_vm1, %v993_v17, 0.0  ;;  %v180_v62 = vsel %vm146_vm1, %v998_v48, 0.0 }
  0x24   :  { %1512 = vst [vmem:[#allocation48_spill] sm:$0xff] %v1021_v36  ;;  %1513 = vst [vmem:[#allocation49_spill] sm:$0xff] %v1023_v16  ;;  %v173_v0 = vadd.f32 %v172_v6, %v171_v2  ;;  %v182_v38 = vsel %vm146_vm1, %v1000_v43, 0.0  ;;  %v184_v47 = vsel %vm146_vm1, %v1002_v42, 0.0  ;;  %v186_v4 = vsel %vm146_vm1, %v1012_v37, 0.0 }
  0x25   :  { %1514 = vst [vmem:[#allocation50_spill] sm:$0xff] %v1025_v10  ;;  %1515 = vst [vmem:[#allocation51_spill] sm:$0xff] %v1029_v5  ;;  %v188_v2 = vsel %vm146_vm1, %v1014_v35, 0.0  ;;  %v1059_v27 = vsel %vm146_vm1, %v1016_v59, 0.0  ;;  %v1063_v48 = vsel %vm146_vm1, %v1021_v36, 0.0  ;;  %v1067_v43 = vsel %vm146_vm1, %v1023_v16, 0.0 }
  0x26   :  { %1516 = vst [vmem:[#allocation52_spill] sm:$0xff] %v1031_v34  ;;  %1517 = vst [vmem:[#allocation53_spill] sm:$0xff] %v1033_v3  ;;  %v175_v6 = vadd.f32 %v174_v53, %v173_v0  ;;  %v1071_v42 = vsel %vm146_vm1, %v1025_v10, 0.0  ;;  %v1075_v35 = vsel %vm146_vm1, %v1029_v5, 0.0  ;;  %v1079_v53 = vsel %vm146_vm1, %v1031_v34, 0.0 }
  0x27   :  { %1518 = vst [vmem:[#allocation54_spill] sm:$0xff] %v1035_v1  ;;  %1519 = vst [vmem:[#allocation55_spill] sm:$0xff] %v1037_v63  ;;  %v1083_v0 = vsel %vm146_vm1, %v1033_v3, 0.0  ;;  %v1087_v16 = vsel %vm146_vm1, %v1035_v1, 0.0  ;;  %v1091_v10 = vsel %vm146_vm1, %v1037_v63, 0.0  ;;  %v284_v5 = vmul.f32 %v694_v7, %v694_v7 }
  0x28   :  { %v177_v36 = vadd.f32 %v176_v11, %v175_v6  ;;  %v285_v34 = vmul.f32 %v696_v8, %v696_v8  ;;  %v286_v59 = vmul.f32 %v698_v9, %v698_v9  ;;  %v287_v11 = vmul.f32 %v706_v12, %v706_v12 }
  0x29   :  { %v288_v6 = vmul.f32 %v708_v13, %v708_v13  ;;  %v289_v63 = vmul.f32 %v710_v14, %v710_v14  ;;  %v290_v3 = vmul.f32 %v712_v15, %v712_v15  ;;  %v291_v7 = vmul.f32 %v720_v18, %v720_v18 }
  0x2a   :  { %v179_v1 = vadd.f32 %v178_v32, %v177_v36  ;;  %v292_v8 = vmul.f32 %v722_v19, %v722_v19  ;;  %v293_v9 = vmul.f32 %v724_v20, %v724_v20  ;;  %v294_v12 = vmul.f32 %v726_v21, %v726_v21 }
  0x2b   :  { %v295_v13 = vmul.f32 %v728_v22, %v728_v22  ;;  %v296_v14 = vmul.f32 %v973_v58, %v973_v58  ;;  %v1121_v15 = vmul.f32 %v975_v26, %v975_v26  ;;  %v1125_v18 = vmul.f32 %v989_v60, %v989_v60 }
  0x2c   :  { %v181_v36 = vadd.f32 %v180_v62, %v179_v1  ;;  %v318_v19 = vmul.f32 %v730_v23, %v730_v23  ;;  %v319_v20 = vmul.f32 %v732_v24, %v732_v24  ;;  %v320_v21 = vmul.f32 %v734_v25, %v734_v25 }
  0x2d   :  { %v321_v22 = vmul.f32 %v742_v28, %v742_v28  ;;  %v322_v1 = vmul.f32 %v744_v29, %v744_v29  ;;  %v323_v58 = vmul.f32 %v746_v30, %v746_v30  ;;  %v324_v60 = vmul.f32 %v748_v31, %v748_v31 }
  0x2e   :  { %v183_v62 = vadd.f32 %v182_v38, %v181_v36  ;;  %v325_v23 = vmul.f32 %v753_v33, %v753_v33  ;;  %v326_v24 = vmul.f32 %v767_v39, %v767_v39  ;;  %v348_v25 = vsel %vm146_vm1, %v284_v5, 0.0 }
  0x2f   :  { %v349_v28 = vsel %vm146_vm1, %v285_v34, 0.0  ;;  %v327_v29 = vmul.f32 %v769_v40, %v769_v40  ;;  %v351_v30 = vsel %vm146_vm1, %v286_v59, 0.0  ;;  %v328_v31 = vmul.f32 %v771_v41, %v771_v41 }
  0x30   :  { %v185_v26 = vadd.f32 %v184_v47, %v183_v62  ;;  %v350_v32 = vadd.f32 %v349_v28, %v348_v25  ;;  %v329_v33 = vmul.f32 %v776_v44, %v776_v44  ;;  %v330_v39 = vmul.f32 %v778_v45, %v778_v45  ;;  %v1523_v28 = vld [vmem:[#allocation7_spill] sm:$0xff] }
  0x31   :  { %v353_v5 = vsel %vm146_vm1, %v287_v11, 0.0  ;;  %v331_v34 = vmul.f32 %v780_v46, %v780_v46  ;;  %v332_v40 = vmul.f32 %v790_v50, %v790_v50  ;;  %v333_v59 = vmul.f32 %v792_v51, %v792_v51  ;;  %v1520_v51 = vld [vmem:[#allocation4_spill] sm:$0xff] }
  0x32   :  { %v187_v38 = vadd.f32 %v186_v4, %v185_v26  ;;  %v352_v47 = vadd.f32 %v351_v30, %v350_v32  ;;  %v334_v41 = vmul.f32 %v794_v52, %v794_v52  ;;  %v335_v44 = vmul.f32 %v799_v55, %v799_v55  ;;  %v1521_v52 = vld [vmem:[#allocation5_spill] sm:$0xff]  ;;  %v1524_v32 = vld [vmem:[#allocation8_spill] sm:$0xff] }
  0x33   :  { %v355_v45 = vsel %vm146_vm1, %v288_v6, 0.0  ;;  %v336_v4 = vmul.f32 %v801_v56, %v801_v56  ;;  %v337_v46 = vmul.f32 %v803_v57, %v803_v57  ;;  %v338_v36 = vmul.f32 %v813_v61, %v813_v61  ;;  %v1522_v6 = vld [vmem:[#allocation6_spill] sm:$0xff]  ;;  %v1525_v30 = vld [vmem:[#allocation9_spill] sm:$0xff] }
  0x34   :  { %v189_v11 = vadd.f32 %v188_v2, %v187_v38  ;;  %v354_v50 = vadd.f32 %v353_v5, %v352_v47  ;;  %v339_v62 = vmul.f32 %v1520_v51, %v1520_v51  ;;  %v340_v25 = vmul.f32 %v1521_v52, %v1521_v52  ;;  %v1526_v38 = vld [vmem:[#allocation10_spill] sm:$0xff]  ;;  %v1528_v52 = vld [vmem:[#allocation12_spill] sm:$0xff] }
  0x35   :  { %v357_v55 = vsel %vm146_vm1, %v289_v63, 0.0  ;;  %v341_v56 = vmul.f32 %v1522_v6, %v1522_v6  ;;  %v342_v57 = vmul.f32 %v1523_v28, %v1523_v28  ;;  %v343_v61 = vmul.f32 %v1524_v32, %v1524_v32 }
  0x36   :  { %v191_v2 = vadd.f32 %v1059_v27, %v189_v11  ;;  %v356_v26 = vadd.f32 %v355_v45, %v354_v50  ;;  %v344_v5 = vmul.f32 %v1525_v30, %v1525_v30  ;;  %v345_v47 = vmul.f32 %v1526_v38, %v1526_v38  ;;  %v1527_v11 = vld [vmem:[#allocation11_spill] sm:$0xff] }
  0x37   :  { %v359_v63 = vsel %vm146_vm1, %v290_v3, 0.0  ;;  %v346_v51 = vmul.f32 %v1527_v11, %v1527_v11  ;;  %v347_v6 = vmul.f32 %v1528_v52, %v1528_v52  ;;  %v361_v50 = vsel %vm146_vm1, %v291_v7, 0.0 }
  0x38   :  { %v193_v27 = vadd.f32 %v1063_v48, %v191_v2  ;;  %v358_v45 = vadd.f32 %v357_v55, %v356_v26  ;;  %v363_v28 = vsel %vm146_vm1, %v292_v8, 0.0  ;;  %v365_v32 = vsel %vm146_vm1, %v293_v9, 0.0 }
  0x39   :  { %v367_v30 = vsel %vm146_vm1, %v294_v12, 0.0  ;;  %v369_v48 = vsel %vm146_vm1, %v295_v13, 0.0  ;;  %v371_v2 = vsel %vm146_vm1, %v296_v14, 0.0  ;;  %v1204_v11 = vsel %vm146_vm1, %v318_v19, 0.0 }
  0x3a   :  { %v195_v38 = vadd.f32 %v1067_v43, %v193_v27  ;;  %v360_v3 = vadd.f32 %v359_v63, %v358_v45  ;;  %v1207_v55 = vsel %vm146_vm1, %v319_v20, 0.0  ;;  %v1210_v7 = vsel %vm146_vm1, %v320_v21, 0.0 }
  0x3b   :  { %v1213_v8 = vsel %vm146_vm1, %v321_v22, 0.0  ;;  %v1217_v12 = vsel %vm146_vm1, %v322_v1, 0.0  ;;  %v1220_v13 = vsel %vm146_vm1, %v323_v58, 0.0  ;;  %v1223_v14 = vsel %vm146_vm1, %v324_v60, 0.0 }
  0x3c   :  { %v197_v9 = vadd.f32 %v1071_v42, %v195_v38  ;;  %v362_v43 = vadd.f32 %v361_v50, %v360_v3  ;;  %v1226_v19 = vsel %vm146_vm1, %v325_v23, 0.0  ;;  %v1229_v20 = vsel %vm146_vm1, %v326_v24, 0.0 }
  0x3d   :  { %v1232_v21 = vsel %vm146_vm1, %v327_v29, 0.0  ;;  %v1236_v1 = vsel %vm146_vm1, %v328_v31, 0.0  ;;  %v1239_v58 = vsel %vm146_vm1, %v329_v33, 0.0  ;;  %v1242_v60 = vsel %vm146_vm1, %v330_v39, 0.0 }
  0x3e   :  { %v199_v42 = vadd.f32 %v1075_v35, %v197_v9  ;;  %v364_v22 = vadd.f32 %v363_v28, %v362_v43  ;;  %v1245_v23 = vsel %vm146_vm1, %v331_v34, 0.0  ;;  %v1248_v24 = vsel %vm146_vm1, %v332_v40, 0.0 }
  0x3f   :  { %v1251_v29 = vsel %vm146_vm1, %v333_v59, 0.0  ;;  %v1255_v31 = vsel %vm146_vm1, %v334_v41, 0.0  ;;  %v1258_v33 = vsel %vm146_vm1, %v335_v44, 0.0  ;;  %v1261_v39 = vsel %vm146_vm1, %v336_v4, 0.0 }
  0x40   :  { %v201_v35 = vadd.f32 %v1079_v53, %v199_v42  ;;  %v366_v26 = vadd.f32 %v365_v32, %v364_v22  ;;  %v1264_v34 = vsel %vm146_vm1, %v337_v46, 0.0  ;;  %v1267_v40 = vsel %vm146_vm1, %v338_v36, 0.0  ;;  %v641_v53 = vld [vmem:[%s1443_s0 + $0x80] sm:$0xff]  }
  0x41   :  { %v1270_v59 = vsel %vm146_vm1, %v339_v62, 0.0  ;;  %v1277_v63 = vsel %vm146_vm1, %v340_v25, 0.0  ;;  %v1280_v4 = vsel %vm146_vm1, %v341_v56, 0.0  ;;  %v1283_v46 = vsel %vm146_vm1, %v342_v57, 0.0 }
  0x42   :  { %v203_v41 = vadd.f32 %v1083_v0, %v201_v35  ;;  %v368_v44 = vadd.f32 %v367_v30, %v366_v26  ;;  %v1286_v36 = vsel %vm146_vm1, %v343_v61, 0.0  ;;  %v1289_v62 = vsel %vm146_vm1, %v344_v5, 0.0  ;;  %v1532_v26 = vld [vmem:[#allocation13_spill] sm:$0xff] }
  0x43   :  { %v1292_v27 = vsel %vm146_vm1, %v345_v47, 0.0  ;;  %v1296_v25 = vsel %vm146_vm1, %v346_v51, 0.0  ;;  %v1299_v56 = vsel %vm146_vm1, %v347_v6, 0.0  ;;  %v1301_v57 = vunpack.c.l.bf16 %v641_v53 }
  0x44   :  { %v205_v0 = vadd.f32 %v1087_v16, %v203_v41  ;;  %v370_v52 = vadd.f32 %v369_v48, %v368_v44  ;;  %v208_v61 = vsel %vm146_vm1, %v1039_v49, 0.0  ;;  %v299_v5 = vmul.f32 %v991_v54, %v991_v54 }
  0x45   :  { %v373_v47 = vsel %vm146_vm1, %v1121_v15, 0.0  ;;  %v1310_v50 = vunpack.c.h.bf16 %v641_v53  ;;  %v210_v51 = vsel %vm146_vm1, %v1301_v57, 0.0  ;;  %v300_v6 = vmul.f32 %v993_v17, %v993_v17  ;;  %v1529_v15 = vld [vmem:[#allocation43_spill] sm:$0xff] }
  0x46   :  { %v207_v16 = vadd.f32 %v1091_v10, %v205_v0  ;;  %v372_v45 = vadd.f32 %v371_v2, %v370_v52  ;;  %v375_v28 = vsel %vm146_vm1, %v1125_v18, 0.0  ;;  %v301_v10 = vmul.f32 %v1529_v15, %v1529_v15  ;;  %v1530_v2 = vld [vmem:[#allocation44_spill] sm:$0xff]  ;;  %v1531_v18 = vld [vmem:[#allocation45_spill] sm:$0xff]  ;;  %v1533_v52 = vld [vmem:[#allocation14_spill] sm:$0xff] }
  0x47   :  { %v212_v54 = vsel %vm146_vm1, %v1310_v50, 0.0  ;;  %v377_v38 = vsel %vm146_vm1, %v299_v5, 0.0  ;;  %v302_v9 = vmul.f32 %v1530_v2, %v1530_v2  ;;  %v379_v17 = vsel %vm146_vm1, %v300_v6, 0.0  ;;  %v1537_v15 = vld [vmem:[#allocation16_spill] sm:$0xff]  ;;  %v1539_v2 = vld [vmem:[#allocation17_spill] sm:$0xff] }
  0x48   :  { %v209_v32 = vadd.f32 %v208_v61, %v207_v16  ;;  %v374_v30 = vadd.f32 %v373_v47, %v372_v45  ;;  %v303_v22 = vmul.f32 %v1531_v18, %v1531_v18  ;;  %v381_v35 = vsel %vm146_vm1, %v301_v10, 0.0  ;;  %v1534_v47 = vld [vmem:[#allocation46_spill] sm:$0xff] }
  0x49   :  { %v304_v44 = vmul.f32 %v1012_v37, %v1012_v37  ;;  %v383_v0 = vsel %vm146_vm1, %v302_v9, 0.0  ;;  %v305_v16 = vmul.f32 %v1534_v47, %v1534_v47 }
  0x4a   :  { %v211_v3 = vadd.f32 %v210_v51, %v209_v32  ;;  %v376_v48 = vadd.f32 %v375_v28, %v374_v30  ;;  %v385_v45 = vsel %vm146_vm1, %v303_v22, 0.0  ;;  %v1535_v51 = vld [vmem:[#allocation15_spill] sm:$0xff]  ;;  %v1541_v22 = vld [vmem:[#allocation18_spill] sm:$0xff] }
  0x4b   :  { %v1536_v32 = vld [vmem:[#allocation47_spill] sm:$0xff] }
  0x4c   :  { %v213_v43 = vadd.f32 %v212_v54, %v211_v3  ;;  %v378_v42 = vadd.f32 %v377_v38, %v376_v48  ;;  %v306_v30 = vmul.f32 %v1536_v32, %v1536_v32  ;;  %v387_v54 = vsel %vm146_vm1, %v304_v44, 0.0  ;;  %v1538_v38 = vld [vmem:[#allocation48_spill] sm:$0xff] }
  0x4d   :  { %v307_v3 = vmul.f32 %v1538_v38, %v1538_v38  ;;  %v389_v48 = vsel %vm146_vm1, %v305_v16, 0.0 }
  0x4e   :  { %v215_v53 = vadd.f32 %v1532_v26, %v213_v43  ;;  %v380_v41 = vadd.f32 %v379_v17, %v378_v42  ;;  %v1540_v43 = vld [vmem:[#allocation49_spill] sm:$0xff]  ;;  %v391_v18 = vsel %vm146_vm1, %v306_v30, 0.0 }
  0x4f   :  { %v308_v42 = vmul.f32 %v1540_v43, %v1540_v43  ;;  %v393_v44 = vsel %vm146_vm1, %v307_v3, 0.0 }
  0x50   :  { %v217_v61 = vadd.f32 %v1533_v52, %v215_v53  ;;  %v382_v5 = vadd.f32 %v381_v35, %v380_v41  ;;  %v1542_v53 = vld [vmem:[#allocation50_spill] sm:$0xff] }
  0x51   :  { %v309_v41 = vmul.f32 %v1542_v53, %v1542_v53  ;;  %v395_v16 = vsel %vm146_vm1, %v308_v42, 0.0 }
  0x52   :  { %v219_v6 = vadd.f32 %v1535_v51, %v217_v61  ;;  %v384_v28 = vadd.f32 %v383_v0, %v382_v5  ;;  %v1543_v0 = vld [vmem:[#allocation19_spill] sm:$0xff] }
  0x53   :  { %v1544_v5 = vld [vmem:[#allocation51_spill] sm:$0xff]  ;;  %v397_v30 = vsel %vm146_vm1, %v309_v41, 0.0 }
  0x54   :  { %v221_v37 = vadd.f32 %v1537_v15, %v219_v6  ;;  %v386_v10 = vadd.f32 %v385_v45, %v384_v28  ;;  %v310_v47 = vmul.f32 %v1544_v5, %v1544_v5  ;;  %v1545_v45 = vld [vmem:[#allocation20_spill] sm:$0xff] }
  0x55   :  { %v1546_v28 = vld [vmem:[#allocation52_spill] sm:$0xff] }
  0x56   :  { %v223_v9 = vadd.f32 %v1539_v2, %v221_v37  ;;  %v388_v17 = vadd.f32 %v387_v54, %v386_v10  ;;  %v311_v32 = vmul.f32 %v1546_v28, %v1546_v28  ;;  %v1547_v54 = vld [vmem:[#allocation21_spill] sm:$0xff]  ;;  %v399_v3 = vsel %vm146_vm1, %v310_v47, 0.0  ;;  %v1555_v28 = vld [vmem:[#allocation26_spill] sm:$0xff] }
  0x57   :  { %v1548_v10 = vld [vmem:[#allocation53_spill] sm:$0xff] }
  0x58   :  { %v225_v35 = vadd.f32 %v1541_v22, %v223_v9  ;;  %v390_v26 = vadd.f32 %v389_v48, %v388_v17  ;;  %v312_v38 = vmul.f32 %v1548_v10, %v1548_v10  ;;  %v1549_v48 = vld [vmem:[#allocation22_spill] sm:$0xff]  ;;  %v401_v42 = vsel %vm146_vm1, %v311_v32, 0.0  ;;  %v1554_v47 = vld [vmem:[#allocation25_spill] sm:$0xff] }
  0x59   :  { %v1550_v17 = vld [vmem:[#allocation54_spill] sm:$0xff] }
  0x5a   :  { %v227_v52 = vadd.f32 %v1543_v0, %v225_v35  ;;  %v392_v61 = vadd.f32 %v391_v18, %v390_v26  ;;  %v313_v43 = vmul.f32 %v1550_v17, %v1550_v17  ;;  %v1551_v18 = vld [vmem:[#allocation23_spill] sm:$0xff]  ;;  %v403_v41 = vsel %vm146_vm1, %v312_v38, 0.0 }
  0x5b   :  { %v1552_v26 = vld [vmem:[#allocation55_spill] sm:$0xff] }
  0x5c   :  { %v229_v51 = vadd.f32 %v1545_v45, %v227_v52  ;;  %v394_v6 = vadd.f32 %v393_v44, %v392_v61  ;;  %v314_v53 = vmul.f32 %v1552_v26, %v1552_v26  ;;  %v1553_v44 = vld [vmem:[#allocation24_spill] sm:$0xff]  ;;  %v315_v61 = vmul.f32 %v1039_v49, %v1039_v49 }
  0x5d   :  { %v405_v5 = vsel %vm146_vm1, %v313_v43, 0.0 }
  0x5e   :  { %v231_v15 = vadd.f32 %v1547_v54, %v229_v51  ;;  %v396_v37 = vadd.f32 %v395_v16, %v394_v6  ;;  %v316_v51 = vmul.f32 %v1301_v57, %v1301_v57  ;;  %v407_v6 = vsel %vm146_vm1, %v314_v53, 0.0  ;;  %v1561_v53 = vld [vmem:[#allocation32_spill] sm:$0xff] }
  0x5f   :  { %v317_v54 = vmul.f32 %v1310_v50, %v1310_v50 }
  0x60   :  { %v233_v2 = vadd.f32 %v1549_v48, %v231_v15  ;;  %v398_v9 = vadd.f32 %v397_v30, %v396_v37  ;;  %v409_v15 = vsel %vm146_vm1, %v315_v61, 0.0  ;;  %v1556_v37 = vld [vmem:[#allocation27_spill] sm:$0xff]  ;;  %v411_v38 = vsel %vm146_vm1, %v316_v51, 0.0 }
  0x61   :  { %v413_v57 = vsel %vm146_vm1, %v317_v54, 0.0 }
  0x62   :  { %v235_v22 = vadd.f32 %v1551_v18, %v233_v2  ;;  %v400_v35 = vadd.f32 %v399_v3, %v398_v9  ;;  %v1557_v3 = vld [vmem:[#allocation28_spill] sm:$0xff]  ;;  %v1558_v9 = vld [vmem:[#allocation29_spill] sm:$0xff] }
  0x64   :  { %v237_v0 = vadd.f32 %v1553_v44, %v235_v22  ;;  %v402_v52 = vadd.f32 %v401_v42, %v400_v35  ;;  %v1559_v42 = vld [vmem:[#allocation30_spill] sm:$0xff]  ;;  %v1560_v35 = vld [vmem:[#allocation31_spill] sm:$0xff] }
  0x66   :  { %v239_v16 = vadd.f32 %v1554_v47, %v237_v0  ;;  %v404_v45 = vadd.f32 %v403_v41, %v402_v52  ;;  %v1562_v0 = vld [vmem:[#allocation33_spill] sm:$0xff] }
  0x68   :  { %v241_v32 = vadd.f32 %v1555_v28, %v239_v16  ;;  %v406_v30 = vadd.f32 %v405_v5, %v404_v45  ;;  %v1563_v5 = vld [vmem:[#allocation34_spill] sm:$0xff]  ;;  %v1564_v45 = vld [vmem:[#allocation35_spill] sm:$0xff]  ;;  %v1565_v28 = vld [vmem:[#allocation36_spill] sm:$0xff] }
  0x6a   :  { %v243_v49 = vadd.f32 %v1556_v37, %v241_v32  ;;  %v408_v10 = vadd.f32 %v407_v6, %v406_v30  ;;  %v1566_v30 = vld [vmem:[#allocation37_spill] sm:$0xff] }
  0x6c   :  { %v245_v48 = vadd.f32 %v1557_v3, %v243_v49  ;;  %v410_v2 = vadd.f32 %v409_v15, %v408_v10  ;;  %v1567_v15 = vld [vmem:[#allocation38_spill] sm:$0xff]  ;;  %v1568_v49 = vld [vmem:[#allocation39_spill] sm:$0xff] }
  0x6e   :  { %v247_v17 = vadd.f32 %v1558_v9, %v245_v48  ;;  %v412_v43 = vadd.f32 %v411_v38, %v410_v2  ;;  %v1569_v38 = vld [vmem:[#allocation40_spill] sm:$0xff]  ;;  %v1570_v48 = vld [vmem:[#allocation41_spill] sm:$0xff] }
  0x70   :  { %v249_v18 = vadd.f32 %v1559_v42, %v247_v17  ;;  %v414_v22 = vadd.f32 %v413_v57, %v412_v43  ;;  %v1571_v57 = vld [vmem:[#allocation42_spill] sm:$0xff] }
  0x72   :  { %v251_v50 = vadd.f32 %v1560_v35, %v249_v18  ;;  %v416_v26 = vadd.f32 %v1204_v11, %v414_v22 }
  0x74   :  { %v253_v41 = vadd.f32 %v1561_v53, %v251_v50  ;;  %v418_v44 = vadd.f32 %v1207_v55, %v416_v26 }
  0x76   :  { %v255_v52 = vadd.f32 %v1562_v0, %v253_v41  ;;  %v420_v61 = vadd.f32 %v1210_v7, %v418_v44 }
  0x78   :  { %v257_v47 = vadd.f32 %v1563_v5, %v255_v52  ;;  %v422_v16 = vadd.f32 %v1213_v8, %v420_v61 }
  0x7a   :  { %v259_v51 = vadd.f32 %v1564_v45, %v257_v47  ;;  %v424_v6 = vadd.f32 %v1217_v12, %v422_v16  ;;  %v283_v47 = vld [vmem:[#allocation3] sm:$0x1] }
  0x7c   :  { %v261_v32 = vadd.f32 %v1565_v28, %v259_v51  ;;  %v426_v11 = vadd.f32 %v1220_v13, %v424_v6 }
  0x7e   :  { %v263_v54 = vadd.f32 %v1566_v30, %v261_v32  ;;  %v428_v55 = vadd.f32 %v1223_v14, %v426_v11 }
  0x80   :  { %v265_v37 = vadd.f32 %v1567_v15, %v263_v54  ;;  %v430_v7 = vadd.f32 %v1226_v19, %v428_v55 }
  0x82   :  { %v267_v10 = vadd.f32 %v1568_v49, %v265_v37  ;;  %v432_v8 = vadd.f32 %v1229_v20, %v430_v7 }
  0x84   :  { %v269_v3 = vadd.f32 %v1569_v38, %v267_v10  ;;  %v434_v12 = vadd.f32 %v1232_v21, %v432_v8 }
  0x86   :  { %v271_v2 = vadd.f32 %v1570_v48, %v269_v3  ;;  %v436_v13 = vadd.f32 %v1236_v1, %v434_v12  ;;  %v145_v1 = vld [vmem:[#allocation2] sm:$0x1] }
  0x88   :  { %v273_v9 = vadd.f32 %v1571_v57, %v271_v2  ;;  %v438_v14 = vadd.f32 %v1239_v58, %v436_v13 }
  0x8a   :  { %v274_v17 = vrot.slane %v273_v9, 4  ;;  %v440_v43 = vadd.f32 %v1242_v60, %v438_v14 }
  0x8c   :  { %v275_v19 = vadd.f32 %v274_v17, %v273_v9  ;;  %v442_v42 = vadd.f32 %v1245_v23, %v440_v43 }
  0x8e   :  { %v276_v18 = vrot.slane %v275_v19, 2  ;;  %v444_v20 = vadd.f32 %v1248_v24, %v442_v42 }
  0x90   :  { %v277_v22 = vadd.f32 %v276_v18, %v275_v19  ;;  %v446_v21 = vadd.f32 %v1251_v29, %v444_v20 }
  0x92   :  { %v278_v35 = vrot.slane %v277_v22, 1  ;;  %v448_v50 = vadd.f32 %v1255_v31, %v446_v21 }
  0x94   :  { %v279_v26 = vadd.f32 %v278_v35, %v277_v22  ;;  %v450_v53 = vadd.f32 %v1258_v33, %v448_v50 }
  0x96   :  { %v280_v58 = vadd.f32 %v279_v26, %v145_v1  ;;  %v452_v41 = vadd.f32 %v1261_v39, %v450_v53 }
  0x98   :  { %282 = vst.msk [vmem:[#allocation2] sm:$0x1] %vm14_vm0, %v280_v58  ;;  %v454_v60 = vadd.f32 %v1264_v34, %v452_v41 }
  0x9a   :  { %v456_v23 = vadd.f32 %v1267_v40, %v454_v60 }
  0x9c   :  { %v458_v24 = vadd.f32 %v1270_v59, %v456_v23 }
  0x9e   :  { %v460_v29 = vadd.f32 %v1277_v63, %v458_v24 }
  0x9f   :  { %v486_v44 = vld [vmem:[#allocation2] sm:$0x1] }
  0xa0   :  { %v462_v31 = vadd.f32 %v1280_v4, %v460_v29  ;;  %487 = vst.msk [vmem:[%s1444_s1] sm:$0x1] %vm14_vm0, %v486_v44 }
  0xa2   :  { %v464_v33 = vadd.f32 %v1283_v46, %v462_v31 }
  0xa4   :  { %v466_v39 = vadd.f32 %v1286_v36, %v464_v33 }
  0xa6   :  { %v468_v34 = vadd.f32 %v1289_v62, %v466_v39 }
  0xa8   :  { %v470_v40 = vadd.f32 %v1292_v27, %v468_v34 }
  0xaa   :  { %v472_v59 = vadd.f32 %v1296_v25, %v470_v40 }
  0xac   :  { %v474_v63 = vadd.f32 %v1299_v56, %v472_v59 }
  0xae   :  { %v475_v0 = vrot.slane %v474_v63, 4 }
  0xb0   :  { %v476_v52 = vadd.f32 %v475_v0, %v474_v63 }
  0xb2   :  { %v477_v4 = vrot.slane %v476_v52, 2 }
  0xb4   :  { %v478_v61 = vadd.f32 %v477_v4, %v476_v52 }
  0xb6   :  { %v479_v5 = vrot.slane %v478_v61, 1 }
  0xb8   :  { %v480_v16 = vadd.f32 %v479_v5, %v478_v61 }
  0xba   :  { %v481_v45 = vadd.f32 %v480_v16, %v283_v47 }
  0xbc   :  { %482 = vst.msk [vmem:[#allocation3] sm:$0x1] %vm14_vm0, %v481_v45 }
  0xc3   :  { %v488_v46 = vld [vmem:[#allocation3] sm:$0x1] }
  0xc4   :  { %489 = vst.msk [vmem:[%s1445_s2] sm:$0x1] %vm14_vm0, %v488_v46 }

// kernel: cond_cnn_generator_forward.17
= control target key start
LH: loop header
LB: loop body
LE: loop exit
PB: predicated region body
PF: predicated region fallthrough
CT: control target
= control target key end

     0   :  { %v2649_v0 = vmov 0   ;;  %vm897_vm0 = vcmask 261120   ;;  %vm16_vm1 = vcmask 523264   ;;  %vm2024_vm2 = vcmask 519168   ;;  %s3673_s1 = inlined_call_operand.vmem [shape: bf16[288,64], index: 1, kind: input, shape index: {}]   ;;  %s3674_s0 = inlined_call_operand.vmem [shape: bf16[512,288], index: 0, kind: input, shape index: {}]   ;;  %s3675_s2 = inlined_call_operand.vmem [shape: bf16[512,64], index: 2, kind: output, shape index: {}]  }
   0x1   :  { %994 = vmatprep.subr.bf16.mxu0 %v2649_v0  ;;  %2469 = vmatprep.subr.bf16.mxu1 %v2649_v0  ;;  %v2503_v1 = vld [vmem:[%s3673_s1] sm:$0xff]   ;;  %v2504_v2 = vld [vmem:[%s3673_s1 + $0x8] sm:$0xff]   ;;  %v2505_v3 = vld [vmem:[%s3673_s1 + $0x10] sm:$0xff]  }
   0x2   :  { %995 = vmatpush1.bf16.msra.mxu0 %v2503_v1  ;;  %2485 = vmatpush1.bf16.msra.mxu1 %v2503_v1  ;;  %v2506_v4 = vld [vmem:[%s3673_s1 + $0x18] sm:$0xff]   ;;  %v2507_v5 = vld [vmem:[%s3673_s1 + $0x20] sm:$0xff]   ;;  %v2508_v7 = vld [vmem:[%s3673_s1 + $0x28] sm:$0xff]  }
   0x3   :  { %996 = vmatprep.subr.bf16.mxu0 %v2649_v0  ;;  %2470 = vmatprep.subr.bf16.mxu1 %v2649_v0  ;;  %v2521_v6 = vld [vmem:[%s3674_s0 + $0x4] ss:$12 sps:$4 sm:$0xff]   ;;  %v2510_v10 = vld [vmem:[%s3673_s1 + $0x38] sm:$0xff]   ;;  %v2512_v12 = vld [vmem:[%s3673_s1 + $0x48] sm:$0xff]  }
   0x4   :  { %v2524_v8 = vld [vmem:[%s3674_s0 + $0x244] ss:$12 sps:$4 sm:$0xff]   ;;  %1026 = vmatprep.mubr.bf16.mxu0 %v2521_v6  ;;  %v2514_v14 = vld [vmem:[%s3673_s1 + $0x58] sm:$0xff]   ;;  %v2516_v16 = vld [vmem:[%s3673_s1 + $0x68] sm:$0xff]  }
   0x5   :  { %1218 = vmatprep.mubr.bf16.mxu1 %v2524_v8  ;;  %v2509_v9 = vld [vmem:[%s3673_s1 + $0x30] sm:$0xff]   ;;  %v2511_v11 = vld [vmem:[%s3673_s1 + $0x40] sm:$0xff]   ;;  %v2518_v18 = vld [vmem:[%s3673_s1 + $0x78] sm:$0xff]  }
   0x6   :  { %997 = vmatpush1.bf16.msra.mxu0 %v2504_v2  ;;  %2486 = vmatpush1.bf16.msra.mxu1 %v2504_v2  ;;  %v2513_v13 = vld [vmem:[%s3673_s1 + $0x50] sm:$0xff]   ;;  %v2515_v15 = vld [vmem:[%s3673_s1 + $0x60] sm:$0xff]   ;;  %v2526_v22 = vld [vmem:[%s3674_s0 + $0x1c] ss:$12 sps:$4 sm:$0xff]  }
   0x7   :  { %998 = vmatprep.subr.bf16.mxu0 %v2649_v0  ;;  %2471 = vmatprep.subr.bf16.mxu1 %v2649_v0  ;;  %v2517_v17 = vld [vmem:[%s3673_s1 + $0x70] sm:$0xff]   ;;  %v2525_v19 = vld [vmem:[%s3673_s1 + $0x80] sm:$0xff]   ;;  %v2528_v23 = vld [vmem:[%s3674_s0 + $0x25c] ss:$12 sps:$4 sm:$0xff]  }
   0x8   :  { %v2519_v20 = vld [vmem:[%s3674_s0] ss:$12 sps:$4 sm:$0xff]   ;;  %v2530_v25 = vld [vmem:[%s3674_s0 + $0x18] ss:$12 sps:$4 sm:$0xff]   ;;  %v2536_v29 = vld [vmem:[%s3674_s0 + $0x30] ss:$12 sps:$4 sm:$0xff]  }
   0x9   :  { %v2522_v21 = vld [vmem:[%s3674_s0 + $0x240] ss:$12 sps:$4 sm:$0xff]   ;;  %v2531_v26 = vld [vmem:[%s3674_s0 + $0x258] ss:$12 sps:$4 sm:$0xff]   ;;  %v2537_v30 = vld [vmem:[%s3674_s0 + $0x270] ss:$12 sps:$4 sm:$0xff]  }
   0xa   :  { %999 = vmatpush1.bf16.msra.mxu0 %v2505_v3  ;;  %2487 = vmatpush1.bf16.msra.mxu1 %v2505_v3  ;;  %v2550_v24 = vld [vmem:[%s3673_s1 + $0x88] sm:$0xff]   ;;  %v2532_v27 = vld [vmem:[%s3674_s0 + $0x34] ss:$12 sps:$4 sm:$0xff]   ;;  %v2544_v35 = vld [vmem:[%s3674_s0 + $0x64] ss:$12 sps:$4 sm:$0xff]  }
   0xb   :  { %1000 = vmatprep.subr.bf16.mxu0 %v2649_v0  ;;  %2472 = vmatprep.subr.bf16.mxu1 %v2649_v0  ;;  %v2534_v28 = vld [vmem:[%s3674_s0 + $0x274] ss:$12 sps:$4 sm:$0xff]   ;;  %v2538_v31 = vld [vmem:[%s3674_s0 + $0x4c] ss:$12 sps:$4 sm:$0xff]   ;;  %v2546_v36 = vld [vmem:[%s3674_s0 + $0x2a4] ss:$12 sps:$4 sm:$0xff]  }
   0xc   :  { %v2540_v32 = vld [vmem:[%s3674_s0 + $0x28c] ss:$12 sps:$4 sm:$0xff]   ;;  %v2542_v33 = vld [vmem:[%s3674_s0 + $0x48] ss:$12 sps:$4 sm:$0xff]   ;;  %v2561_v45 = vld [vmem:[%s3674_s0 + $0x90] ss:$12 sps:$4 sm:$0xff]  }
   0xd   :  { %v2543_v34 = vld [vmem:[%s3674_s0 + $0x288] ss:$12 sps:$4 sm:$0xff]   ;;  %v2548_v37 = vld [vmem:[%s3674_s0 + $0x60] ss:$12 sps:$4 sm:$0xff]   ;;  %v2555_v41 = vld [vmem:[%s3674_s0 + $0x78] ss:$12 sps:$4 sm:$0xff]  }
   0xe   :  { %1001 = vmatpush1.bf16.msra.mxu0 %v2506_v4  ;;  %2488 = vmatpush1.bf16.msra.mxu1 %v2506_v4  ;;  %v2549_v38 = vld [vmem:[%s3674_s0 + $0x2a0] ss:$12 sps:$4 sm:$0xff]   ;;  %v2551_v39 = vld [vmem:[%s3674_s0 + $0x7c] ss:$12 sps:$4 sm:$0xff]   ;;  %v2556_v42 = vld [vmem:[%s3674_s0 + $0x2b8] ss:$12 sps:$4 sm:$0xff]  }
   0xf   :  { %1002 = vmatprep.subr.bf16.mxu0 %v2649_v0  ;;  %2473 = vmatprep.subr.bf16.mxu1 %v2649_v0  ;;  %v2553_v40 = vld [vmem:[%s3674_s0 + $0x2bc] ss:$12 sps:$4 sm:$0xff]   ;;  %v2557_v43 = vld [vmem:[%s3674_s0 + $0x94] ss:$12 sps:$4 sm:$0xff]   ;;  %v2563_v47 = vld [vmem:[%s3674_s0 + $0xac] ss:$12 sps:$4 sm:$0xff]  }
  0x10   :  { %v2559_v44 = vld [vmem:[%s3674_s0 + $0x2d4] ss:$12 sps:$4 sm:$0xff]   ;;  %v2562_v46 = vld [vmem:[%s3674_s0 + $0x2d0] ss:$12 sps:$4 sm:$0xff]   ;;  %v2565_v48 = vld [vmem:[%s3674_s0 + $0x2ec] ss:$12 sps:$4 sm:$0xff]  }
  0x11   :  { %v2567_v49 = vld [vmem:[%s3674_s0 + $0xa8] ss:$12 sps:$4 sm:$0xff]   ;;  %v2569_v51 = vld [vmem:[%s3674_s0 + $0xc4] ss:$12 sps:$4 sm:$0xff]   ;;  %v2572_v53 = vld [vmem:[%s3674_s0 + $0xc0] ss:$12 sps:$4 sm:$0xff]  }
  0x12   :  { %1003 = vmatpush1.bf16.msra.mxu0 %v2507_v5  ;;  %2489 = vmatpush1.bf16.msra.mxu1 %v2507_v5  ;;  %v2568_v50 = vld [vmem:[%s3674_s0 + $0x2e8] ss:$12 sps:$4 sm:$0xff]   ;;  %v2573_v54 = vld [vmem:[%s3674_s0 + $0x20] ss:$12 sps:$4 sm:$0xff]   ;;  %v2576_v56 = vld [vmem:[%s3674_s0 + $0x38] ss:$12 sps:$4 sm:$0xff]  }
  0x13   :  { %1004 = vmatprep.subr.bf16.mxu0 %v2649_v0  ;;  %2474 = vmatprep.subr.bf16.mxu1 %v2649_v0  ;;  %v2571_v52 = vld [vmem:[%s3674_s0 + $0x8] ss:$12 sps:$4 sm:$0xff]   ;;  %v2577_v57 = vld [vmem:[%s3674_s0 + $0xd8] ss:$12 sps:$4 sm:$0xff]   ;;  %v2578_v58 = vld [vmem:[%s3674_s0 + $0x50] ss:$12 sps:$4 sm:$0xff]  }
  0x14   :  { %v2574_v55 = vld [vmem:[%s3674_s0 + $0xdc] ss:$12 sps:$4 sm:$0xff]   ;;  %v2579_v59 = vld [vmem:[%s3674_s0 + $0xf4] ss:$12 sps:$4 sm:$0xff]   ;;  %v2584_v63 = vld [vmem:[%s3674_s0 + $0x10c] ss:$12 sps:$4 sm:$0xff]  }
  0x15   :  { %v2581_v60 = vld [vmem:[%s3674_s0 + $0x68] ss:$12 sps:$4 sm:$0xff]   ;;  %v2582_v61 = vld [vmem:[%s3674_s0 + $0xf0] ss:$12 sps:$4 sm:$0xff]   ;;  %v2583_v62 = vld [vmem:[%s3674_s0 + $0x80] ss:$12 sps:$4 sm:$0xff]  }
  0x16   :  { %1005 = vmatpush1.bf16.msra.mxu0 %v2508_v7  ;;  %2490 = vmatpush1.bf16.msra.mxu1 %v2508_v7  ;;  %v2587_v1 = vld [vmem:[%s3674_s0 + $0x108] ss:$12 sps:$4 sm:$0xff]   ;;  %v2588_v2 = vld [vmem:[%s3674_s0 + $0xb0] ss:$12 sps:$4 sm:$0xff]   ;;  %v2592_v5 = vld [vmem:[%s3674_s0 + $0x120] ss:$12 sps:$4 sm:$0xff]  }
  0x17   :  { %1006 = vmatprep.subr.bf16.mxu0 %v2649_v0  ;;  %2475 = vmatprep.subr.bf16.mxu1 %v2649_v0  ;;  %v2589_v3 = vld [vmem:[%s3674_s0 + $0x124] ss:$12 sps:$4 sm:$0xff]   ;;  %v2591_v4 = vld [vmem:[%s3674_s0 + $0xc8] ss:$12 sps:$4 sm:$0xff]   ;;  %v2593_v6 = vld [vmem:[%s3674_s0 + $0xe0] ss:$12 sps:$4 sm:$0xff]  }
  0x18   :  { %v2594_v7 = vld [vmem:[%s3674_s0 + $0x13c] ss:$12 sps:$4 sm:$0xff]   ;;  %v2596_v8 = vld [vmem:[%s3674_s0 + $0xf8] ss:$12 sps:$4 sm:$0xff]  }
  0x1a   :  { %1007 = vmatpush1.bf16.msra.mxu0 %v2509_v9  ;;  %2491 = vmatpush1.bf16.msra.mxu1 %v2509_v9  ;;  %v2597_v9 = vld [vmem:[%s3674_s0 + $0x138] ss:$12 sps:$4 sm:$0xff]  }
  0x1b   :  { %1008 = vmatprep.subr.bf16.mxu0 %v2649_v0  ;;  %2476 = vmatprep.subr.bf16.mxu1 %v2649_v0 }
  0x1e   :  { %1009 = vmatpush1.bf16.msra.mxu0 %v2510_v10  ;;  %2492 = vmatpush1.bf16.msra.mxu1 %v2510_v10  ;;  %v2598_v10 = vld [vmem:[%s3674_s0 + $0x110] ss:$12 sps:$4 sm:$0xff]  }
  0x1f   :  { %1010 = vmatprep.subr.bf16.mxu0 %v2649_v0  ;;  %2477 = vmatprep.subr.bf16.mxu1 %v2649_v0 }
  0x22   :  { %1011 = vmatpush1.bf16.msra.mxu0 %v2511_v11  ;;  %2493 = vmatpush1.bf16.msra.mxu1 %v2511_v11  ;;  %v2599_v11 = vld [vmem:[%s3674_s0 + $0x154] ss:$12 sps:$4 sm:$0xff]  }
  0x23   :  { %1012 = vmatprep.subr.bf16.mxu0 %v2649_v0  ;;  %2478 = vmatprep.subr.bf16.mxu1 %v2649_v0 }
  0x26   :  { %1013 = vmatpush1.bf16.msra.mxu0 %v2512_v12  ;;  %2494 = vmatpush1.bf16.msra.mxu1 %v2512_v12  ;;  %v2601_v12 = vld [vmem:[%s3674_s0 + $0x128] ss:$12 sps:$4 sm:$0xff]  }
  0x27   :  { %1014 = vmatprep.subr.bf16.mxu0 %v2649_v0  ;;  %2479 = vmatprep.subr.bf16.mxu1 %v2649_v0 }
  0x2a   :  { %1015 = vmatpush1.bf16.msra.mxu0 %v2513_v13  ;;  %2495 = vmatpush1.bf16.msra.mxu1 %v2513_v13  ;;  %v2602_v13 = vld [vmem:[%s3674_s0 + $0x150] ss:$12 sps:$4 sm:$0xff]  }
  0x2b   :  { %1016 = vmatprep.subr.bf16.mxu0 %v2649_v0  ;;  %2480 = vmatprep.subr.bf16.mxu1 %v2649_v0 }
  0x2e   :  { %1017 = vmatpush1.bf16.msra.mxu0 %v2514_v14  ;;  %2496 = vmatpush1.bf16.msra.mxu1 %v2514_v14  ;;  %v2603_v14 = vld [vmem:[%s3674_s0 + $0x140] ss:$12 sps:$4 sm:$0xff]  }
  0x2f   :  { %1018 = vmatprep.subr.bf16.mxu0 %v2649_v0  ;;  %2481 = vmatprep.subr.bf16.mxu1 %v2649_v0 }
  0x32   :  { %1019 = vmatpush1.bf16.msra.mxu0 %v2515_v15  ;;  %2497 = vmatpush1.bf16.msra.mxu1 %v2515_v15  ;;  %v2604_v15 = vld [vmem:[%s3674_s0 + $0x16c] ss:$12 sps:$4 sm:$0xff]  }
  0x33   :  { %1020 = vmatprep.subr.bf16.mxu0 %v2649_v0  ;;  %2482 = vmatprep.subr.bf16.mxu1 %v2649_v0 }
  0x36   :  { %1021 = vmatpush1.bf16.msra.mxu0 %v2516_v16  ;;  %2498 = vmatpush1.bf16.msra.mxu1 %v2516_v16  ;;  %v2606_v16 = vld [vmem:[%s3674_s0 + $0x158] ss:$12 sps:$4 sm:$0xff]  }
  0x37   :  { %1022 = vmatprep.subr.bf16.mxu0 %v2649_v0  ;;  %2483 = vmatprep.subr.bf16.mxu1 %v2649_v0 }
  0x3a   :  { %1023 = vmatpush1.bf16.msra.mxu0 %v2517_v17  ;;  %2499 = vmatpush1.bf16.msra.mxu1 %v2517_v17  ;;  %v2607_v17 = vld [vmem:[%s3674_s0 + $0x168] ss:$12 sps:$4 sm:$0xff]  }
  0x3b   :  { %1024 = vmatprep.subr.bf16.mxu0 %v2649_v0  ;;  %2484 = vmatprep.subr.bf16.mxu1 %v2649_v0  ;;  %v2586_v0 = vld [vmem:[%s3674_s0 + $0x98] ss:$12 sps:$4 sm:$0xff]  }
  0x3e   :  { %1025 = vmatpush1.bf16.msra.mxu0 %v2518_v18  ;;  %2500 = vmatpush1.bf16.msra.mxu1 %v2518_v18  ;;  %v2608_v18 = vld [vmem:[%s3674_s0 + $0x170] ss:$12 sps:$4 sm:$0xff]  }
  0x3f   :  { %2401 = vmatprep.subr.bf16.mxu1 %v2525_v19 }
  0x41   :  { %1027 = vmatmul.mubr.bf16.vlgmr.msra.gmra.mrb[0].mxu0 %v2519_v20  ;;  %1219 = vmatmul.mubr.bf16.vlgmr.msra.gmra.mrb[0].mxu1 %v2522_v21  ;;  %v2611_v20 = vld [vmem:[%s3674_s0 + $0x188] ss:$12 sps:$4 sm:$0xff]   ;;  %v2612_v21 = vld [vmem:[%s3674_s0 + $0x180] ss:$12 sps:$4 sm:$0xff]  }
  0x42   :  { %2402 = vmatpush3.bf16.msra.mxu1 %v2525_v19  ;;  %1034 = vmatprep.mubr.bf16.mxu0 %v2526_v22  ;;  %v2609_v19 = vld [vmem:[%s3674_s0 + $0x184] ss:$12 sps:$4 sm:$0xff]   ;;  %v2613_v22 = vld [vmem:[%s3674_s0 + $0x1a0] ss:$12 sps:$4 sm:$0xff]  }
  0x43   :  { %1226 = vmatprep.mubr.bf16.mxu1 %v2528_v23  ;;  %2403 = vmatprep.subr.bf16.mxu1 %v2550_v24  ;;  %v2614_v23 = vld [vmem:[%s3674_s0 + $0x19c] ss:$12 sps:$4 sm:$0xff]  }
  0x46   :  { %2404 = vmatpush3.bf16.msra.mxu1 %v2550_v24  ;;  %v2616_v24 = vld [vmem:[%s3674_s0 + $0x1b8] ss:$12 sps:$4 sm:$0xff]  }
  0x49   :  { %1035 = vmatmul.mubr.bf16.gmra.mrb[4].mxu0 %v2530_v25  ;;  %1227 = vmatmul.mubr.bf16.gmra.mrb[4].mxu1 %v2531_v26  ;;  %v2617_v25 = vld [vmem:[%s3674_s0 + $0x198] ss:$12 sps:$4 sm:$0xff]   ;;  %v2618_v26 = vld [vmem:[%s3674_s0 + $0x1d0] ss:$12 sps:$4 sm:$0xff]  }
  0x4a   :  { %1042 = vmatprep.mubr.bf16.mxu0 %v2532_v27  ;;  %1234 = vmatprep.mubr.bf16.mxu1 %v2534_v28  ;;  %v2619_v27 = vld [vmem:[%s3674_s0 + $0x1b4] ss:$12 sps:$4 sm:$0xff]  }
  0x4b   :  { %v2621_v28 = vld [vmem:[%s3674_s0 + $0x1e8] ss:$12 sps:$4 sm:$0xff]  }
  0x51   :  { %1043 = vmatmul.mubr.bf16.gmra.mrb[8].mxu0 %v2536_v29  ;;  %1235 = vmatmul.mubr.bf16.gmra.mrb[8].mxu1 %v2537_v30  ;;  %v2998_v29 = vld [vmem:[%s3674_s0 + $0x1b0] ss:$12 sps:$4 sm:$0xff]   ;;  %v3003_v30 = vld [vmem:[%s3674_s0 + $0x200] ss:$12 sps:$4 sm:$0xff]  }
  0x52   :  { %1050 = vmatprep.mubr.bf16.mxu0 %v2538_v31  ;;  %1242 = vmatprep.mubr.bf16.mxu1 %v2540_v32  ;;  %v3008_v31 = vld [vmem:[%s3674_s0 + $0x1cc] ss:$12 sps:$4 sm:$0xff]  }
  0x53   :  { %v3013_v32 = vld [vmem:[%s3674_s0 + $0x218] ss:$12 sps:$4 sm:$0xff]  }
  0x59   :  { %1051 = vmatmul.mubr.bf16.gmra.mrb[12].mxu0 %v2542_v33  ;;  %1243 = vmatmul.mubr.bf16.gmra.mrb[12].mxu1 %v2543_v34  ;;  %v2650_v33 = vmov 0.0   ;;  %v2627_v34 = vld [vmem:[%s3674_s0 + $0x1c8] ss:$12 sps:$4 sm:$0xff]  }
  0x5a   :  { %1058 = vmatprep.mubr.bf16.mxu0 %v2544_v35  ;;  %1250 = vmatprep.mubr.bf16.mxu1 %v2546_v36  ;;  %19 = vst.msk [vmem:[#allocation2 + $0x10] sm:$0xff] %vm16_vm1, %v2650_v33  ;;  %17 = vst.msk [vmem:[#allocation2] sm:$0xff] %vm16_vm1, %v2650_v33  ;;  %v2628_v35 = vld [vmem:[%s3674_s0 + $0x230] ss:$12 sps:$4 sm:$0xff]  }
  0x5b   :  { %18 = vst.msk [vmem:[#allocation2 + $0x8] sm:$0xff] %vm16_vm1, %v2650_v33  ;;  %20 = vst.msk [vmem:[#allocation2 + $0x18] sm:$0xff] %vm16_vm1, %v2650_v33  ;;  %v2629_v36 = vld [vmem:[%s3674_s0 + $0x1e4] ss:$12 sps:$4 sm:$0xff]  }
  0x5c   :  { %21 = vst.msk [vmem:[#allocation2 + $0x20] sm:$0xff] %vm16_vm1, %v2650_v33  ;;  %22 = vst.msk [vmem:[#allocation2 + $0x28] sm:$0xff] %vm16_vm1, %v2650_v33 }
  0x5d   :  { %23 = vst.msk [vmem:[#allocation2 + $0x30] sm:$0xff] %vm16_vm1, %v2650_v33  ;;  %24 = vst.msk [vmem:[#allocation2 + $0x38] sm:$0xff] %vm16_vm1, %v2650_v33 }
  0x5e   :  { %25 = vst.msk [vmem:[#allocation2 + $0x40] sm:$0xff] %vm16_vm1, %v2650_v33  ;;  %26 = vst.msk [vmem:[#allocation2 + $0x48] sm:$0xff] %vm16_vm1, %v2650_v33 }
  0x5f   :  { %27 = vst.msk [vmem:[#allocation2 + $0x50] sm:$0xff] %vm16_vm1, %v2650_v33  ;;  %28 = vst.msk [vmem:[#allocation2 + $0x58] sm:$0xff] %vm16_vm1, %v2650_v33 }
  0x60   :  { %29 = vst.msk [vmem:[#allocation2 + $0x60] sm:$0xff] %vm16_vm1, %v2650_v33  ;;  %30 = vst.msk [vmem:[#allocation2 + $0x68] sm:$0xff] %vm16_vm1, %v2650_v33 }
  0x61   :  { %1059 = vmatmul.mubr.bf16.gmra.mrb[16].mxu0 %v2548_v37  ;;  %1251 = vmatmul.mubr.bf16.gmra.mrb[16].mxu1 %v2549_v38  ;;  %31 = vst.msk [vmem:[#allocation2 + $0x70] sm:$0xff] %vm16_vm1, %v2650_v33  ;;  %32 = vst.msk [vmem:[#allocation2 + $0x78] sm:$0xff] %vm16_vm1, %v2650_v33  ;;  %v2631_v37 = vld [vmem:[%s3674_s0 + $0x248] ss:$12 sps:$4 sm:$0xff]   ;;  %v2632_v38 = vld [vmem:[%s3674_s0 + $0x1e0] ss:$12 sps:$4 sm:$0xff]  }
  0x62   :  { %1066 = vmatprep.mubr.bf16.mxu0 %v2551_v39  ;;  %1258 = vmatprep.mubr.bf16.mxu1 %v2553_v40  ;;  %33 = vst.msk [vmem:[#allocation2 + $0x80] sm:$0xff] %vm16_vm1, %v2650_v33  ;;  %34 = vst.msk [vmem:[#allocation2 + $0x88] sm:$0xff] %vm16_vm1, %v2650_v33  ;;  %v2633_v39 = vld [vmem:[%s3674_s0 + $0x260] ss:$12 sps:$4 sm:$0xff]   ;;  %v2634_v40 = vld [vmem:[%s3674_s0 + $0x1fc] ss:$12 sps:$4 sm:$0xff]  }
  0x63   :  { %35 = vst.msk [vmem:[#allocation2 + $0x90] sm:$0xff] %vm16_vm1, %v2650_v33  ;;  %36 = vst.msk [vmem:[#allocation2 + $0x98] sm:$0xff] %vm16_vm1, %v2650_v33 }
  0x64   :  { %37 = vst.msk [vmem:[#allocation2 + $0xa0] sm:$0xff] %vm16_vm1, %v2650_v33  ;;  %38 = vst.msk [vmem:[#allocation2 + $0xa8] sm:$0xff] %vm16_vm1, %v2650_v33 }
  0x65   :  { %39 = vst.msk [vmem:[#allocation2 + $0xb0] sm:$0xff] %vm16_vm1, %v2650_v33  ;;  %40 = vst.msk [vmem:[#allocation2 + $0xb8] sm:$0xff] %vm16_vm1, %v2650_v33 }
  0x66   :  { %41 = vst.msk [vmem:[#allocation2 + $0xc0] sm:$0xff] %vm16_vm1, %v2650_v33  ;;  %42 = vst.msk [vmem:[#allocation2 + $0xc8] sm:$0xff] %vm16_vm1, %v2650_v33 }
  0x67   :  { %43 = vst.msk [vmem:[#allocation2 + $0xd0] sm:$0xff] %vm16_vm1, %v2650_v33  ;;  %44 = vst.msk [vmem:[#allocation2 + $0xd8] sm:$0xff] %vm16_vm1, %v2650_v33 }
  0x68   :  { %45 = vst.msk [vmem:[#allocation2 + $0xe0] sm:$0xff] %vm16_vm1, %v2650_v33  ;;  %46 = vst.msk [vmem:[#allocation2 + $0xe8] sm:$0xff] %vm16_vm1, %v2650_v33 }
  0x69   :  { %1067 = vmatmul.mubr.bf16.gmra.mrb[20].mxu0 %v2555_v41  ;;  %1259 = vmatmul.mubr.bf16.gmra.mrb[20].mxu1 %v2556_v42  ;;  %47 = vst.msk [vmem:[#allocation2 + $0xf0] sm:$0xff] %vm16_vm1, %v2650_v33  ;;  %48 = vst.msk [vmem:[#allocation2 + $0xf8] sm:$0xff] %vm16_vm1, %v2650_v33  ;;  %v2636_v41 = vld [vmem:[%s3674_s0 + $0x278] ss:$12 sps:$4 sm:$0xff]  }
  0x6a   :  { %1074 = vmatprep.mubr.bf16.mxu0 %v2557_v43  ;;  %1266 = vmatprep.mubr.bf16.mxu1 %v2559_v44  ;;  %49 = vst.msk [vmem:[#allocation2 + $0x100] sm:$0xff] %vm16_vm1, %v2650_v33  ;;  %50 = vst.msk [vmem:[#allocation2 + $0x108] sm:$0xff] %vm16_vm1, %v2650_v33  ;;  %v2637_v42 = vld [vmem:[%s3674_s0 + $0x1f8] ss:$12 sps:$4 sm:$0xff]   ;;  %v2638_v43 = vld [vmem:[%s3674_s0 + $0x290] ss:$12 sps:$4 sm:$0xff]  }
  0x6b   :  { %51 = vst.msk [vmem:[#allocation2 + $0x110] sm:$0xff] %vm16_vm1, %v2650_v33  ;;  %52 = vst.msk [vmem:[#allocation2 + $0x118] sm:$0xff] %vm16_vm1, %v2650_v33  ;;  %v2639_v44 = vld [vmem:[%s3674_s0 + $0x214] ss:$12 sps:$4 sm:$0xff]  }
  0x6c   :  { %53 = vst.msk [vmem:[#allocation2 + $0x120] sm:$0xff] %vm16_vm1, %v2650_v33  ;;  %54 = vst.msk [vmem:[#allocation2 + $0x128] sm:$0xff] %vm16_vm1, %v2650_v33 }
  0x6d   :  { %55 = vst.msk [vmem:[#allocation2 + $0x130] sm:$0xff] %vm16_vm1, %v2650_v33  ;;  %56 = vst.msk [vmem:[#allocation2 + $0x138] sm:$0xff] %vm16_vm1, %v2650_v33 }
  0x6e   :  { %57 = vst.msk [vmem:[#allocation2 + $0x140] sm:$0xff] %vm16_vm1, %v2650_v33  ;;  %58 = vst.msk [vmem:[#allocation2 + $0x148] sm:$0xff] %vm16_vm1, %v2650_v33 }
  0x6f   :  { %59 = vst.msk [vmem:[#allocation2 + $0x150] sm:$0xff] %vm16_vm1, %v2650_v33  ;;  %60 = vst.msk [vmem:[#allocation2 + $0x158] sm:$0xff] %vm16_vm1, %v2650_v33 }
  0x70   :  { %61 = vst.msk [vmem:[#allocation2 + $0x160] sm:$0xff] %vm16_vm1, %v2650_v33  ;;  %62 = vst.msk [vmem:[#allocation2 + $0x168] sm:$0xff] %vm16_vm1, %v2650_v33 }
  0x71   :  { %1075 = vmatmul.mubr.bf16.gmra.mrb[24].mxu0 %v2561_v45  ;;  %1267 = vmatmul.mubr.bf16.gmra.mrb[24].mxu1 %v2562_v46  ;;  %63 = vst.msk [vmem:[#allocation2 + $0x170] sm:$0xff] %vm16_vm1, %v2650_v33  ;;  %64 = vst.msk [vmem:[#allocation2 + $0x178] sm:$0xff] %vm16_vm1, %v2650_v33  ;;  %v2641_v45 = vld [vmem:[%s3674_s0 + $0x2a8] ss:$12 sps:$4 sm:$0xff]   ;;  %v2642_v46 = vld [vmem:[%s3674_s0 + $0x210] ss:$12 sps:$4 sm:$0xff]  }
  0x72   :  { %1082 = vmatprep.mubr.bf16.mxu0 %v2563_v47  ;;  %1274 = vmatprep.mubr.bf16.mxu1 %v2565_v48  ;;  %65 = vst.msk [vmem:[#allocation2 + $0x180] sm:$0xff] %vm16_vm1, %v2650_v33  ;;  %66 = vst.msk [vmem:[#allocation2 + $0x188] sm:$0xff] %vm16_vm1, %v2650_v33  ;;  %v2643_v47 = vld [vmem:[%s3674_s0 + $0x2c0] ss:$12 sps:$4 sm:$0xff]  }
  0x73   :  { %67 = vst.msk [vmem:[#allocation2 + $0x190] sm:$0xff] %vm16_vm1, %v2650_v33  ;;  %68 = vst.msk [vmem:[#allocation2 + $0x198] sm:$0xff] %vm16_vm1, %v2650_v33  ;;  %v2644_v48 = vld [vmem:[%s3674_s0 + $0x22c] ss:$12 sps:$4 sm:$0xff]  }
  0x74   :  { %69 = vst.msk [vmem:[#allocation2 + $0x1a0] sm:$0xff] %vm16_vm1, %v2650_v33  ;;  %70 = vst.msk [vmem:[#allocation2 + $0x1a8] sm:$0xff] %vm16_vm1, %v2650_v33 }
  0x75   :  { %71 = vst.msk [vmem:[#allocation2 + $0x1b0] sm:$0xff] %vm16_vm1, %v2650_v33  ;;  %72 = vst.msk [vmem:[#allocation2 + $0x1b8] sm:$0xff] %vm16_vm1, %v2650_v33 }
  0x76   :  { %73 = vst.msk [vmem:[#allocation2 + $0x1c0] sm:$0xff] %vm16_vm1, %v2650_v33  ;;  %74 = vst.msk [vmem:[#allocation2 + $0x1c8] sm:$0xff] %vm16_vm1, %v2650_v33 }
  0x77   :  { %75 = vst.msk [vmem:[#allocation2 + $0x1d0] sm:$0xff] %vm16_vm1, %v2650_v33  ;;  %76 = vst.msk [vmem:[#allocation2 + $0x1d8] sm:$0xff] %vm16_vm1, %v2650_v33 }
  0x78   :  { %77 = vst.msk [vmem:[#allocation2 + $0x1e0] sm:$0xff] %vm16_vm1, %v2650_v33  ;;  %78 = vst.msk [vmem:[#allocation2 + $0x1e8] sm:$0xff] %vm16_vm1, %v2650_v33 }
  0x79   :  { %1083 = vmatmul.mubr.bf16.gmra.mrb[28].mxu0 %v2567_v49  ;;  %1275 = vmatmul.mubr.bf16.gmra.mrb[28].mxu1 %v2568_v50  ;;  %79 = vst.msk [vmem:[#allocation2 + $0x1f0] sm:$0xff] %vm16_vm1, %v2650_v33  ;;  %80 = vst.msk [vmem:[#allocation2 + $0x1f8] sm:$0xff] %vm16_vm1, %v2650_v33  ;;  %v2646_v49 = vld [vmem:[%s3674_s0 + $0x2d8] ss:$12 sps:$4 sm:$0xff]   ;;  %v2647_v50 = vld [vmem:[%s3674_s0 + $0x228] ss:$12 sps:$4 sm:$0xff]  }
  0x7a   :  { %1090 = vmatprep.mubr.bf16.mxu0 %v2569_v51  ;;  %2405 = vmatprep.mubr.msk.bf16.mxu1 %vm897_vm0, %v2571_v52  ;;  %v2648_v51 = vld [vmem:[%s3674_s0 + $0x2f0] ss:$12 sps:$4 sm:$0xff]  }
  0x81   :  { %1091 = vmatmul.mubr.bf16.gmra.mrb[32].mxu0 %v2572_v53  ;;  %2406 = vmatmul.mubr.msk.bf16.vlgmr.msra.gmra.mrb[32].mxu1 %vm897_vm0, %v2573_v54 }
  0x82   :  { %1098 = vmatprep.mubr.bf16.mxu0 %v2574_v55  ;;  %2409 = vmatprep.mubr.msk.bf16.mxu1 %vm897_vm0, %v2576_v56 }
  0x89   :  { %1099 = vmatmul.mubr.bf16.gmra.mrb[36].mxu0 %v2577_v57  ;;  %2410 = vmatmul.mubr.msk.bf16.gmra.mrb[36].mxu1 %vm897_vm0, %v2578_v58 }
  0x8a   :  { %1106 = vmatprep.mubr.bf16.mxu0 %v2579_v59  ;;  %2413 = vmatprep.mubr.msk.bf16.mxu1 %vm897_vm0, %v2581_v60 }
  0x91   :  { %1107 = vmatmul.mubr.bf16.gmra.mrb[40].mxu0 %v2582_v61  ;;  %2414 = vmatmul.mubr.msk.bf16.gmra.mrb[40].mxu1 %vm897_vm0, %v2583_v62 }
  0x92   :  { %1114 = vmatprep.mubr.bf16.mxu0 %v2584_v63  ;;  %2417 = vmatprep.mubr.msk.bf16.mxu1 %vm897_vm0, %v2586_v0 }
  0x99   :  { %1115 = vmatmul.mubr.bf16.gmra.mrb[44].mxu0 %v2587_v1  ;;  %2418 = vmatmul.mubr.msk.bf16.gmra.mrb[44].mxu1 %vm897_vm0, %v2588_v2 }
  0x9a   :  { %1122 = vmatprep.mubr.bf16.mxu0 %v2589_v3  ;;  %2421 = vmatprep.mubr.msk.bf16.mxu1 %vm897_vm0, %v2591_v4 }
  0xa1   :  { %1123 = vmatmul.mubr.bf16.gmra.mrb[48].mxu0 %v2592_v5  ;;  %2422 = vmatmul.mubr.msk.bf16.gmra.mrb[48].mxu1 %vm897_vm0, %v2593_v6 }
  0xa2   :  { %1130 = vmatprep.mubr.bf16.mxu0 %v2594_v7  ;;  %2425 = vmatprep.mubr.msk.bf16.mxu1 %vm897_vm0, %v2596_v8 }
  0xa9   :  { %1131 = vmatmul.mubr.bf16.gmra.mrb[52].mxu0 %v2597_v9  ;;  %2426 = vmatmul.mubr.msk.bf16.gmra.mrb[52].mxu1 %vm897_vm0, %v2598_v10 }
  0xaa   :  { %1138 = vmatprep.mubr.bf16.mxu0 %v2599_v11  ;;  %2429 = vmatprep.mubr.msk.bf16.mxu1 %vm897_vm0, %v2601_v12 }
  0xb1   :  { %1139 = vmatmul.mubr.bf16.gmra.mrb[56].mxu0 %v2602_v13  ;;  %2430 = vmatmul.mubr.msk.bf16.gmra.mrb[56].mxu1 %vm897_vm0, %v2603_v14 }
  0xb2   :  { %1146 = vmatprep.mubr.bf16.mxu0 %v2604_v15  ;;  %2433 = vmatprep.mubr.msk.bf16.mxu1 %vm897_vm0, %v2606_v16 }
  0xb9   :  { %1147 = vmatmul.mubr.bf16.gmra.mrb[60].mxu0 %v2607_v17  ;;  %2434 = vmatmul.mubr.msk.bf16.gmra.mrb[60].mxu1 %vm897_vm0, %v2608_v18 }
  0xba   :  { %1154 = vmatprep.mubr.bf16.mxu0 %v2609_v19  ;;  %2437 = vmatprep.mubr.msk.bf16.mxu1 %vm897_vm0, %v2611_v20 }
  0xc1   :  { %1155 = vmatmul.mubr.bf16.gmra.mrb[64].mxu0 %v2612_v21  ;;  %2438 = vmatmul.mubr.msk.bf16.gmra.mrb[64].mxu1 %vm897_vm0, %v2613_v22 }
  0xc2   :  { %1162 = vmatprep.mubr.bf16.mxu0 %v2614_v23  ;;  %2441 = vmatprep.mubr.msk.bf16.mxu1 %vm897_vm0, %v2616_v24 }
  0xc9   :  { %1163 = vmatmul.mubr.bf16.gmra.mrb[68].mxu0 %v2617_v25  ;;  %2442 = vmatmul.mubr.msk.bf16.gmra.mrb[68].mxu1 %vm897_vm0, %v2618_v26 }
  0xca   :  { %1170 = vmatprep.mubr.bf16.mxu0 %v2619_v27  ;;  %2445 = vmatprep.mubr.msk.bf16.mxu1 %vm897_vm0, %v2621_v28 }
  0xd1   :  { %1171 = vmatmul.mubr.bf16.gmra.mrb[72].mxu0 %v2998_v29  ;;  %2446 = vmatmul.mubr.msk.bf16.gmra.mrb[72].mxu1 %vm897_vm0, %v3003_v30 }
  0xd2   :  { %1178 = vmatprep.mubr.bf16.mxu0 %v3008_v31  ;;  %2449 = vmatprep.mubr.msk.bf16.mxu1 %vm897_vm0, %v3013_v32 }
  0xd9   :  { %1179 = vmatmul.mubr.bf16.gmra.mrb[76].mxu0 %v2627_v34  ;;  %2450 = vmatmul.mubr.msk.bf16.gmra.mrb[76].mxu1 %vm897_vm0, %v2628_v35 }
  0xda   :  { %1186 = vmatprep.mubr.bf16.mxu0 %v2629_v36  ;;  %2453 = vmatprep.mubr.msk.bf16.mxu1 %vm897_vm0, %v2631_v37 }
  0xe1   :  { %1187 = vmatmul.mubr.bf16.gmra.mrb[80].mxu0 %v2632_v38  ;;  %2454 = vmatmul.mubr.msk.bf16.gmra.mrb[80].mxu1 %vm897_vm0, %v2633_v39 }
  0xe2   :  { %1194 = vmatprep.mubr.bf16.mxu0 %v2634_v40  ;;  %2457 = vmatprep.mubr.msk.bf16.mxu1 %vm897_vm0, %v2636_v41 }
  0xe9   :  { %1195 = vmatmul.mubr.bf16.gmra.mrb[84].mxu0 %v2637_v42  ;;  %2458 = vmatmul.mubr.msk.bf16.gmra.mrb[84].mxu1 %vm897_vm0, %v2638_v43 }
  0xea   :  { %1202 = vmatprep.mubr.bf16.mxu0 %v2639_v44  ;;  %2461 = vmatprep.mubr.msk.bf16.mxu1 %vm897_vm0, %v2641_v45 }
  0xf1   :  { %1203 = vmatmul.mubr.bf16.gmra.mrb[88].mxu0 %v2642_v46  ;;  %2462 = vmatmul.mubr.msk.bf16.gmra.mrb[88].mxu1 %vm897_vm0, %v2643_v47 }
  0xf2   :  { %1210 = vmatprep.mubr.bf16.mxu0 %v2644_v48  ;;  %2465 = vmatprep.mubr.msk.bf16.mxu1 %vm897_vm0, %v2646_v49 }
  0xf9   :  { %1211 = vmatmul.mubr.bf16.gmra.mrb[92].mxu0 %v2647_v50  ;;  %2466 = vmatmul.mubr.msk.bf16.gmra.mrb[92].mxu1 %vm897_vm0, %v2648_v51 }
 0x114   :  { %v3212_v52 = vpop.f32.mrb[0].mxu0  ;;  %v3214_v53 = vpop.f32.mrb[0].mxu1 }
 0x115   :  { %v1030_v54 = vpop.f32.mrb[1].mxu0  ;;  %v1222_v55 = vpop.f32.mrb[1].mxu1 }
 0x116   :  { %v3216_v56 = vpop.f32.mrb[2].mxu0  ;;  %v3218_v57 = vpop.f32.mrb[2].mxu1  ;;  %v83_v55 = vld [vmem:[#allocation2 + $0x10] sm:$0xff] }
 0x117   :  { %v1033_v58 = vpop.f32.mrb[3].mxu0  ;;  %v1225_v59 = vpop.f32.mrb[3].mxu1 }
 0x11c   :  { %v1036_v60 = vpop.f32.mrb[4].mxu0  ;;  %v3220_v61 = vpop.f32.mrb[4].mxu1 }
 0x11d   :  { %v1038_v62 = vpop.f32.mrb[5].mxu0  ;;  %v1230_v63 = vpop.f32.mrb[5].mxu1 }
 0x11e   :  { %v3222_v0 = vpop.f32.mrb[6].mxu0  ;;  %v3224_v1 = vpop.f32.mrb[6].mxu1  ;;  %v81_v63 = vld [vmem:[#allocation2] sm:$0xff] }
 0x11f   :  { %v1041_v2 = vpop.f32.mrb[7].mxu0  ;;  %v1233_v3 = vpop.f32.mrb[7].mxu1 }
 0x124   :  { %v3226_v4 = vpop.f32.mrb[8].mxu0  ;;  %v3228_v5 = vpop.f32.mrb[8].mxu1 }
 0x125   :  { %v1046_v6 = vpop.f32.mrb[9].mxu0  ;;  %v1238_v7 = vpop.f32.mrb[9].mxu1 }
 0x126   :  { %v3230_v8 = vpop.f32.mrb[10].mxu0  ;;  %v3232_v9 = vpop.f32.mrb[10].mxu1  ;;  %v84_v7 = vld [vmem:[#allocation2 + $0x18] sm:$0xff] }
 0x127   :  { %v1049_v10 = vpop.f32.mrb[11].mxu0  ;;  %v1241_v11 = vpop.f32.mrb[11].mxu1 }
 0x12c   :  { %v3234_v12 = vpop.f32.mrb[12].mxu0  ;;  %v3236_v13 = vpop.f32.mrb[12].mxu1 }
 0x12d   :  { %v1054_v14 = vpop.f32.mrb[13].mxu0  ;;  %v1246_v15 = vpop.f32.mrb[13].mxu1 }
 0x12e   :  { %v3238_v16 = vpop.f32.mrb[14].mxu0  ;;  %v3240_v17 = vpop.f32.mrb[14].mxu1 }
 0x12f   :  { %v1057_v18 = vpop.f32.mrb[15].mxu0  ;;  %v1249_v19 = vpop.f32.mrb[15].mxu1 }
 0x130   :  { %v82_v18 = vld [vmem:[#allocation2 + $0x8] sm:$0xff] }
 0x134   :  { %v3242_v20 = vpop.f32.mrb[16].mxu0  ;;  %v3244_v21 = vpop.f32.mrb[16].mxu1 }
 0x135   :  { %v1062_v22 = vpop.f32.mrb[17].mxu0  ;;  %v1254_v23 = vpop.f32.mrb[17].mxu1 }
 0x136   :  { %v3246_v24 = vpop.f32.mrb[18].mxu0  ;;  %v3248_v25 = vpop.f32.mrb[18].mxu1 }
 0x137   :  { %v1065_v26 = vpop.f32.mrb[19].mxu0  ;;  %v1257_v27 = vpop.f32.mrb[19].mxu1 }
 0x138   :  { %v87_v27 = vld [vmem:[#allocation2 + $0x30] sm:$0xff] }
 0x13c   :  { %v3250_v28 = vpop.f32.mrb[20].mxu0  ;;  %v3252_v29 = vpop.f32.mrb[20].mxu1 }
 0x13d   :  { %v1070_v30 = vpop.f32.mrb[21].mxu0  ;;  %v1262_v31 = vpop.f32.mrb[21].mxu1 }
 0x13e   :  { %v3254_v32 = vpop.f32.mrb[22].mxu0  ;;  %v3256_v33 = vpop.f32.mrb[22].mxu1 }
 0x13f   :  { %v1073_v34 = vpop.f32.mrb[23].mxu0  ;;  %v1265_v35 = vpop.f32.mrb[23].mxu1 }
 0x140   :  { %v85_v34 = vld [vmem:[#allocation2 + $0x20] sm:$0xff] }
 0x144   :  { %v3258_v36 = vpop.f32.mrb[24].mxu0  ;;  %v3260_v37 = vpop.f32.mrb[24].mxu1 }
 0x145   :  { %v1078_v38 = vpop.f32.mrb[25].mxu0  ;;  %v1270_v39 = vpop.f32.mrb[25].mxu1 }
 0x146   :  { %v3262_v40 = vpop.f32.mrb[26].mxu0  ;;  %v3264_v41 = vpop.f32.mrb[26].mxu1  ;;  %v88_v39 = vld [vmem:[#allocation2 + $0x38] sm:$0xff] }
 0x147   :  { %v1081_v42 = vpop.f32.mrb[27].mxu0  ;;  %v1273_v43 = vpop.f32.mrb[27].mxu1 }
 0x14c   :  { %v3266_v44 = vpop.f32.mrb[28].mxu0  ;;  %v3268_v45 = vpop.f32.mrb[28].mxu1 }
 0x14d   :  { %v1086_v46 = vpop.f32.mrb[29].mxu0  ;;  %v1278_v47 = vpop.f32.mrb[29].mxu1 }
 0x14e   :  { %v3270_v48 = vpop.f32.mrb[30].mxu0  ;;  %v3272_v49 = vpop.f32.mrb[30].mxu1 }
 0x14f   :  { %v1089_v50 = vpop.f32.mrb[31].mxu0  ;;  %v1281_v51 = vpop.f32.mrb[31].mxu1 }
 0x150   :  { %v86_v50 = vld [vmem:[#allocation2 + $0x28] sm:$0xff] }
 0x154   :  { %v3274_v54 = vpop.f32.mrb[32].mxu0  ;;  %v2407_v58 = vpop.f32.mrb[32].mxu1 }
 0x155   :  { %v1326_v59 = vadd.f32 %v2407_v58, %v1036_v60  ;;  %v1094_v62 = vpop.f32.mrb[33].mxu0  ;;  %v1317_v2 = vpop.f32.mrb[33].mxu1 }
 0x156   :  { %v1318_v3 = vadd.f32 %v1317_v2, %v3212_v52  ;;  %v3277_v6 = vpop.f32.mrb[34].mxu0  ;;  %v2408_v10 = vpop.f32.mrb[34].mxu1 }
 0x157   :  { %v1574_v11 = vadd.f32 %v1326_v59, %v83_v55  ;;  %v1329_v14 = vadd.f32 %v2408_v10, %v3222_v0  ;;  %v1097_v15 = vpop.f32.mrb[35].mxu0  ;;  %v1320_v19 = vpop.f32.mrb[35].mxu1 }
 0x158   :  { %v1572_v22 = vadd.f32 %v1318_v3, %v81_v63  ;;  %v1321_v23 = vadd.f32 %v1320_v19, %v3216_v56  ;;  %v89_v19 = vld [vmem:[#allocation2 + $0x40] sm:$0xff] }
 0x159   :  { %1639 = vst.msk [vmem:[#allocation2 + $0x10] sm:$0xff] %vm16_vm1, %v1574_v11  ;;  %v1575_v60 = vadd.f32 %v1329_v14, %v84_v7  ;;  %v91_v11 = vld [vmem:[#allocation2 + $0x50] sm:$0xff] }
 0x15a   :  { %1637 = vst.msk [vmem:[#allocation2] sm:$0xff] %vm16_vm1, %v1572_v22  ;;  %v1573_v26 = vadd.f32 %v1321_v23, %v82_v18 }
 0x15b   :  { %1640 = vst.msk [vmem:[#allocation2 + $0x18] sm:$0xff] %vm16_vm1, %v1575_v60 }
 0x15c   :  { %1638 = vst.msk [vmem:[#allocation2 + $0x8] sm:$0xff] %vm16_vm1, %v1573_v26  ;;  %v3285_v52 = vpop.f32.mrb[36].mxu0  ;;  %v2411_v0 = vpop.f32.mrb[36].mxu1  ;;  %v92_v26 = vld [vmem:[#allocation2 + $0x58] sm:$0xff] }
 0x15d   :  { %v1342_v30 = vadd.f32 %v2411_v0, %v3234_v12  ;;  %v1102_v31 = vpop.f32.mrb[37].mxu0  ;;  %v1333_v35 = vpop.f32.mrb[37].mxu1 }
 0x15e   :  { %v1334_v56 = vadd.f32 %v1333_v35, %v3226_v4  ;;  %v3289_v38 = vpop.f32.mrb[38].mxu0  ;;  %v2412_v42 = vpop.f32.mrb[38].mxu1 }
 0x15f   :  { %v1578_v43 = vadd.f32 %v1342_v30, %v87_v27  ;;  %v1345_v46 = vadd.f32 %v2412_v42, %v3238_v16  ;;  %v1105_v47 = vpop.f32.mrb[39].mxu0  ;;  %v1336_v51 = vpop.f32.mrb[39].mxu1 }
 0x160   :  { %v1706_v55 = vld [vmem:[#allocation2 + $0x10] sm:$0xff]  ;;  %v1576_v58 = vadd.f32 %v1334_v56, %v85_v34  ;;  %v1337_v12 = vadd.f32 %v1336_v51, %v3230_v8  ;;  %v90_v34 = vld [vmem:[#allocation2 + $0x48] sm:$0xff] }
 0x161   :  { %v2305_v59 = vpack.c.bf16 %v1706_v55, %v1706_v55  ;;  %v1704_v62 = vld [vmem:[#allocation2] sm:$0xff]  ;;  %1643 = vst.msk [vmem:[#allocation2 + $0x30] sm:$0xff] %vm16_vm1, %v1578_v43  ;;  %v1579_v4 = vadd.f32 %v1345_v46, %v88_v39 }
 0x162   :  { %v2303_v63 = vpack.c.bf16 %v1704_v62, %v1704_v62  ;;  %v1707_v2 = vld [vmem:[#allocation2 + $0x18] sm:$0xff]  ;;  %1641 = vst.msk [vmem:[#allocation2 + $0x20] sm:$0xff] %vm16_vm1, %v1576_v58  ;;  %v1577_v3 = vadd.f32 %v1337_v12, %v86_v50  ;;  %v95_v58 = vld [vmem:[#allocation2 + $0x70] sm:$0xff] }
 0x163   :  { %2027 = vst.msk [vmem:[%s3675_s2 + $0x8] sm:$0xf] %vm2024_vm2, %v2305_v59  ;;  %v2306_v16 = vpack.c.bf16 %v1707_v2, %v1707_v2  ;;  %v1705_v7 = vld [vmem:[#allocation2 + $0x8] sm:$0xff] }
 0x164   :  { %1644 = vst.msk [vmem:[#allocation2 + $0x38] sm:$0xff] %vm16_vm1, %v1579_v4  ;;  %v2304_v8 = vpack.c.bf16 %v1705_v7, %v1705_v7  ;;  %1642 = vst.msk [vmem:[#allocation2 + $0x28] sm:$0xff] %vm16_vm1, %v1577_v3  ;;  %v3305_v10 = vpop.f32.mrb[40].mxu0  ;;  %v2415_v14 = vpop.f32.mrb[40].mxu1  ;;  %v93_v4 = vld [vmem:[#allocation2 + $0x60] sm:$0xff] }
 0x165   :  { %2025 = vst.msk [vmem:[%s3675_s2] sm:$0xf] %vm2024_vm2, %v2303_v63  ;;  %2028 = vst.msk [vmem:[%s3675_s2 + $0xc] sm:$0xf] %vm2024_vm2, %v2306_v16  ;;  %v1358_v15 = vadd.f32 %v2415_v14, %v3250_v28  ;;  %v1110_v18 = vpop.f32.mrb[41].mxu0  ;;  %v1349_v22 = vpop.f32.mrb[41].mxu1 }
 0x166   :  { %2026 = vst.msk [vmem:[%s3675_s2 + $0x4] sm:$0xf] %vm2024_vm2, %v2304_v8  ;;  %v1350_v23 = vadd.f32 %v1349_v22, %v3242_v20  ;;  %v3317_v60 = vpop.f32.mrb[42].mxu0  ;;  %v2416_v27 = vpop.f32.mrb[42].mxu1  ;;  %v96_v16 = vld [vmem:[#allocation2 + $0x78] sm:$0xff] }
 0x167   :  { %v1582_v0 = vadd.f32 %v1358_v15, %v91_v11  ;;  %v1361_v30 = vadd.f32 %v2416_v27, %v3254_v32  ;;  %v1113_v31 = vpop.f32.mrb[43].mxu0  ;;  %v1352_v28 = vpop.f32.mrb[43].mxu1  ;;  %v94_v15 = vld [vmem:[#allocation2 + $0x68] sm:$0xff] }
 0x168   :  { %v1710_v35 = vld [vmem:[#allocation2 + $0x30] sm:$0xff]  ;;  %v1580_v56 = vadd.f32 %v1350_v23, %v89_v19  ;;  %v1353_v39 = vadd.f32 %v1352_v28, %v3246_v24 }
 0x169   :  { %v2309_v42 = vpack.c.bf16 %v1710_v35, %v1710_v35  ;;  %v1708_v43 = vld [vmem:[#allocation2 + $0x20] sm:$0xff]  ;;  %1647 = vst.msk [vmem:[#allocation2 + $0x50] sm:$0xff] %vm16_vm1, %v1582_v0  ;;  %v1583_v46 = vadd.f32 %v1361_v30, %v92_v26  ;;  %v99_v28 = vld [vmem:[#allocation2 + $0x90] sm:$0xff] }
 0x16a   :  { %v2307_v20 = vpack.c.bf16 %v1708_v43, %v1708_v43  ;;  %1645 = vst.msk [vmem:[#allocation2 + $0x40] sm:$0xff] %vm16_vm1, %v1580_v56  ;;  %v1581_v50 = vadd.f32 %v1353_v39, %v90_v34 }
 0x16b   :  { %v1711_v47 = vld [vmem:[#allocation2 + $0x38] sm:$0xff]  ;;  %2031 = vst.msk [vmem:[%s3675_s2 + $0x18] sm:$0xf] %vm2024_vm2, %v2309_v42  ;;  %v1709_v51 = vld [vmem:[#allocation2 + $0x28] sm:$0xff]  ;;  %v97_v42 = vld [vmem:[#allocation2 + $0x80] sm:$0xff] }
 0x16c   :  { %v2310_v32 = vpack.c.bf16 %v1711_v47, %v1711_v47  ;;  %1648 = vst.msk [vmem:[#allocation2 + $0x58] sm:$0xff] %vm16_vm1, %v1583_v46  ;;  %v2308_v24 = vpack.c.bf16 %v1709_v51, %v1709_v51  ;;  %1646 = vst.msk [vmem:[#allocation2 + $0x48] sm:$0xff] %vm16_vm1, %v1581_v50  ;;  %v3333_v55 = vpop.f32.mrb[44].mxu0  ;;  %v2419_v12 = vpop.f32.mrb[44].mxu1  ;;  %v100_v47 = vld [vmem:[#allocation2 + $0x98] sm:$0xff] }
 0x16d   :  { %2029 = vst.msk [vmem:[%s3675_s2 + $0x10] sm:$0xf] %vm2024_vm2, %v2307_v20  ;;  %v1374_v59 = vadd.f32 %v2419_v12, %v3266_v44  ;;  %v1118_v62 = vpop.f32.mrb[45].mxu0  ;;  %v1365_v63 = vpop.f32.mrb[45].mxu1 }
 0x16e   :  { %2032 = vst.msk [vmem:[%s3675_s2 + $0x1c] sm:$0xf] %vm2024_vm2, %v2310_v32  ;;  %2030 = vst.msk [vmem:[%s3675_s2 + $0x14] sm:$0xf] %vm2024_vm2, %v2308_v24  ;;  %v1366_v2 = vadd.f32 %v1365_v63, %v3258_v36  ;;  %v3345_v3 = vpop.f32.mrb[46].mxu0  ;;  %v2420_v7 = vpop.f32.mrb[46].mxu1 }
 0x16f   :  { %v1586_v8 = vadd.f32 %v1374_v59, %v95_v58  ;;  %v1377_v11 = vadd.f32 %v2420_v7, %v3270_v48  ;;  %v1121_v14 = vpop.f32.mrb[47].mxu0  ;;  %v1368_v44 = vpop.f32.mrb[47].mxu1  ;;  %v98_v58 = vld [vmem:[#allocation2 + $0x88] sm:$0xff] }
 0x170   :  { %v1714_v18 = vld [vmem:[#allocation2 + $0x50] sm:$0xff]  ;;  %v1584_v19 = vadd.f32 %v1366_v2, %v93_v4  ;;  %v1369_v22 = vadd.f32 %v1368_v44, %v3262_v40 }
 0x171   :  { %v2313_v23 = vpack.c.bf16 %v1714_v18, %v1714_v18  ;;  %v1712_v26 = vld [vmem:[#allocation2 + $0x40] sm:$0xff]  ;;  %1651 = vst.msk [vmem:[#allocation2 + $0x70] sm:$0xff] %vm16_vm1, %v1586_v8  ;;  %v1587_v27 = vadd.f32 %v1377_v11, %v96_v16  ;;  %v103_v14 = vld [vmem:[#allocation2 + $0xb0] sm:$0xff] }
 0x172   :  { %v2311_v36 = vpack.c.bf16 %v1712_v26, %v1712_v26  ;;  %1649 = vst.msk [vmem:[#allocation2 + $0x60] sm:$0xff] %vm16_vm1, %v1584_v19  ;;  %v1585_v30 = vadd.f32 %v1369_v22, %v94_v15  ;;  %v101_v19 = vld [vmem:[#allocation2 + $0xa0] sm:$0xff] }
 0x173   :  { %v1715_v0 = vld [vmem:[#allocation2 + $0x58] sm:$0xff]  ;;  %2035 = vst.msk [vmem:[%s3675_s2 + $0x28] sm:$0xf] %vm2024_vm2, %v2313_v23  ;;  %v1713_v31 = vld [vmem:[#allocation2 + $0x48] sm:$0xff] }
 0x174   :  { %v2314_v48 = vpack.c.bf16 %v1715_v0, %v1715_v0  ;;  %1652 = vst.msk [vmem:[#allocation2 + $0x78] sm:$0xff] %vm16_vm1, %v1587_v27  ;;  %v2312_v40 = vpack.c.bf16 %v1713_v31, %v1713_v31  ;;  %1650 = vst.msk [vmem:[#allocation2 + $0x68] sm:$0xff] %vm16_vm1, %v1585_v30  ;;  %v3361_v34 = vpop.f32.mrb[48].mxu0  ;;  %v2423_v35 = vpop.f32.mrb[48].mxu1  ;;  %v104_v27 = vld [vmem:[#allocation2 + $0xb8] sm:$0xff]  ;;  %v102_v31 = vld [vmem:[#allocation2 + $0xa8] sm:$0xff] }
 0x175   :  { %2033 = vst.msk [vmem:[%s3675_s2 + $0x20] sm:$0xf] %vm2024_vm2, %v2311_v36  ;;  %v1390_v56 = vadd.f32 %v2423_v35, %v3285_v52  ;;  %v1126_v39 = vpop.f32.mrb[49].mxu0  ;;  %v1381_v43 = vpop.f32.mrb[49].mxu1 }
 0x176   :  { %2036 = vst.msk [vmem:[%s3675_s2 + $0x2c] sm:$0xf] %vm2024_vm2, %v2314_v48  ;;  %2034 = vst.msk [vmem:[%s3675_s2 + $0x24] sm:$0xf] %vm2024_vm2, %v2312_v40  ;;  %v1382_v46 = vadd.f32 %v1381_v43, %v3274_v54  ;;  %v3373_v20 = vpop.f32.mrb[50].mxu0  ;;  %v2424_v50 = vpop.f32.mrb[50].mxu1 }
 0x177   :  { %v1590_v32 = vadd.f32 %v1390_v56, %v99_v28  ;;  %v1393_v51 = vadd.f32 %v2424_v50, %v3289_v38  ;;  %v1129_v24 = vpop.f32.mrb[51].mxu0  ;;  %v1384_v52 = vpop.f32.mrb[51].mxu1 }
 0x178   :  { %v1718_v12 = vld [vmem:[#allocation2 + $0x70] sm:$0xff]  ;;  %v1588_v59 = vadd.f32 %v1382_v46, %v97_v42  ;;  %v1385_v62 = vadd.f32 %v1384_v52, %v3277_v6  ;;  %v105_v52 = vld [vmem:[#allocation2 + $0xc0] sm:$0xff] }
 0x179   :  { %v2317_v4 = vpack.c.bf16 %v1718_v12, %v1718_v12  ;;  %v1716_v63 = vld [vmem:[#allocation2 + $0x60] sm:$0xff]  ;;  %1655 = vst.msk [vmem:[#allocation2 + $0x90] sm:$0xff] %vm16_vm1, %v1590_v32  ;;  %v1591_v2 = vadd.f32 %v1393_v51, %v100_v47  ;;  %v107_v32 = vld [vmem:[#allocation2 + $0xd0] sm:$0xff] }
 0x17a   :  { %v2315_v54 = vpack.c.bf16 %v1716_v63, %v1716_v63  ;;  %1653 = vst.msk [vmem:[#allocation2 + $0x80] sm:$0xff] %vm16_vm1, %v1588_v59  ;;  %v1589_v7 = vadd.f32 %v1385_v62, %v98_v58 }
 0x17b   :  { %v1719_v16 = vld [vmem:[#allocation2 + $0x78] sm:$0xff]  ;;  %2039 = vst.msk [vmem:[%s3675_s2 + $0x38] sm:$0xf] %vm2024_vm2, %v2317_v4  ;;  %v1717_v8 = vld [vmem:[#allocation2 + $0x68] sm:$0xff] }
 0x17c   :  { %v2318_v38 = vpack.c.bf16 %v1719_v16, %v1719_v16  ;;  %1656 = vst.msk [vmem:[#allocation2 + $0x98] sm:$0xff] %vm16_vm1, %v1591_v2  ;;  %v2316_v6 = vpack.c.bf16 %v1717_v8, %v1717_v8  ;;  %1654 = vst.msk [vmem:[#allocation2 + $0x88] sm:$0xff] %vm16_vm1, %v1589_v7  ;;  %v1132_v11 = vpop.f32.mrb[52].mxu0  ;;  %v2427_v15 = vpop.f32.mrb[52].mxu1  ;;  %v108_v4 = vld [vmem:[#allocation2 + $0xd8] sm:$0xff]  ;;  %v106_v7 = vld [vmem:[#allocation2 + $0xc8] sm:$0xff] }
 0x17d   :  { %2037 = vst.msk [vmem:[%s3675_s2 + $0x30] sm:$0xf] %vm2024_vm2, %v2315_v54  ;;  %v1406_v44 = vadd.f32 %v2427_v15, %v3333_v55  ;;  %v1134_v18 = vpop.f32.mrb[53].mxu0  ;;  %v1397_v22 = vpop.f32.mrb[53].mxu1 }
 0x17e   :  { %2040 = vst.msk [vmem:[%s3675_s2 + $0x3c] sm:$0xf] %vm2024_vm2, %v2318_v38  ;;  %2038 = vst.msk [vmem:[%s3675_s2 + $0x34] sm:$0xf] %vm2024_vm2, %v2316_v6  ;;  %v1398_v23 = vadd.f32 %v1397_v22, %v3305_v10  ;;  %v1135_v26 = vpop.f32.mrb[54].mxu0  ;;  %v2428_v36 = vpop.f32.mrb[54].mxu1 }
 0x17f   :  { %v1594_v0 = vadd.f32 %v1406_v44, %v103_v14  ;;  %v1409_v30 = vadd.f32 %v2428_v36, %v3345_v3  ;;  %v1137_v48 = vpop.f32.mrb[55].mxu0  ;;  %v1400_v40 = vpop.f32.mrb[55].mxu1 }
 0x180   :  { %v1722_v55 = vld [vmem:[#allocation2 + $0x90] sm:$0xff]  ;;  %v1592_v28 = vadd.f32 %v1398_v23, %v101_v19  ;;  %v1401_v35 = vadd.f32 %v1400_v40, %v3317_v60  ;;  %v109_v48 = vld [vmem:[#allocation2 + $0xe0] sm:$0xff] }
 0x181   :  { %v2321_v56 = vpack.c.bf16 %v1722_v55, %v1722_v55  ;;  %v1720_v39 = vld [vmem:[#allocation2 + $0x80] sm:$0xff]  ;;  %1659 = vst.msk [vmem:[#allocation2 + $0xb0] sm:$0xff] %vm16_vm1, %v1594_v0  ;;  %v1595_v42 = vadd.f32 %v1409_v30, %v104_v27  ;;  %v111_v27 = vld [vmem:[#allocation2 + $0xf0] sm:$0xff] }
 0x182   :  { %v2319_v43 = vpack.c.bf16 %v1720_v39, %v1720_v39  ;;  %1657 = vst.msk [vmem:[#allocation2 + $0xa0] sm:$0xff] %vm16_vm1, %v1592_v28  ;;  %v1593_v46 = vadd.f32 %v1401_v35, %v102_v31  ;;  %v112_v28 = vld [vmem:[#allocation2 + $0xf8] sm:$0xff] }
 0x183   :  { %v1723_v10 = vld [vmem:[#allocation2 + $0x98] sm:$0xff]  ;;  %2043 = vst.msk [vmem:[%s3675_s2 + $0x48] sm:$0xf] %vm2024_vm2, %v2321_v56  ;;  %v1721_v47 = vld [vmem:[#allocation2 + $0x88] sm:$0xff] }
 0x184   :  { %v2322_v3 = vpack.c.bf16 %v1723_v10, %v1723_v10  ;;  %1660 = vst.msk [vmem:[#allocation2 + $0xb8] sm:$0xff] %vm16_vm1, %v1595_v42  ;;  %v2320_v60 = vpack.c.bf16 %v1721_v47, %v1721_v47  ;;  %1658 = vst.msk [vmem:[#allocation2 + $0xa8] sm:$0xff] %vm16_vm1, %v1593_v46  ;;  %v1140_v50 = vpop.f32.mrb[56].mxu0  ;;  %v2431_v51 = vpop.f32.mrb[56].mxu1 }
 0x185   :  { %2041 = vst.msk [vmem:[%s3675_s2 + $0x40] sm:$0xf] %vm2024_vm2, %v2319_v43  ;;  %v1422_v24 = vadd.f32 %v2431_v51, %v1132_v11  ;;  %v1142_v58 = vpop.f32.mrb[57].mxu0  ;;  %v1413_v12 = vpop.f32.mrb[57].mxu1  ;;  %v110_v43 = vld [vmem:[#allocation2 + $0xe8] sm:$0xff] }
 0x186   :  { %2044 = vst.msk [vmem:[%s3675_s2 + $0x4c] sm:$0xf] %vm2024_vm2, %v2322_v3  ;;  %2042 = vst.msk [vmem:[%s3675_s2 + $0x44] sm:$0xf] %vm2024_vm2, %v2320_v60  ;;  %v1414_v59 = vadd.f32 %v1413_v12, %v3361_v34  ;;  %v1143_v62 = vpop.f32.mrb[58].mxu0  ;;  %v2432_v63 = vpop.f32.mrb[58].mxu1 }
 0x187   :  { %v1598_v2 = vadd.f32 %v1422_v24, %v107_v32  ;;  %v1425_v54 = vadd.f32 %v2432_v63, %v1135_v26  ;;  %v1145_v16 = vpop.f32.mrb[59].mxu0  ;;  %v1416_v38 = vpop.f32.mrb[59].mxu1 }
 0x188   :  { %v1726_v8 = vld [vmem:[#allocation2 + $0xb0] sm:$0xff]  ;;  %v1596_v6 = vadd.f32 %v1414_v59, %v105_v52  ;;  %v1417_v11 = vadd.f32 %v1416_v38, %v3373_v20 }
 0x189   :  { %v2325_v14 = vpack.c.bf16 %v1726_v8, %v1726_v8  ;;  %v1724_v15 = vld [vmem:[#allocation2 + $0xa0] sm:$0xff]  ;;  %1663 = vst.msk [vmem:[#allocation2 + $0xd0] sm:$0xff] %vm16_vm1, %v1598_v2  ;;  %v1599_v44 = vadd.f32 %v1425_v54, %v108_v4 }
 0x18a   :  { %v2323_v18 = vpack.c.bf16 %v1724_v15, %v1724_v15  ;;  %1661 = vst.msk [vmem:[#allocation2 + $0xc0] sm:$0xff] %vm16_vm1, %v1596_v6  ;;  %v1597_v34 = vadd.f32 %v1417_v11, %v106_v7  ;;  %v113_v2 = vld [vmem:[#allocation2 + $0x100] sm:$0xff]  ;;  %v114_v6 = vld [vmem:[#allocation2 + $0x108] sm:$0xff] }
 0x18b   :  { %v1727_v19 = vld [vmem:[#allocation2 + $0xb8] sm:$0xff]  ;;  %2047 = vst.msk [vmem:[%s3675_s2 + $0x58] sm:$0xf] %vm2024_vm2, %v2325_v14  ;;  %v1725_v23 = vld [vmem:[#allocation2 + $0xa8] sm:$0xff] }
 0x18c   :  { %v2326_v22 = vpack.c.bf16 %v1727_v19, %v1727_v19  ;;  %1664 = vst.msk [vmem:[#allocation2 + $0xd8] sm:$0xff] %vm16_vm1, %v1599_v44  ;;  %v2324_v20 = vpack.c.bf16 %v1725_v23, %v1725_v23  ;;  %1662 = vst.msk [vmem:[#allocation2 + $0xc8] sm:$0xff] %vm16_vm1, %v1597_v34  ;;  %v1148_v26 = vpop.f32.mrb[60].mxu0  ;;  %v2435_v36 = vpop.f32.mrb[60].mxu1 }
 0x18d   :  { %2045 = vst.msk [vmem:[%s3675_s2 + $0x50] sm:$0xf] %vm2024_vm2, %v2323_v18  ;;  %v1438_v0 = vadd.f32 %v2435_v36, %v1148_v26  ;;  %v1150_v30 = vpop.f32.mrb[61].mxu0  ;;  %v1429_v31 = vpop.f32.mrb[61].mxu1  ;;  %v115_v36 = vld [vmem:[#allocation2 + $0x110] sm:$0xff] }
 0x18e   :  { %2048 = vst.msk [vmem:[%s3675_s2 + $0x5c] sm:$0xf] %vm2024_vm2, %v2326_v22  ;;  %2046 = vst.msk [vmem:[%s3675_s2 + $0x54] sm:$0xf] %vm2024_vm2, %v2324_v20  ;;  %v1430_v40 = vadd.f32 %v1429_v31, %v1140_v50  ;;  %v1151_v55 = vpop.f32.mrb[62].mxu0  ;;  %v2436_v35 = vpop.f32.mrb[62].mxu1 }
 0x18f   :  { %v1602_v56 = vadd.f32 %v1438_v0, %v111_v27  ;;  %v1441_v39 = vadd.f32 %v2436_v35, %v1151_v55  ;;  %v1153_v42 = vpop.f32.mrb[63].mxu0  ;;  %v1432_v10 = vpop.f32.mrb[63].mxu1  ;;  %v116_v55 = vld [vmem:[#allocation2 + $0x118] sm:$0xff] }
 0x190   :  { %v1730_v46 = vld [vmem:[#allocation2 + $0xd0] sm:$0xff]  ;;  %v1600_v3 = vadd.f32 %v1430_v40, %v109_v48  ;;  %v1433_v47 = vadd.f32 %v1432_v10, %v1143_v62 }
 0x191   :  { %v2329_v60 = vpack.c.bf16 %v1730_v46, %v1730_v46  ;;  %v1728_v32 = vld [vmem:[#allocation2 + $0xc0] sm:$0xff]  ;;  %1667 = vst.msk [vmem:[#allocation2 + $0xf0] sm:$0xff] %vm16_vm1, %v1602_v56  ;;  %v1603_v51 = vadd.f32 %v1441_v39, %v112_v28 }
 0x192   :  { %v2327_v24 = vpack.c.bf16 %v1728_v32, %v1728_v32  ;;  %1665 = vst.msk [vmem:[#allocation2 + $0xe0] sm:$0xff] %vm16_vm1, %v1600_v3  ;;  %v1601_v50 = vadd.f32 %v1433_v47, %v110_v43  ;;  %v117_v32 = vld [vmem:[#allocation2 + $0x120] sm:$0xff] }
 0x193   :  { %v1731_v58 = vld [vmem:[#allocation2 + $0xd8] sm:$0xff]  ;;  %2051 = vst.msk [vmem:[%s3675_s2 + $0x68] sm:$0xf] %vm2024_vm2, %v2329_v60  ;;  %v1729_v12 = vld [vmem:[#allocation2 + $0xc8] sm:$0xff] }
 0x194   :  { %v2330_v52 = vpack.c.bf16 %v1731_v58, %v1731_v58  ;;  %1668 = vst.msk [vmem:[#allocation2 + $0xf8] sm:$0xff] %vm16_vm1, %v1603_v51  ;;  %v2328_v59 = vpack.c.bf16 %v1729_v12, %v1729_v12  ;;  %1666 = vst.msk [vmem:[#allocation2 + $0xe8] sm:$0xff] %vm16_vm1, %v1601_v50  ;;  %v1156_v62 = vpop.f32.mrb[64].mxu0  ;;  %v2439_v4 = vpop.f32.mrb[64].mxu1  ;;  %v118_v12 = vld [vmem:[#allocation2 + $0x128] sm:$0xff] }
 0x195   :  { %2049 = vst.msk [vmem:[%s3675_s2 + $0x60] sm:$0xf] %vm2024_vm2, %v2327_v24  ;;  %v1158_v63 = vpop.f32.mrb[65].mxu0  ;;  %v1445_v54 = vpop.f32.mrb[65].mxu1 }
 0x196   :  { %2052 = vst.msk [vmem:[%s3675_s2 + $0x6c] sm:$0xf] %vm2024_vm2, %v2330_v52  ;;  %2050 = vst.msk [vmem:[%s3675_s2 + $0x64] sm:$0xf] %vm2024_vm2, %v2328_v59  ;;  %v1446_v16 = vadd.f32 %v1445_v54, %v1156_v62  ;;  %v1159_v7 = vpop.f32.mrb[66].mxu0  ;;  %v2440_v38 = vpop.f32.mrb[66].mxu1 }
 0x197   :  { %v1161_v8 = vpop.f32.mrb[67].mxu0  ;;  %v1448_v11 = vpop.f32.mrb[67].mxu1 }
 0x198   :  { %v1734_v14 = vld [vmem:[#allocation2 + $0xf0] sm:$0xff]  ;;  %v1604_v15 = vadd.f32 %v1446_v16, %v113_v2  ;;  %v1449_v44 = vadd.f32 %v1448_v11, %v1159_v7 }
 0x199   :  { %v2333_v18 = vpack.c.bf16 %v1734_v14, %v1734_v14  ;;  %v1732_v19 = vld [vmem:[#allocation2 + $0xe0] sm:$0xff]  ;;  %v119_v11 = vld [vmem:[#allocation2 + $0x130] sm:$0xff] }
 0x19a   :  { %v2331_v34 = vpack.c.bf16 %v1732_v19, %v1732_v19  ;;  %1669 = vst.msk [vmem:[#allocation2 + $0x100] sm:$0xff] %vm16_vm1, %v1604_v15  ;;  %v1605_v23 = vadd.f32 %v1449_v44, %v114_v6 }
 0x19b   :  { %v1735_v22 = vld [vmem:[#allocation2 + $0xf8] sm:$0xff]  ;;  %2055 = vst.msk [vmem:[%s3675_s2 + $0x78] sm:$0xf] %vm2024_vm2, %v2333_v18  ;;  %v1733_v26 = vld [vmem:[#allocation2 + $0xe8] sm:$0xff] }
 0x19c   :  { %v2334_v20 = vpack.c.bf16 %v1735_v22, %v1735_v22  ;;  %2053 = vst.msk [vmem:[%s3675_s2 + $0x70] sm:$0xf] %vm2024_vm2, %v2331_v34  ;;  %v2332_v27 = vpack.c.bf16 %v1733_v26, %v1733_v26  ;;  %v1164_v0 = vpop.f32.mrb[68].mxu0  ;;  %v2443_v30 = vpop.f32.mrb[68].mxu1  ;;  %v120_v34 = vld [vmem:[#allocation2 + $0x138] sm:$0xff] }
 0x19d   :  { %1670 = vst.msk [vmem:[#allocation2 + $0x108] sm:$0xff] %vm16_vm1, %v1605_v23  ;;  %v1454_v48 = vadd.f32 %v2439_v4, %v1164_v0  ;;  %v1166_v31 = vpop.f32.mrb[69].mxu0  ;;  %v1461_v40 = vpop.f32.mrb[69].mxu1 }
 0x19e   :  { %2056 = vst.msk [vmem:[%s3675_s2 + $0x7c] sm:$0xf] %vm2024_vm2, %v2334_v20  ;;  %2054 = vst.msk [vmem:[%s3675_s2 + $0x74] sm:$0xf] %vm2024_vm2, %v2332_v27  ;;  %v1167_v28 = vpop.f32.mrb[70].mxu0  ;;  %v2444_v35 = vpop.f32.mrb[70].mxu1 }
 0x19f   :  { %v1606_v56 = vadd.f32 %v1454_v48, %v115_v36  ;;  %v1457_v39 = vadd.f32 %v2440_v38, %v1167_v28  ;;  %v1169_v42 = vpop.f32.mrb[71].mxu0  ;;  %v1464_v43 = vpop.f32.mrb[71].mxu1 }
 0x1a1   :  { %v1736_v10 = vld [vmem:[#allocation2 + $0x100] sm:$0xff]  ;;  %1671 = vst.msk [vmem:[#allocation2 + $0x110] sm:$0xff] %vm16_vm1, %v1606_v56  ;;  %v1607_v46 = vadd.f32 %v1457_v39, %v116_v55 }
 0x1a2   :  { %v2335_v3 = vpack.c.bf16 %v1736_v10, %v1736_v10  ;;  %v121_v55 = vld [vmem:[#allocation2 + $0x140] sm:$0xff] }
 0x1a3   :  { %1672 = vst.msk [vmem:[#allocation2 + $0x118] sm:$0xff] %vm16_vm1, %v1607_v46  ;;  %v129_v10 = vld [vmem:[#allocation2 + $0x180] sm:$0xff] }
 0x1a4   :  { %v1737_v47 = vld [vmem:[#allocation2 + $0x108] sm:$0xff]  ;;  %2057 = vst.msk [vmem:[%s3675_s2 + $0x80] sm:$0xf] %vm2024_vm2, %v2335_v3  ;;  %v1172_v51 = vpop.f32.mrb[72].mxu0  ;;  %v3487_v24 = vpop.f32.mrb[72].mxu1 }
 0x1a5   :  { %v2336_v60 = vpack.c.bf16 %v1737_v47, %v1737_v47  ;;  %v1462_v58 = vadd.f32 %v1461_v40, %v1172_v51  ;;  %v1174_v50 = vpop.f32.mrb[73].mxu0  ;;  %v1477_v52 = vpop.f32.mrb[73].mxu1  ;;  %v122_v47 = vld [vmem:[#allocation2 + $0x148] sm:$0xff] }
 0x1a6   :  { %v1175_v59 = vpop.f32.mrb[74].mxu0  ;;  %v3493_v62 = vpop.f32.mrb[74].mxu1 }
 0x1a7   :  { %2058 = vst.msk [vmem:[%s3675_s2 + $0x84] sm:$0xf] %vm2024_vm2, %v2336_v60  ;;  %v1608_v4 = vadd.f32 %v1462_v58, %v117_v32  ;;  %v1465_v63 = vadd.f32 %v1464_v43, %v1175_v59  ;;  %v1177_v2 = vpop.f32.mrb[75].mxu0  ;;  %v1480_v54 = vpop.f32.mrb[75].mxu1  ;;  %v132_v32 = vld [vmem:[#allocation2 + $0x198] sm:$0xff] }
 0x1a8   :  { %v1738_v16 = vld [vmem:[#allocation2 + $0x110] sm:$0xff] }
 0x1a9   :  { %v2337_v7 = vpack.c.bf16 %v1738_v16, %v1738_v16  ;;  %1673 = vst.msk [vmem:[#allocation2 + $0x120] sm:$0xff] %vm16_vm1, %v1608_v4  ;;  %v1609_v38 = vadd.f32 %v1465_v63, %v118_v12  ;;  %v130_v63 = vld [vmem:[#allocation2 + $0x188] sm:$0xff] }
 0x1aa   :  { %v1739_v8 = vld [vmem:[#allocation2 + $0x118] sm:$0xff] }
 0x1ab   :  { %2059 = vst.msk [vmem:[%s3675_s2 + $0x88] sm:$0xf] %vm2024_vm2, %v2337_v7  ;;  %v2338_v6 = vpack.c.bf16 %v1739_v8, %v1739_v8 }
 0x1ac   :  { %1674 = vst.msk [vmem:[#allocation2 + $0x128] sm:$0xff] %vm16_vm1, %v1609_v38  ;;  %v1180_v14 = vpop.f32.mrb[76].mxu0  ;;  %v3501_v15 = vpop.f32.mrb[76].mxu1 }
 0x1ad   :  { %2060 = vst.msk [vmem:[%s3675_s2 + $0x8c] sm:$0xf] %vm2024_vm2, %v2338_v6  ;;  %v1470_v44 = vadd.f32 %v2443_v30, %v1180_v14  ;;  %v1182_v18 = vpop.f32.mrb[77].mxu0  ;;  %v3507_v19 = vpop.f32.mrb[77].mxu1 }
 0x1ae   :  { %v1183_v22 = vpop.f32.mrb[78].mxu0  ;;  %v3509_v23 = vpop.f32.mrb[78].mxu1 }
 0x1af   :  { %v1610_v20 = vadd.f32 %v1470_v44, %v119_v11  ;;  %v1473_v26 = vadd.f32 %v2444_v35, %v1183_v22  ;;  %v1185_v27 = vpop.f32.mrb[79].mxu0  ;;  %v3511_v36 = vpop.f32.mrb[79].mxu1  ;;  %v131_v35 = vld [vmem:[#allocation2 + $0x190] sm:$0xff]  ;;  %v133_v22 = vld [vmem:[#allocation2 + $0x1a0] sm:$0xff] }
 0x1b0   :  { %v1740_v0 = vld [vmem:[#allocation2 + $0x120] sm:$0xff]  ;;  %v135_v11 = vld [vmem:[#allocation2 + $0x1b0] sm:$0xff]  ;;  %v124_v27 = vld [vmem:[#allocation2 + $0x158] sm:$0xff] }
 0x1b1   :  { %v2339_v48 = vpack.c.bf16 %v1740_v0, %v1740_v0  ;;  %1675 = vst.msk [vmem:[#allocation2 + $0x130] sm:$0xff] %vm16_vm1, %v1610_v20  ;;  %v1611_v31 = vadd.f32 %v1473_v26, %v120_v34 }
 0x1b3   :  { %v1741_v40 = vld [vmem:[#allocation2 + $0x128] sm:$0xff]  ;;  %2061 = vst.msk [vmem:[%s3675_s2 + $0x90] sm:$0xf] %vm2024_vm2, %v2339_v48  ;;  %v136_v48 = vld [vmem:[#allocation2 + $0x1b8] sm:$0xff] }
 0x1b4   :  { %v2340_v30 = vpack.c.bf16 %v1741_v40, %v1741_v40  ;;  %1676 = vst.msk [vmem:[#allocation2 + $0x138] sm:$0xff] %vm16_vm1, %v1611_v31  ;;  %v1188_v28 = vpop.f32.mrb[80].mxu0  ;;  %v2455_v56 = vpop.f32.mrb[80].mxu1 }
 0x1b5   :  { %v1478_v39 = vadd.f32 %v1477_v52, %v1188_v28  ;;  %v1518_v42 = vadd.f32 %v2455_v56, %v3220_v61  ;;  %v1190_v43 = vpop.f32.mrb[81].mxu0  ;;  %v1509_v46 = vpop.f32.mrb[81].mxu1  ;;  %v134_v56 = vld [vmem:[#allocation2 + $0x1a8] sm:$0xff] }
 0x1b6   :  { %2062 = vst.msk [vmem:[%s3675_s2 + $0x94] sm:$0xf] %vm2024_vm2, %v2340_v30  ;;  %v1510_v3 = vadd.f32 %v1509_v46, %v3214_v53  ;;  %v1191_v60 = vpop.f32.mrb[82].mxu0  ;;  %v2456_v51 = vpop.f32.mrb[82].mxu1 }
 0x1b7   :  { %v1612_v58 = vadd.f32 %v1478_v39, %v121_v55  ;;  %v1622_v50 = vadd.f32 %v1518_v42, %v131_v35  ;;  %v1481_v12 = vadd.f32 %v1480_v54, %v1191_v60  ;;  %v1521_v59 = vadd.f32 %v2456_v51, %v3224_v1  ;;  %v1193_v4 = vpop.f32.mrb[83].mxu0  ;;  %v1512_v2 = vpop.f32.mrb[83].mxu1 }
 0x1b8   :  { %v1742_v52 = vld [vmem:[#allocation2 + $0x130] sm:$0xff]  ;;  %v1620_v16 = vadd.f32 %v1510_v3, %v129_v10  ;;  %v1513_v61 = vadd.f32 %v1512_v2, %v3218_v57 }
 0x1b9   :  { %v2341_v7 = vpack.c.bf16 %v1742_v52, %v1742_v52  ;;  %1677 = vst.msk [vmem:[#allocation2 + $0x140] sm:$0xff] %vm16_vm1, %v1612_v58  ;;  %1687 = vst.msk [vmem:[#allocation2 + $0x190] sm:$0xff] %vm16_vm1, %v1622_v50  ;;  %v1613_v53 = vadd.f32 %v1481_v12, %v122_v47  ;;  %v1623_v38 = vadd.f32 %v1521_v59, %v132_v32  ;;  %v123_v57 = vld [vmem:[#allocation2 + $0x150] sm:$0xff]  ;;  %v125_v12 = vld [vmem:[#allocation2 + $0x160] sm:$0xff] }
 0x1ba   :  { %1685 = vst.msk [vmem:[#allocation2 + $0x180] sm:$0xff] %vm16_vm1, %v1620_v16  ;;  %v1621_v54 = vadd.f32 %v1513_v61, %v130_v63  ;;  %v139_v4 = vld [vmem:[#allocation2 + $0x1d0] sm:$0xff]  ;;  %v137_v61 = vld [vmem:[#allocation2 + $0x1c0] sm:$0xff] }
 0x1bb   :  { %v1743_v8 = vld [vmem:[#allocation2 + $0x138] sm:$0xff]  ;;  %2063 = vst.msk [vmem:[%s3675_s2 + $0x98] sm:$0xf] %vm2024_vm2, %v2341_v7 }
 0x1bc   :  { %v2342_v1 = vpack.c.bf16 %v1743_v8, %v1743_v8  ;;  %1678 = vst.msk [vmem:[#allocation2 + $0x148] sm:$0xff] %vm16_vm1, %v1613_v53  ;;  %1688 = vst.msk [vmem:[#allocation2 + $0x198] sm:$0xff] %vm16_vm1, %v1623_v38  ;;  %v1196_v6 = vpop.f32.mrb[84].mxu0  ;;  %v2459_v14 = vpop.f32.mrb[84].mxu1  ;;  %v126_v38 = vld [vmem:[#allocation2 + $0x168] sm:$0xff] }
 0x1bd   :  { %1686 = vst.msk [vmem:[#allocation2 + $0x188] sm:$0xff] %vm16_vm1, %v1621_v54  ;;  %v1486_v44 = vadd.f32 %v3487_v24, %v1196_v6  ;;  %v1534_v18 = vadd.f32 %v2459_v14, %v3236_v13  ;;  %v1198_v34 = vpop.f32.mrb[85].mxu0  ;;  %v1525_v20 = vpop.f32.mrb[85].mxu1  ;;  %v140_v54 = vld [vmem:[#allocation2 + $0x1d8] sm:$0xff]  ;;  %v138_v14 = vld [vmem:[#allocation2 + $0x1c8] sm:$0xff] }
 0x1be   :  { %2064 = vst.msk [vmem:[%s3675_s2 + $0x9c] sm:$0xf] %vm2024_vm2, %v2342_v1  ;;  %v1526_v26 = vadd.f32 %v1525_v20, %v3228_v5  ;;  %v1199_v0 = vpop.f32.mrb[86].mxu0  ;;  %v2460_v31 = vpop.f32.mrb[86].mxu1 }
 0x1bf   :  { %v1614_v40 = vadd.f32 %v1486_v44, %v123_v57  ;;  %v1626_v30 = vadd.f32 %v1534_v18, %v135_v11  ;;  %v1489_v55 = vadd.f32 %v3493_v62, %v1199_v0  ;;  %v1537_v28 = vadd.f32 %v2460_v31, %v3240_v17  ;;  %v1201_v35 = vpop.f32.mrb[87].mxu0  ;;  %v1528_v24 = vpop.f32.mrb[87].mxu1 }
 0x1c0   :  { %v1744_v39 = vld [vmem:[#allocation2 + $0x140] sm:$0xff]  ;;  %v1754_v13 = vld [vmem:[#allocation2 + $0x190] sm:$0xff]  ;;  %v1624_v42 = vadd.f32 %v1526_v26, %v133_v22  ;;  %v1529_v43 = vadd.f32 %v1528_v24, %v3232_v9 }
 0x1c1   :  { %v2343_v10 = vpack.c.bf16 %v1744_v39, %v1744_v39  ;;  %v2353_v5 = vpack.c.bf16 %v1754_v13, %v1754_v13  ;;  %v1752_v46 = vld [vmem:[#allocation2 + $0x180] sm:$0xff]  ;;  %1679 = vst.msk [vmem:[#allocation2 + $0x150] sm:$0xff] %vm16_vm1, %v1614_v40  ;;  %1691 = vst.msk [vmem:[#allocation2 + $0x1b0] sm:$0xff] %vm16_vm1, %v1626_v30  ;;  %v1615_v3 = vadd.f32 %v1489_v55, %v124_v27  ;;  %v127_v35 = vld [vmem:[#allocation2 + $0x170] sm:$0xff] }
 0x1c2   :  { %v1627_v47 = vadd.f32 %v1537_v28, %v136_v48  ;;  %v2351_v62 = vpack.c.bf16 %v1752_v46, %v1752_v46  ;;  %1689 = vst.msk [vmem:[#allocation2 + $0x1a0] sm:$0xff] %vm16_vm1, %v1624_v42  ;;  %v1625_v32 = vadd.f32 %v1529_v43, %v134_v56  ;;  %v143_v24 = vld [vmem:[#allocation2 + $0x1f0] sm:$0xff] }
 0x1c3   :  { %v1745_v60 = vld [vmem:[#allocation2 + $0x148] sm:$0xff]  ;;  %v1755_v17 = vld [vmem:[#allocation2 + $0x198] sm:$0xff]  ;;  %2065 = vst.msk [vmem:[%s3675_s2 + $0xa0] sm:$0xf] %vm2024_vm2, %v2343_v10  ;;  %2075 = vst.msk [vmem:[%s3675_s2 + $0xc8] sm:$0xf] %vm2024_vm2, %v2353_v5 }
 0x1c4   :  { %v2344_v9 = vpack.c.bf16 %v1745_v60, %v1745_v60  ;;  %v2354_v51 = vpack.c.bf16 %v1755_v17, %v1755_v17  ;;  %v1753_v58 = vld [vmem:[#allocation2 + $0x188] sm:$0xff]  ;;  %1680 = vst.msk [vmem:[#allocation2 + $0x158] sm:$0xff] %vm16_vm1, %v1615_v3  ;;  %1692 = vst.msk [vmem:[#allocation2 + $0x1b8] sm:$0xff] %vm16_vm1, %v1627_v47  ;;  %v1204_v59 = vpop.f32.mrb[88].mxu0  ;;  %v2463_v63 = vpop.f32.mrb[88].mxu1  ;;  %v141_v10 = vld [vmem:[#allocation2 + $0x1e0] sm:$0xff] }
 0x1c5   :  { %2073 = vst.msk [vmem:[%s3675_s2 + $0xc0] sm:$0xf] %vm2024_vm2, %v2351_v62  ;;  %v2352_v50 = vpack.c.bf16 %v1753_v58, %v1753_v58  ;;  %v1494_v2 = vadd.f32 %v3507_v19, %v1204_v59  ;;  %v1550_v52 = vadd.f32 %v2463_v63, %v3252_v29  ;;  %v1206_v16 = vpop.f32.mrb[89].mxu0  ;;  %v1541_v7 = vpop.f32.mrb[89].mxu1  ;;  %v128_v3 = vld [vmem:[#allocation2 + $0x178] sm:$0xff] }
 0x1c6   :  { %1690 = vst.msk [vmem:[#allocation2 + $0x1a8] sm:$0xff] %vm16_vm1, %v1625_v32  ;;  %v1542_v53 = vadd.f32 %v1541_v7, %v3244_v21  ;;  %v1207_v8 = vpop.f32.mrb[90].mxu0  ;;  %v2464_v1 = vpop.f32.mrb[90].mxu1  ;;  %v144_v62 = vld [vmem:[#allocation2 + $0x1f8] sm:$0xff] }
 0x1c7   :  { %2066 = vst.msk [vmem:[%s3675_s2 + $0xa4] sm:$0xf] %vm2024_vm2, %v2344_v9  ;;  %2076 = vst.msk [vmem:[%s3675_s2 + $0xcc] sm:$0xf] %vm2024_vm2, %v2354_v51  ;;  %v1616_v57 = vadd.f32 %v1494_v2, %v125_v12  ;;  %v1630_v6 = vadd.f32 %v1550_v52, %v139_v4  ;;  %v1497_v19 = vadd.f32 %v3511_v36, %v1207_v8  ;;  %v1209_v11 = vpop.f32.mrb[91].mxu0  ;;  %v1544_v44 = vpop.f32.mrb[91].mxu1 }
 0x1c8   :  { %2074 = vst.msk [vmem:[%s3675_s2 + $0xc4] sm:$0xf] %vm2024_vm2, %v2352_v50  ;;  %v1553_v29 = vadd.f32 %v2464_v1, %v3256_v33  ;;  %v1746_v18 = vld [vmem:[#allocation2 + $0x150] sm:$0xff]  ;;  %v1628_v22 = vadd.f32 %v1542_v53, %v137_v61  ;;  %v1545_v20 = vadd.f32 %v1544_v44, %v3248_v25  ;;  %v142_v51 = vld [vmem:[#allocation2 + $0x1e8] sm:$0xff] }
 0x1c9   :  { %v1758_v34 = vld [vmem:[#allocation2 + $0x1b0] sm:$0xff]  ;;  %v2345_v26 = vpack.c.bf16 %v1746_v18, %v1746_v18  ;;  %v1756_v27 = vld [vmem:[#allocation2 + $0x1a0] sm:$0xff]  ;;  %1681 = vst.msk [vmem:[#allocation2 + $0x160] sm:$0xff] %vm16_vm1, %v1616_v57  ;;  %1695 = vst.msk [vmem:[#allocation2 + $0x1d0] sm:$0xff] %vm16_vm1, %v1630_v6  ;;  %v1617_v0 = vadd.f32 %v1497_v19, %v126_v38 }
 0x1ca   :  { %v2357_v21 = vpack.c.bf16 %v1758_v34, %v1758_v34  ;;  %v1631_v48 = vadd.f32 %v1553_v29, %v140_v54  ;;  %v2355_v36 = vpack.c.bf16 %v1756_v27, %v1756_v27  ;;  %1693 = vst.msk [vmem:[#allocation2 + $0x1c0] sm:$0xff] %vm16_vm1, %v1628_v22  ;;  %v1629_v40 = vadd.f32 %v1545_v20, %v138_v14 }
 0x1cb   :  { %v1747_v31 = vld [vmem:[#allocation2 + $0x158] sm:$0xff]  ;;  %2067 = vst.msk [vmem:[%s3675_s2 + $0xa8] sm:$0xf] %vm2024_vm2, %v2345_v26 }
 0x1cc   :  { %v1759_v33 = vld [vmem:[#allocation2 + $0x1b8] sm:$0xff]  ;;  %2079 = vst.msk [vmem:[%s3675_s2 + $0xd8] sm:$0xf] %vm2024_vm2, %v2357_v21  ;;  %v2346_v25 = vpack.c.bf16 %v1747_v31, %v1747_v31  ;;  %2077 = vst.msk [vmem:[%s3675_s2 + $0xd0] sm:$0xf] %vm2024_vm2, %v2355_v36  ;;  %v1212_v56 = vpop.f32.mrb[92].mxu0 }
 0x1cd   :  { %v2358_v30 = vpack.c.bf16 %v1759_v33, %v1759_v33  ;;  %v1757_v55 = vld [vmem:[#allocation2 + $0x1a8] sm:$0xff]  ;;  %1682 = vst.msk [vmem:[#allocation2 + $0x168] sm:$0xff] %vm16_vm1, %v1617_v0  ;;  %1696 = vst.msk [vmem:[#allocation2 + $0x1d8] sm:$0xff] %vm16_vm1, %v1631_v48  ;;  %v2467_v39 = vpop.f32.mrb[92].mxu1  ;;  %v1502_v13 = vadd.f32 %v3501_v15, %v1212_v56  ;;  %v1214_v43 = vpop.f32.mrb[93].mxu0 }
 0x1ce   :  { %v2356_v28 = vpack.c.bf16 %v1757_v55, %v1757_v55  ;;  %1694 = vst.msk [vmem:[#allocation2 + $0x1c8] sm:$0xff] %vm16_vm1, %v1629_v40  ;;  %v1566_v42 = vadd.f32 %v2467_v39, %v3268_v45  ;;  %v1557_v5 = vpop.f32.mrb[93].mxu1  ;;  %v1215_v47 = vpop.f32.mrb[94].mxu0 }
 0x1cf   :  { %2068 = vst.msk [vmem:[%s3675_s2 + $0xac] sm:$0xf] %vm2024_vm2, %v2346_v25  ;;  %2080 = vst.msk [vmem:[%s3675_s2 + $0xdc] sm:$0xf] %vm2024_vm2, %v2358_v30  ;;  %v1558_v46 = vadd.f32 %v1557_v5, %v3260_v37  ;;  %v2468_v60 = vpop.f32.mrb[94].mxu1  ;;  %v1618_v17 = vadd.f32 %v1502_v13, %v127_v35  ;;  %v1505_v15 = vadd.f32 %v3509_v23, %v1215_v47  ;;  %v1217_v9 = vpop.f32.mrb[95].mxu0 }
 0x1d0   :  { %2078 = vst.msk [vmem:[%s3675_s2 + $0xd4] sm:$0xf] %vm2024_vm2, %v2356_v28  ;;  %v1634_v32 = vadd.f32 %v1566_v42, %v143_v24  ;;  %v1569_v45 = vadd.f32 %v2468_v60, %v3272_v49  ;;  %v1560_v58 = vpop.f32.mrb[95].mxu1  ;;  %v1748_v50 = vld [vmem:[#allocation2 + $0x160] sm:$0xff]  ;;  %v1762_v12 = vld [vmem:[#allocation2 + $0x1d0] sm:$0xff] }
 0x1d1   :  { %v1632_v59 = vadd.f32 %v1558_v46, %v141_v10  ;;  %v1561_v4 = vadd.f32 %v1560_v58, %v3264_v41  ;;  %v2347_v63 = vpack.c.bf16 %v1748_v50, %v1748_v50  ;;  %v2361_v37 = vpack.c.bf16 %v1762_v12, %v1762_v12  ;;  %v1760_v2 = vld [vmem:[#allocation2 + $0x1c0] sm:$0xff]  ;;  %1683 = vst.msk [vmem:[#allocation2 + $0x170] sm:$0xff] %vm16_vm1, %v1618_v17 }
 0x1d2   :  { %1699 = vst.msk [vmem:[#allocation2 + $0x1f0] sm:$0xff] %vm16_vm1, %v1634_v32  ;;  %v1619_v52 = vadd.f32 %v1505_v15, %v128_v3  ;;  %v1635_v16 = vadd.f32 %v1569_v45, %v144_v62  ;;  %v2359_v23 = vpack.c.bf16 %v1760_v2, %v1760_v2 }
 0x1d3   :  { %1697 = vst.msk [vmem:[#allocation2 + $0x1e0] sm:$0xff] %vm16_vm1, %v1632_v59  ;;  %v1633_v7 = vadd.f32 %v1561_v4, %v142_v51 }
 0x1d4   :  { %v1749_v61 = vld [vmem:[#allocation2 + $0x168] sm:$0xff]  ;;  %v1763_v49 = vld [vmem:[#allocation2 + $0x1d8] sm:$0xff]  ;;  %2069 = vst.msk [vmem:[%s3675_s2 + $0xb0] sm:$0xf] %vm2024_vm2, %v2347_v63  ;;  %2083 = vst.msk [vmem:[%s3675_s2 + $0xe8] sm:$0xf] %vm2024_vm2, %v2361_v37 }
 0x1d5   :  { %v2348_v41 = vpack.c.bf16 %v1749_v61, %v1749_v61  ;;  %v2362_v53 = vpack.c.bf16 %v1763_v49, %v1763_v49  ;;  %v1761_v38 = vld [vmem:[#allocation2 + $0x1c8] sm:$0xff]  ;;  %1684 = vst.msk [vmem:[#allocation2 + $0x178] sm:$0xff] %vm16_vm1, %v1619_v52  ;;  %1700 = vst.msk [vmem:[#allocation2 + $0x1f8] sm:$0xff] %vm16_vm1, %v1635_v16 }
 0x1d6   :  { %2081 = vst.msk [vmem:[%s3675_s2 + $0xe0] sm:$0xf] %vm2024_vm2, %v2359_v23  ;;  %v2360_v8 = vpack.c.bf16 %v1761_v38, %v1761_v38 }
 0x1d7   :  { %1698 = vst.msk [vmem:[#allocation2 + $0x1e8] sm:$0xff] %vm16_vm1, %v1633_v7 }
 0x1d8   :  { %2070 = vst.msk [vmem:[%s3675_s2 + $0xb4] sm:$0xf] %vm2024_vm2, %v2348_v41  ;;  %2084 = vst.msk [vmem:[%s3675_s2 + $0xec] sm:$0xf] %vm2024_vm2, %v2362_v53  ;;  %v1750_v54 = vld [vmem:[#allocation2 + $0x170] sm:$0xff] }
 0x1d9   :  { %2082 = vst.msk [vmem:[%s3675_s2 + $0xe4] sm:$0xf] %vm2024_vm2, %v2360_v8  ;;  %v1766_v1 = vld [vmem:[#allocation2 + $0x1f0] sm:$0xff]  ;;  %v2349_v57 = vpack.c.bf16 %v1750_v54, %v1750_v54 }
 0x1da   :  { %v2365_v6 = vpack.c.bf16 %v1766_v1, %v1766_v1  ;;  %v1764_v19 = vld [vmem:[#allocation2 + $0x1e0] sm:$0xff] }
 0x1db   :  { %v2363_v29 = vpack.c.bf16 %v1764_v19, %v1764_v19  ;;  %2071 = vst.msk [vmem:[%s3675_s2 + $0xb8] sm:$0xf] %vm2024_vm2, %v2349_v57 }
 0x1dc   :  { %v1751_v11 = vld [vmem:[#allocation2 + $0x178] sm:$0xff]  ;;  %2087 = vst.msk [vmem:[%s3675_s2 + $0xf8] sm:$0xf] %vm2024_vm2, %v2365_v6 }
 0x1dd   :  { %v1767_v14 = vld [vmem:[#allocation2 + $0x1f8] sm:$0xff]  ;;  %v2350_v44 = vpack.c.bf16 %v1751_v11, %v1751_v11  ;;  %2085 = vst.msk [vmem:[%s3675_s2 + $0xf0] sm:$0xf] %vm2024_vm2, %v2363_v29 }
 0x1de   :  { %v2366_v18 = vpack.c.bf16 %v1767_v14, %v1767_v14  ;;  %v1765_v34 = vld [vmem:[#allocation2 + $0x1e8] sm:$0xff] }
 0x1df   :  { %v2364_v22 = vpack.c.bf16 %v1765_v34, %v1765_v34  ;;  %2072 = vst.msk [vmem:[%s3675_s2 + $0xbc] sm:$0xf] %vm2024_vm2, %v2350_v44 }
 0x1e0   :  { %2088 = vst.msk [vmem:[%s3675_s2 + $0xfc] sm:$0xf] %vm2024_vm2, %v2366_v18 }
 0x1e1   :  { %2086 = vst.msk [vmem:[%s3675_s2 + $0xf4] sm:$0xf] %vm2024_vm2, %v2364_v22 }

// kernel: cond_cnn_generator_forward.20
= control target key start
LH: loop header
LB: loop body
LE: loop exit
PB: predicated region body
PF: predicated region fallthrough
CT: control target
= control target key end

     0   :  { %s846_s9 = smov 0   ;;  %s1357_s0 = inlined_call_operand.vmem [shape: bf16[2048,32], index: 0, kind: input, shape index: {}]   ;;  %s1358_s1 = inlined_call_operand.vmem [shape: f32[1,32], index: 1, kind: output, shape index: {0}]   ;;  %s1359_s2 = inlined_call_operand.vmem [shape: f32[1,32], index: 2, kind: output, shape index: {1}]  }
   0x1 LB: > { %s852_s10 = sadd.s32 4294967295, %s828_s9   ;;  %p647_p0 = scmp.ge.s32.totalorder %s828_s9, 1  ;;  %s828_s9 = sphi %s846_s9, %s13_s9  }
   0x2   : > { %p106_p1 = scmp.lt.s32.totalorder %s828_s9, 5 }
   0x4   : > { %p107_p2 = pnand %p647_p0, %p106_p1 }
   0x5   : > { %s648_s11 = sshll.u32 (!%p107_p2), %s852_s10, 6  ;;  %p650_p4 = scmp.ne.s32.totalorder (!%p107_p2), %s852_s10, 0 }
   0x6   : > { %110 = sbr.rel (%p107_p2) target bundleno = 197 (0xc5), region = 24  ;;  %p124_p3 = scmp.lt.s32.totalorder (!%p107_p2), %s648_s11, 255 }
   0xd   : > { %s1361_s11 = smov (!%p124_p3, %s648_s11), 255  ;;  %132 = sbr.rel (%p650_p4) target bundleno = 20 (0x14), region = 28 }
   0xe   : > { %s649_s12 = sshll.u32 %s1361_s11, 2  ;;  %vm133_vm0 = vcmask (!%p650_p4), 253952   ;;  %v830_v0 = vmov (!%p650_p4), 0.0  }
   0xf   : > { %s860_s15 = scalar_lea.vmem %s1357_s0, %s649_s12  ;;  %134 = vst.msk [vmem:[#allocation2] sm:$0x1] (!%p650_p4), %vm133_vm0, %v830_v0  ;;  %135 = vst.msk [vmem:[#allocation3] sm:$0x1] (!%p650_p4), %vm133_vm0, %v830_v0 }
  0x14 PF: > { %v655_v1 = vld [vmem:[%s860_s15] sm:$0xff]   ;;  %v782_v2 = vld [vmem:[%s860_s15 + $0x8] sm:$0xff]   ;;  %vm265_vm1 = vcmask 261120   ;;  %v783_v6 = vld [vmem:[%s860_s15 + $0x10] sm:$0xff]   ;;  %vm400_vm2 = vcmask 253952   ;;  %p651_p5 = scmp.ne.s32.totalorder %s852_s10, 3 }
  0x15   : > { %v865_v3 = vunpack.c.l.bf16 %v655_v1  ;;  %v867_v4 = vunpack.c.h.bf16 %v655_v1  ;;  %v869_v5 = vunpack.c.l.bf16 %v782_v2  ;;  %v872_v7 = vunpack.c.h.bf16 %v782_v2  ;;  %v784_v14 = vld [vmem:[%s860_s15 + $0x18] sm:$0xff]   ;;  %v785_v21 = vld [vmem:[%s860_s15 + $0x20] sm:$0xff]   ;;  %v786_v28 = vld [vmem:[%s860_s15 + $0x28] sm:$0xff]  }
  0x16   : > { %v880_v12 = vunpack.c.l.bf16 %v783_v6  ;;  %v885_v16 = vunpack.c.h.bf16 %v783_v6  ;;  %v889_v19 = vunpack.c.l.bf16 %v784_v14  ;;  %v894_v23 = vunpack.c.h.bf16 %v784_v14  ;;  %v787_v35 = vld [vmem:[%s860_s15 + $0x30] sm:$0xff]   ;;  %v788_v42 = vld [vmem:[%s860_s15 + $0x38] sm:$0xff]   ;;  %v789_v49 = vld [vmem:[%s860_s15 + $0x40] sm:$0xff]  }
  0x17   : > { %v266_v8 = vsel %vm265_vm1, %v865_v3, 0.0  ;;  %v267_v9 = vsel %vm265_vm1, %v867_v4, 0.0  ;;  %v269_v10 = vsel %vm265_vm1, %v869_v5, 0.0  ;;  %v271_v13 = vsel %vm265_vm1, %v872_v7, 0.0  ;;  %v790_v56 = vld [vmem:[%s860_s15 + $0x48] sm:$0xff]   ;;  %v791_v63 = vld [vmem:[%s860_s15 + $0x50] sm:$0xff]  }
  0x18   : > { %v268_v11 = vadd.f32 %v267_v9, %v266_v8  ;;  %v273_v17 = vsel %vm265_vm1, %v880_v12, 0.0  ;;  %v275_v20 = vsel %vm265_vm1, %v885_v16, 0.0  ;;  %v277_v24 = vsel %vm265_vm1, %v889_v19, 0.0  ;;  %v792_v14 = vld [vmem:[%s860_s15 + $0x58] sm:$0xff]  }
  0x19   : > { %v898_v26 = vunpack.c.l.bf16 %v785_v21  ;;  %v279_v27 = vsel %vm265_vm1, %v894_v23, 0.0  ;;  %v903_v30 = vunpack.c.h.bf16 %v785_v21  ;;  %v907_v33 = vunpack.c.l.bf16 %v786_v28 }
  0x1a   : > { %v270_v15 = vadd.f32 %v269_v10, %v268_v11  ;;  %v912_v37 = vunpack.c.h.bf16 %v786_v28  ;;  %v916_v40 = vunpack.c.l.bf16 %v787_v35  ;;  %v921_v44 = vunpack.c.h.bf16 %v787_v35 }
  0x1b   : > { %v281_v31 = vsel %vm265_vm1, %v898_v26, 0.0  ;;  %v283_v34 = vsel %vm265_vm1, %v903_v30, 0.0  ;;  %v285_v38 = vsel %vm265_vm1, %v907_v33, 0.0  ;;  %v925_v47 = vunpack.c.l.bf16 %v788_v42 }
  0x1c   : > { %v272_v18 = vadd.f32 %v271_v13, %v270_v15  ;;  %v287_v41 = vsel %vm265_vm1, %v912_v37, 0.0  ;;  %v289_v45 = vsel %vm265_vm1, %v916_v40, 0.0  ;;  %v291_v48 = vsel %vm265_vm1, %v921_v44, 0.0 }
  0x1d   : > { %v930_v51 = vunpack.c.h.bf16 %v788_v42  ;;  %v293_v52 = vsel %vm265_vm1, %v925_v47, 0.0  ;;  %v934_v54 = vunpack.c.l.bf16 %v789_v49  ;;  %v939_v58 = vunpack.c.h.bf16 %v789_v49  ;;  %v794_v42 = vld [vmem:[%s860_s15 + $0x68] sm:$0xff]  }
  0x1e   : > { %v274_v22 = vadd.f32 %v273_v17, %v272_v18  ;;  %v943_v61 = vunpack.c.l.bf16 %v790_v56  ;;  %v948_v1 = vunpack.c.h.bf16 %v790_v56  ;;  %v403_v6 = vmul.f32 %v865_v3, %v865_v3 }
  0x1f   : > { %v295_v55 = vsel %vm265_vm1, %v930_v51, 0.0  ;;  %v297_v59 = vsel %vm265_vm1, %v934_v54, 0.0  ;;  %v299_v62 = vsel %vm265_vm1, %v939_v58, 0.0  ;;  %v404_v9 = vmul.f32 %v867_v4, %v867_v4 }
  0x20   : > { %v276_v25 = vadd.f32 %v275_v20, %v274_v22  ;;  %v301_v2 = vsel %vm265_vm1, %v943_v61, 0.0  ;;  %v405_v10 = vmul.f32 %v869_v5, %v869_v5  ;;  %v958_v11 = vunpack.c.l.bf16 %v791_v63 }
  0x21   : > { %v303_v13 = vsel %vm265_vm1, %v948_v1, 0.0  ;;  %v406_v17 = vmul.f32 %v872_v7, %v872_v7  ;;  %v965_v18 = vunpack.c.h.bf16 %v791_v63  ;;  %v467_v4 = vsel %vm265_vm1, %v403_v6, 0.0 }
  0x22   : > { %v278_v29 = vadd.f32 %v277_v24, %v276_v25  ;;  %v305_v3 = vsel %vm265_vm1, %v958_v11, 0.0  ;;  %v407_v5 = vmul.f32 %v880_v12, %v880_v12  ;;  %v468_v21 = vsel %vm265_vm1, %v404_v9, 0.0 }
  0x23   : > { %v470_v22 = vsel %vm265_vm1, %v405_v10, 0.0  ;;  %v974_v24 = vunpack.c.l.bf16 %v792_v14  ;;  %v307_v7 = vsel %vm265_vm1, %v965_v18, 0.0  ;;  %v469_v25 = vadd.f32 %v468_v21, %v467_v4 }
  0x24   : > { %v280_v32 = vadd.f32 %v279_v27, %v278_v29  ;;  %v793_v27 = vld [vmem:[%s860_s15 + $0x60] sm:$0xff]   ;;  %v408_v29 = vmul.f32 %v885_v16, %v885_v16  ;;  %v1012_v63 = vunpack.c.h.bf16 %v794_v42  ;;  %v413_v6 = vmul.f32 %v907_v33, %v907_v33 }
  0x25   : > { %v309_v12 = vsel %vm265_vm1, %v974_v24, 0.0 }
  0x26   : > { %v282_v36 = vadd.f32 %v281_v31, %v280_v32  ;;  %v472_v31 = vsel %vm265_vm1, %v406_v17, 0.0  ;;  %v982_v32 = vunpack.c.h.bf16 %v792_v14  ;;  %v486_v21 = vsel %vm265_vm1, %v413_v6, 0.0 }
  0x28   : > { %v284_v39 = vadd.f32 %v283_v34, %v282_v36  ;;  %v471_v34 = vadd.f32 %v470_v22, %v469_v25  ;;  %v409_v36 = vmul.f32 %v889_v19, %v889_v19  ;;  %v311_v16 = vsel %vm265_vm1, %v982_v32, 0.0  ;;  %v797_v25 = vld [vmem:[%s860_s15 + $0x80] sm:$0xff]  }
  0x2a   : > { %v286_v43 = vadd.f32 %v285_v38, %v284_v39  ;;  %v474_v38 = vsel %vm265_vm1, %v407_v5, 0.0  ;;  %v989_v39 = vunpack.c.l.bf16 %v793_v27  ;;  %v415_v5 = vmul.f32 %v916_v40, %v916_v40 }
  0x2c   : > { %v288_v46 = vadd.f32 %v287_v41, %v286_v43  ;;  %v473_v41 = vadd.f32 %v472_v31, %v471_v34  ;;  %v313_v19 = vsel %vm265_vm1, %v989_v39, 0.0 }
  0x2e   : > { %v290_v50 = vadd.f32 %v289_v45, %v288_v46  ;;  %v410_v45 = vmul.f32 %v894_v23, %v894_v23  ;;  %v476_v46 = vsel %vm265_vm1, %v408_v29, 0.0  ;;  %v475_v49 = vadd.f32 %v474_v38, %v473_v41  ;;  %v798_v41 = vld [vmem:[%s860_s15 + $0x88] sm:$0xff]  }
  0x2f   : > { %v1049_v38 = vunpack.c.l.bf16 %v797_v25 }
  0x30   : > { %v292_v53 = vadd.f32 %v291_v48, %v290_v50  ;;  %v997_v48 = vunpack.c.h.bf16 %v793_v27  ;;  %v477_v56 = vadd.f32 %v476_v46, %v475_v49  ;;  %v1057_v46 = vunpack.c.h.bf16 %v797_v25 }
  0x32   : > { %v294_v57 = vadd.f32 %v293_v52, %v292_v53  ;;  %v411_v52 = vmul.f32 %v898_v26, %v898_v26  ;;  %v478_v53 = vsel %vm265_vm1, %v409_v36, 0.0  ;;  %v315_v23 = vsel %vm265_vm1, %v997_v48, 0.0 }
  0x33   : > { %v490_v36 = vsel %vm265_vm1, %v415_v5, 0.0 }
  0x34   : > { %v296_v60 = vadd.f32 %v295_v55, %v294_v57  ;;  %v1004_v55 = vunpack.c.l.bf16 %v794_v42  ;;  %v795_v57 = vld [vmem:[%s860_s15 + $0x70] sm:$0xff]  }
  0x35   : > { %v1019_v9 = vunpack.c.l.bf16 %v795_v57 }
  0x36   : > { %v298_v0 = vadd.f32 %v297_v59, %v296_v60  ;;  %v412_v60 = vmul.f32 %v903_v30, %v903_v30  ;;  %v317_v26 = vsel %vm265_vm1, %v1004_v55, 0.0  ;;  %v319_v30 = vsel %vm265_vm1, %v1012_v63, 0.0 }
  0x37   : > { %v321_v33 = vsel %vm265_vm1, %v1019_v9, 0.0 }
  0x38   : > { %v300_v8 = vadd.f32 %v299_v62, %v298_v0  ;;  %v480_v62 = vsel %vm265_vm1, %v410_v45, 0.0  ;;  %v479_v0 = vadd.f32 %v478_v53, %v477_v56  ;;  %v484_v17 = vsel %vm265_vm1, %v412_v60, 0.0  ;;  %v799_v56 = vld [vmem:[%s860_s15 + $0x90] sm:$0xff]  }
  0x39   : > { %v1064_v53 = vunpack.c.l.bf16 %v798_v41 }
  0x3a   : > { %v302_v15 = vadd.f32 %v301_v2, %v300_v8  ;;  %v482_v8 = vsel %vm265_vm1, %v411_v52, 0.0  ;;  %v481_v10 = vadd.f32 %v480_v62, %v479_v0  ;;  %v1072_v62 = vunpack.c.h.bf16 %v798_v41 }
  0x3c   : > { %v304_v20 = vadd.f32 %v303_v13, %v302_v15  ;;  %v796_v13 = vld [vmem:[%s860_s15 + $0x78] sm:$0xff]   ;;  %v414_v15 = vmul.f32 %v912_v37, %v912_v37  ;;  %v483_v4 = vadd.f32 %v482_v8, %v481_v10  ;;  %v1079_v8 = vunpack.c.l.bf16 %v799_v56 }
  0x3d   : > { %v1034_v22 = vunpack.c.l.bf16 %v796_v13  ;;  %v1042_v31 = vunpack.c.h.bf16 %v796_v13  ;;  %v800_v10 = vld [vmem:[%s860_s15 + $0x98] sm:$0xff]  }
  0x3e   : > { %v306_v28 = vadd.f32 %v305_v3, %v304_v20  ;;  %v1027_v3 = vunpack.c.h.bf16 %v795_v57  ;;  %v488_v29 = vsel %vm265_vm1, %v414_v15, 0.0 }
  0x3f   : > { %v325_v40 = vsel %vm265_vm1, %v1034_v22, 0.0 }
  0x40   : > { %v308_v35 = vadd.f32 %v307_v7, %v306_v28  ;;  %v323_v37 = vsel %vm265_vm1, %v1027_v3, 0.0  ;;  %v485_v7 = vadd.f32 %v484_v17, %v483_v4  ;;  %v416_v28 = vmul.f32 %v921_v44, %v921_v44 }
  0x41   : > { %v327_v44 = vsel %vm265_vm1, %v1042_v31, 0.0  ;;  %v1087_v17 = vunpack.c.h.bf16 %v799_v56 }
  0x42   : > { %v310_v43 = vadd.f32 %v309_v12, %v308_v35  ;;  %v487_v12 = vadd.f32 %v486_v21, %v485_v7  ;;  %v417_v35 = vmul.f32 %v925_v47, %v925_v47  ;;  %v492_v45 = vsel %vm265_vm1, %v416_v28, 0.0  ;;  %v801_v7 = vld [vmem:[%s860_s15 + $0xa0] sm:$0xff]  }
  0x43   : > { %v329_v47 = vsel %vm265_vm1, %v1049_v38, 0.0  ;;  %v1094_v21 = vunpack.c.l.bf16 %v800_v10 }
  0x44   : > { %v312_v50 = vadd.f32 %v311_v16, %v310_v43  ;;  %v489_v16 = vadd.f32 %v488_v29, %v487_v12  ;;  %v418_v43 = vmul.f32 %v930_v51, %v930_v51  ;;  %v494_v52 = vsel %vm265_vm1, %v417_v35, 0.0 }
  0x45   : > { %v331_v51 = vsel %vm265_vm1, %v1057_v46, 0.0  ;;  %v1102_v29 = vunpack.c.h.bf16 %v800_v10 }
  0x46   : > { %v314_v59 = vadd.f32 %v313_v19, %v312_v50  ;;  %v491_v19 = vadd.f32 %v490_v36, %v489_v16  ;;  %v419_v50 = vmul.f32 %v934_v54, %v934_v54  ;;  %v496_v60 = vsel %vm265_vm1, %v418_v43, 0.0  ;;  %v802_v16 = vld [vmem:[%s860_s15 + $0xa8] sm:$0xff]  }
  0x47   : > { %v333_v54 = vsel %vm265_vm1, %v1064_v53, 0.0  ;;  %v1109_v36 = vunpack.c.l.bf16 %v801_v7 }
  0x48   : > { %v316_v2 = vadd.f32 %v315_v23, %v314_v59  ;;  %v493_v23 = vadd.f32 %v492_v45, %v491_v19  ;;  %v420_v59 = vmul.f32 %v939_v58, %v939_v58  ;;  %v498_v6 = vsel %vm265_vm1, %v419_v50, 0.0 }
  0x49   : > { %v335_v58 = vsel %vm265_vm1, %v1072_v62, 0.0  ;;  %v1117_v45 = vunpack.c.h.bf16 %v801_v7 }
  0x4a   : > { %v318_v14 = vadd.f32 %v317_v26, %v316_v2  ;;  %v495_v26 = vadd.f32 %v494_v52, %v493_v23  ;;  %v421_v2 = vmul.f32 %v943_v61, %v943_v61  ;;  %v500_v15 = vsel %vm265_vm1, %v420_v59, 0.0  ;;  %v803_v23 = vld [vmem:[%s860_s15 + $0xb0] sm:$0xff]  }
  0x4b   : > { %v337_v61 = vsel %vm265_vm1, %v1079_v8, 0.0  ;;  %v1124_v52 = vunpack.c.l.bf16 %v802_v16 }
  0x4c   : > { %v320_v20 = vadd.f32 %v319_v30, %v318_v14  ;;  %v497_v30 = vadd.f32 %v496_v60, %v495_v26  ;;  %v422_v14 = vmul.f32 %v948_v1, %v948_v1  ;;  %v502_v5 = vsel %vm265_vm1, %v421_v2, 0.0 }
  0x4d   : > { %v339_v1 = vsel %vm265_vm1, %v1087_v17, 0.0  ;;  %v1132_v60 = vunpack.c.h.bf16 %v802_v16 }
  0x4e   : > { %v322_v27 = vadd.f32 %v321_v33, %v320_v20  ;;  %v499_v33 = vadd.f32 %v498_v6, %v497_v30  ;;  %v423_v20 = vmul.f32 %v958_v11, %v958_v11  ;;  %v504_v28 = vsel %vm265_vm1, %v422_v14, 0.0  ;;  %v804_v30 = vld [vmem:[%s860_s15 + $0xb8] sm:$0xff]  }
  0x4f   : > { %v341_v11 = vsel %vm265_vm1, %v1094_v21, 0.0  ;;  %v1139_v6 = vunpack.c.l.bf16 %v803_v23 }
  0x50   : > { %v324_v34 = vadd.f32 %v323_v37, %v322_v27  ;;  %v501_v37 = vadd.f32 %v500_v15, %v499_v33  ;;  %v424_v27 = vmul.f32 %v965_v18, %v965_v18  ;;  %v506_v35 = vsel %vm265_vm1, %v423_v20, 0.0 }
  0x51   : > { %v343_v18 = vsel %vm265_vm1, %v1102_v29, 0.0  ;;  %v1147_v15 = vunpack.c.h.bf16 %v803_v23 }
  0x52   : > { %v326_v42 = vadd.f32 %v325_v40, %v324_v34  ;;  %v503_v40 = vadd.f32 %v502_v5, %v501_v37  ;;  %v425_v34 = vmul.f32 %v974_v24, %v974_v24  ;;  %v508_v43 = vsel %vm265_vm1, %v424_v27, 0.0  ;;  %v805_v37 = vld [vmem:[%s860_s15 + $0xc0] sm:$0xff]  }
  0x53   : > { %v345_v24 = vsel %vm265_vm1, %v1109_v36, 0.0  ;;  %v1154_v5 = vunpack.c.l.bf16 %v804_v30 }
  0x54   : > { %v328_v49 = vadd.f32 %v327_v44, %v326_v42  ;;  %v505_v44 = vadd.f32 %v504_v28, %v503_v40  ;;  %v426_v42 = vmul.f32 %v982_v32, %v982_v32  ;;  %v510_v50 = vsel %vm265_vm1, %v425_v34, 0.0 }
  0x55   : > { %v347_v32 = vsel %vm265_vm1, %v1117_v45, 0.0  ;;  %v1162_v28 = vunpack.c.h.bf16 %v804_v30 }
  0x56   : > { %v330_v57 = vadd.f32 %v329_v47, %v328_v49  ;;  %v507_v47 = vadd.f32 %v506_v35, %v505_v44  ;;  %v427_v49 = vmul.f32 %v989_v39, %v989_v39  ;;  %v512_v59 = vsel %vm265_vm1, %v426_v42, 0.0  ;;  %v806_v44 = vld [vmem:[%s860_s15 + $0xc8] sm:$0xff]  }
  0x57   : > { %v349_v39 = vsel %vm265_vm1, %v1124_v52, 0.0  ;;  %v1169_v35 = vunpack.c.l.bf16 %v805_v37 }
  0x58   : > { %v332_v0 = vadd.f32 %v331_v51, %v330_v57  ;;  %v509_v51 = vadd.f32 %v508_v43, %v507_v47  ;;  %v428_v57 = vmul.f32 %v997_v48, %v997_v48  ;;  %v514_v2 = vsel %vm265_vm1, %v427_v49, 0.0 }
  0x59   : > { %v351_v48 = vsel %vm265_vm1, %v1132_v60, 0.0  ;;  %v1177_v43 = vunpack.c.h.bf16 %v805_v37 }
  0x5a   : > { %v334_v13 = vadd.f32 %v333_v54, %v332_v0  ;;  %v511_v54 = vadd.f32 %v510_v50, %v509_v51  ;;  %v429_v0 = vmul.f32 %v1004_v55, %v1004_v55  ;;  %v516_v14 = vsel %vm265_vm1, %v428_v57, 0.0  ;;  %v807_v51 = vld [vmem:[%s860_s15 + $0xd0] sm:$0xff]  }
  0x5b   : > { %v353_v55 = vsel %vm265_vm1, %v1139_v6, 0.0  ;;  %v1184_v50 = vunpack.c.l.bf16 %v806_v44 }
  0x5c   : > { %v336_v4 = vadd.f32 %v335_v58, %v334_v13  ;;  %v513_v58 = vadd.f32 %v512_v59, %v511_v54  ;;  %v430_v13 = vmul.f32 %v1012_v63, %v1012_v63  ;;  %v518_v20 = vsel %vm265_vm1, %v429_v0, 0.0 }
  0x5d   : > { %v355_v63 = vsel %vm265_vm1, %v1147_v15, 0.0  ;;  %v1192_v59 = vunpack.c.h.bf16 %v806_v44 }
  0x5e   : > { %v338_v25 = vadd.f32 %v337_v61, %v336_v4  ;;  %v515_v61 = vadd.f32 %v514_v2, %v513_v58  ;;  %v431_v4 = vmul.f32 %v1019_v9, %v1019_v9  ;;  %v520_v27 = vsel %vm265_vm1, %v430_v13, 0.0  ;;  %v808_v58 = vld [vmem:[%s860_s15 + $0xd8] sm:$0xff]  }
  0x5f   : > { %v357_v9 = vsel %vm265_vm1, %v1154_v5, 0.0  ;;  %v1199_v2 = vunpack.c.l.bf16 %v807_v51 }
  0x60   : > { %v340_v12 = vadd.f32 %v339_v1, %v338_v25  ;;  %v517_v1 = vadd.f32 %v516_v14, %v515_v61  ;;  %v432_v25 = vmul.f32 %v1027_v3, %v1027_v3  ;;  %v522_v34 = vsel %vm265_vm1, %v431_v4, 0.0 }
  0x61   : > { %v359_v3 = vsel %vm265_vm1, %v1162_v28, 0.0  ;;  %v1207_v14 = vunpack.c.h.bf16 %v807_v51 }
  0x62   : > { %v342_v41 = vadd.f32 %v341_v11, %v340_v12  ;;  %v519_v11 = vadd.f32 %v518_v20, %v517_v1  ;;  %v433_v12 = vmul.f32 %v1034_v22, %v1034_v22  ;;  %v524_v42 = vsel %vm265_vm1, %v432_v25, 0.0  ;;  %v809_v1 = vld [vmem:[%s860_s15 + $0xe0] sm:$0xff]  }
  0x63   : > { %v361_v22 = vsel %vm265_vm1, %v1169_v35, 0.0  ;;  %v1214_v20 = vunpack.c.l.bf16 %v808_v58 }
  0x64   : > { %v344_v19 = vadd.f32 %v343_v18, %v342_v41  ;;  %v521_v18 = vadd.f32 %v520_v27, %v519_v11  ;;  %v434_v41 = vmul.f32 %v1042_v31, %v1042_v31  ;;  %v526_v49 = vsel %vm265_vm1, %v433_v12, 0.0 }
  0x65   : > { %v363_v31 = vsel %vm265_vm1, %v1177_v43, 0.0  ;;  %v1222_v27 = vunpack.c.h.bf16 %v808_v58 }
  0x66   : > { %v346_v56 = vadd.f32 %v345_v24, %v344_v19  ;;  %v523_v24 = vadd.f32 %v522_v34, %v521_v18  ;;  %v435_v19 = vmul.f32 %v1049_v38, %v1049_v38  ;;  %v528_v57 = vsel %vm265_vm1, %v434_v41, 0.0  ;;  %v810_v18 = vld [vmem:[%s860_s15 + $0xe8] sm:$0xff]  }
  0x67   : > { %v365_v38 = vsel %vm265_vm1, %v1184_v50, 0.0  ;;  %v1229_v34 = vunpack.c.l.bf16 %v809_v1 }
  0x68   : > { %v348_v26 = vadd.f32 %v347_v32, %v346_v56  ;;  %v525_v32 = vadd.f32 %v524_v42, %v523_v24  ;;  %v436_v56 = vmul.f32 %v1057_v46, %v1057_v46  ;;  %v530_v0 = vsel %vm265_vm1, %v435_v19, 0.0 }
  0x69   : > { %v367_v46 = vsel %vm265_vm1, %v1192_v59, 0.0  ;;  %v1237_v42 = vunpack.c.h.bf16 %v809_v1  ;;  %v448_v1 = vmul.f32 %v1147_v15, %v1147_v15  ;;  %v450_v15 = vmul.f32 %v1162_v28, %v1162_v28 }
  0x6a   : > { %v350_v10 = vadd.f32 %v349_v39, %v348_v26  ;;  %v527_v39 = vadd.f32 %v526_v49, %v525_v32  ;;  %v437_v26 = vmul.f32 %v1064_v53, %v1064_v53  ;;  %v532_v13 = vsel %vm265_vm1, %v436_v56, 0.0  ;;  %v811_v32 = vld [vmem:[%s860_s15 + $0xf0] sm:$0xff]  }
  0x6b   : > { %v369_v53 = vsel %vm265_vm1, %v1199_v2, 0.0  ;;  %v1244_v49 = vunpack.c.l.bf16 %v810_v18  ;;  %v453_v28 = vmul.f32 %v1184_v50, %v1184_v50  ;;  %v456_v50 = vmul.f32 %v1207_v14, %v1207_v14 }
  0x6c   : > { %v352_v33 = vadd.f32 %v351_v48, %v350_v10  ;;  %v529_v48 = vadd.f32 %v528_v57, %v527_v39  ;;  %v438_v10 = vmul.f32 %v1072_v62, %v1072_v62  ;;  %v534_v4 = vsel %vm265_vm1, %v437_v26, 0.0 }
  0x6d   : > { %v371_v62 = vsel %vm265_vm1, %v1207_v14, 0.0  ;;  %v1252_v57 = vunpack.c.h.bf16 %v810_v18  ;;  %v459_v14 = vmul.f32 %v1229_v34, %v1229_v34 }
  0x6e   : > { %v354_v7 = vadd.f32 %v353_v55, %v352_v33  ;;  %v531_v55 = vadd.f32 %v530_v0, %v529_v48  ;;  %v439_v33 = vmul.f32 %v1079_v8, %v1079_v8  ;;  %v536_v25 = vsel %vm265_vm1, %v438_v10, 0.0  ;;  %v812_v48 = vld [vmem:[%s860_s15 + $0xf8] sm:$0xff]  }
  0x6f   : > { %v373_v8 = vsel %vm265_vm1, %v1214_v20, 0.0  ;;  %v1259_v0 = vunpack.c.l.bf16 %v811_v32 }
  0x70   : > { %v356_v40 = vadd.f32 %v355_v63, %v354_v7  ;;  %v533_v63 = vadd.f32 %v532_v13, %v531_v55  ;;  %v440_v7 = vmul.f32 %v1087_v17, %v1087_v17  ;;  %v538_v12 = vsel %vm265_vm1, %v439_v33, 0.0 }
  0x71   : > { %v375_v17 = vsel %vm265_vm1, %v1222_v27, 0.0  ;;  %v1267_v13 = vunpack.c.h.bf16 %v811_v32 }
  0x72   : > { %v358_v16 = vadd.f32 %v357_v9, %v356_v40  ;;  %v535_v9 = vadd.f32 %v534_v4, %v533_v63  ;;  %v441_v40 = vmul.f32 %v1094_v21, %v1094_v21  ;;  %v540_v41 = vsel %vm265_vm1, %v440_v7, 0.0 }
  0x73   : > { %v377_v21 = vsel %vm265_vm1, %v1229_v34, 0.0  ;;  %v1274_v4 = vunpack.c.l.bf16 %v812_v48  ;;  %v1281_v7 = vunpack.c.h.bf16 %v812_v48 }
  0x74   : > { %v360_v47 = vadd.f32 %v359_v3, %v358_v16  ;;  %v537_v3 = vadd.f32 %v536_v25, %v535_v9  ;;  %v442_v16 = vmul.f32 %v1102_v29, %v1102_v29  ;;  %v542_v19 = vsel %vm265_vm1, %v441_v40, 0.0 }
  0x75   : > { %v379_v29 = vsel %vm265_vm1, %v1237_v42, 0.0  ;;  %v389_v25 = vsel %vm265_vm1, %v1274_v4, 0.0  ;;  %v449_v9 = vmul.f32 %v1154_v5, %v1154_v5  ;;  %v391_v40 = vsel %vm265_vm1, %v1281_v7, 0.0 }
  0x76   : > { %v362_v23 = vadd.f32 %v361_v22, %v360_v47  ;;  %v539_v22 = vadd.f32 %v538_v12, %v537_v3  ;;  %v443_v47 = vmul.f32 %v1109_v36, %v1109_v36  ;;  %v544_v56 = vsel %vm265_vm1, %v442_v16, 0.0 }
  0x77   : > { %v381_v36 = vsel %vm265_vm1, %v1244_v49, 0.0  ;;  %v556_v3 = vsel %vm265_vm1, %v448_v1, 0.0  ;;  %v451_v16 = vmul.f32 %v1169_v35, %v1169_v35  ;;  %v454_v35 = vmul.f32 %v1192_v59, %v1192_v59 }
  0x78   : > { %v364_v54 = vadd.f32 %v363_v31, %v362_v23  ;;  %v541_v31 = vadd.f32 %v540_v41, %v539_v22  ;;  %v444_v23 = vmul.f32 %v1117_v45, %v1117_v45  ;;  %v546_v26 = vsel %vm265_vm1, %v443_v47, 0.0 }
  0x79   : > { %v558_v41 = vsel %vm265_vm1, %v449_v9, 0.0  ;;  %v452_v22 = vmul.f32 %v1177_v43, %v1177_v43  ;;  %v455_v43 = vmul.f32 %v1199_v2, %v1199_v2  ;;  %v457_v59 = vmul.f32 %v1214_v20, %v1214_v20 }
  0x7a   : > { %v366_v30 = vadd.f32 %v365_v38, %v364_v54  ;;  %v543_v38 = vadd.f32 %v542_v19, %v541_v31  ;;  %v445_v54 = vmul.f32 %v1124_v52, %v1124_v52  ;;  %v548_v10 = vsel %vm265_vm1, %v444_v23, 0.0 }
  0x7b   : > { %v385_v52 = vsel %vm265_vm1, %v1259_v0, 0.0  ;;  %v570_v48 = vsel %vm265_vm1, %v455_v43, 0.0  ;;  %v460_v20 = vmul.f32 %v1237_v42, %v1237_v42  ;;  %v465_v9 = vmul.f32 %v1274_v4, %v1274_v4 }
  0x7c   : > { %v368_v61 = vadd.f32 %v367_v46, %v366_v30  ;;  %v383_v46 = vsel %vm265_vm1, %v1252_v57, 0.0  ;;  %v545_v45 = vadd.f32 %v544_v56, %v543_v38  ;;  %v446_v30 = vmul.f32 %v1132_v60, %v1132_v60 }
  0x7d   : > { %v550_v33 = vsel %vm265_vm1, %v445_v54, 0.0  ;;  %v568_v54 = vsel %vm265_vm1, %v454_v35, 0.0  ;;  %v580_v34 = vsel %vm265_vm1, %v460_v20, 0.0 }
  0x7e   : > { %v370_v37 = vadd.f32 %v369_v53, %v368_v61  ;;  %v547_v53 = vadd.f32 %v546_v26, %v545_v45  ;;  %v447_v61 = vmul.f32 %v1139_v6, %v1139_v6  ;;  %v264_v26 = vld [vmem:[#allocation2] sm:$0x1] }
  0x80   : > { %v372_v11 = vadd.f32 %v371_v62, %v370_v37  ;;  %v387_v62 = vsel %vm265_vm1, %v1267_v13, 0.0  ;;  %v549_v60 = vadd.f32 %v548_v10, %v547_v53  ;;  %v552_v37 = vsel %vm265_vm1, %v446_v30, 0.0 }
  0x81   : > { %v458_v30 = vmul.f32 %v1222_v27, %v1222_v27  ;;  %v572_v10 = vsel %vm265_vm1, %v456_v50, 0.0  ;;  %v574_v53 = vsel %vm265_vm1, %v457_v59, 0.0  ;;  %v461_v27 = vmul.f32 %v1244_v49, %v1244_v49 }
  0x82   : > { %v374_v44 = vadd.f32 %v373_v8, %v372_v11  ;;  %v551_v6 = vadd.f32 %v550_v33, %v549_v60  ;;  %v554_v11 = vsel %vm265_vm1, %v447_v61, 0.0 }
  0x83   : > { %v576_v61 = vsel %vm265_vm1, %v458_v30, 0.0  ;;  %v582_v42 = vsel %vm265_vm1, %v461_v27, 0.0 }
  0x84   : > { %v376_v24 = vadd.f32 %v375_v17, %v374_v44  ;;  %v553_v12 = vadd.f32 %v552_v37, %v551_v6  ;;  %v463_v37 = vmul.f32 %v1259_v0, %v1259_v0  ;;  %v464_v6 = vmul.f32 %v1267_v13, %v1267_v13 }
  0x86   : > { %v378_v51 = vadd.f32 %v377_v21, %v376_v24  ;;  %v555_v18 = vadd.f32 %v554_v11, %v553_v12  ;;  %v560_v24 = vsel %vm265_vm1, %v450_v15, 0.0  ;;  %v588_v0 = vsel %vm265_vm1, %v464_v6, 0.0 }
  0x88   : > { %v380_v39 = vadd.f32 %v379_v29, %v378_v51  ;;  %v557_v5 = vadd.f32 %v556_v3, %v555_v18  ;;  %v562_v29 = vsel %vm265_vm1, %v451_v16, 0.0  ;;  %v564_v51 = vsel %vm265_vm1, %v452_v22, 0.0 }
  0x8a   : > { %v382_v58 = vadd.f32 %v381_v36, %v380_v39  ;;  %v559_v47 = vadd.f32 %v558_v41, %v557_v5  ;;  %v566_v36 = vsel %vm265_vm1, %v453_v28, 0.0 }
  0x8c   : > { %v384_v55 = vadd.f32 %v383_v46, %v382_v58  ;;  %v561_v31 = vadd.f32 %v560_v24, %v559_v47 }
  0x8e   : > { %v386_v63 = vadd.f32 %v385_v52, %v384_v55  ;;  %v563_v23 = vadd.f32 %v562_v29, %v561_v31 }
  0x90   : > { %v388_v8 = vadd.f32 %v387_v62, %v386_v63  ;;  %v565_v38 = vadd.f32 %v564_v51, %v563_v23  ;;  %v578_v62 = vsel %vm265_vm1, %v459_v14, 0.0  ;;  %v462_v63 = vmul.f32 %v1252_v57, %v1252_v57 }
  0x91   : > { %v586_v57 = vsel %vm265_vm1, %v463_v37, 0.0 }
  0x92   : > { %v390_v17 = vadd.f32 %v389_v25, %v388_v8  ;;  %v567_v46 = vadd.f32 %v566_v36, %v565_v38  ;;  %v584_v49 = vsel %vm265_vm1, %v462_v63, 0.0 }
  0x94   : > { %v392_v44 = vadd.f32 %v391_v40, %v390_v17  ;;  %v569_v58 = vadd.f32 %v568_v54, %v567_v46  ;;  %v466_v40 = vmul.f32 %v1281_v7, %v1281_v7  ;;  %v590_v17 = vsel %vm265_vm1, %v465_v9, 0.0 }
  0x96   : > { %v393_v21 = vrot.slane %v392_v44, 4  ;;  %v571_v52 = vadd.f32 %v570_v48, %v569_v58  ;;  %v592_v13 = vsel %vm265_vm1, %v466_v40, 0.0 }
  0x98   : > { %v394_v19 = vadd.f32 %v393_v21, %v392_v44  ;;  %v573_v55 = vadd.f32 %v572_v10, %v571_v52  ;;  %v402_v21 = vld [vmem:[#allocation3] sm:$0x1] }
  0x9a   : > { %v395_v32 = vrot.slane %v394_v19, 2  ;;  %v575_v33 = vadd.f32 %v574_v53, %v573_v55 }
  0x9c   : > { %v396_v56 = vadd.f32 %v395_v32, %v394_v19  ;;  %v577_v60 = vadd.f32 %v576_v61, %v575_v33 }
  0x9e   : > { %v397_v39 = vrot.slane %v396_v56, 1  ;;  %v579_v1 = vadd.f32 %v578_v62, %v577_v60 }
  0xa0   : > { %v398_v45 = vadd.f32 %v397_v39, %v396_v56  ;;  %v581_v25 = vadd.f32 %v580_v34, %v579_v1 }
  0xa2   : > { %v399_v2 = vadd.f32 %v398_v45, %v264_v26  ;;  %v583_v8 = vadd.f32 %v582_v42, %v581_v25 }
  0xa4   : > { %401 = vst.msk [vmem:[#allocation2] sm:$0x1] %vm400_vm2, %v399_v2  ;;  %v585_v11 = vadd.f32 %v584_v49, %v583_v8 }
  0xa6   : > { %v587_v12 = vadd.f32 %v586_v57, %v585_v11 }
  0xa8   : > { %v589_v15 = vadd.f32 %v588_v0, %v587_v12 }
  0xaa   : > { %v591_v3 = vadd.f32 %v590_v17, %v589_v15 }
  0xab   : > { %v606_v7 = vld [vmem:[#allocation2] sm:$0x1] (!%p651_p5) }
  0xac   : > { %v593_v18 = vadd.f32 %v592_v13, %v591_v3  ;;  %607 = vst.msk [vmem:[%s1358_s1] sm:$0x1] (!%p651_p5), %vm400_vm2, %v606_v7 }
  0xae   : > { %v594_v44 = vrot.slane %v593_v18, 4 }
  0xb0   : > { %v595_v16 = vadd.f32 %v594_v44, %v593_v18 }
  0xb2   : > { %v596_v41 = vrot.slane %v595_v16, 2 }
  0xb4   : > { %v597_v4 = vadd.f32 %v596_v41, %v595_v16 }
  0xb6   : > { %v598_v5 = vrot.slane %v597_v4, 1  ;;  %605 = sbr.rel (%p651_p5) target bundleno = 197 (0xc5), region = 32 }
  0xb8   : > { %v599_v22 = vadd.f32 %v598_v5, %v597_v4 }
  0xba   : > { %v600_v24 = vadd.f32 %v599_v22, %v402_v21 }
  0xbc   : > { %601 = vst.msk [vmem:[#allocation3] sm:$0x1] %vm400_vm2, %v600_v24 }
  0xc3   : > { %v608_v47 = vld [vmem:[#allocation3] sm:$0x1] }
  0xc4   : > { %609 = vst.msk [vmem:[%s1359_s2] sm:$0x1] %vm400_vm2, %v608_v47 }
  0xc5 PF: > { %s13_s9 = sadd.s32 1, %s828_s9  }
  0xc6   : > { %p10_p6 = scmp.ge.s32.totalorder %s13_s9, 6  }
  0xc8   :  { %12 = sbr.rel (!%p10_p6) target bundleno = 1 (0x1), region = 66 }

// kernel: cond_cnn_generator_forward.19
= control target key start
LH: loop header
LB: loop body
LE: loop exit
PB: predicated region body
PF: predicated region fallthrough
CT: control target
= control target key end

     0   :  { %s2226_s9 = smov 0   ;;  %s2228_s10 = smov 0   ;;  %s2714_s0 = inlined_call_operand.vmem [shape: bf16[2048,144], index: 0, kind: input, shape index: {}]   ;;  %s2715_s1 = inlined_call_operand.vmem [shape: bf16[144,32], index: 1, kind: input, shape index: {}]   ;;  %s2716_s2 = inlined_call_operand.vmem [shape: bf16[2048,32], index: 2, kind: output, shape index: {}]  }
   0x1   :  { %s2230_s11 = smov 0  }
   0x2 LB: > { %s31_s12 = sadd.s32 1, %s2203_s10  ;;  %p1794_p0 = scmp.ge.s32.totalorder %s2207_s11, 1  ;;  %s2207_s11 = sphi %s2230_s11, %s12_s11   ;;  %s2203_s10 = sphi %s2228_s10, %s2718_s10   ;;  %s2199_s9 = sphi %s2226_s9, %s2717_s9  }
   0x3   : > { %p33_p1 = scmp.ge.s32.totalorder %s31_s12, 4  ;;  %p158_p2 = scmp.lt.s32.totalorder %s2207_s11, 5 }
   0x5   : > { %s2720_s12 = smov (%p33_p1, %s31_s12), 0  ;;  %p159_p3 = pnand %p1794_p0, %p158_p2 }
   0x6   : > { %v2080_v0 = vld [vmem:[%s2715_s1] sm:$0xff] (!%p159_p3)   ;;  %v2209_v1 = vmov (!%p159_p3), 0   ;;  %s1795_s15 = sshll.u32 (!%p159_p3), %s2199_s9, 6  ;;  %v2081_v2 = vld [vmem:[%s2715_s1 + $0x8] sm:$0xff] (!%p159_p3)   ;;  %v2082_v3 = vld [vmem:[%s2715_s1 + $0x10] sm:$0xff] (!%p159_p3)   ;;  %vm784_vm0 = vcmask (!%p159_p3), 130048  }
   0x7   : > { %162 = sbr.rel (%p159_p3) target bundleno = 393 (0x189), region = 28  ;;  %881 = vmatprep.subr.bf16.mxu0 (!%p159_p3), %v2209_v1  ;;  %2036 = vmatprep.subr.bf16.mxu1 (!%p159_p3), %v2209_v1  ;;  %p198_p4 = scmp.lt.s32.totalorder (!%p159_p3), %s1795_s15, 255  ;;  %v2083_v4 = vld [vmem:[%s2715_s1 + $0x18] sm:$0xff] (!%p159_p3)   ;;  %v2084_v7 = vld [vmem:[%s2715_s1 + $0x20] sm:$0xff] (!%p159_p3)   ;;  %v2085_v8 = vld [vmem:[%s2715_s1 + $0x28] sm:$0xff] (!%p159_p3)   ;;  %vm231_vm1 = vcmask (!%p159_p3), 261120  }
   0x8   : > { %882 = vmatpush1.bf16.msra.mxu0 (!%p159_p3), %v2080_v0  ;;  %2045 = vmatpush1.bf16.msra.mxu1 (!%p159_p3), %v2080_v0  ;;  %v2086_v9 = vld [vmem:[%s2715_s1 + $0x30] sm:$0xff] (!%p159_p3)   ;;  %v2087_v10 = vld [vmem:[%s2715_s1 + $0x38] sm:$0xff] (!%p159_p3)   ;;  %v2283_v11 = vld [vmem:[%s2715_s1 + $0x40] sm:$0xff] (!%p159_p3)   ;;  %v2210_v12 = vmov (!%p159_p3), 0.0   ;;  %vm1622_vm2 = vcmask (!%p159_p3), 257024  }
   0x9   : > { %883 = vmatprep.subr.bf16.mxu0 (!%p159_p3), %v2209_v1  ;;  %2037 = vmatprep.subr.bf16.mxu1 (!%p159_p3), %v2209_v1  ;;  %232 = vst.msk [vmem:[#allocation2] sm:$0xff] (!%p159_p3), %vm231_vm1, %v2210_v12  ;;  %233 = vst.msk [vmem:[#allocation2 + $0x8] sm:$0xff] (!%p159_p3), %vm231_vm1, %v2210_v12 }
   0xa   : > { %234 = vst.msk [vmem:[#allocation2 + $0x10] sm:$0xff] (!%p159_p3), %vm231_vm1, %v2210_v12  ;;  %235 = vst.msk [vmem:[#allocation2 + $0x18] sm:$0xff] (!%p159_p3), %vm231_vm1, %v2210_v12 }
   0xb   : > { %236 = vst.msk [vmem:[#allocation2 + $0x20] sm:$0xff] (!%p159_p3), %vm231_vm1, %v2210_v12  ;;  %237 = vst.msk [vmem:[#allocation2 + $0x28] sm:$0xff] (!%p159_p3), %vm231_vm1, %v2210_v12 }
   0xc   : > { %884 = vmatpush1.bf16.msra.mxu0 (!%p159_p3), %v2081_v2  ;;  %2046 = vmatpush1.bf16.msra.mxu1 (!%p159_p3), %v2081_v2  ;;  %238 = vst.msk [vmem:[#allocation2 + $0x30] sm:$0xff] (!%p159_p3), %vm231_vm1, %v2210_v12  ;;  %239 = vst.msk [vmem:[#allocation2 + $0x38] sm:$0xff] (!%p159_p3), %vm231_vm1, %v2210_v12 }
   0xd   : > { %885 = vmatprep.subr.bf16.mxu0 (!%p159_p3), %v2209_v1  ;;  %2038 = vmatprep.subr.bf16.mxu1 (!%p159_p3), %v2209_v1  ;;  %240 = vst.msk [vmem:[#allocation2 + $0x40] sm:$0xff] (!%p159_p3), %vm231_vm1, %v2210_v12  ;;  %241 = vst.msk [vmem:[#allocation2 + $0x48] sm:$0xff] (!%p159_p3), %vm231_vm1, %v2210_v12 }
   0xe   : > { %s2722_s15 = smov (!%p198_p4, %s1795_s15), 255  ;;  %242 = vst.msk [vmem:[#allocation2 + $0x50] sm:$0xff] %vm231_vm1, %v2210_v12  ;;  %243 = vst.msk [vmem:[#allocation2 + $0x58] sm:$0xff] %vm231_vm1, %v2210_v12 }
   0xf   : > { %s1971_s20 = sshll.u32 %s2722_s15, 3  ;;  %244 = vst.msk [vmem:[#allocation2 + $0x60] sm:$0xff] %vm231_vm1, %v2210_v12  ;;  %245 = vst.msk [vmem:[#allocation2 + $0x68] sm:$0xff] %vm231_vm1, %v2210_v12  ;;  %s1799_s8 = sshll.u32 %s2722_s15, 2 }
  0x10   : > { %s2259_s23 = scalar_lea.vmem %s2714_s0, %s1971_s20  ;;  %886 = vmatpush1.bf16.msra.mxu0 %v2082_v3  ;;  %2047 = vmatpush1.bf16.msra.mxu1 %v2082_v3  ;;  %246 = vst.msk [vmem:[#allocation2 + $0x70] sm:$0xff] %vm231_vm1, %v2210_v12  ;;  %247 = vst.msk [vmem:[#allocation2 + $0x78] sm:$0xff] %vm231_vm1, %v2210_v12  ;;  %s2515_s14 = scalar_lea.vmem %s2716_s2, %s1799_s8 }
  0x11   : > { %v2091_v5 = vld [vmem:[%s2259_s23 + $0x4] ss:$8 sps:$4 sm:$0xff]   ;;  %887 = vmatprep.subr.bf16.mxu0 %v2209_v1  ;;  %2039 = vmatprep.subr.bf16.mxu1 %v2209_v1  ;;  %248 = vst.msk [vmem:[#allocation2 + $0x80] sm:$0xff] %vm231_vm1, %v2210_v12  ;;  %249 = vst.msk [vmem:[#allocation2 + $0x88] sm:$0xff] %vm231_vm1, %v2210_v12  ;;  %v2089_v13 = vld [vmem:[%s2259_s23] ss:$8 sps:$4 sm:$0xff]  }
  0x12   : > { %v2094_v6 = vld [vmem:[%s2259_s23 + $0x104] ss:$8 sps:$4 sm:$0xff]   ;;  %1873 = vmatprep.mubr.msk.bf16.mxu0 %vm784_vm0, %v2091_v5  ;;  %250 = vst.msk [vmem:[#allocation2 + $0x90] sm:$0xff] %vm231_vm1, %v2210_v12  ;;  %251 = vst.msk [vmem:[#allocation2 + $0x98] sm:$0xff] %vm231_vm1, %v2210_v12  ;;  %v2092_v14 = vld [vmem:[%s2259_s23 + $0x100] ss:$8 sps:$4 sm:$0xff]  }
  0x13   : > { %1889 = vmatprep.mubr.msk.bf16.mxu1 %vm784_vm0, %v2094_v6  ;;  %252 = vst.msk [vmem:[#allocation2 + $0xa0] sm:$0xff] %vm231_vm1, %v2210_v12  ;;  %253 = vst.msk [vmem:[#allocation2 + $0xa8] sm:$0xff] %vm231_vm1, %v2210_v12  ;;  %v2095_v15 = vld [vmem:[%s2259_s23 + $0x14] ss:$8 sps:$4 sm:$0xff]   ;;  %v2099_v17 = vld [vmem:[%s2259_s23 + $0x10] ss:$8 sps:$4 sm:$0xff]  }
  0x14   : > { %888 = vmatpush1.bf16.msra.mxu0 %v2083_v4  ;;  %2048 = vmatpush1.bf16.msra.mxu1 %v2083_v4  ;;  %254 = vst.msk [vmem:[#allocation2 + $0xb0] sm:$0xff] %vm231_vm1, %v2210_v12  ;;  %255 = vst.msk [vmem:[#allocation2 + $0xb8] sm:$0xff] %vm231_vm1, %v2210_v12  ;;  %v2097_v16 = vld [vmem:[%s2259_s23 + $0x114] ss:$8 sps:$4 sm:$0xff]   ;;  %v2100_v18 = vld [vmem:[%s2259_s23 + $0x110] ss:$8 sps:$4 sm:$0xff]  }
  0x15   : > { %889 = vmatprep.subr.bf16.mxu0 %v2209_v1  ;;  %2040 = vmatprep.subr.bf16.mxu1 %v2209_v1  ;;  %256 = vst.msk [vmem:[#allocation2 + $0xc0] sm:$0xff] %vm231_vm1, %v2210_v12  ;;  %257 = vst.msk [vmem:[#allocation2 + $0xc8] sm:$0xff] %vm231_vm1, %v2210_v12  ;;  %v2101_v19 = vld [vmem:[%s2259_s23 + $0x24] ss:$8 sps:$4 sm:$0xff]   ;;  %v2105_v21 = vld [vmem:[%s2259_s23 + $0x20] ss:$8 sps:$4 sm:$0xff]  }
  0x16   : > { %258 = vst.msk [vmem:[#allocation2 + $0xd0] sm:$0xff] %vm231_vm1, %v2210_v12  ;;  %259 = vst.msk [vmem:[#allocation2 + $0xd8] sm:$0xff] %vm231_vm1, %v2210_v12  ;;  %v2103_v20 = vld [vmem:[%s2259_s23 + $0x124] ss:$8 sps:$4 sm:$0xff]   ;;  %v2106_v22 = vld [vmem:[%s2259_s23 + $0x120] ss:$8 sps:$4 sm:$0xff]  }
  0x17   : > { %260 = vst.msk [vmem:[#allocation2 + $0xe0] sm:$0xff] %vm231_vm1, %v2210_v12  ;;  %261 = vst.msk [vmem:[#allocation2 + $0xe8] sm:$0xff] %vm231_vm1, %v2210_v12  ;;  %v2107_v23 = vld [vmem:[%s2259_s23 + $0x34] ss:$8 sps:$4 sm:$0xff]   ;;  %v2111_v25 = vld [vmem:[%s2259_s23 + $0x30] ss:$8 sps:$4 sm:$0xff]  }
  0x18   : > { %890 = vmatpush1.bf16.msra.mxu0 %v2084_v7  ;;  %2049 = vmatpush1.bf16.msra.mxu1 %v2084_v7  ;;  %262 = vst.msk [vmem:[#allocation2 + $0xf0] sm:$0xff] %vm231_vm1, %v2210_v12  ;;  %263 = vst.msk [vmem:[#allocation2 + $0xf8] sm:$0xff] %vm231_vm1, %v2210_v12  ;;  %v2109_v24 = vld [vmem:[%s2259_s23 + $0x134] ss:$8 sps:$4 sm:$0xff]   ;;  %v2112_v26 = vld [vmem:[%s2259_s23 + $0x130] ss:$8 sps:$4 sm:$0xff]  }
  0x19   : > { %891 = vmatprep.subr.bf16.mxu0 %v2209_v1  ;;  %2041 = vmatprep.subr.bf16.mxu1 %v2209_v1  ;;  %264 = vst.msk [vmem:[#allocation2 + $0x100] sm:$0xff] %vm231_vm1, %v2210_v12  ;;  %265 = vst.msk [vmem:[#allocation2 + $0x108] sm:$0xff] %vm231_vm1, %v2210_v12  ;;  %v2113_v27 = vld [vmem:[%s2259_s23 + $0x44] ss:$8 sps:$4 sm:$0xff]   ;;  %v2117_v29 = vld [vmem:[%s2259_s23 + $0x40] ss:$8 sps:$4 sm:$0xff]  }
  0x1a   : > { %266 = vst.msk [vmem:[#allocation2 + $0x110] sm:$0xff] %vm231_vm1, %v2210_v12  ;;  %267 = vst.msk [vmem:[#allocation2 + $0x118] sm:$0xff] %vm231_vm1, %v2210_v12  ;;  %v2115_v28 = vld [vmem:[%s2259_s23 + $0x144] ss:$8 sps:$4 sm:$0xff]   ;;  %v2118_v30 = vld [vmem:[%s2259_s23 + $0x140] ss:$8 sps:$4 sm:$0xff]  }
  0x1b   : > { %268 = vst.msk [vmem:[#allocation2 + $0x120] sm:$0xff] %vm231_vm1, %v2210_v12  ;;  %269 = vst.msk [vmem:[#allocation2 + $0x128] sm:$0xff] %vm231_vm1, %v2210_v12  ;;  %v2119_v31 = vld [vmem:[%s2259_s23 + $0x54] ss:$8 sps:$4 sm:$0xff]   ;;  %v2123_v33 = vld [vmem:[%s2259_s23 + $0x50] ss:$8 sps:$4 sm:$0xff]  }
  0x1c   : > { %892 = vmatpush1.bf16.msra.mxu0 %v2085_v8  ;;  %2050 = vmatpush1.bf16.msra.mxu1 %v2085_v8  ;;  %270 = vst.msk [vmem:[#allocation2 + $0x130] sm:$0xff] %vm231_vm1, %v2210_v12  ;;  %271 = vst.msk [vmem:[#allocation2 + $0x138] sm:$0xff] %vm231_vm1, %v2210_v12  ;;  %v2121_v32 = vld [vmem:[%s2259_s23 + $0x154] ss:$8 sps:$4 sm:$0xff]   ;;  %v2124_v34 = vld [vmem:[%s2259_s23 + $0x150] ss:$8 sps:$4 sm:$0xff]  }
  0x1d   : > { %893 = vmatprep.subr.bf16.mxu0 %v2209_v1  ;;  %2042 = vmatprep.subr.bf16.mxu1 %v2209_v1  ;;  %272 = vst.msk [vmem:[#allocation2 + $0x140] sm:$0xff] %vm231_vm1, %v2210_v12  ;;  %273 = vst.msk [vmem:[#allocation2 + $0x148] sm:$0xff] %vm231_vm1, %v2210_v12  ;;  %v2125_v35 = vld [vmem:[%s2259_s23 + $0x64] ss:$8 sps:$4 sm:$0xff]   ;;  %v2129_v37 = vld [vmem:[%s2259_s23 + $0x60] ss:$8 sps:$4 sm:$0xff]  }
  0x1e   : > { %274 = vst.msk [vmem:[#allocation2 + $0x150] sm:$0xff] %vm231_vm1, %v2210_v12  ;;  %275 = vst.msk [vmem:[#allocation2 + $0x158] sm:$0xff] %vm231_vm1, %v2210_v12  ;;  %v2127_v36 = vld [vmem:[%s2259_s23 + $0x164] ss:$8 sps:$4 sm:$0xff]   ;;  %v2130_v38 = vld [vmem:[%s2259_s23 + $0x160] ss:$8 sps:$4 sm:$0xff]  }
  0x1f   : > { %276 = vst.msk [vmem:[#allocation2 + $0x160] sm:$0xff] %vm231_vm1, %v2210_v12  ;;  %277 = vst.msk [vmem:[#allocation2 + $0x168] sm:$0xff] %vm231_vm1, %v2210_v12  ;;  %v2131_v39 = vld [vmem:[%s2259_s23 + $0x74] ss:$8 sps:$4 sm:$0xff]   ;;  %v2135_v41 = vld [vmem:[%s2259_s23 + $0x70] ss:$8 sps:$4 sm:$0xff]  }
  0x20   : > { %894 = vmatpush1.bf16.msra.mxu0 %v2086_v9  ;;  %2051 = vmatpush1.bf16.msra.mxu1 %v2086_v9  ;;  %278 = vst.msk [vmem:[#allocation2 + $0x170] sm:$0xff] %vm231_vm1, %v2210_v12  ;;  %279 = vst.msk [vmem:[#allocation2 + $0x178] sm:$0xff] %vm231_vm1, %v2210_v12  ;;  %v2133_v40 = vld [vmem:[%s2259_s23 + $0x174] ss:$8 sps:$4 sm:$0xff]   ;;  %v2136_v42 = vld [vmem:[%s2259_s23 + $0x170] ss:$8 sps:$4 sm:$0xff]  }
  0x21   : > { %895 = vmatprep.subr.bf16.mxu0 %v2209_v1  ;;  %2043 = vmatprep.subr.bf16.mxu1 %v2209_v1  ;;  %280 = vst.msk [vmem:[#allocation2 + $0x180] sm:$0xff] %vm231_vm1, %v2210_v12  ;;  %281 = vst.msk [vmem:[#allocation2 + $0x188] sm:$0xff] %vm231_vm1, %v2210_v12  ;;  %v2137_v43 = vld [vmem:[%s2259_s23 + $0x84] ss:$8 sps:$4 sm:$0xff]   ;;  %v2141_v45 = vld [vmem:[%s2259_s23 + $0x80] ss:$8 sps:$4 sm:$0xff]  }
  0x22   : > { %282 = vst.msk [vmem:[#allocation2 + $0x190] sm:$0xff] %vm231_vm1, %v2210_v12  ;;  %283 = vst.msk [vmem:[#allocation2 + $0x198] sm:$0xff] %vm231_vm1, %v2210_v12  ;;  %v2139_v44 = vld [vmem:[%s2259_s23 + $0x184] ss:$8 sps:$4 sm:$0xff]   ;;  %v2142_v46 = vld [vmem:[%s2259_s23 + $0x180] ss:$8 sps:$4 sm:$0xff]  }
  0x23   : > { %284 = vst.msk [vmem:[#allocation2 + $0x1a0] sm:$0xff] %vm231_vm1, %v2210_v12  ;;  %285 = vst.msk [vmem:[#allocation2 + $0x1a8] sm:$0xff] %vm231_vm1, %v2210_v12  ;;  %v2143_v47 = vld [vmem:[%s2259_s23 + $0x94] ss:$8 sps:$4 sm:$0xff]   ;;  %v2147_v49 = vld [vmem:[%s2259_s23 + $0x90] ss:$8 sps:$4 sm:$0xff]  }
  0x24   : > { %896 = vmatpush1.bf16.msra.mxu0 %v2087_v10  ;;  %2052 = vmatpush1.bf16.msra.mxu1 %v2087_v10  ;;  %286 = vst.msk [vmem:[#allocation2 + $0x1b0] sm:$0xff] %vm231_vm1, %v2210_v12  ;;  %287 = vst.msk [vmem:[#allocation2 + $0x1b8] sm:$0xff] %vm231_vm1, %v2210_v12  ;;  %v2145_v48 = vld [vmem:[%s2259_s23 + $0x194] ss:$8 sps:$4 sm:$0xff]   ;;  %v2148_v50 = vld [vmem:[%s2259_s23 + $0x190] ss:$8 sps:$4 sm:$0xff]  }
  0x25   : > { %897 = vmatprep.subr.bf16.mxu0 %v2209_v1  ;;  %2044 = vmatprep.subr.bf16.mxu1 %v2209_v1  ;;  %288 = vst.msk [vmem:[#allocation2 + $0x1c0] sm:$0xff] %vm231_vm1, %v2210_v12  ;;  %289 = vst.msk [vmem:[#allocation2 + $0x1c8] sm:$0xff] %vm231_vm1, %v2210_v12  ;;  %v2149_v51 = vld [vmem:[%s2259_s23 + $0xa4] ss:$8 sps:$4 sm:$0xff]   ;;  %v2153_v53 = vld [vmem:[%s2259_s23 + $0xa0] ss:$8 sps:$4 sm:$0xff]  }
  0x26   : > { %290 = vst.msk [vmem:[#allocation2 + $0x1d0] sm:$0xff] %vm231_vm1, %v2210_v12  ;;  %291 = vst.msk [vmem:[#allocation2 + $0x1d8] sm:$0xff] %vm231_vm1, %v2210_v12  ;;  %v2151_v52 = vld [vmem:[%s2259_s23 + $0x1a4] ss:$8 sps:$4 sm:$0xff]   ;;  %v2154_v54 = vld [vmem:[%s2259_s23 + $0x1a0] ss:$8 sps:$4 sm:$0xff]  }
  0x27   : > { %292 = vst.msk [vmem:[#allocation2 + $0x1e0] sm:$0xff] %vm231_vm1, %v2210_v12  ;;  %293 = vst.msk [vmem:[#allocation2 + $0x1e8] sm:$0xff] %vm231_vm1, %v2210_v12  ;;  %v2155_v55 = vld [vmem:[%s2259_s23 + $0xb4] ss:$8 sps:$4 sm:$0xff]   ;;  %v2159_v57 = vld [vmem:[%s2259_s23 + $0xb0] ss:$8 sps:$4 sm:$0xff]  }
  0x28   : > { %294 = vst.msk [vmem:[#allocation2 + $0x1f0] sm:$0xff] %vm231_vm1, %v2210_v12  ;;  %295 = vst.msk [vmem:[#allocation2 + $0x1f8] sm:$0xff] %vm231_vm1, %v2210_v12  ;;  %898 = vmatpush1.bf16.msra.mxu0 %v2283_v11  ;;  %2053 = vmatpush1.bf16.msra.mxu1 %v2283_v11  ;;  %v2157_v56 = vld [vmem:[%s2259_s23 + $0x1b4] ss:$8 sps:$4 sm:$0xff]   ;;  %v2160_v58 = vld [vmem:[%s2259_s23 + $0x1b0] ss:$8 sps:$4 sm:$0xff]  }
  0x29   : > { %v2161_v59 = vld [vmem:[%s2259_s23 + $0xc4] ss:$8 sps:$4 sm:$0xff]   ;;  %v2165_v61 = vld [vmem:[%s2259_s23 + $0xc0] ss:$8 sps:$4 sm:$0xff]   ;;  %v2167_v63 = vld [vmem:[%s2259_s23 + $0xd4] ss:$8 sps:$4 sm:$0xff]  }
  0x2a   : > { %v2163_v60 = vld [vmem:[%s2259_s23 + $0x1c4] ss:$8 sps:$4 sm:$0xff]   ;;  %v2166_v62 = vld [vmem:[%s2259_s23 + $0x1c0] ss:$8 sps:$4 sm:$0xff]   ;;  %v2169_v0 = vld [vmem:[%s2259_s23 + $0x1d4] ss:$8 sps:$4 sm:$0xff]  }
  0x2b   : > { %914 = vmatmul.mubr.bf16.vlgmr.msra.gmra.mrb[0].mxu0 %v2089_v13  ;;  %1042 = vmatmul.mubr.bf16.vlgmr.msra.gmra.mrb[0].mxu1 %v2092_v14  ;;  %v2171_v1 = vld [vmem:[%s2259_s23 + $0xd0] ss:$8 sps:$4 sm:$0xff]   ;;  %v2173_v3 = vld [vmem:[%s2259_s23 + $0xe4] ss:$8 sps:$4 sm:$0xff]   ;;  %v2177_v5 = vld [vmem:[%s2259_s23 + $0xe0] ss:$8 sps:$4 sm:$0xff]  }
  0x2c   : > { %1874 = vmatprep.mubr.msk.bf16.mxu0 %vm784_vm0, %v2095_v15  ;;  %1890 = vmatprep.mubr.msk.bf16.mxu1 %vm784_vm0, %v2097_v16  ;;  %v2172_v2 = vld [vmem:[%s2259_s23 + $0x1d0] ss:$8 sps:$4 sm:$0xff]   ;;  %v2175_v4 = vld [vmem:[%s2259_s23 + $0x1e4] ss:$8 sps:$4 sm:$0xff]   ;;  %v2178_v6 = vld [vmem:[%s2259_s23 + $0x1e0] ss:$8 sps:$4 sm:$0xff]  }
  0x2d   : > { %v2179_v7 = vld [vmem:[%s2259_s23 + $0xf4] ss:$8 sps:$4 sm:$0xff]   ;;  %v2183_v9 = vld [vmem:[%s2259_s23 + $0xf0] ss:$8 sps:$4 sm:$0xff]   ;;  %v296_v11 = vld [vmem:[#allocation2] sm:$0xff] }
  0x2e   : > { %v2181_v8 = vld [vmem:[%s2259_s23 + $0x1f4] ss:$8 sps:$4 sm:$0xff]   ;;  %v2184_v10 = vld [vmem:[%s2259_s23 + $0x1f0] ss:$8 sps:$4 sm:$0xff]   ;;  %v328_v12 = vld [vmem:[#allocation2 + $0x100] sm:$0xff] }
  0x2f   : > { %v297_v15 = vld [vmem:[#allocation2 + $0x8] sm:$0xff] }
  0x30   : > { %v329_v16 = vld [vmem:[#allocation2 + $0x108] sm:$0xff] }
  0x33   : > { %922 = vmatmul.mubr.bf16.gmra.mrb[4].mxu0 %v2099_v17  ;;  %1050 = vmatmul.mubr.bf16.gmra.mrb[4].mxu1 %v2100_v18 }
  0x34   : > { %1875 = vmatprep.mubr.msk.bf16.mxu0 %vm784_vm0, %v2101_v19  ;;  %1891 = vmatprep.mubr.msk.bf16.mxu1 %vm784_vm0, %v2103_v20 }
  0x3b   : > { %930 = vmatmul.mubr.bf16.gmra.mrb[8].mxu0 %v2105_v21  ;;  %1058 = vmatmul.mubr.bf16.gmra.mrb[8].mxu1 %v2106_v22 }
  0x3c   : > { %1876 = vmatprep.mubr.msk.bf16.mxu0 %vm784_vm0, %v2107_v23  ;;  %1892 = vmatprep.mubr.msk.bf16.mxu1 %vm784_vm0, %v2109_v24 }
  0x43   : > { %938 = vmatmul.mubr.bf16.gmra.mrb[12].mxu0 %v2111_v25  ;;  %1066 = vmatmul.mubr.bf16.gmra.mrb[12].mxu1 %v2112_v26 }
  0x44   : > { %1877 = vmatprep.mubr.msk.bf16.mxu0 %vm784_vm0, %v2113_v27  ;;  %1893 = vmatprep.mubr.msk.bf16.mxu1 %vm784_vm0, %v2115_v28  ;;  %v298_v27 = vld [vmem:[#allocation2 + $0x10] sm:$0xff] }
  0x45   : > { %v330_v28 = vld [vmem:[#allocation2 + $0x110] sm:$0xff] }
  0x4b   : > { %946 = vmatmul.mubr.bf16.gmra.mrb[16].mxu0 %v2117_v29  ;;  %1074 = vmatmul.mubr.bf16.gmra.mrb[16].mxu1 %v2118_v30 }
  0x4c   : > { %1878 = vmatprep.mubr.msk.bf16.mxu0 %vm784_vm0, %v2119_v31  ;;  %1894 = vmatprep.mubr.msk.bf16.mxu1 %vm784_vm0, %v2121_v32  ;;  %v299_v31 = vld [vmem:[#allocation2 + $0x18] sm:$0xff] }
  0x4d   : > { %v331_v32 = vld [vmem:[#allocation2 + $0x118] sm:$0xff] }
  0x53   : > { %954 = vmatmul.mubr.bf16.gmra.mrb[20].mxu0 %v2123_v33  ;;  %1082 = vmatmul.mubr.bf16.gmra.mrb[20].mxu1 %v2124_v34 }
  0x54   : > { %1879 = vmatprep.mubr.msk.bf16.mxu0 %vm784_vm0, %v2125_v35  ;;  %1895 = vmatprep.mubr.msk.bf16.mxu1 %vm784_vm0, %v2127_v36 }
  0x5b   : > { %962 = vmatmul.mubr.bf16.gmra.mrb[24].mxu0 %v2129_v37  ;;  %1090 = vmatmul.mubr.bf16.gmra.mrb[24].mxu1 %v2130_v38 }
  0x5c   : > { %1880 = vmatprep.mubr.msk.bf16.mxu0 %vm784_vm0, %v2131_v39  ;;  %1896 = vmatprep.mubr.msk.bf16.mxu1 %vm784_vm0, %v2133_v40 }
  0x63   : > { %970 = vmatmul.mubr.bf16.gmra.mrb[28].mxu0 %v2135_v41  ;;  %1098 = vmatmul.mubr.bf16.gmra.mrb[28].mxu1 %v2136_v42 }
  0x64   : > { %1881 = vmatprep.mubr.msk.bf16.mxu0 %vm784_vm0, %v2137_v43  ;;  %1897 = vmatprep.mubr.msk.bf16.mxu1 %vm784_vm0, %v2139_v44 }
  0x6b   : > { %978 = vmatmul.mubr.bf16.gmra.mrb[32].mxu0 %v2141_v45  ;;  %1106 = vmatmul.mubr.bf16.gmra.mrb[32].mxu1 %v2142_v46 }
  0x6c   : > { %1882 = vmatprep.mubr.msk.bf16.mxu0 %vm784_vm0, %v2143_v47  ;;  %1898 = vmatprep.mubr.msk.bf16.mxu1 %vm784_vm0, %v2145_v48 }
  0x73   : > { %986 = vmatmul.mubr.bf16.gmra.mrb[36].mxu0 %v2147_v49  ;;  %1114 = vmatmul.mubr.bf16.gmra.mrb[36].mxu1 %v2148_v50 }
  0x74   : > { %1883 = vmatprep.mubr.msk.bf16.mxu0 %vm784_vm0, %v2149_v51  ;;  %1899 = vmatprep.mubr.msk.bf16.mxu1 %vm784_vm0, %v2151_v52  ;;  %v300_v51 = vld [vmem:[#allocation2 + $0x20] sm:$0xff] }
  0x75   : > { %v332_v52 = vld [vmem:[#allocation2 + $0x120] sm:$0xff] }
  0x7b   : > { %994 = vmatmul.mubr.bf16.gmra.mrb[40].mxu0 %v2153_v53  ;;  %1122 = vmatmul.mubr.bf16.gmra.mrb[40].mxu1 %v2154_v54 }
  0x7c   : > { %1884 = vmatprep.mubr.msk.bf16.mxu0 %vm784_vm0, %v2155_v55  ;;  %1900 = vmatprep.mubr.msk.bf16.mxu1 %vm784_vm0, %v2157_v56  ;;  %v301_v55 = vld [vmem:[#allocation2 + $0x28] sm:$0xff] }
  0x7d   : > { %v333_v56 = vld [vmem:[#allocation2 + $0x128] sm:$0xff] }
  0x83   : > { %1002 = vmatmul.mubr.bf16.gmra.mrb[44].mxu0 %v2159_v57  ;;  %1130 = vmatmul.mubr.bf16.gmra.mrb[44].mxu1 %v2160_v58 }
  0x84   : > { %1885 = vmatprep.mubr.msk.bf16.mxu0 %vm784_vm0, %v2161_v59  ;;  %1901 = vmatprep.mubr.msk.bf16.mxu1 %vm784_vm0, %v2163_v60 }
  0x8b   : > { %1010 = vmatmul.mubr.bf16.gmra.mrb[48].mxu0 %v2165_v61  ;;  %1138 = vmatmul.mubr.bf16.gmra.mrb[48].mxu1 %v2166_v62 }
  0x8c   : > { %1886 = vmatprep.mubr.msk.bf16.mxu0 %vm784_vm0, %v2167_v63  ;;  %1902 = vmatprep.mubr.msk.bf16.mxu1 %vm784_vm0, %v2169_v0 }
  0x93   : > { %1018 = vmatmul.mubr.bf16.gmra.mrb[52].mxu0 %v2171_v1  ;;  %1146 = vmatmul.mubr.bf16.gmra.mrb[52].mxu1 %v2172_v2 }
  0x94   : > { %1887 = vmatprep.mubr.msk.bf16.mxu0 %vm784_vm0, %v2173_v3  ;;  %1903 = vmatprep.mubr.msk.bf16.mxu1 %vm784_vm0, %v2175_v4 }
  0x9b   : > { %1026 = vmatmul.mubr.bf16.gmra.mrb[56].mxu0 %v2177_v5  ;;  %1154 = vmatmul.mubr.bf16.gmra.mrb[56].mxu1 %v2178_v6 }
  0x9c   : > { %1888 = vmatprep.mubr.msk.bf16.mxu0 %vm784_vm0, %v2179_v7  ;;  %1904 = vmatprep.mubr.msk.bf16.mxu1 %vm784_vm0, %v2181_v8 }
  0xa3   : > { %1034 = vmatmul.mubr.bf16.gmra.mrb[60].mxu0 %v2183_v9  ;;  %1162 = vmatmul.mubr.bf16.gmra.mrb[60].mxu1 %v2184_v10 }
  0xfe   : > { %v915_v13 = vpop.f32.mrb[0].mxu0  ;;  %v1043_v14 = vpop.f32.mrb[0].mxu1 }
  0xff   : > { %v1170_v17 = vadd.f32 %v915_v13, %v296_v11  ;;  %v1202_v18 = vadd.f32 %v1043_v14, %v328_v12  ;;  %v917_v19 = vpop.f32.mrb[1].mxu0  ;;  %v1045_v20 = vpop.f32.mrb[1].mxu1  ;;  %v302_v11 = vld [vmem:[#allocation2 + $0x30] sm:$0xff] }
 0x100   : > { %v918_v21 = vpop.f32.mrb[2].mxu0  ;;  %v1046_v22 = vpop.f32.mrb[2].mxu1  ;;  %v334_v12 = vld [vmem:[#allocation2 + $0x130] sm:$0xff] }
 0x101   : > { %1235 = vst.msk [vmem:[#allocation2] sm:$0xff] %vm231_vm1, %v1170_v17  ;;  %1267 = vst.msk [vmem:[#allocation2 + $0x100] sm:$0xff] %vm231_vm1, %v1202_v18  ;;  %v1171_v23 = vadd.f32 %v918_v21, %v297_v15  ;;  %v1203_v24 = vadd.f32 %v1046_v22, %v329_v16  ;;  %v920_v25 = vpop.f32.mrb[3].mxu0  ;;  %v1048_v26 = vpop.f32.mrb[3].mxu1  ;;  %v303_v15 = vld [vmem:[#allocation2 + $0x38] sm:$0xff] }
 0x102   : > { %v335_v16 = vld [vmem:[#allocation2 + $0x138] sm:$0xff] }
 0x103   : > { %1236 = vst.msk [vmem:[#allocation2 + $0x8] sm:$0xff] %vm231_vm1, %v1171_v23  ;;  %1268 = vst.msk [vmem:[#allocation2 + $0x108] sm:$0xff] %vm231_vm1, %v1203_v24 }
 0x106   : > { %v923_v29 = vpop.f32.mrb[4].mxu0  ;;  %v1051_v30 = vpop.f32.mrb[4].mxu1 }
 0x107   : > { %v1172_v33 = vadd.f32 %v923_v29, %v298_v27  ;;  %v1204_v34 = vadd.f32 %v1051_v30, %v330_v28  ;;  %v925_v35 = vpop.f32.mrb[5].mxu0  ;;  %v1053_v36 = vpop.f32.mrb[5].mxu1 }
 0x108   : > { %v1302_v37 = vld [vmem:[#allocation2] sm:$0xff]  ;;  %v926_v39 = vpop.f32.mrb[6].mxu0  ;;  %v1054_v40 = vpop.f32.mrb[6].mxu1 }
 0x109   : > { %v1334_v38 = vld [vmem:[#allocation2 + $0x100] sm:$0xff]  ;;  %v1972_v41 = vpack.c.bf16 %v1302_v37, %v1302_v37  ;;  %1237 = vst.msk [vmem:[#allocation2 + $0x10] sm:$0xff] %vm231_vm1, %v1172_v33  ;;  %1269 = vst.msk [vmem:[#allocation2 + $0x110] sm:$0xff] %vm231_vm1, %v1204_v34  ;;  %v1173_v43 = vadd.f32 %v926_v39, %v299_v31  ;;  %v1205_v44 = vadd.f32 %v1054_v40, %v331_v32  ;;  %v928_v45 = vpop.f32.mrb[7].mxu0  ;;  %v1056_v46 = vpop.f32.mrb[7].mxu1  ;;  %v305_v39 = vld [vmem:[#allocation2 + $0x48] sm:$0xff] }
 0x10a   : > { %v2004_v42 = vpack.c.bf16 %v1334_v38, %v1334_v38  ;;  %v1303_v47 = vld [vmem:[#allocation2 + $0x8] sm:$0xff]  ;;  %v304_v35 = vld [vmem:[#allocation2 + $0x40] sm:$0xff] }
 0x10b   : > { %v1335_v48 = vld [vmem:[#allocation2 + $0x108] sm:$0xff]  ;;  %1623 = vst.msk [vmem:[%s2515_s14] sm:$0xf] %vm1622_vm2, %v1972_v41  ;;  %v1973_v49 = vpack.c.bf16 %v1303_v47, %v1303_v47  ;;  %v336_v36 = vld [vmem:[#allocation2 + $0x140] sm:$0xff] }
 0x10c   : > { %1655 = vst.msk [vmem:[%s2515_s14 + $0x80] sm:$0xf] %vm1622_vm2, %v2004_v42  ;;  %v2005_v50 = vpack.c.bf16 %v1335_v48, %v1335_v48  ;;  %v337_v40 = vld [vmem:[#allocation2 + $0x148] sm:$0xff] }
 0x10d   : > { %1238 = vst.msk [vmem:[#allocation2 + $0x18] sm:$0xff] %vm231_vm1, %v1173_v43  ;;  %1270 = vst.msk [vmem:[#allocation2 + $0x118] sm:$0xff] %vm231_vm1, %v1205_v44 }
 0x10e   : > { %1624 = vst.msk [vmem:[%s2515_s14 + $0x4] sm:$0xf] %vm1622_vm2, %v1973_v49  ;;  %1656 = vst.msk [vmem:[%s2515_s14 + $0x84] sm:$0xf] %vm1622_vm2, %v2005_v50  ;;  %v931_v53 = vpop.f32.mrb[8].mxu0  ;;  %v1059_v54 = vpop.f32.mrb[8].mxu1 }
 0x10f   : > { %v1174_v57 = vadd.f32 %v931_v53, %v300_v51  ;;  %v1206_v58 = vadd.f32 %v1059_v54, %v332_v52  ;;  %v933_v59 = vpop.f32.mrb[9].mxu0  ;;  %v1061_v60 = vpop.f32.mrb[9].mxu1 }
 0x110   : > { %v1304_v61 = vld [vmem:[#allocation2 + $0x10] sm:$0xff]  ;;  %v934_v63 = vpop.f32.mrb[10].mxu0  ;;  %v1062_v0 = vpop.f32.mrb[10].mxu1 }
 0x111   : > { %v1336_v62 = vld [vmem:[#allocation2 + $0x110] sm:$0xff]  ;;  %v1974_v1 = vpack.c.bf16 %v1304_v61, %v1304_v61  ;;  %1239 = vst.msk [vmem:[#allocation2 + $0x20] sm:$0xff] %vm231_vm1, %v1174_v57  ;;  %1271 = vst.msk [vmem:[#allocation2 + $0x120] sm:$0xff] %vm231_vm1, %v1206_v58  ;;  %v1175_v3 = vadd.f32 %v934_v63, %v301_v55  ;;  %v1207_v4 = vadd.f32 %v1062_v0, %v333_v56  ;;  %v936_v5 = vpop.f32.mrb[11].mxu0  ;;  %v1064_v6 = vpop.f32.mrb[11].mxu1  ;;  %v307_v63 = vld [vmem:[#allocation2 + $0x58] sm:$0xff] }
 0x112   : > { %v2006_v2 = vpack.c.bf16 %v1336_v62, %v1336_v62  ;;  %v306_v59 = vld [vmem:[#allocation2 + $0x50] sm:$0xff]  ;;  %v339_v0 = vld [vmem:[#allocation2 + $0x158] sm:$0xff] }
 0x113   : > { %1625 = vst.msk [vmem:[%s2515_s14 + $0x8] sm:$0xf] %vm1622_vm2, %v1974_v1  ;;  %v338_v60 = vld [vmem:[#allocation2 + $0x150] sm:$0xff] }
 0x114   : > { %v1305_v7 = vld [vmem:[#allocation2 + $0x18] sm:$0xff]  ;;  %1657 = vst.msk [vmem:[%s2515_s14 + $0x88] sm:$0xf] %vm1622_vm2, %v2006_v2 }
 0x115   : > { %v1337_v8 = vld [vmem:[#allocation2 + $0x118] sm:$0xff]  ;;  %v1975_v9 = vpack.c.bf16 %v1305_v7, %v1305_v7  ;;  %1240 = vst.msk [vmem:[#allocation2 + $0x28] sm:$0xff] %vm231_vm1, %v1175_v3  ;;  %1272 = vst.msk [vmem:[#allocation2 + $0x128] sm:$0xff] %vm231_vm1, %v1207_v4 }
 0x116   : > { %v2007_v10 = vpack.c.bf16 %v1337_v8, %v1337_v8  ;;  %v939_v13 = vpop.f32.mrb[12].mxu0  ;;  %v1067_v14 = vpop.f32.mrb[12].mxu1 }
 0x117   : > { %1626 = vst.msk [vmem:[%s2515_s14 + $0xc] sm:$0xf] %vm1622_vm2, %v1975_v9  ;;  %v1176_v17 = vadd.f32 %v939_v13, %v302_v11  ;;  %v1208_v18 = vadd.f32 %v1067_v14, %v334_v12  ;;  %v941_v19 = vpop.f32.mrb[13].mxu0  ;;  %v1069_v20 = vpop.f32.mrb[13].mxu1 }
 0x118   : > { %1658 = vst.msk [vmem:[%s2515_s14 + $0x8c] sm:$0xf] %vm1622_vm2, %v2007_v10  ;;  %v1306_v21 = vld [vmem:[#allocation2 + $0x20] sm:$0xff]  ;;  %v942_v23 = vpop.f32.mrb[14].mxu0  ;;  %v1070_v24 = vpop.f32.mrb[14].mxu1 }
 0x119   : > { %v1338_v22 = vld [vmem:[#allocation2 + $0x120] sm:$0xff]  ;;  %v1976_v25 = vpack.c.bf16 %v1306_v21, %v1306_v21  ;;  %1241 = vst.msk [vmem:[#allocation2 + $0x30] sm:$0xff] %vm231_vm1, %v1176_v17  ;;  %1273 = vst.msk [vmem:[#allocation2 + $0x130] sm:$0xff] %vm231_vm1, %v1208_v18  ;;  %v1177_v27 = vadd.f32 %v942_v23, %v303_v15  ;;  %v1209_v28 = vadd.f32 %v1070_v24, %v335_v16  ;;  %v944_v29 = vpop.f32.mrb[15].mxu0  ;;  %v1072_v30 = vpop.f32.mrb[15].mxu1  ;;  %v309_v23 = vld [vmem:[#allocation2 + $0x68] sm:$0xff] }
 0x11a   : > { %v2008_v26 = vpack.c.bf16 %v1338_v22, %v1338_v22  ;;  %v308_v19 = vld [vmem:[#allocation2 + $0x60] sm:$0xff]  ;;  %v341_v24 = vld [vmem:[#allocation2 + $0x168] sm:$0xff] }
 0x11b   : > { %1627 = vst.msk [vmem:[%s2515_s14 + $0x10] sm:$0xf] %vm1622_vm2, %v1976_v25  ;;  %v340_v20 = vld [vmem:[#allocation2 + $0x160] sm:$0xff] }
 0x11c   : > { %v1307_v31 = vld [vmem:[#allocation2 + $0x28] sm:$0xff]  ;;  %1659 = vst.msk [vmem:[%s2515_s14 + $0x90] sm:$0xf] %vm1622_vm2, %v2008_v26 }
 0x11d   : > { %v1339_v32 = vld [vmem:[#allocation2 + $0x128] sm:$0xff]  ;;  %v1977_v33 = vpack.c.bf16 %v1307_v31, %v1307_v31  ;;  %1242 = vst.msk [vmem:[#allocation2 + $0x38] sm:$0xff] %vm231_vm1, %v1177_v27  ;;  %1274 = vst.msk [vmem:[#allocation2 + $0x138] sm:$0xff] %vm231_vm1, %v1209_v28 }
 0x11e   : > { %v2009_v34 = vpack.c.bf16 %v1339_v32, %v1339_v32  ;;  %v947_v37 = vpop.f32.mrb[16].mxu0  ;;  %v1075_v38 = vpop.f32.mrb[16].mxu1 }
 0x11f   : > { %1628 = vst.msk [vmem:[%s2515_s14 + $0x14] sm:$0xf] %vm1622_vm2, %v1977_v33  ;;  %v1178_v41 = vadd.f32 %v947_v37, %v304_v35  ;;  %v1210_v42 = vadd.f32 %v1075_v38, %v336_v36  ;;  %v949_v43 = vpop.f32.mrb[17].mxu0  ;;  %v1077_v44 = vpop.f32.mrb[17].mxu1 }
 0x120   : > { %1660 = vst.msk [vmem:[%s2515_s14 + $0x94] sm:$0xf] %vm1622_vm2, %v2009_v34  ;;  %v1308_v45 = vld [vmem:[#allocation2 + $0x30] sm:$0xff]  ;;  %v950_v47 = vpop.f32.mrb[18].mxu0  ;;  %v1078_v48 = vpop.f32.mrb[18].mxu1 }
 0x121   : > { %v1340_v46 = vld [vmem:[#allocation2 + $0x130] sm:$0xff]  ;;  %v1978_v49 = vpack.c.bf16 %v1308_v45, %v1308_v45  ;;  %1243 = vst.msk [vmem:[#allocation2 + $0x40] sm:$0xff] %vm231_vm1, %v1178_v41  ;;  %1275 = vst.msk [vmem:[#allocation2 + $0x140] sm:$0xff] %vm231_vm1, %v1210_v42  ;;  %v1179_v51 = vadd.f32 %v950_v47, %v305_v39  ;;  %v1211_v52 = vadd.f32 %v1078_v48, %v337_v40  ;;  %v952_v53 = vpop.f32.mrb[19].mxu0  ;;  %v1080_v54 = vpop.f32.mrb[19].mxu1  ;;  %v311_v47 = vld [vmem:[#allocation2 + $0x78] sm:$0xff] }
 0x122   : > { %v2010_v50 = vpack.c.bf16 %v1340_v46, %v1340_v46  ;;  %v310_v43 = vld [vmem:[#allocation2 + $0x70] sm:$0xff]  ;;  %v343_v48 = vld [vmem:[#allocation2 + $0x178] sm:$0xff] }
 0x123   : > { %1629 = vst.msk [vmem:[%s2515_s14 + $0x18] sm:$0xf] %vm1622_vm2, %v1978_v49  ;;  %v342_v44 = vld [vmem:[#allocation2 + $0x170] sm:$0xff] }
 0x124   : > { %v1309_v55 = vld [vmem:[#allocation2 + $0x38] sm:$0xff]  ;;  %1661 = vst.msk [vmem:[%s2515_s14 + $0x98] sm:$0xf] %vm1622_vm2, %v2010_v50 }
 0x125   : > { %v1341_v56 = vld [vmem:[#allocation2 + $0x138] sm:$0xff]  ;;  %v1979_v57 = vpack.c.bf16 %v1309_v55, %v1309_v55  ;;  %1244 = vst.msk [vmem:[#allocation2 + $0x48] sm:$0xff] %vm231_vm1, %v1179_v51  ;;  %1276 = vst.msk [vmem:[#allocation2 + $0x148] sm:$0xff] %vm231_vm1, %v1211_v52 }
 0x126   : > { %v2011_v58 = vpack.c.bf16 %v1341_v56, %v1341_v56  ;;  %v955_v61 = vpop.f32.mrb[20].mxu0  ;;  %v1083_v62 = vpop.f32.mrb[20].mxu1 }
 0x127   : > { %1630 = vst.msk [vmem:[%s2515_s14 + $0x1c] sm:$0xf] %vm1622_vm2, %v1979_v57  ;;  %v1180_v1 = vadd.f32 %v955_v61, %v306_v59  ;;  %v1212_v2 = vadd.f32 %v1083_v62, %v338_v60  ;;  %v957_v3 = vpop.f32.mrb[21].mxu0  ;;  %v1085_v4 = vpop.f32.mrb[21].mxu1 }
 0x128   : > { %1662 = vst.msk [vmem:[%s2515_s14 + $0x9c] sm:$0xf] %vm1622_vm2, %v2011_v58  ;;  %v1310_v5 = vld [vmem:[#allocation2 + $0x40] sm:$0xff]  ;;  %v958_v7 = vpop.f32.mrb[22].mxu0  ;;  %v1086_v8 = vpop.f32.mrb[22].mxu1 }
 0x129   : > { %v1342_v6 = vld [vmem:[#allocation2 + $0x140] sm:$0xff]  ;;  %v1980_v9 = vpack.c.bf16 %v1310_v5, %v1310_v5  ;;  %1245 = vst.msk [vmem:[#allocation2 + $0x50] sm:$0xff] %vm231_vm1, %v1180_v1  ;;  %1277 = vst.msk [vmem:[#allocation2 + $0x150] sm:$0xff] %vm231_vm1, %v1212_v2  ;;  %v1181_v11 = vadd.f32 %v958_v7, %v307_v63  ;;  %v1213_v12 = vadd.f32 %v1086_v8, %v339_v0  ;;  %v960_v13 = vpop.f32.mrb[23].mxu0  ;;  %v1088_v14 = vpop.f32.mrb[23].mxu1  ;;  %v313_v7 = vld [vmem:[#allocation2 + $0x88] sm:$0xff] }
 0x12a   : > { %v2012_v10 = vpack.c.bf16 %v1342_v6, %v1342_v6  ;;  %v312_v3 = vld [vmem:[#allocation2 + $0x80] sm:$0xff]  ;;  %v345_v8 = vld [vmem:[#allocation2 + $0x188] sm:$0xff] }
 0x12b   : > { %1631 = vst.msk [vmem:[%s2515_s14 + $0x20] sm:$0xf] %vm1622_vm2, %v1980_v9  ;;  %v344_v4 = vld [vmem:[#allocation2 + $0x180] sm:$0xff] }
 0x12c   : > { %v1311_v15 = vld [vmem:[#allocation2 + $0x48] sm:$0xff]  ;;  %1663 = vst.msk [vmem:[%s2515_s14 + $0xa0] sm:$0xf] %vm1622_vm2, %v2012_v10 }
 0x12d   : > { %v1343_v16 = vld [vmem:[#allocation2 + $0x148] sm:$0xff]  ;;  %v1981_v17 = vpack.c.bf16 %v1311_v15, %v1311_v15  ;;  %1246 = vst.msk [vmem:[#allocation2 + $0x58] sm:$0xff] %vm231_vm1, %v1181_v11  ;;  %1278 = vst.msk [vmem:[#allocation2 + $0x158] sm:$0xff] %vm231_vm1, %v1213_v12 }
 0x12e   : > { %v2013_v18 = vpack.c.bf16 %v1343_v16, %v1343_v16  ;;  %v963_v21 = vpop.f32.mrb[24].mxu0  ;;  %v1091_v22 = vpop.f32.mrb[24].mxu1 }
 0x12f   : > { %1632 = vst.msk [vmem:[%s2515_s14 + $0x24] sm:$0xf] %vm1622_vm2, %v1981_v17  ;;  %v1182_v25 = vadd.f32 %v963_v21, %v308_v19  ;;  %v1214_v26 = vadd.f32 %v1091_v22, %v340_v20  ;;  %v965_v27 = vpop.f32.mrb[25].mxu0  ;;  %v1093_v28 = vpop.f32.mrb[25].mxu1 }
 0x130   : > { %1664 = vst.msk [vmem:[%s2515_s14 + $0xa4] sm:$0xf] %vm1622_vm2, %v2013_v18  ;;  %v1312_v29 = vld [vmem:[#allocation2 + $0x50] sm:$0xff]  ;;  %v966_v31 = vpop.f32.mrb[26].mxu0  ;;  %v1094_v32 = vpop.f32.mrb[26].mxu1 }
 0x131   : > { %v1344_v30 = vld [vmem:[#allocation2 + $0x150] sm:$0xff]  ;;  %v1982_v33 = vpack.c.bf16 %v1312_v29, %v1312_v29  ;;  %1247 = vst.msk [vmem:[#allocation2 + $0x60] sm:$0xff] %vm231_vm1, %v1182_v25  ;;  %1279 = vst.msk [vmem:[#allocation2 + $0x160] sm:$0xff] %vm231_vm1, %v1214_v26  ;;  %v1183_v35 = vadd.f32 %v966_v31, %v309_v23  ;;  %v1215_v36 = vadd.f32 %v1094_v32, %v341_v24  ;;  %v968_v37 = vpop.f32.mrb[27].mxu0  ;;  %v1096_v38 = vpop.f32.mrb[27].mxu1  ;;  %v315_v31 = vld [vmem:[#allocation2 + $0x98] sm:$0xff] }
 0x132   : > { %v2014_v34 = vpack.c.bf16 %v1344_v30, %v1344_v30  ;;  %v314_v27 = vld [vmem:[#allocation2 + $0x90] sm:$0xff]  ;;  %v347_v32 = vld [vmem:[#allocation2 + $0x198] sm:$0xff] }
 0x133   : > { %1633 = vst.msk [vmem:[%s2515_s14 + $0x28] sm:$0xf] %vm1622_vm2, %v1982_v33  ;;  %v346_v28 = vld [vmem:[#allocation2 + $0x190] sm:$0xff] }
 0x134   : > { %v1313_v39 = vld [vmem:[#allocation2 + $0x58] sm:$0xff]  ;;  %1665 = vst.msk [vmem:[%s2515_s14 + $0xa8] sm:$0xf] %vm1622_vm2, %v2014_v34 }
 0x135   : > { %v1345_v40 = vld [vmem:[#allocation2 + $0x158] sm:$0xff]  ;;  %v1983_v41 = vpack.c.bf16 %v1313_v39, %v1313_v39  ;;  %1248 = vst.msk [vmem:[#allocation2 + $0x68] sm:$0xff] %vm231_vm1, %v1183_v35  ;;  %1280 = vst.msk [vmem:[#allocation2 + $0x168] sm:$0xff] %vm231_vm1, %v1215_v36 }
 0x136   : > { %v2015_v42 = vpack.c.bf16 %v1345_v40, %v1345_v40  ;;  %v971_v45 = vpop.f32.mrb[28].mxu0  ;;  %v1099_v46 = vpop.f32.mrb[28].mxu1 }
 0x137   : > { %1634 = vst.msk [vmem:[%s2515_s14 + $0x2c] sm:$0xf] %vm1622_vm2, %v1983_v41  ;;  %v1184_v49 = vadd.f32 %v971_v45, %v310_v43  ;;  %v1216_v50 = vadd.f32 %v1099_v46, %v342_v44  ;;  %v973_v51 = vpop.f32.mrb[29].mxu0  ;;  %v1101_v52 = vpop.f32.mrb[29].mxu1 }
 0x138   : > { %1666 = vst.msk [vmem:[%s2515_s14 + $0xac] sm:$0xf] %vm1622_vm2, %v2015_v42  ;;  %v1314_v53 = vld [vmem:[#allocation2 + $0x60] sm:$0xff]  ;;  %v974_v55 = vpop.f32.mrb[30].mxu0  ;;  %v1102_v56 = vpop.f32.mrb[30].mxu1 }
 0x139   : > { %v1346_v54 = vld [vmem:[#allocation2 + $0x160] sm:$0xff]  ;;  %v1984_v57 = vpack.c.bf16 %v1314_v53, %v1314_v53  ;;  %1249 = vst.msk [vmem:[#allocation2 + $0x70] sm:$0xff] %vm231_vm1, %v1184_v49  ;;  %1281 = vst.msk [vmem:[#allocation2 + $0x170] sm:$0xff] %vm231_vm1, %v1216_v50  ;;  %v1185_v59 = vadd.f32 %v974_v55, %v311_v47  ;;  %v1217_v60 = vadd.f32 %v1102_v56, %v343_v48  ;;  %v976_v61 = vpop.f32.mrb[31].mxu0  ;;  %v1104_v62 = vpop.f32.mrb[31].mxu1  ;;  %v317_v55 = vld [vmem:[#allocation2 + $0xa8] sm:$0xff] }
 0x13a   : > { %v2016_v58 = vpack.c.bf16 %v1346_v54, %v1346_v54  ;;  %v316_v51 = vld [vmem:[#allocation2 + $0xa0] sm:$0xff]  ;;  %v349_v56 = vld [vmem:[#allocation2 + $0x1a8] sm:$0xff] }
 0x13b   : > { %1635 = vst.msk [vmem:[%s2515_s14 + $0x30] sm:$0xf] %vm1622_vm2, %v1984_v57  ;;  %v348_v52 = vld [vmem:[#allocation2 + $0x1a0] sm:$0xff] }
 0x13c   : > { %v1315_v63 = vld [vmem:[#allocation2 + $0x68] sm:$0xff]  ;;  %1667 = vst.msk [vmem:[%s2515_s14 + $0xb0] sm:$0xf] %vm1622_vm2, %v2016_v58 }
 0x13d   : > { %v1347_v0 = vld [vmem:[#allocation2 + $0x168] sm:$0xff]  ;;  %v1985_v1 = vpack.c.bf16 %v1315_v63, %v1315_v63  ;;  %1250 = vst.msk [vmem:[#allocation2 + $0x78] sm:$0xff] %vm231_vm1, %v1185_v59  ;;  %1282 = vst.msk [vmem:[#allocation2 + $0x178] sm:$0xff] %vm231_vm1, %v1217_v60 }
 0x13e   : > { %v2017_v2 = vpack.c.bf16 %v1347_v0, %v1347_v0  ;;  %v979_v5 = vpop.f32.mrb[32].mxu0  ;;  %v1107_v6 = vpop.f32.mrb[32].mxu1 }
 0x13f   : > { %1636 = vst.msk [vmem:[%s2515_s14 + $0x34] sm:$0xf] %vm1622_vm2, %v1985_v1  ;;  %v1186_v9 = vadd.f32 %v979_v5, %v312_v3  ;;  %v1218_v10 = vadd.f32 %v1107_v6, %v344_v4  ;;  %v981_v11 = vpop.f32.mrb[33].mxu0  ;;  %v1109_v12 = vpop.f32.mrb[33].mxu1 }
 0x140   : > { %1668 = vst.msk [vmem:[%s2515_s14 + $0xb4] sm:$0xf] %vm1622_vm2, %v2017_v2  ;;  %v1316_v13 = vld [vmem:[#allocation2 + $0x70] sm:$0xff]  ;;  %v982_v15 = vpop.f32.mrb[34].mxu0  ;;  %v1110_v16 = vpop.f32.mrb[34].mxu1 }
 0x141   : > { %v1348_v14 = vld [vmem:[#allocation2 + $0x170] sm:$0xff]  ;;  %v1986_v17 = vpack.c.bf16 %v1316_v13, %v1316_v13  ;;  %1251 = vst.msk [vmem:[#allocation2 + $0x80] sm:$0xff] %vm231_vm1, %v1186_v9  ;;  %1283 = vst.msk [vmem:[#allocation2 + $0x180] sm:$0xff] %vm231_vm1, %v1218_v10  ;;  %v1187_v19 = vadd.f32 %v982_v15, %v313_v7  ;;  %v1219_v20 = vadd.f32 %v1110_v16, %v345_v8  ;;  %v984_v21 = vpop.f32.mrb[35].mxu0  ;;  %v1112_v22 = vpop.f32.mrb[35].mxu1  ;;  %v319_v15 = vld [vmem:[#allocation2 + $0xb8] sm:$0xff] }
 0x142   : > { %v2018_v18 = vpack.c.bf16 %v1348_v14, %v1348_v14  ;;  %v318_v11 = vld [vmem:[#allocation2 + $0xb0] sm:$0xff]  ;;  %v351_v16 = vld [vmem:[#allocation2 + $0x1b8] sm:$0xff] }
 0x143   : > { %1637 = vst.msk [vmem:[%s2515_s14 + $0x38] sm:$0xf] %vm1622_vm2, %v1986_v17  ;;  %v350_v12 = vld [vmem:[#allocation2 + $0x1b0] sm:$0xff] }
 0x144   : > { %v1317_v23 = vld [vmem:[#allocation2 + $0x78] sm:$0xff]  ;;  %1669 = vst.msk [vmem:[%s2515_s14 + $0xb8] sm:$0xf] %vm1622_vm2, %v2018_v18 }
 0x145   : > { %v1349_v24 = vld [vmem:[#allocation2 + $0x178] sm:$0xff]  ;;  %v1987_v25 = vpack.c.bf16 %v1317_v23, %v1317_v23  ;;  %1252 = vst.msk [vmem:[#allocation2 + $0x88] sm:$0xff] %vm231_vm1, %v1187_v19  ;;  %1284 = vst.msk [vmem:[#allocation2 + $0x188] sm:$0xff] %vm231_vm1, %v1219_v20 }
 0x146   : > { %v2019_v26 = vpack.c.bf16 %v1349_v24, %v1349_v24  ;;  %v987_v29 = vpop.f32.mrb[36].mxu0  ;;  %v1115_v30 = vpop.f32.mrb[36].mxu1 }
 0x147   : > { %1638 = vst.msk [vmem:[%s2515_s14 + $0x3c] sm:$0xf] %vm1622_vm2, %v1987_v25  ;;  %v1188_v33 = vadd.f32 %v987_v29, %v314_v27  ;;  %v1220_v34 = vadd.f32 %v1115_v30, %v346_v28  ;;  %v989_v35 = vpop.f32.mrb[37].mxu0  ;;  %v1117_v36 = vpop.f32.mrb[37].mxu1 }
 0x148   : > { %1670 = vst.msk [vmem:[%s2515_s14 + $0xbc] sm:$0xf] %vm1622_vm2, %v2019_v26  ;;  %v1318_v37 = vld [vmem:[#allocation2 + $0x80] sm:$0xff]  ;;  %v990_v39 = vpop.f32.mrb[38].mxu0  ;;  %v1118_v40 = vpop.f32.mrb[38].mxu1 }
 0x149   : > { %v1350_v38 = vld [vmem:[#allocation2 + $0x180] sm:$0xff]  ;;  %v1988_v41 = vpack.c.bf16 %v1318_v37, %v1318_v37  ;;  %1253 = vst.msk [vmem:[#allocation2 + $0x90] sm:$0xff] %vm231_vm1, %v1188_v33  ;;  %1285 = vst.msk [vmem:[#allocation2 + $0x190] sm:$0xff] %vm231_vm1, %v1220_v34  ;;  %v1189_v43 = vadd.f32 %v990_v39, %v315_v31  ;;  %v1221_v44 = vadd.f32 %v1118_v40, %v347_v32  ;;  %v992_v45 = vpop.f32.mrb[39].mxu0  ;;  %v1120_v46 = vpop.f32.mrb[39].mxu1  ;;  %v321_v39 = vld [vmem:[#allocation2 + $0xc8] sm:$0xff] }
 0x14a   : > { %v2020_v42 = vpack.c.bf16 %v1350_v38, %v1350_v38  ;;  %v320_v35 = vld [vmem:[#allocation2 + $0xc0] sm:$0xff]  ;;  %v353_v40 = vld [vmem:[#allocation2 + $0x1c8] sm:$0xff] }
 0x14b   : > { %1639 = vst.msk [vmem:[%s2515_s14 + $0x40] sm:$0xf] %vm1622_vm2, %v1988_v41  ;;  %v352_v36 = vld [vmem:[#allocation2 + $0x1c0] sm:$0xff] }
 0x14c   : > { %v1319_v47 = vld [vmem:[#allocation2 + $0x88] sm:$0xff]  ;;  %1671 = vst.msk [vmem:[%s2515_s14 + $0xc0] sm:$0xf] %vm1622_vm2, %v2020_v42 }
 0x14d   : > { %v1351_v48 = vld [vmem:[#allocation2 + $0x188] sm:$0xff]  ;;  %v1989_v49 = vpack.c.bf16 %v1319_v47, %v1319_v47  ;;  %1254 = vst.msk [vmem:[#allocation2 + $0x98] sm:$0xff] %vm231_vm1, %v1189_v43  ;;  %1286 = vst.msk [vmem:[#allocation2 + $0x198] sm:$0xff] %vm231_vm1, %v1221_v44 }
 0x14e   : > { %v2021_v50 = vpack.c.bf16 %v1351_v48, %v1351_v48  ;;  %v995_v53 = vpop.f32.mrb[40].mxu0  ;;  %v1123_v54 = vpop.f32.mrb[40].mxu1 }
 0x14f   : > { %1640 = vst.msk [vmem:[%s2515_s14 + $0x44] sm:$0xf] %vm1622_vm2, %v1989_v49  ;;  %v1190_v57 = vadd.f32 %v995_v53, %v316_v51  ;;  %v1222_v58 = vadd.f32 %v1123_v54, %v348_v52  ;;  %v997_v59 = vpop.f32.mrb[41].mxu0  ;;  %v1125_v60 = vpop.f32.mrb[41].mxu1 }
 0x150   : > { %1672 = vst.msk [vmem:[%s2515_s14 + $0xc4] sm:$0xf] %vm1622_vm2, %v2021_v50  ;;  %v1320_v61 = vld [vmem:[#allocation2 + $0x90] sm:$0xff]  ;;  %v998_v63 = vpop.f32.mrb[42].mxu0  ;;  %v1126_v0 = vpop.f32.mrb[42].mxu1 }
 0x151   : > { %v1352_v62 = vld [vmem:[#allocation2 + $0x190] sm:$0xff]  ;;  %v1990_v1 = vpack.c.bf16 %v1320_v61, %v1320_v61  ;;  %1255 = vst.msk [vmem:[#allocation2 + $0xa0] sm:$0xff] %vm231_vm1, %v1190_v57  ;;  %1287 = vst.msk [vmem:[#allocation2 + $0x1a0] sm:$0xff] %vm231_vm1, %v1222_v58  ;;  %v1191_v3 = vadd.f32 %v998_v63, %v317_v55  ;;  %v1223_v4 = vadd.f32 %v1126_v0, %v349_v56  ;;  %v1000_v5 = vpop.f32.mrb[43].mxu0  ;;  %v1128_v6 = vpop.f32.mrb[43].mxu1  ;;  %v323_v63 = vld [vmem:[#allocation2 + $0xd8] sm:$0xff] }
 0x152   : > { %v2022_v2 = vpack.c.bf16 %v1352_v62, %v1352_v62  ;;  %v322_v59 = vld [vmem:[#allocation2 + $0xd0] sm:$0xff]  ;;  %v355_v0 = vld [vmem:[#allocation2 + $0x1d8] sm:$0xff] }
 0x153   : > { %1641 = vst.msk [vmem:[%s2515_s14 + $0x48] sm:$0xf] %vm1622_vm2, %v1990_v1  ;;  %v354_v60 = vld [vmem:[#allocation2 + $0x1d0] sm:$0xff] }
 0x154   : > { %v1321_v7 = vld [vmem:[#allocation2 + $0x98] sm:$0xff]  ;;  %1673 = vst.msk [vmem:[%s2515_s14 + $0xc8] sm:$0xf] %vm1622_vm2, %v2022_v2 }
 0x155   : > { %v1353_v8 = vld [vmem:[#allocation2 + $0x198] sm:$0xff]  ;;  %v1991_v9 = vpack.c.bf16 %v1321_v7, %v1321_v7  ;;  %1256 = vst.msk [vmem:[#allocation2 + $0xa8] sm:$0xff] %vm231_vm1, %v1191_v3  ;;  %1288 = vst.msk [vmem:[#allocation2 + $0x1a8] sm:$0xff] %vm231_vm1, %v1223_v4 }
 0x156   : > { %v2023_v10 = vpack.c.bf16 %v1353_v8, %v1353_v8  ;;  %v1003_v13 = vpop.f32.mrb[44].mxu0  ;;  %v1131_v14 = vpop.f32.mrb[44].mxu1 }
 0x157   : > { %1642 = vst.msk [vmem:[%s2515_s14 + $0x4c] sm:$0xf] %vm1622_vm2, %v1991_v9  ;;  %v1192_v17 = vadd.f32 %v1003_v13, %v318_v11  ;;  %v1224_v18 = vadd.f32 %v1131_v14, %v350_v12  ;;  %v1005_v19 = vpop.f32.mrb[45].mxu0  ;;  %v1133_v20 = vpop.f32.mrb[45].mxu1 }
 0x158   : > { %1674 = vst.msk [vmem:[%s2515_s14 + $0xcc] sm:$0xf] %vm1622_vm2, %v2023_v10  ;;  %v1322_v21 = vld [vmem:[#allocation2 + $0xa0] sm:$0xff]  ;;  %v1006_v23 = vpop.f32.mrb[46].mxu0  ;;  %v1134_v24 = vpop.f32.mrb[46].mxu1 }
 0x159   : > { %v1354_v22 = vld [vmem:[#allocation2 + $0x1a0] sm:$0xff]  ;;  %v1992_v25 = vpack.c.bf16 %v1322_v21, %v1322_v21  ;;  %1257 = vst.msk [vmem:[#allocation2 + $0xb0] sm:$0xff] %vm231_vm1, %v1192_v17  ;;  %1289 = vst.msk [vmem:[#allocation2 + $0x1b0] sm:$0xff] %vm231_vm1, %v1224_v18  ;;  %v1193_v27 = vadd.f32 %v1006_v23, %v319_v15  ;;  %v1225_v28 = vadd.f32 %v1134_v24, %v351_v16  ;;  %v1008_v29 = vpop.f32.mrb[47].mxu0  ;;  %v1136_v30 = vpop.f32.mrb[47].mxu1  ;;  %v325_v23 = vld [vmem:[#allocation2 + $0xe8] sm:$0xff] }
 0x15a   : > { %v2024_v26 = vpack.c.bf16 %v1354_v22, %v1354_v22  ;;  %v324_v19 = vld [vmem:[#allocation2 + $0xe0] sm:$0xff]  ;;  %v357_v24 = vld [vmem:[#allocation2 + $0x1e8] sm:$0xff] }
 0x15b   : > { %1643 = vst.msk [vmem:[%s2515_s14 + $0x50] sm:$0xf] %vm1622_vm2, %v1992_v25  ;;  %v356_v20 = vld [vmem:[#allocation2 + $0x1e0] sm:$0xff] }
 0x15c   : > { %v1323_v31 = vld [vmem:[#allocation2 + $0xa8] sm:$0xff]  ;;  %1675 = vst.msk [vmem:[%s2515_s14 + $0xd0] sm:$0xf] %vm1622_vm2, %v2024_v26 }
 0x15d   : > { %v1355_v32 = vld [vmem:[#allocation2 + $0x1a8] sm:$0xff]  ;;  %v1993_v33 = vpack.c.bf16 %v1323_v31, %v1323_v31  ;;  %1258 = vst.msk [vmem:[#allocation2 + $0xb8] sm:$0xff] %vm231_vm1, %v1193_v27  ;;  %1290 = vst.msk [vmem:[#allocation2 + $0x1b8] sm:$0xff] %vm231_vm1, %v1225_v28 }
 0x15e   : > { %v2025_v34 = vpack.c.bf16 %v1355_v32, %v1355_v32  ;;  %v1011_v37 = vpop.f32.mrb[48].mxu0  ;;  %v1139_v38 = vpop.f32.mrb[48].mxu1 }
 0x15f   : > { %1644 = vst.msk [vmem:[%s2515_s14 + $0x54] sm:$0xf] %vm1622_vm2, %v1993_v33  ;;  %v1194_v41 = vadd.f32 %v1011_v37, %v320_v35  ;;  %v1226_v42 = vadd.f32 %v1139_v38, %v352_v36  ;;  %v1013_v43 = vpop.f32.mrb[49].mxu0  ;;  %v1141_v44 = vpop.f32.mrb[49].mxu1 }
 0x160   : > { %1676 = vst.msk [vmem:[%s2515_s14 + $0xd4] sm:$0xf] %vm1622_vm2, %v2025_v34  ;;  %v1324_v45 = vld [vmem:[#allocation2 + $0xb0] sm:$0xff]  ;;  %v1014_v47 = vpop.f32.mrb[50].mxu0  ;;  %v1142_v48 = vpop.f32.mrb[50].mxu1 }
 0x161   : > { %v1356_v46 = vld [vmem:[#allocation2 + $0x1b0] sm:$0xff]  ;;  %v1994_v49 = vpack.c.bf16 %v1324_v45, %v1324_v45  ;;  %1259 = vst.msk [vmem:[#allocation2 + $0xc0] sm:$0xff] %vm231_vm1, %v1194_v41  ;;  %1291 = vst.msk [vmem:[#allocation2 + $0x1c0] sm:$0xff] %vm231_vm1, %v1226_v42  ;;  %v1195_v51 = vadd.f32 %v1014_v47, %v321_v39  ;;  %v1227_v52 = vadd.f32 %v1142_v48, %v353_v40  ;;  %v1016_v53 = vpop.f32.mrb[51].mxu0  ;;  %v1144_v54 = vpop.f32.mrb[51].mxu1  ;;  %v327_v47 = vld [vmem:[#allocation2 + $0xf8] sm:$0xff] }
 0x162   : > { %v2026_v50 = vpack.c.bf16 %v1356_v46, %v1356_v46  ;;  %v326_v43 = vld [vmem:[#allocation2 + $0xf0] sm:$0xff]  ;;  %v359_v48 = vld [vmem:[#allocation2 + $0x1f8] sm:$0xff] }
 0x163   : > { %1645 = vst.msk [vmem:[%s2515_s14 + $0x58] sm:$0xf] %vm1622_vm2, %v1994_v49  ;;  %v358_v44 = vld [vmem:[#allocation2 + $0x1f0] sm:$0xff] }
 0x164   : > { %v1325_v55 = vld [vmem:[#allocation2 + $0xb8] sm:$0xff]  ;;  %1677 = vst.msk [vmem:[%s2515_s14 + $0xd8] sm:$0xf] %vm1622_vm2, %v2026_v50 }
 0x165   : > { %v1357_v56 = vld [vmem:[#allocation2 + $0x1b8] sm:$0xff]  ;;  %v1995_v57 = vpack.c.bf16 %v1325_v55, %v1325_v55  ;;  %1260 = vst.msk [vmem:[#allocation2 + $0xc8] sm:$0xff] %vm231_vm1, %v1195_v51  ;;  %1292 = vst.msk [vmem:[#allocation2 + $0x1c8] sm:$0xff] %vm231_vm1, %v1227_v52 }
 0x166   : > { %v2027_v58 = vpack.c.bf16 %v1357_v56, %v1357_v56  ;;  %v1019_v61 = vpop.f32.mrb[52].mxu0  ;;  %v1147_v62 = vpop.f32.mrb[52].mxu1 }
 0x167   : > { %1646 = vst.msk [vmem:[%s2515_s14 + $0x5c] sm:$0xf] %vm1622_vm2, %v1995_v57  ;;  %v1196_v1 = vadd.f32 %v1019_v61, %v322_v59  ;;  %v1228_v2 = vadd.f32 %v1147_v62, %v354_v60  ;;  %v1021_v3 = vpop.f32.mrb[53].mxu0  ;;  %v1149_v4 = vpop.f32.mrb[53].mxu1 }
 0x168   : > { %1678 = vst.msk [vmem:[%s2515_s14 + $0xdc] sm:$0xf] %vm1622_vm2, %v2027_v58  ;;  %v1326_v5 = vld [vmem:[#allocation2 + $0xc0] sm:$0xff]  ;;  %v1022_v7 = vpop.f32.mrb[54].mxu0  ;;  %v1150_v8 = vpop.f32.mrb[54].mxu1 }
 0x169   : > { %v1358_v6 = vld [vmem:[#allocation2 + $0x1c0] sm:$0xff]  ;;  %v1996_v9 = vpack.c.bf16 %v1326_v5, %v1326_v5  ;;  %1261 = vst.msk [vmem:[#allocation2 + $0xd0] sm:$0xff] %vm231_vm1, %v1196_v1  ;;  %1293 = vst.msk [vmem:[#allocation2 + $0x1d0] sm:$0xff] %vm231_vm1, %v1228_v2  ;;  %v1197_v11 = vadd.f32 %v1022_v7, %v323_v63  ;;  %v1229_v12 = vadd.f32 %v1150_v8, %v355_v0  ;;  %v1024_v13 = vpop.f32.mrb[55].mxu0  ;;  %v1152_v14 = vpop.f32.mrb[55].mxu1 }
 0x16a   : > { %v2028_v10 = vpack.c.bf16 %v1358_v6, %v1358_v6 }
 0x16b   : > { %1647 = vst.msk [vmem:[%s2515_s14 + $0x60] sm:$0xf] %vm1622_vm2, %v1996_v9 }
 0x16c   : > { %v1327_v15 = vld [vmem:[#allocation2 + $0xc8] sm:$0xff]  ;;  %1679 = vst.msk [vmem:[%s2515_s14 + $0xe0] sm:$0xf] %vm1622_vm2, %v2028_v10 }
 0x16d   : > { %v1359_v16 = vld [vmem:[#allocation2 + $0x1c8] sm:$0xff]  ;;  %v1997_v17 = vpack.c.bf16 %v1327_v15, %v1327_v15  ;;  %1262 = vst.msk [vmem:[#allocation2 + $0xd8] sm:$0xff] %vm231_vm1, %v1197_v11  ;;  %1294 = vst.msk [vmem:[#allocation2 + $0x1d8] sm:$0xff] %vm231_vm1, %v1229_v12 }
 0x16e   : > { %v2029_v18 = vpack.c.bf16 %v1359_v16, %v1359_v16  ;;  %v1027_v21 = vpop.f32.mrb[56].mxu0  ;;  %v1155_v22 = vpop.f32.mrb[56].mxu1 }
 0x16f   : > { %1648 = vst.msk [vmem:[%s2515_s14 + $0x64] sm:$0xf] %vm1622_vm2, %v1997_v17  ;;  %v1198_v25 = vadd.f32 %v1027_v21, %v324_v19  ;;  %v1230_v26 = vadd.f32 %v1155_v22, %v356_v20  ;;  %v1029_v27 = vpop.f32.mrb[57].mxu0  ;;  %v1157_v28 = vpop.f32.mrb[57].mxu1 }
 0x170   : > { %1680 = vst.msk [vmem:[%s2515_s14 + $0xe4] sm:$0xf] %vm1622_vm2, %v2029_v18  ;;  %v1328_v29 = vld [vmem:[#allocation2 + $0xd0] sm:$0xff]  ;;  %v1030_v31 = vpop.f32.mrb[58].mxu0  ;;  %v1158_v32 = vpop.f32.mrb[58].mxu1 }
 0x171   : > { %v1360_v30 = vld [vmem:[#allocation2 + $0x1d0] sm:$0xff]  ;;  %v1998_v33 = vpack.c.bf16 %v1328_v29, %v1328_v29  ;;  %1263 = vst.msk [vmem:[#allocation2 + $0xe0] sm:$0xff] %vm231_vm1, %v1198_v25  ;;  %1295 = vst.msk [vmem:[#allocation2 + $0x1e0] sm:$0xff] %vm231_vm1, %v1230_v26  ;;  %v1199_v35 = vadd.f32 %v1030_v31, %v325_v23  ;;  %v1231_v36 = vadd.f32 %v1158_v32, %v357_v24  ;;  %v1032_v37 = vpop.f32.mrb[59].mxu0  ;;  %v1160_v38 = vpop.f32.mrb[59].mxu1 }
 0x172   : > { %v2030_v34 = vpack.c.bf16 %v1360_v30, %v1360_v30 }
 0x173   : > { %1649 = vst.msk [vmem:[%s2515_s14 + $0x68] sm:$0xf] %vm1622_vm2, %v1998_v33 }
 0x174   : > { %v1329_v39 = vld [vmem:[#allocation2 + $0xd8] sm:$0xff]  ;;  %1681 = vst.msk [vmem:[%s2515_s14 + $0xe8] sm:$0xf] %vm1622_vm2, %v2030_v34 }
 0x175   : > { %v1361_v40 = vld [vmem:[#allocation2 + $0x1d8] sm:$0xff]  ;;  %v1999_v41 = vpack.c.bf16 %v1329_v39, %v1329_v39  ;;  %1264 = vst.msk [vmem:[#allocation2 + $0xe8] sm:$0xff] %vm231_vm1, %v1199_v35  ;;  %1296 = vst.msk [vmem:[#allocation2 + $0x1e8] sm:$0xff] %vm231_vm1, %v1231_v36 }
 0x176   : > { %v2031_v42 = vpack.c.bf16 %v1361_v40, %v1361_v40  ;;  %v1035_v45 = vpop.f32.mrb[60].mxu0  ;;  %v1163_v46 = vpop.f32.mrb[60].mxu1 }
 0x177   : > { %1650 = vst.msk [vmem:[%s2515_s14 + $0x6c] sm:$0xf] %vm1622_vm2, %v1999_v41  ;;  %v1200_v49 = vadd.f32 %v1035_v45, %v326_v43  ;;  %v1232_v50 = vadd.f32 %v1163_v46, %v358_v44  ;;  %v1037_v51 = vpop.f32.mrb[61].mxu0  ;;  %v1165_v52 = vpop.f32.mrb[61].mxu1 }
 0x178   : > { %1682 = vst.msk [vmem:[%s2515_s14 + $0xec] sm:$0xf] %vm1622_vm2, %v2031_v42  ;;  %v1330_v53 = vld [vmem:[#allocation2 + $0xe0] sm:$0xff]  ;;  %v1038_v55 = vpop.f32.mrb[62].mxu0  ;;  %v1166_v56 = vpop.f32.mrb[62].mxu1 }
 0x179   : > { %v1362_v54 = vld [vmem:[#allocation2 + $0x1e0] sm:$0xff]  ;;  %v2000_v57 = vpack.c.bf16 %v1330_v53, %v1330_v53  ;;  %1265 = vst.msk [vmem:[#allocation2 + $0xf0] sm:$0xff] %vm231_vm1, %v1200_v49  ;;  %1297 = vst.msk [vmem:[#allocation2 + $0x1f0] sm:$0xff] %vm231_vm1, %v1232_v50  ;;  %v1201_v59 = vadd.f32 %v1038_v55, %v327_v47  ;;  %v1233_v60 = vadd.f32 %v1166_v56, %v359_v48  ;;  %v1040_v61 = vpop.f32.mrb[63].mxu0  ;;  %v1168_v62 = vpop.f32.mrb[63].mxu1 }
 0x17a   : > { %v2032_v58 = vpack.c.bf16 %v1362_v54, %v1362_v54 }
 0x17b   : > { %1651 = vst.msk [vmem:[%s2515_s14 + $0x70] sm:$0xf] %vm1622_vm2, %v2000_v57 }
 0x17c   : > { %v1331_v63 = vld [vmem:[#allocation2 + $0xe8] sm:$0xff]  ;;  %1683 = vst.msk [vmem:[%s2515_s14 + $0xf0] sm:$0xf] %vm1622_vm2, %v2032_v58 }
 0x17d   : > { %v1363_v0 = vld [vmem:[#allocation2 + $0x1e8] sm:$0xff]  ;;  %v2001_v1 = vpack.c.bf16 %v1331_v63, %v1331_v63  ;;  %1266 = vst.msk [vmem:[#allocation2 + $0xf8] sm:$0xff] %vm231_vm1, %v1201_v59  ;;  %1298 = vst.msk [vmem:[#allocation2 + $0x1f8] sm:$0xff] %vm231_vm1, %v1233_v60 }
 0x17e   : > { %v2033_v2 = vpack.c.bf16 %v1363_v0, %v1363_v0 }
 0x17f   : > { %1652 = vst.msk [vmem:[%s2515_s14 + $0x74] sm:$0xf] %vm1622_vm2, %v2001_v1 }
 0x180   : > { %1684 = vst.msk [vmem:[%s2515_s14 + $0xf4] sm:$0xf] %vm1622_vm2, %v2033_v2  ;;  %v1332_v3 = vld [vmem:[#allocation2 + $0xf0] sm:$0xff] }
 0x181   : > { %v1364_v4 = vld [vmem:[#allocation2 + $0x1f0] sm:$0xff]  ;;  %v2002_v5 = vpack.c.bf16 %v1332_v3, %v1332_v3 }
 0x182   : > { %v2034_v6 = vpack.c.bf16 %v1364_v4, %v1364_v4 }
 0x183   : > { %1653 = vst.msk [vmem:[%s2515_s14 + $0x78] sm:$0xf] %vm1622_vm2, %v2002_v5 }
 0x184   : > { %v1333_v7 = vld [vmem:[#allocation2 + $0xf8] sm:$0xff]  ;;  %1685 = vst.msk [vmem:[%s2515_s14 + $0xf8] sm:$0xf] %vm1622_vm2, %v2034_v6 }
 0x185   : > { %v1365_v8 = vld [vmem:[#allocation2 + $0x1f8] sm:$0xff]  ;;  %v2003_v9 = vpack.c.bf16 %v1333_v7, %v1333_v7 }
 0x186   : > { %v2035_v10 = vpack.c.bf16 %v1365_v8, %v1365_v8 }
 0x187   : > { %1654 = vst.msk [vmem:[%s2515_s14 + $0x7c] sm:$0xf] %vm1622_vm2, %v2003_v9 }
 0x188   : > { %1686 = vst.msk [vmem:[%s2515_s14 + $0xfc] sm:$0xf] %vm1622_vm2, %v2035_v10 }
 0x189 PF: > { %s12_s11 = sadd.s32 1, %s2207_s11   ;;  %s2717_s9 = smov %s2203_s10 }
 0x18a   : > { %p9_p5 = scmp.ge.s32.totalorder %s12_s11, 6   ;;  %s2718_s10 = smov %s2720_s12 }
 0x18c   :  { %11 = sbr.rel (!%p9_p5) target bundleno = 2 (0x2), region = 69 }

// kernel: cond_cnn_generator_forward.21
= control target key start
LH: loop header
LB: loop body
LE: loop exit
PB: predicated region body
PF: predicated region fallthrough
CT: control target
= control target key end

     0   :  { %s2052_s9 = smov 0   ;;  %s2054_s10 = smov 0   ;;  %s2507_s0 = inlined_call_operand.vmem [shape: bf16[8192,72], index: 0, kind: input, shape index: {}]   ;;  %s2508_s1 = inlined_call_operand.vmem [shape: bf16[72,8], index: 1, kind: input, shape index: {}]   ;;  %s2509_s2 = inlined_call_operand.vmem [shape: bf16[8192,8], index: 2, kind: output, shape index: {}]  }
   0x1   :  { %s2056_s11 = smov 0  }
   0x2 LB: > { %s31_s12 = sadd.s32 1, %s2030_s10  ;;  %p1623_p0 = scmp.ge.s32.totalorder %s2034_s11, 1  ;;  %s2034_s11 = sphi %s2056_s11, %s12_s11   ;;  %s2030_s10 = sphi %s2054_s10, %s2511_s10   ;;  %s2026_s9 = sphi %s2052_s9, %s2510_s9  }
   0x3   : > { %p33_p1 = scmp.ge.s32.totalorder %s31_s12, 16  ;;  %p155_p2 = scmp.lt.s32.totalorder %s2034_s11, 17 }
   0x5   : > { %s2513_s12 = smov (%p33_p1, %s31_s12), 0  ;;  %p156_p3 = pnand %p1623_p0, %p155_p2 }
   0x6   : > { %v1975_v0 = vld [vmem:[%s2508_s1] sm:$0xff] (!%p156_p3)   ;;  %v2076_v1 = vld [vmem:[%s2508_s1 + $0x8] sm:$0xff] (!%p156_p3)   ;;  %s1624_s17 = sshll.u32 (!%p156_p3), %s2026_s9, 6  ;;  %v2083_v2 = vld [vmem:[%s2508_s1 + $0x10] sm:$0xff] (!%p156_p3)   ;;  %vm223_vm0 = vcmask (!%p156_p3), 64512   ;;  %v2036_v3 = vmov (!%p156_p3), 0.0  }
   0x7   : > { %159 = sbr.rel (%p156_p3) target bundleno = 319 (0x13f), region = 28  ;;  %1864 = vmatprep.subr.bf16.mxu0 (!%p156_p3), %v1975_v0  ;;  %1938 = vmatprep.subr.bf16.mxu1 (!%p156_p3), %v1975_v0  ;;  %p192_p4 = scmp.lt.s32.totalorder (!%p156_p3), %s1624_s17, 1023  ;;  %226 = vst.msk [vmem:[#allocation2 + $0x10] sm:$0xff] (!%p156_p3), %vm223_vm0, %v2036_v3  ;;  %224 = vst.msk [vmem:[#allocation2] sm:$0xff] (!%p156_p3), %vm223_vm0, %v2036_v3  ;;  %v1978_v4 = vld [vmem:[%s2508_s1 + $0x18] sm:$0xff] (!%p156_p3)   ;;  %vm612_vm1 = vcmask (!%p156_p3), 588800  }
   0x8   : > { %1865 = vmatpush3.bf16.msra.mxu0 (!%p156_p3), %v1975_v0  ;;  %1943 = vmatpush3.bf16.msra.mxu1 (!%p156_p3), %v1975_v0  ;;  %225 = vst.msk [vmem:[#allocation2 + $0x8] sm:$0xff] (!%p156_p3), %vm223_vm0, %v2036_v3  ;;  %227 = vst.msk [vmem:[#allocation2 + $0x18] sm:$0xff] (!%p156_p3), %vm223_vm0, %v2036_v3  ;;  %v1979_v7 = vld [vmem:[%s2508_s1 + $0x20] ss:$0 sps:$4 sm:$0xff] (!%p156_p3)   ;;  %vm709_vm2 = vcmask (!%p156_p3), 1043456   ;;  %vm1454_vm3 = vcmask (!%p156_p3), 60416  }
   0x9   : > { %1866 = vmatprep.subr.bf16.mxu0 (!%p156_p3), %v2076_v1  ;;  %1939 = vmatprep.subr.bf16.mxu1 (!%p156_p3), %v2076_v1  ;;  %228 = vst.msk [vmem:[#allocation2 + $0x20] sm:$0xff] (!%p156_p3), %vm223_vm0, %v2036_v3  ;;  %229 = vst.msk [vmem:[#allocation2 + $0x28] sm:$0xff] (!%p156_p3), %vm223_vm0, %v2036_v3  ;;  %v711_v8 = vsel (!%p156_p3), %vm709_vm2, %v1979_v7, 0 }
   0xa   : > { %230 = vst.msk [vmem:[#allocation2 + $0x30] sm:$0xff] (!%p156_p3), %vm223_vm0, %v2036_v3  ;;  %231 = vst.msk [vmem:[#allocation2 + $0x38] sm:$0xff] (!%p156_p3), %vm223_vm0, %v2036_v3 }
   0xb   : > { %232 = vst.msk [vmem:[#allocation2 + $0x40] sm:$0xff] (!%p156_p3), %vm223_vm0, %v2036_v3  ;;  %233 = vst.msk [vmem:[#allocation2 + $0x48] sm:$0xff] (!%p156_p3), %vm223_vm0, %v2036_v3 }
   0xc   : > { %234 = vst.msk [vmem:[#allocation2 + $0x50] sm:$0xff] (!%p156_p3), %vm223_vm0, %v2036_v3  ;;  %235 = vst.msk [vmem:[#allocation2 + $0x58] sm:$0xff] (!%p156_p3), %vm223_vm0, %v2036_v3  ;;  %1867 = vmatpush3.bf16.msra.mxu0 (!%p156_p3), %v2076_v1  ;;  %1944 = vmatpush3.bf16.msra.mxu1 (!%p156_p3), %v2076_v1 }
   0xd   : > { %236 = vst.msk [vmem:[#allocation2 + $0x60] sm:$0xff] (!%p156_p3), %vm223_vm0, %v2036_v3  ;;  %237 = vst.msk [vmem:[#allocation2 + $0x68] sm:$0xff] (!%p156_p3), %vm223_vm0, %v2036_v3  ;;  %1868 = vmatprep.subr.bf16.mxu0 (!%p156_p3), %v2083_v2  ;;  %1940 = vmatprep.subr.bf16.mxu1 (!%p156_p3), %v2083_v2 }
   0xe   : > { %s2515_s17 = smov (!%p192_p4, %s1624_s17), 1023  ;;  %238 = vst.msk [vmem:[#allocation2 + $0x70] sm:$0xff] %vm223_vm0, %v2036_v3  ;;  %239 = vst.msk [vmem:[#allocation2 + $0x78] sm:$0xff] %vm223_vm0, %v2036_v3  ;;  %v290_v39 = vld [vmem:[#allocation2 + $0x10] sm:$0xff]  ;;  %v288_v41 = vld [vmem:[#allocation2] sm:$0xff] }
   0xf   : > { %s1625_s20 = sshll.u32 %s2515_s17, 2  ;;  %240 = vst.msk [vmem:[#allocation2 + $0x80] sm:$0xff] %vm223_vm0, %v2036_v3  ;;  %241 = vst.msk [vmem:[#allocation2 + $0x88] sm:$0xff] %vm223_vm0, %v2036_v3  ;;  %v291_v45 = vld [vmem:[#allocation2 + $0x18] sm:$0xff]  ;;  %v289_v51 = vld [vmem:[#allocation2 + $0x8] sm:$0xff] }
  0x10   : > { %242 = vst.msk [vmem:[#allocation2 + $0x90] sm:$0xff] %vm223_vm0, %v2036_v3  ;;  %243 = vst.msk [vmem:[#allocation2 + $0x98] sm:$0xff] %vm223_vm0, %v2036_v3  ;;  %s2226_s25 = scalar_lea.vmem %s2507_s0, %s1625_s20  ;;  %1869 = vmatpush3.bf16.msra.mxu0 %v2083_v2  ;;  %1945 = vmatpush3.bf16.msra.mxu1 %v2083_v2  ;;  %v292_v1 = vld [vmem:[#allocation2 + $0x20] sm:$0xff]  ;;  %s2312_s30 = scalar_lea.vmem %s2509_s2, %s1625_s20 }
  0x11   : > { %244 = vst.msk [vmem:[#allocation2 + $0xa0] sm:$0xff] %vm223_vm0, %v2036_v3  ;;  %245 = vst.msk [vmem:[#allocation2 + $0xa8] sm:$0xff] %vm223_vm0, %v2036_v3  ;;  %v1980_v5 = vld [vmem:[%s2226_s25] sm:$0xff]   ;;  %1870 = vmatprep.subr.bf16.mxu0 %v1978_v4  ;;  %1941 = vmatprep.subr.bf16.mxu1 %v1978_v4  ;;  %v1982_v9 = vld [vmem:[%s2226_s25 + $0x8] sm:$0xff]  }
  0x12   : > { %246 = vst.msk [vmem:[#allocation2 + $0xb0] sm:$0xff] %vm223_vm0, %v2036_v3  ;;  %247 = vst.msk [vmem:[#allocation2 + $0xb8] sm:$0xff] %vm223_vm0, %v2036_v3  ;;  %v1981_v6 = vld [vmem:[%s2226_s25 + $0x80] sm:$0xff]   ;;  %1874 = vmatprep.mubr.msk.bf16.mxu0 %vm612_vm1, %v1980_v5  ;;  %v1983_v10 = vld [vmem:[%s2226_s25 + $0x88] sm:$0xff]  }
  0x13   : > { %248 = vst.msk [vmem:[#allocation2 + $0xc0] sm:$0xff] %vm223_vm0, %v2036_v3  ;;  %249 = vst.msk [vmem:[#allocation2 + $0xc8] sm:$0xff] %vm223_vm0, %v2036_v3  ;;  %1906 = vmatprep.mubr.msk.bf16.mxu1 %vm612_vm1, %v1981_v6  ;;  %v1984_v11 = vld [vmem:[%s2226_s25 + $0x10] sm:$0xff]   ;;  %v1986_v13 = vld [vmem:[%s2226_s25 + $0x18] sm:$0xff]  }
  0x14   : > { %250 = vst.msk [vmem:[#allocation2 + $0xd0] sm:$0xff] %vm223_vm0, %v2036_v3  ;;  %251 = vst.msk [vmem:[#allocation2 + $0xd8] sm:$0xff] %vm223_vm0, %v2036_v3  ;;  %1871 = vmatpush3.bf16.msra.mxu0 %v1978_v4  ;;  %1946 = vmatpush3.bf16.msra.mxu1 %v1978_v4  ;;  %v1985_v12 = vld [vmem:[%s2226_s25 + $0x90] sm:$0xff]   ;;  %v1987_v14 = vld [vmem:[%s2226_s25 + $0x98] sm:$0xff]  }
  0x15   : > { %252 = vst.msk [vmem:[#allocation2 + $0xe0] sm:$0xff] %vm223_vm0, %v2036_v3  ;;  %253 = vst.msk [vmem:[#allocation2 + $0xe8] sm:$0xff] %vm223_vm0, %v2036_v3  ;;  %1948 = vmatprep.subr.msk.bf16.mxu0 %vm709_vm2, %v1979_v7  ;;  %1949 = vmatprep.subr.msk.bf16.mxu1 %vm709_vm2, %v1979_v7  ;;  %v1988_v15 = vld [vmem:[%s2226_s25 + $0x20] sm:$0xff]   ;;  %v1990_v17 = vld [vmem:[%s2226_s25 + $0x28] sm:$0xff]  }
  0x16   : > { %254 = vst.msk [vmem:[#allocation2 + $0xf0] sm:$0xff] %vm223_vm0, %v2036_v3  ;;  %255 = vst.msk [vmem:[#allocation2 + $0xf8] sm:$0xff] %vm223_vm0, %v2036_v3  ;;  %v1989_v16 = vld [vmem:[%s2226_s25 + $0xa0] sm:$0xff]   ;;  %v1991_v18 = vld [vmem:[%s2226_s25 + $0xa8] sm:$0xff]  }
  0x17   : > { %256 = vst.msk [vmem:[#allocation2 + $0x100] sm:$0xff] %vm223_vm0, %v2036_v3  ;;  %257 = vst.msk [vmem:[#allocation2 + $0x108] sm:$0xff] %vm223_vm0, %v2036_v3  ;;  %v1992_v19 = vld [vmem:[%s2226_s25 + $0x30] sm:$0xff]   ;;  %v1994_v21 = vld [vmem:[%s2226_s25 + $0x38] sm:$0xff]  }
  0x18   : > { %258 = vst.msk [vmem:[#allocation2 + $0x110] sm:$0xff] %vm223_vm0, %v2036_v3  ;;  %259 = vst.msk [vmem:[#allocation2 + $0x118] sm:$0xff] %vm223_vm0, %v2036_v3  ;;  %1873 = vmatpush3.bf16.msra.mxu0 %v711_v8  ;;  %1947 = vmatpush3.bf16.msra.mxu1 %v711_v8  ;;  %v1993_v20 = vld [vmem:[%s2226_s25 + $0xb0] sm:$0xff]   ;;  %v1995_v22 = vld [vmem:[%s2226_s25 + $0xb8] sm:$0xff]  }
  0x19   : > { %260 = vst.msk [vmem:[#allocation2 + $0x120] sm:$0xff] %vm223_vm0, %v2036_v3  ;;  %261 = vst.msk [vmem:[#allocation2 + $0x128] sm:$0xff] %vm223_vm0, %v2036_v3  ;;  %v1996_v23 = vld [vmem:[%s2226_s25 + $0x40] sm:$0xff]   ;;  %v1998_v25 = vld [vmem:[%s2226_s25 + $0x48] sm:$0xff]  }
  0x1a   : > { %262 = vst.msk [vmem:[#allocation2 + $0x130] sm:$0xff] %vm223_vm0, %v2036_v3  ;;  %263 = vst.msk [vmem:[#allocation2 + $0x138] sm:$0xff] %vm223_vm0, %v2036_v3  ;;  %v1997_v24 = vld [vmem:[%s2226_s25 + $0xc0] sm:$0xff]   ;;  %v1999_v26 = vld [vmem:[%s2226_s25 + $0xc8] sm:$0xff]  }
  0x1b   : > { %264 = vst.msk [vmem:[#allocation2 + $0x140] sm:$0xff] %vm223_vm0, %v2036_v3  ;;  %265 = vst.msk [vmem:[#allocation2 + $0x148] sm:$0xff] %vm223_vm0, %v2036_v3  ;;  %1875 = vmatmul.mubr.msk.bf16.vlgmr.msra.gmra.mrb[0].mxu0 %vm612_vm1, %v1982_v9  ;;  %1907 = vmatmul.mubr.msk.bf16.vlgmr.msra.gmra.mrb[0].mxu1 %vm612_vm1, %v1983_v10  ;;  %v2000_v27 = vld [vmem:[%s2226_s25 + $0x50] sm:$0xff]   ;;  %v2002_v29 = vld [vmem:[%s2226_s25 + $0x58] sm:$0xff]  }
  0x1c   : > { %266 = vst.msk [vmem:[#allocation2 + $0x150] sm:$0xff] %vm223_vm0, %v2036_v3  ;;  %267 = vst.msk [vmem:[#allocation2 + $0x158] sm:$0xff] %vm223_vm0, %v2036_v3  ;;  %1878 = vmatprep.mubr.msk.bf16.mxu0 %vm612_vm1, %v1984_v11  ;;  %1910 = vmatprep.mubr.msk.bf16.mxu1 %vm612_vm1, %v1985_v12  ;;  %v2001_v28 = vld [vmem:[%s2226_s25 + $0xd0] sm:$0xff]   ;;  %v2003_v30 = vld [vmem:[%s2226_s25 + $0xd8] sm:$0xff]  }
  0x1d   : > { %268 = vst.msk [vmem:[#allocation2 + $0x160] sm:$0xff] %vm223_vm0, %v2036_v3  ;;  %269 = vst.msk [vmem:[#allocation2 + $0x168] sm:$0xff] %vm223_vm0, %v2036_v3  ;;  %v2004_v31 = vld [vmem:[%s2226_s25 + $0x60] sm:$0xff]   ;;  %v2006_v33 = vld [vmem:[%s2226_s25 + $0x68] sm:$0xff]  }
  0x1e   : > { %270 = vst.msk [vmem:[#allocation2 + $0x170] sm:$0xff] %vm223_vm0, %v2036_v3  ;;  %271 = vst.msk [vmem:[#allocation2 + $0x178] sm:$0xff] %vm223_vm0, %v2036_v3  ;;  %v2005_v32 = vld [vmem:[%s2226_s25 + $0xe0] sm:$0xff]   ;;  %v2007_v34 = vld [vmem:[%s2226_s25 + $0xe8] sm:$0xff]  }
  0x1f   : > { %272 = vst.msk [vmem:[#allocation2 + $0x180] sm:$0xff] %vm223_vm0, %v2036_v3  ;;  %273 = vst.msk [vmem:[#allocation2 + $0x188] sm:$0xff] %vm223_vm0, %v2036_v3  ;;  %v2008_v35 = vld [vmem:[%s2226_s25 + $0x70] sm:$0xff]   ;;  %v2010_v37 = vld [vmem:[%s2226_s25 + $0x78] sm:$0xff]  }
  0x20   : > { %274 = vst.msk [vmem:[#allocation2 + $0x190] sm:$0xff] %vm223_vm0, %v2036_v3  ;;  %275 = vst.msk [vmem:[#allocation2 + $0x198] sm:$0xff] %vm223_vm0, %v2036_v3  ;;  %v2009_v36 = vld [vmem:[%s2226_s25 + $0xf0] sm:$0xff]   ;;  %v2011_v38 = vld [vmem:[%s2226_s25 + $0xf8] sm:$0xff]  }
  0x21   : > { %276 = vst.msk [vmem:[#allocation2 + $0x1a0] sm:$0xff] %vm223_vm0, %v2036_v3  ;;  %277 = vst.msk [vmem:[#allocation2 + $0x1a8] sm:$0xff] %vm223_vm0, %v2036_v3  ;;  %v322_v40 = vld [vmem:[#allocation2 + $0x110] sm:$0xff]  ;;  %v320_v42 = vld [vmem:[#allocation2 + $0x100] sm:$0xff] }
  0x22   : > { %278 = vst.msk [vmem:[#allocation2 + $0x1b0] sm:$0xff] %vm223_vm0, %v2036_v3  ;;  %279 = vst.msk [vmem:[#allocation2 + $0x1b8] sm:$0xff] %vm223_vm0, %v2036_v3  ;;  %v323_v46 = vld [vmem:[#allocation2 + $0x118] sm:$0xff]  ;;  %v321_v52 = vld [vmem:[#allocation2 + $0x108] sm:$0xff] }
  0x23   : > { %280 = vst.msk [vmem:[#allocation2 + $0x1c0] sm:$0xff] %vm223_vm0, %v2036_v3  ;;  %281 = vst.msk [vmem:[#allocation2 + $0x1c8] sm:$0xff] %vm223_vm0, %v2036_v3  ;;  %1879 = vmatmul.mubr.msk.bf16.gmra.mrb[4].mxu0 %vm612_vm1, %v1986_v13  ;;  %1911 = vmatmul.mubr.msk.bf16.gmra.mrb[4].mxu1 %vm612_vm1, %v1987_v14  ;;  %v294_v63 = vld [vmem:[#allocation2 + $0x30] sm:$0xff]  ;;  %v324_v2 = vld [vmem:[#allocation2 + $0x120] sm:$0xff] }
  0x24   : > { %282 = vst.msk [vmem:[#allocation2 + $0x1d0] sm:$0xff] %vm223_vm0, %v2036_v3  ;;  %283 = vst.msk [vmem:[#allocation2 + $0x1d8] sm:$0xff] %vm223_vm0, %v2036_v3  ;;  %1882 = vmatprep.mubr.msk.bf16.mxu0 %vm612_vm1, %v1988_v15  ;;  %1914 = vmatprep.mubr.msk.bf16.mxu1 %vm612_vm1, %v1989_v16  ;;  %v326_v0 = vld [vmem:[#allocation2 + $0x130] sm:$0xff]  ;;  %v295_v5 = vld [vmem:[#allocation2 + $0x38] sm:$0xff] }
  0x25   : > { %284 = vst.msk [vmem:[#allocation2 + $0x1e0] sm:$0xff] %vm223_vm0, %v2036_v3  ;;  %285 = vst.msk [vmem:[#allocation2 + $0x1e8] sm:$0xff] %vm223_vm0, %v2036_v3  ;;  %v327_v6 = vld [vmem:[#allocation2 + $0x138] sm:$0xff]  ;;  %v293_v11 = vld [vmem:[#allocation2 + $0x28] sm:$0xff] }
  0x26   : > { %286 = vst.msk [vmem:[#allocation2 + $0x1f0] sm:$0xff] %vm223_vm0, %v2036_v3  ;;  %287 = vst.msk [vmem:[#allocation2 + $0x1f8] sm:$0xff] %vm223_vm0, %v2036_v3  ;;  %v325_v12 = vld [vmem:[#allocation2 + $0x128] sm:$0xff] }
  0x2b   : > { %1883 = vmatmul.mubr.msk.bf16.gmra.mrb[8].mxu0 %vm612_vm1, %v1990_v17  ;;  %1915 = vmatmul.mubr.msk.bf16.gmra.mrb[8].mxu1 %vm612_vm1, %v1991_v18 }
  0x2c   : > { %1886 = vmatprep.mubr.msk.bf16.mxu0 %vm612_vm1, %v1992_v19  ;;  %1918 = vmatprep.mubr.msk.bf16.mxu1 %vm612_vm1, %v1993_v20 }
  0x33   : > { %1887 = vmatmul.mubr.msk.bf16.gmra.mrb[12].mxu0 %vm612_vm1, %v1994_v21  ;;  %1919 = vmatmul.mubr.msk.bf16.gmra.mrb[12].mxu1 %vm612_vm1, %v1995_v22 }
  0x34   : > { %1890 = vmatprep.mubr.msk.bf16.mxu0 %vm612_vm1, %v1996_v23  ;;  %1922 = vmatprep.mubr.msk.bf16.mxu1 %vm612_vm1, %v1997_v24 }
  0x3b   : > { %1891 = vmatmul.mubr.msk.bf16.gmra.mrb[16].mxu0 %vm612_vm1, %v1998_v25  ;;  %1923 = vmatmul.mubr.msk.bf16.gmra.mrb[16].mxu1 %vm612_vm1, %v1999_v26 }
  0x3c   : > { %1894 = vmatprep.mubr.msk.bf16.mxu0 %vm612_vm1, %v2000_v27  ;;  %1926 = vmatprep.mubr.msk.bf16.mxu1 %vm612_vm1, %v2001_v28 }
  0x43   : > { %1895 = vmatmul.mubr.msk.bf16.gmra.mrb[20].mxu0 %vm612_vm1, %v2002_v29  ;;  %1927 = vmatmul.mubr.msk.bf16.gmra.mrb[20].mxu1 %vm612_vm1, %v2003_v30 }
  0x44   : > { %1898 = vmatprep.mubr.msk.bf16.mxu0 %vm612_vm1, %v2004_v31  ;;  %1930 = vmatprep.mubr.msk.bf16.mxu1 %vm612_vm1, %v2005_v32 }
  0x4b   : > { %1899 = vmatmul.mubr.msk.bf16.gmra.mrb[24].mxu0 %vm612_vm1, %v2006_v33  ;;  %1931 = vmatmul.mubr.msk.bf16.gmra.mrb[24].mxu1 %vm612_vm1, %v2007_v34 }
  0x4c   : > { %1902 = vmatprep.mubr.msk.bf16.mxu0 %vm612_vm1, %v2008_v35  ;;  %1934 = vmatprep.mubr.msk.bf16.mxu1 %vm612_vm1, %v2009_v36 }
  0x53   : > { %1903 = vmatmul.mubr.msk.bf16.gmra.mrb[28].mxu0 %vm612_vm1, %v2010_v37  ;;  %1935 = vmatmul.mubr.msk.bf16.gmra.mrb[28].mxu1 %vm612_vm1, %v2011_v38 }
  0xee   : > { %v1876_v43 = vpop.f32.mrb[0].mxu0  ;;  %v1908_v44 = vpop.f32.mrb[0].mxu1 }
  0xef   : > { %v1004_v47 = vadd.f32 %v1876_v43, %v290_v39  ;;  %v1036_v48 = vadd.f32 %v1908_v44, %v322_v40  ;;  %v747_v49 = vpop.f32.mrb[1].mxu0  ;;  %v875_v50 = vpop.f32.mrb[1].mxu1  ;;  %v298_v39 = vld [vmem:[#allocation2 + $0x50] sm:$0xff] }
  0xf0   : > { %v1002_v53 = vadd.f32 %v747_v49, %v288_v41  ;;  %v1034_v54 = vadd.f32 %v875_v50, %v320_v42  ;;  %v1877_v55 = vpop.f32.mrb[2].mxu0  ;;  %v1909_v56 = vpop.f32.mrb[2].mxu1  ;;  %v330_v40 = vld [vmem:[#allocation2 + $0x150] sm:$0xff]  ;;  %v296_v41 = vld [vmem:[#allocation2 + $0x40] sm:$0xff] }
  0xf1   : > { %1069 = vst.msk [vmem:[#allocation2 + $0x10] sm:$0xff] %vm223_vm0, %v1004_v47  ;;  %1101 = vst.msk [vmem:[#allocation2 + $0x110] sm:$0xff] %vm223_vm0, %v1036_v48  ;;  %v1005_v57 = vadd.f32 %v1877_v55, %v291_v45  ;;  %v1037_v58 = vadd.f32 %v1909_v56, %v323_v46  ;;  %v750_v59 = vpop.f32.mrb[3].mxu0  ;;  %v878_v60 = vpop.f32.mrb[3].mxu1  ;;  %v328_v42 = vld [vmem:[#allocation2 + $0x140] sm:$0xff]  ;;  %v299_v45 = vld [vmem:[#allocation2 + $0x58] sm:$0xff] }
  0xf2   : > { %1067 = vst.msk [vmem:[#allocation2] sm:$0xff] %vm223_vm0, %v1002_v53  ;;  %1099 = vst.msk [vmem:[#allocation2 + $0x100] sm:$0xff] %vm223_vm0, %v1034_v54  ;;  %v1003_v61 = vadd.f32 %v750_v59, %v289_v51  ;;  %v1035_v62 = vadd.f32 %v878_v60, %v321_v52  ;;  %v331_v46 = vld [vmem:[#allocation2 + $0x158] sm:$0xff]  ;;  %v297_v51 = vld [vmem:[#allocation2 + $0x48] sm:$0xff] }
  0xf3   : > { %1070 = vst.msk [vmem:[#allocation2 + $0x18] sm:$0xff] %vm223_vm0, %v1005_v57  ;;  %1102 = vst.msk [vmem:[#allocation2 + $0x118] sm:$0xff] %vm223_vm0, %v1037_v58  ;;  %v329_v52 = vld [vmem:[#allocation2 + $0x148] sm:$0xff] }
  0xf4   : > { %1068 = vst.msk [vmem:[#allocation2 + $0x8] sm:$0xff] %vm223_vm0, %v1003_v61  ;;  %1100 = vst.msk [vmem:[#allocation2 + $0x108] sm:$0xff] %vm223_vm0, %v1035_v62 }
  0xf6   : > { %v1880_v3 = vpop.f32.mrb[4].mxu0  ;;  %v1912_v4 = vpop.f32.mrb[4].mxu1 }
  0xf7   : > { %v1008_v7 = vadd.f32 %v1880_v3, %v294_v63  ;;  %v1040_v8 = vadd.f32 %v1912_v4, %v326_v0  ;;  %v763_v9 = vpop.f32.mrb[5].mxu0  ;;  %v891_v10 = vpop.f32.mrb[5].mxu1 }
  0xf8   : > { %v1136_v13 = vld [vmem:[#allocation2 + $0x10] sm:$0xff]  ;;  %v1006_v15 = vadd.f32 %v763_v9, %v292_v1  ;;  %v1038_v16 = vadd.f32 %v891_v10, %v324_v2  ;;  %v1881_v17 = vpop.f32.mrb[6].mxu0  ;;  %v1913_v18 = vpop.f32.mrb[6].mxu1 }
  0xf9   : > { %v1168_v14 = vld [vmem:[#allocation2 + $0x110] sm:$0xff]  ;;  %v1765_v19 = vpack.c.bf16 %v1136_v13, %v1136_v13  ;;  %v1134_v21 = vld [vmem:[#allocation2] sm:$0xff]  ;;  %1073 = vst.msk [vmem:[#allocation2 + $0x30] sm:$0xff] %vm223_vm0, %v1008_v7  ;;  %1105 = vst.msk [vmem:[#allocation2 + $0x130] sm:$0xff] %vm223_vm0, %v1040_v8  ;;  %v1009_v23 = vadd.f32 %v1881_v17, %v295_v5  ;;  %v1041_v24 = vadd.f32 %v1913_v18, %v327_v6  ;;  %v766_v25 = vpop.f32.mrb[7].mxu0  ;;  %v894_v26 = vpop.f32.mrb[7].mxu1 }
  0xfa   : > { %v1797_v20 = vpack.c.bf16 %v1168_v14, %v1168_v14  ;;  %v1166_v22 = vld [vmem:[#allocation2 + $0x100] sm:$0xff]  ;;  %v1763_v27 = vpack.c.bf16 %v1134_v21, %v1134_v21  ;;  %v1137_v29 = vld [vmem:[#allocation2 + $0x18] sm:$0xff]  ;;  %1071 = vst.msk [vmem:[#allocation2 + $0x20] sm:$0xff] %vm223_vm0, %v1006_v15  ;;  %1103 = vst.msk [vmem:[#allocation2 + $0x120] sm:$0xff] %vm223_vm0, %v1038_v16  ;;  %v1007_v31 = vadd.f32 %v766_v25, %v293_v11 }
  0xfb   : > { %v1795_v28 = vpack.c.bf16 %v1166_v22, %v1166_v22  ;;  %v1169_v30 = vld [vmem:[#allocation2 + $0x118] sm:$0xff]  ;;  %v1039_v32 = vadd.f32 %v894_v26, %v325_v12  ;;  %1457 = vst.msk [vmem:[%s2312_s30 + $0x8] sm:$0xf] %vm1454_vm3, %v1765_v19  ;;  %v1766_v33 = vpack.c.bf16 %v1137_v29, %v1137_v29  ;;  %v1135_v35 = vld [vmem:[#allocation2 + $0x8] sm:$0xff]  ;;  %v302_v15 = vld [vmem:[#allocation2 + $0x70] sm:$0xff] }
  0xfc   : > { %1489 = vst.msk [vmem:[%s2312_s30 + $0x88] sm:$0xf] %vm1454_vm3, %v1797_v20  ;;  %v1798_v34 = vpack.c.bf16 %v1169_v30, %v1169_v30  ;;  %v1167_v36 = vld [vmem:[#allocation2 + $0x108] sm:$0xff]  ;;  %1455 = vst.msk [vmem:[%s2312_s30] sm:$0xf] %vm1454_vm3, %v1763_v27  ;;  %v1764_v37 = vpack.c.bf16 %v1135_v35, %v1135_v35  ;;  %v334_v16 = vld [vmem:[#allocation2 + $0x170] sm:$0xff] }
  0xfd   : > { %1074 = vst.msk [vmem:[#allocation2 + $0x38] sm:$0xff] %vm223_vm0, %v1009_v23  ;;  %1106 = vst.msk [vmem:[#allocation2 + $0x138] sm:$0xff] %vm223_vm0, %v1041_v24  ;;  %v1796_v38 = vpack.c.bf16 %v1167_v36, %v1167_v36  ;;  %v300_v17 = vld [vmem:[#allocation2 + $0x60] sm:$0xff]  ;;  %v303_v21 = vld [vmem:[#allocation2 + $0x78] sm:$0xff] }
  0xfe   : > { %1487 = vst.msk [vmem:[%s2312_s30 + $0x80] sm:$0xf] %vm1454_vm3, %v1795_v28  ;;  %1458 = vst.msk [vmem:[%s2312_s30 + $0xc] sm:$0xf] %vm1454_vm3, %v1766_v33  ;;  %v1884_v43 = vpop.f32.mrb[8].mxu0  ;;  %v1916_v44 = vpop.f32.mrb[8].mxu1 }
  0xff   : > { %1072 = vst.msk [vmem:[#allocation2 + $0x28] sm:$0xff] %vm223_vm0, %v1007_v31  ;;  %1104 = vst.msk [vmem:[#allocation2 + $0x128] sm:$0xff] %vm223_vm0, %v1039_v32  ;;  %v1012_v47 = vadd.f32 %v1884_v43, %v298_v39  ;;  %v1044_v48 = vadd.f32 %v1916_v44, %v330_v40  ;;  %v779_v49 = vpop.f32.mrb[9].mxu0  ;;  %v907_v50 = vpop.f32.mrb[9].mxu1  ;;  %v332_v18 = vld [vmem:[#allocation2 + $0x160] sm:$0xff]  ;;  %v335_v22 = vld [vmem:[#allocation2 + $0x178] sm:$0xff] }
 0x100   : > { %1490 = vst.msk [vmem:[%s2312_s30 + $0x8c] sm:$0xf] %vm1454_vm3, %v1798_v34  ;;  %1456 = vst.msk [vmem:[%s2312_s30 + $0x4] sm:$0xf] %vm1454_vm3, %v1764_v37  ;;  %v1140_v53 = vld [vmem:[#allocation2 + $0x30] sm:$0xff]  ;;  %v1010_v55 = vadd.f32 %v779_v49, %v296_v41  ;;  %v1042_v56 = vadd.f32 %v907_v50, %v328_v42  ;;  %v1885_v57 = vpop.f32.mrb[10].mxu0 }
 0x101   : > { %1488 = vst.msk [vmem:[%s2312_s30 + $0x84] sm:$0xf] %vm1454_vm3, %v1796_v38  ;;  %v1172_v54 = vld [vmem:[#allocation2 + $0x130] sm:$0xff]  ;;  %v1917_v58 = vpop.f32.mrb[10].mxu1  ;;  %v1769_v59 = vpack.c.bf16 %v1140_v53, %v1140_v53  ;;  %v1138_v61 = vld [vmem:[#allocation2 + $0x20] sm:$0xff]  ;;  %v1013_v63 = vadd.f32 %v1885_v57, %v299_v45  ;;  %v782_v1 = vpop.f32.mrb[11].mxu0 }
 0x102   : > { %v1801_v60 = vpack.c.bf16 %v1172_v54, %v1172_v54  ;;  %v1170_v62 = vld [vmem:[#allocation2 + $0x120] sm:$0xff]  ;;  %1077 = vst.msk [vmem:[#allocation2 + $0x50] sm:$0xff] %vm223_vm0, %v1012_v47  ;;  %1109 = vst.msk [vmem:[#allocation2 + $0x150] sm:$0xff] %vm223_vm0, %v1044_v48  ;;  %v1045_v0 = vadd.f32 %v1917_v58, %v331_v46  ;;  %v910_v2 = vpop.f32.mrb[11].mxu1  ;;  %v1767_v3 = vpack.c.bf16 %v1138_v61, %v1138_v61  ;;  %v301_v27 = vld [vmem:[#allocation2 + $0x68] sm:$0xff] }
 0x103   : > { %v1799_v4 = vpack.c.bf16 %v1170_v62, %v1170_v62  ;;  %1075 = vst.msk [vmem:[#allocation2 + $0x40] sm:$0xff] %vm223_vm0, %v1010_v55  ;;  %1107 = vst.msk [vmem:[#allocation2 + $0x140] sm:$0xff] %vm223_vm0, %v1042_v56  ;;  %v1011_v7 = vadd.f32 %v782_v1, %v297_v51  ;;  %v1043_v8 = vadd.f32 %v910_v2, %v329_v52  ;;  %v333_v28 = vld [vmem:[#allocation2 + $0x168] sm:$0xff]  ;;  %v306_v55 = vld [vmem:[#allocation2 + $0x90] sm:$0xff] }
 0x104   : > { %v1141_v5 = vld [vmem:[#allocation2 + $0x38] sm:$0xff]  ;;  %1461 = vst.msk [vmem:[%s2312_s30 + $0x18] sm:$0xf] %vm1454_vm3, %v1769_v59  ;;  %1493 = vst.msk [vmem:[%s2312_s30 + $0x98] sm:$0xf] %vm1454_vm3, %v1801_v60  ;;  %v338_v56 = vld [vmem:[#allocation2 + $0x190] sm:$0xff] }
 0x105   : > { %v1173_v6 = vld [vmem:[#allocation2 + $0x138] sm:$0xff]  ;;  %v1770_v9 = vpack.c.bf16 %v1141_v5, %v1141_v5  ;;  %1078 = vst.msk [vmem:[#allocation2 + $0x58] sm:$0xff] %vm223_vm0, %v1013_v63  ;;  %1110 = vst.msk [vmem:[#allocation2 + $0x158] sm:$0xff] %vm223_vm0, %v1045_v0  ;;  %v304_v57 = vld [vmem:[#allocation2 + $0x80] sm:$0xff] }
 0x106   : > { %v1802_v10 = vpack.c.bf16 %v1173_v6, %v1173_v6  ;;  %v1139_v11 = vld [vmem:[#allocation2 + $0x28] sm:$0xff]  ;;  %1459 = vst.msk [vmem:[%s2312_s30 + $0x10] sm:$0xf] %vm1454_vm3, %v1767_v3  ;;  %1491 = vst.msk [vmem:[%s2312_s30 + $0x90] sm:$0xf] %vm1454_vm3, %v1799_v4  ;;  %v1888_v19 = vpop.f32.mrb[12].mxu0 }
 0x107   : > { %v1171_v12 = vld [vmem:[#allocation2 + $0x128] sm:$0xff]  ;;  %v1768_v13 = vpack.c.bf16 %v1139_v11, %v1139_v11  ;;  %1076 = vst.msk [vmem:[#allocation2 + $0x48] sm:$0xff] %vm223_vm0, %v1011_v7  ;;  %1108 = vst.msk [vmem:[#allocation2 + $0x148] sm:$0xff] %vm223_vm0, %v1043_v8  ;;  %v1920_v20 = vpop.f32.mrb[12].mxu1  ;;  %v1016_v23 = vadd.f32 %v1888_v19, %v302_v15  ;;  %v795_v25 = vpop.f32.mrb[13].mxu0  ;;  %v336_v58 = vld [vmem:[#allocation2 + $0x180] sm:$0xff] }
 0x108   : > { %v1800_v14 = vpack.c.bf16 %v1171_v12, %v1171_v12  ;;  %1462 = vst.msk [vmem:[%s2312_s30 + $0x1c] sm:$0xf] %vm1454_vm3, %v1770_v9  ;;  %1494 = vst.msk [vmem:[%s2312_s30 + $0x9c] sm:$0xf] %vm1454_vm3, %v1802_v10  ;;  %v1048_v24 = vadd.f32 %v1920_v20, %v334_v16  ;;  %v923_v26 = vpop.f32.mrb[13].mxu1  ;;  %v1014_v31 = vadd.f32 %v795_v25, %v300_v17  ;;  %v1889_v33 = vpop.f32.mrb[14].mxu0 }
 0x109   : > { %1460 = vst.msk [vmem:[%s2312_s30 + $0x14] sm:$0xf] %vm1454_vm3, %v1768_v13  ;;  %v1144_v29 = vld [vmem:[#allocation2 + $0x50] sm:$0xff]  ;;  %v1046_v32 = vadd.f32 %v923_v26, %v332_v18  ;;  %v1921_v34 = vpop.f32.mrb[14].mxu1  ;;  %v1017_v39 = vadd.f32 %v1889_v33, %v303_v21  ;;  %v798_v41 = vpop.f32.mrb[15].mxu0  ;;  %v307_v61 = vld [vmem:[#allocation2 + $0x98] sm:$0xff] }
 0x10a   : > { %1492 = vst.msk [vmem:[%s2312_s30 + $0x94] sm:$0xf] %vm1454_vm3, %v1800_v14  ;;  %v1176_v30 = vld [vmem:[#allocation2 + $0x150] sm:$0xff]  ;;  %v1773_v35 = vpack.c.bf16 %v1144_v29, %v1144_v29  ;;  %v1142_v37 = vld [vmem:[#allocation2 + $0x40] sm:$0xff]  ;;  %v1049_v40 = vadd.f32 %v1921_v34, %v335_v22  ;;  %v926_v42 = vpop.f32.mrb[15].mxu1  ;;  %v1015_v47 = vadd.f32 %v798_v41, %v301_v27  ;;  %v339_v62 = vld [vmem:[#allocation2 + $0x198] sm:$0xff] }
 0x10b   : > { %v1805_v36 = vpack.c.bf16 %v1176_v30, %v1176_v30  ;;  %v1174_v38 = vld [vmem:[#allocation2 + $0x140] sm:$0xff]  ;;  %1081 = vst.msk [vmem:[#allocation2 + $0x70] sm:$0xff] %vm223_vm0, %v1016_v23  ;;  %1113 = vst.msk [vmem:[#allocation2 + $0x170] sm:$0xff] %vm223_vm0, %v1048_v24  ;;  %v1771_v43 = vpack.c.bf16 %v1142_v37, %v1142_v37  ;;  %v1047_v48 = vadd.f32 %v926_v42, %v333_v28  ;;  %v305_v3 = vld [vmem:[#allocation2 + $0x88] sm:$0xff] }
 0x10c   : > { %v1803_v44 = vpack.c.bf16 %v1174_v38, %v1174_v38  ;;  %v1145_v45 = vld [vmem:[#allocation2 + $0x58] sm:$0xff]  ;;  %1079 = vst.msk [vmem:[#allocation2 + $0x60] sm:$0xff] %vm223_vm0, %v1014_v31  ;;  %1111 = vst.msk [vmem:[#allocation2 + $0x160] sm:$0xff] %vm223_vm0, %v1046_v32  ;;  %v337_v4 = vld [vmem:[#allocation2 + $0x188] sm:$0xff] }
 0x10d   : > { %v1177_v46 = vld [vmem:[#allocation2 + $0x158] sm:$0xff]  ;;  %1465 = vst.msk [vmem:[%s2312_s30 + $0x28] sm:$0xf] %vm1454_vm3, %v1773_v35  ;;  %1497 = vst.msk [vmem:[%s2312_s30 + $0xa8] sm:$0xf] %vm1454_vm3, %v1805_v36  ;;  %v1774_v49 = vpack.c.bf16 %v1145_v45, %v1145_v45  ;;  %v310_v31 = vld [vmem:[#allocation2 + $0xb0] sm:$0xff] }
 0x10e   : > { %v1806_v50 = vpack.c.bf16 %v1177_v46, %v1177_v46  ;;  %v1143_v51 = vld [vmem:[#allocation2 + $0x48] sm:$0xff]  ;;  %1082 = vst.msk [vmem:[#allocation2 + $0x78] sm:$0xff] %vm223_vm0, %v1017_v39  ;;  %1114 = vst.msk [vmem:[#allocation2 + $0x178] sm:$0xff] %vm223_vm0, %v1049_v40  ;;  %v1892_v59 = vpop.f32.mrb[16].mxu0  ;;  %v1924_v60 = vpop.f32.mrb[16].mxu1  ;;  %v342_v32 = vld [vmem:[#allocation2 + $0x1b0] sm:$0xff] }
 0x10f   : > { %v1175_v52 = vld [vmem:[#allocation2 + $0x148] sm:$0xff]  ;;  %1463 = vst.msk [vmem:[%s2312_s30 + $0x20] sm:$0xf] %vm1454_vm3, %v1771_v43  ;;  %1495 = vst.msk [vmem:[%s2312_s30 + $0xa0] sm:$0xf] %vm1454_vm3, %v1803_v44  ;;  %v1772_v53 = vpack.c.bf16 %v1143_v51, %v1143_v51  ;;  %v1020_v63 = vadd.f32 %v1892_v59, %v306_v55  ;;  %v1052_v0 = vadd.f32 %v1924_v60, %v338_v56  ;;  %v811_v1 = vpop.f32.mrb[17].mxu0 }
 0x110   : > { %v1804_v54 = vpack.c.bf16 %v1175_v52, %v1175_v52  ;;  %1080 = vst.msk [vmem:[#allocation2 + $0x68] sm:$0xff] %vm223_vm0, %v1015_v47  ;;  %1112 = vst.msk [vmem:[#allocation2 + $0x168] sm:$0xff] %vm223_vm0, %v1047_v48  ;;  %v939_v2 = vpop.f32.mrb[17].mxu1  ;;  %v1018_v7 = vadd.f32 %v811_v1, %v304_v57  ;;  %v1893_v9 = vpop.f32.mrb[18].mxu0  ;;  %v308_v33 = vld [vmem:[#allocation2 + $0xa0] sm:$0xff]  ;;  %v311_v37 = vld [vmem:[#allocation2 + $0xb8] sm:$0xff] }
 0x111   : > { %1466 = vst.msk [vmem:[%s2312_s30 + $0x2c] sm:$0xf] %vm1454_vm3, %v1774_v49  ;;  %1498 = vst.msk [vmem:[%s2312_s30 + $0xac] sm:$0xf] %vm1454_vm3, %v1806_v50  ;;  %v1050_v8 = vadd.f32 %v939_v2, %v336_v58  ;;  %v1925_v10 = vpop.f32.mrb[18].mxu1  ;;  %v1021_v15 = vadd.f32 %v1893_v9, %v307_v61  ;;  %v814_v17 = vpop.f32.mrb[19].mxu0 }
 0x112   : > { %1464 = vst.msk [vmem:[%s2312_s30 + $0x24] sm:$0xf] %vm1454_vm3, %v1772_v53  ;;  %1496 = vst.msk [vmem:[%s2312_s30 + $0xa4] sm:$0xf] %vm1454_vm3, %v1804_v54  ;;  %v1148_v5 = vld [vmem:[#allocation2 + $0x70] sm:$0xff]  ;;  %v1053_v16 = vadd.f32 %v1925_v10, %v339_v62  ;;  %v942_v18 = vpop.f32.mrb[19].mxu1  ;;  %v1019_v23 = vadd.f32 %v814_v17, %v305_v3 }
 0x113   : > { %v1180_v6 = vld [vmem:[#allocation2 + $0x170] sm:$0xff]  ;;  %v1777_v11 = vpack.c.bf16 %v1148_v5, %v1148_v5  ;;  %v1146_v13 = vld [vmem:[#allocation2 + $0x60] sm:$0xff]  ;;  %1085 = vst.msk [vmem:[#allocation2 + $0x90] sm:$0xff] %vm223_vm0, %v1020_v63  ;;  %1117 = vst.msk [vmem:[#allocation2 + $0x190] sm:$0xff] %vm223_vm0, %v1052_v0  ;;  %v1051_v24 = vadd.f32 %v942_v18, %v337_v4 }
 0x114   : > { %v1809_v12 = vpack.c.bf16 %v1180_v6, %v1180_v6  ;;  %v1178_v14 = vld [vmem:[#allocation2 + $0x160] sm:$0xff]  ;;  %v1775_v19 = vpack.c.bf16 %v1146_v13, %v1146_v13  ;;  %1083 = vst.msk [vmem:[#allocation2 + $0x80] sm:$0xff] %vm223_vm0, %v1018_v7  ;;  %1115 = vst.msk [vmem:[#allocation2 + $0x180] sm:$0xff] %vm223_vm0, %v1050_v8  ;;  %v343_v38 = vld [vmem:[#allocation2 + $0x1b8] sm:$0xff] }
 0x115   : > { %v1807_v20 = vpack.c.bf16 %v1178_v14, %v1178_v14  ;;  %v1149_v21 = vld [vmem:[#allocation2 + $0x78] sm:$0xff]  ;;  %1469 = vst.msk [vmem:[%s2312_s30 + $0x38] sm:$0xf] %vm1454_vm3, %v1777_v11  ;;  %v340_v34 = vld [vmem:[#allocation2 + $0x1a0] sm:$0xff]  ;;  %v309_v43 = vld [vmem:[#allocation2 + $0xa8] sm:$0xff] }
 0x116   : > { %v1181_v22 = vld [vmem:[#allocation2 + $0x178] sm:$0xff]  ;;  %1501 = vst.msk [vmem:[%s2312_s30 + $0xb8] sm:$0xf] %vm1454_vm3, %v1809_v12  ;;  %v1778_v25 = vpack.c.bf16 %v1149_v21, %v1149_v21  ;;  %1467 = vst.msk [vmem:[%s2312_s30 + $0x30] sm:$0xf] %vm1454_vm3, %v1775_v19  ;;  %v1896_v35 = vpop.f32.mrb[20].mxu0 }
 0x117   : > { %v1810_v26 = vpack.c.bf16 %v1181_v22, %v1181_v22  ;;  %v1147_v27 = vld [vmem:[#allocation2 + $0x68] sm:$0xff]  ;;  %1086 = vst.msk [vmem:[#allocation2 + $0x98] sm:$0xff] %vm223_vm0, %v1021_v15  ;;  %1118 = vst.msk [vmem:[#allocation2 + $0x198] sm:$0xff] %vm223_vm0, %v1053_v16  ;;  %v1928_v36 = vpop.f32.mrb[20].mxu1  ;;  %v1024_v39 = vadd.f32 %v1896_v35, %v310_v31  ;;  %v827_v41 = vpop.f32.mrb[21].mxu0  ;;  %v314_v7 = vld [vmem:[#allocation2 + $0xd0] sm:$0xff] }
 0x118   : > { %v1179_v28 = vld [vmem:[#allocation2 + $0x168] sm:$0xff]  ;;  %1499 = vst.msk [vmem:[%s2312_s30 + $0xb0] sm:$0xf] %vm1454_vm3, %v1807_v20  ;;  %v1776_v29 = vpack.c.bf16 %v1147_v27, %v1147_v27  ;;  %1470 = vst.msk [vmem:[%s2312_s30 + $0x3c] sm:$0xf] %vm1454_vm3, %v1778_v25  ;;  %v1056_v40 = vadd.f32 %v1928_v36, %v342_v32  ;;  %v955_v42 = vpop.f32.mrb[21].mxu1  ;;  %v1022_v47 = vadd.f32 %v827_v41, %v308_v33 }
 0x119   : > { %v1808_v30 = vpack.c.bf16 %v1179_v28, %v1179_v28  ;;  %1084 = vst.msk [vmem:[#allocation2 + $0x88] sm:$0xff] %vm223_vm0, %v1019_v23  ;;  %1116 = vst.msk [vmem:[#allocation2 + $0x188] sm:$0xff] %vm223_vm0, %v1051_v24  ;;  %v341_v44 = vld [vmem:[#allocation2 + $0x1a8] sm:$0xff]  ;;  %v1054_v48 = vadd.f32 %v955_v42, %v340_v34  ;;  %v1897_v49 = vpop.f32.mrb[22].mxu0  ;;  %v1929_v50 = vpop.f32.mrb[22].mxu1  ;;  %v346_v8 = vld [vmem:[#allocation2 + $0x1d0] sm:$0xff] }
 0x11a   : > { %1502 = vst.msk [vmem:[%s2312_s30 + $0xbc] sm:$0xf] %vm1454_vm3, %v1810_v26  ;;  %1468 = vst.msk [vmem:[%s2312_s30 + $0x34] sm:$0xf] %vm1454_vm3, %v1776_v29  ;;  %v1152_v45 = vld [vmem:[#allocation2 + $0x90] sm:$0xff]  ;;  %v1025_v55 = vadd.f32 %v1897_v49, %v311_v37  ;;  %v1057_v56 = vadd.f32 %v1929_v50, %v343_v38  ;;  %v830_v57 = vpop.f32.mrb[23].mxu0 }
 0x11b   : > { %1500 = vst.msk [vmem:[%s2312_s30 + $0xb4] sm:$0xf] %vm1454_vm3, %v1808_v30  ;;  %v1184_v46 = vld [vmem:[#allocation2 + $0x190] sm:$0xff]  ;;  %v1781_v51 = vpack.c.bf16 %v1152_v45, %v1152_v45  ;;  %v1150_v53 = vld [vmem:[#allocation2 + $0x80] sm:$0xff]  ;;  %v958_v58 = vpop.f32.mrb[23].mxu1  ;;  %v1023_v63 = vadd.f32 %v830_v57, %v309_v43  ;;  %v315_v13 = vld [vmem:[#allocation2 + $0xd8] sm:$0xff] }
 0x11c   : > { %v1813_v52 = vpack.c.bf16 %v1184_v46, %v1184_v46  ;;  %v1182_v54 = vld [vmem:[#allocation2 + $0x180] sm:$0xff]  ;;  %1089 = vst.msk [vmem:[#allocation2 + $0xb0] sm:$0xff] %vm223_vm0, %v1024_v39  ;;  %1121 = vst.msk [vmem:[#allocation2 + $0x1b0] sm:$0xff] %vm223_vm0, %v1056_v40  ;;  %v1779_v59 = vpack.c.bf16 %v1150_v53, %v1150_v53  ;;  %v1055_v0 = vadd.f32 %v958_v58, %v341_v44  ;;  %v347_v14 = vld [vmem:[#allocation2 + $0x1d8] sm:$0xff] }
 0x11d   : > { %v1811_v60 = vpack.c.bf16 %v1182_v54, %v1182_v54  ;;  %1087 = vst.msk [vmem:[#allocation2 + $0xa0] sm:$0xff] %vm223_vm0, %v1022_v47  ;;  %1119 = vst.msk [vmem:[#allocation2 + $0x1a0] sm:$0xff] %vm223_vm0, %v1054_v48  ;;  %v312_v9 = vld [vmem:[#allocation2 + $0xc0] sm:$0xff]  ;;  %v313_v19 = vld [vmem:[#allocation2 + $0xc8] sm:$0xff] }
 0x11e   : > { %v1153_v61 = vld [vmem:[#allocation2 + $0x98] sm:$0xff]  ;;  %1473 = vst.msk [vmem:[%s2312_s30 + $0x48] sm:$0xf] %vm1454_vm3, %v1781_v51  ;;  %1505 = vst.msk [vmem:[%s2312_s30 + $0xc8] sm:$0xf] %vm1454_vm3, %v1813_v52  ;;  %v344_v10 = vld [vmem:[#allocation2 + $0x1c0] sm:$0xff] }
 0x11f   : > { %v1185_v62 = vld [vmem:[#allocation2 + $0x198] sm:$0xff]  ;;  %v1782_v1 = vpack.c.bf16 %v1153_v61, %v1153_v61  ;;  %1090 = vst.msk [vmem:[#allocation2 + $0xb8] sm:$0xff] %vm223_vm0, %v1025_v55  ;;  %1122 = vst.msk [vmem:[#allocation2 + $0x1b8] sm:$0xff] %vm223_vm0, %v1057_v56  ;;  %v1900_v11 = vpop.f32.mrb[24].mxu0  ;;  %v1932_v12 = vpop.f32.mrb[24].mxu1  ;;  %v345_v20 = vld [vmem:[#allocation2 + $0x1c8] sm:$0xff] }
 0x120   : > { %v1814_v2 = vpack.c.bf16 %v1185_v62, %v1185_v62  ;;  %v1151_v3 = vld [vmem:[#allocation2 + $0x88] sm:$0xff]  ;;  %1471 = vst.msk [vmem:[%s2312_s30 + $0x40] sm:$0xf] %vm1454_vm3, %v1779_v59  ;;  %1503 = vst.msk [vmem:[%s2312_s30 + $0xc0] sm:$0xf] %vm1454_vm3, %v1811_v60  ;;  %v1028_v15 = vadd.f32 %v1900_v11, %v314_v7  ;;  %v1060_v16 = vadd.f32 %v1932_v12, %v346_v8  ;;  %v843_v17 = vpop.f32.mrb[25].mxu0 }
 0x121   : > { %v1183_v4 = vld [vmem:[#allocation2 + $0x188] sm:$0xff]  ;;  %v1780_v5 = vpack.c.bf16 %v1151_v3, %v1151_v3  ;;  %1088 = vst.msk [vmem:[#allocation2 + $0xa8] sm:$0xff] %vm223_vm0, %v1023_v63  ;;  %1120 = vst.msk [vmem:[#allocation2 + $0x1a8] sm:$0xff] %vm223_vm0, %v1055_v0  ;;  %v971_v18 = vpop.f32.mrb[25].mxu1  ;;  %v1026_v23 = vadd.f32 %v843_v17, %v312_v9  ;;  %v1901_v25 = vpop.f32.mrb[26].mxu0  ;;  %v318_v47 = vld [vmem:[#allocation2 + $0xf0] sm:$0xff] }
 0x122   : > { %v1812_v6 = vpack.c.bf16 %v1183_v4, %v1183_v4  ;;  %1474 = vst.msk [vmem:[%s2312_s30 + $0x4c] sm:$0xf] %vm1454_vm3, %v1782_v1  ;;  %1506 = vst.msk [vmem:[%s2312_s30 + $0xcc] sm:$0xf] %vm1454_vm3, %v1814_v2  ;;  %v1058_v24 = vadd.f32 %v971_v18, %v344_v10  ;;  %v1933_v26 = vpop.f32.mrb[26].mxu1  ;;  %v1029_v31 = vadd.f32 %v1901_v25, %v315_v13  ;;  %v846_v33 = vpop.f32.mrb[27].mxu0 }
 0x123   : > { %1472 = vst.msk [vmem:[%s2312_s30 + $0x44] sm:$0xf] %vm1454_vm3, %v1780_v5  ;;  %v1156_v21 = vld [vmem:[#allocation2 + $0xb0] sm:$0xff]  ;;  %v1061_v32 = vadd.f32 %v1933_v26, %v347_v14  ;;  %v974_v34 = vpop.f32.mrb[27].mxu1  ;;  %v1027_v39 = vadd.f32 %v846_v33, %v313_v19  ;;  %v316_v49 = vld [vmem:[#allocation2 + $0xe0] sm:$0xff]  ;;  %v319_v53 = vld [vmem:[#allocation2 + $0xf8] sm:$0xff] }
 0x124   : > { %1504 = vst.msk [vmem:[%s2312_s30 + $0xc4] sm:$0xf] %vm1454_vm3, %v1812_v6  ;;  %v1188_v22 = vld [vmem:[#allocation2 + $0x1b0] sm:$0xff]  ;;  %v1785_v27 = vpack.c.bf16 %v1156_v21, %v1156_v21  ;;  %v1154_v29 = vld [vmem:[#allocation2 + $0xa0] sm:$0xff]  ;;  %v1059_v40 = vadd.f32 %v974_v34, %v345_v20  ;;  %v351_v54 = vld [vmem:[#allocation2 + $0x1f8] sm:$0xff] }
 0x125   : > { %v1817_v28 = vpack.c.bf16 %v1188_v22, %v1188_v22  ;;  %v1186_v30 = vld [vmem:[#allocation2 + $0x1a0] sm:$0xff]  ;;  %1093 = vst.msk [vmem:[#allocation2 + $0xd0] sm:$0xff] %vm223_vm0, %v1028_v15  ;;  %1125 = vst.msk [vmem:[#allocation2 + $0x1d0] sm:$0xff] %vm223_vm0, %v1060_v16  ;;  %v1783_v35 = vpack.c.bf16 %v1154_v29, %v1154_v29  ;;  %v350_v48 = vld [vmem:[#allocation2 + $0x1f0] sm:$0xff] }
 0x126   : > { %v1815_v36 = vpack.c.bf16 %v1186_v30, %v1186_v30  ;;  %v1157_v37 = vld [vmem:[#allocation2 + $0xb8] sm:$0xff]  ;;  %1091 = vst.msk [vmem:[#allocation2 + $0xc0] sm:$0xff] %vm223_vm0, %v1026_v23  ;;  %1123 = vst.msk [vmem:[#allocation2 + $0x1c0] sm:$0xff] %vm223_vm0, %v1058_v24  ;;  %v348_v50 = vld [vmem:[#allocation2 + $0x1e0] sm:$0xff]  ;;  %v1904_v51 = vpop.f32.mrb[28].mxu0  ;;  %v1936_v52 = vpop.f32.mrb[28].mxu1 }
 0x127   : > { %v1189_v38 = vld [vmem:[#allocation2 + $0x1b8] sm:$0xff]  ;;  %1477 = vst.msk [vmem:[%s2312_s30 + $0x58] sm:$0xf] %vm1454_vm3, %v1785_v27  ;;  %1509 = vst.msk [vmem:[%s2312_s30 + $0xd8] sm:$0xf] %vm1454_vm3, %v1817_v28  ;;  %v1786_v41 = vpack.c.bf16 %v1157_v37, %v1157_v37  ;;  %v1032_v55 = vadd.f32 %v1904_v51, %v318_v47  ;;  %v1064_v56 = vadd.f32 %v1936_v52, %v350_v48  ;;  %v859_v57 = vpop.f32.mrb[29].mxu0 }
 0x128   : > { %v1818_v42 = vpack.c.bf16 %v1189_v38, %v1189_v38  ;;  %v1155_v43 = vld [vmem:[#allocation2 + $0xa8] sm:$0xff]  ;;  %1094 = vst.msk [vmem:[#allocation2 + $0xd8] sm:$0xff] %vm223_vm0, %v1029_v31  ;;  %1126 = vst.msk [vmem:[#allocation2 + $0x1d8] sm:$0xff] %vm223_vm0, %v1061_v32  ;;  %v987_v58 = vpop.f32.mrb[29].mxu1  ;;  %v1030_v63 = vadd.f32 %v859_v57, %v316_v49  ;;  %v1905_v1 = vpop.f32.mrb[30].mxu0 }
 0x129   : > { %v1187_v44 = vld [vmem:[#allocation2 + $0x1a8] sm:$0xff]  ;;  %1475 = vst.msk [vmem:[%s2312_s30 + $0x50] sm:$0xf] %vm1454_vm3, %v1783_v35  ;;  %1507 = vst.msk [vmem:[%s2312_s30 + $0xd0] sm:$0xf] %vm1454_vm3, %v1815_v36  ;;  %v1784_v45 = vpack.c.bf16 %v1155_v43, %v1155_v43  ;;  %v1062_v0 = vadd.f32 %v987_v58, %v348_v50  ;;  %v1937_v2 = vpop.f32.mrb[30].mxu1  ;;  %v1033_v7 = vadd.f32 %v1905_v1, %v319_v53 }
 0x12a   : > { %v1816_v46 = vpack.c.bf16 %v1187_v44, %v1187_v44  ;;  %1092 = vst.msk [vmem:[#allocation2 + $0xc8] sm:$0xff] %vm223_vm0, %v1027_v39  ;;  %1124 = vst.msk [vmem:[#allocation2 + $0x1c8] sm:$0xff] %vm223_vm0, %v1059_v40  ;;  %v317_v59 = vld [vmem:[#allocation2 + $0xe8] sm:$0xff]  ;;  %v1065_v8 = vadd.f32 %v1937_v2, %v351_v54  ;;  %v862_v9 = vpop.f32.mrb[31].mxu0  ;;  %v990_v10 = vpop.f32.mrb[31].mxu1 }
 0x12b   : > { %1478 = vst.msk [vmem:[%s2312_s30 + $0x5c] sm:$0xf] %vm1454_vm3, %v1786_v41  ;;  %1510 = vst.msk [vmem:[%s2312_s30 + $0xdc] sm:$0xf] %vm1454_vm3, %v1818_v42  ;;  %v349_v60 = vld [vmem:[#allocation2 + $0x1e8] sm:$0xff]  ;;  %v1031_v15 = vadd.f32 %v862_v9, %v317_v59 }
 0x12c   : > { %1476 = vst.msk [vmem:[%s2312_s30 + $0x54] sm:$0xf] %vm1454_vm3, %v1784_v45  ;;  %1508 = vst.msk [vmem:[%s2312_s30 + $0xd4] sm:$0xf] %vm1454_vm3, %v1816_v46  ;;  %v1160_v61 = vld [vmem:[#allocation2 + $0xd0] sm:$0xff]  ;;  %v1063_v16 = vadd.f32 %v990_v10, %v349_v60 }
 0x12d   : > { %v1192_v62 = vld [vmem:[#allocation2 + $0x1d0] sm:$0xff]  ;;  %v1789_v3 = vpack.c.bf16 %v1160_v61, %v1160_v61  ;;  %v1158_v5 = vld [vmem:[#allocation2 + $0xc0] sm:$0xff]  ;;  %1097 = vst.msk [vmem:[#allocation2 + $0xf0] sm:$0xff] %vm223_vm0, %v1032_v55  ;;  %1129 = vst.msk [vmem:[#allocation2 + $0x1f0] sm:$0xff] %vm223_vm0, %v1064_v56 }
 0x12e   : > { %v1821_v4 = vpack.c.bf16 %v1192_v62, %v1192_v62  ;;  %v1190_v6 = vld [vmem:[#allocation2 + $0x1c0] sm:$0xff]  ;;  %v1787_v11 = vpack.c.bf16 %v1158_v5, %v1158_v5  ;;  %1095 = vst.msk [vmem:[#allocation2 + $0xe0] sm:$0xff] %vm223_vm0, %v1030_v63  ;;  %1127 = vst.msk [vmem:[#allocation2 + $0x1e0] sm:$0xff] %vm223_vm0, %v1062_v0 }
 0x12f   : > { %v1819_v12 = vpack.c.bf16 %v1190_v6, %v1190_v6  ;;  %v1161_v13 = vld [vmem:[#allocation2 + $0xd8] sm:$0xff]  ;;  %1481 = vst.msk [vmem:[%s2312_s30 + $0x68] sm:$0xf] %vm1454_vm3, %v1789_v3 }
 0x130   : > { %v1193_v14 = vld [vmem:[#allocation2 + $0x1d8] sm:$0xff]  ;;  %1513 = vst.msk [vmem:[%s2312_s30 + $0xe8] sm:$0xf] %vm1454_vm3, %v1821_v4  ;;  %v1790_v17 = vpack.c.bf16 %v1161_v13, %v1161_v13  ;;  %1479 = vst.msk [vmem:[%s2312_s30 + $0x60] sm:$0xf] %vm1454_vm3, %v1787_v11 }
 0x131   : > { %v1822_v18 = vpack.c.bf16 %v1193_v14, %v1193_v14  ;;  %v1159_v19 = vld [vmem:[#allocation2 + $0xc8] sm:$0xff]  ;;  %1098 = vst.msk [vmem:[#allocation2 + $0xf8] sm:$0xff] %vm223_vm0, %v1033_v7  ;;  %1130 = vst.msk [vmem:[#allocation2 + $0x1f8] sm:$0xff] %vm223_vm0, %v1065_v8 }
 0x132   : > { %v1191_v20 = vld [vmem:[#allocation2 + $0x1c8] sm:$0xff]  ;;  %1511 = vst.msk [vmem:[%s2312_s30 + $0xe0] sm:$0xf] %vm1454_vm3, %v1819_v12  ;;  %v1788_v21 = vpack.c.bf16 %v1159_v19, %v1159_v19  ;;  %1482 = vst.msk [vmem:[%s2312_s30 + $0x6c] sm:$0xf] %vm1454_vm3, %v1790_v17 }
 0x133   : > { %v1820_v22 = vpack.c.bf16 %v1191_v20, %v1191_v20  ;;  %1096 = vst.msk [vmem:[#allocation2 + $0xe8] sm:$0xff] %vm223_vm0, %v1031_v15  ;;  %1128 = vst.msk [vmem:[#allocation2 + $0x1e8] sm:$0xff] %vm223_vm0, %v1063_v16 }
 0x134   : > { %1514 = vst.msk [vmem:[%s2312_s30 + $0xec] sm:$0xf] %vm1454_vm3, %v1822_v18  ;;  %1480 = vst.msk [vmem:[%s2312_s30 + $0x64] sm:$0xf] %vm1454_vm3, %v1788_v21  ;;  %v1164_v23 = vld [vmem:[#allocation2 + $0xf0] sm:$0xff] }
 0x135   : > { %1512 = vst.msk [vmem:[%s2312_s30 + $0xe4] sm:$0xf] %vm1454_vm3, %v1820_v22  ;;  %v1196_v24 = vld [vmem:[#allocation2 + $0x1f0] sm:$0xff]  ;;  %v1793_v25 = vpack.c.bf16 %v1164_v23, %v1164_v23  ;;  %v1162_v27 = vld [vmem:[#allocation2 + $0xe0] sm:$0xff] }
 0x136   : > { %v1825_v26 = vpack.c.bf16 %v1196_v24, %v1196_v24  ;;  %v1194_v28 = vld [vmem:[#allocation2 + $0x1e0] sm:$0xff]  ;;  %v1791_v29 = vpack.c.bf16 %v1162_v27, %v1162_v27 }
 0x137   : > { %v1823_v30 = vpack.c.bf16 %v1194_v28, %v1194_v28  ;;  %1485 = vst.msk [vmem:[%s2312_s30 + $0x78] sm:$0xf] %vm1454_vm3, %v1793_v25 }
 0x138   : > { %v1165_v31 = vld [vmem:[#allocation2 + $0xf8] sm:$0xff]  ;;  %1517 = vst.msk [vmem:[%s2312_s30 + $0xf8] sm:$0xf] %vm1454_vm3, %v1825_v26  ;;  %1483 = vst.msk [vmem:[%s2312_s30 + $0x70] sm:$0xf] %vm1454_vm3, %v1791_v29 }
 0x139   : > { %v1197_v32 = vld [vmem:[#allocation2 + $0x1f8] sm:$0xff]  ;;  %v1794_v33 = vpack.c.bf16 %v1165_v31, %v1165_v31  ;;  %1515 = vst.msk [vmem:[%s2312_s30 + $0xf0] sm:$0xf] %vm1454_vm3, %v1823_v30 }
 0x13a   : > { %v1826_v34 = vpack.c.bf16 %v1197_v32, %v1197_v32  ;;  %v1163_v35 = vld [vmem:[#allocation2 + $0xe8] sm:$0xff] }
 0x13b   : > { %v1195_v36 = vld [vmem:[#allocation2 + $0x1e8] sm:$0xff]  ;;  %v1792_v37 = vpack.c.bf16 %v1163_v35, %v1163_v35  ;;  %1486 = vst.msk [vmem:[%s2312_s30 + $0x7c] sm:$0xf] %vm1454_vm3, %v1794_v33 }
 0x13c   : > { %v1824_v38 = vpack.c.bf16 %v1195_v36, %v1195_v36  ;;  %1518 = vst.msk [vmem:[%s2312_s30 + $0xfc] sm:$0xf] %vm1454_vm3, %v1826_v34 }
 0x13d   : > { %1484 = vst.msk [vmem:[%s2312_s30 + $0x74] sm:$0xf] %vm1454_vm3, %v1792_v37 }
 0x13e   : > { %1516 = vst.msk [vmem:[%s2312_s30 + $0xf4] sm:$0xf] %vm1454_vm3, %v1824_v38 }
 0x13f PF: > { %s12_s11 = sadd.s32 1, %s2034_s11   ;;  %s2510_s9 = smov %s2030_s10 }
 0x140   : > { %p9_p5 = scmp.ge.s32.totalorder %s12_s11, 18   ;;  %s2511_s10 = smov %s2513_s12 }
 0x142   :  { %11 = sbr.rel (!%p9_p5) target bundleno = 2 (0x2), region = 69 }

// kernel: cond_cnn_generator_forward.22
= control target key start
LH: loop header
LB: loop body
LE: loop exit
PB: predicated region body
PF: predicated region fallthrough
CT: control target
= control target key end

     0   :  { %s846_s9 = smov 0   ;;  %s1357_s0 = inlined_call_operand.vmem [shape: bf16[8192,8], index: 0, kind: input, shape index: {}]   ;;  %s1358_s1 = inlined_call_operand.vmem [shape: f32[1,8], index: 1, kind: output, shape index: {0}]   ;;  %s1359_s2 = inlined_call_operand.vmem [shape: f32[1,8], index: 2, kind: output, shape index: {1}]  }
   0x1 LB: > { %s852_s10 = sadd.s32 4294967295, %s828_s9   ;;  %p647_p0 = scmp.ge.s32.totalorder %s828_s9, 1  ;;  %s828_s9 = sphi %s846_s9, %s13_s9  }
   0x2   : > { %p106_p1 = scmp.lt.s32.totalorder %s828_s9, 17 }
   0x4   : > { %p107_p2 = pnand %p647_p0, %p106_p1 }
   0x5   : > { %s648_s11 = sshll.u32 (!%p107_p2), %s852_s10, 6  ;;  %p650_p4 = scmp.ne.s32.totalorder (!%p107_p2), %s852_s10, 0 }
   0x6   : > { %110 = sbr.rel (%p107_p2) target bundleno = 197 (0xc5), region = 24  ;;  %p124_p3 = scmp.lt.s32.totalorder (!%p107_p2), %s648_s11, 1023 }
   0xd   : > { %s1361_s11 = smov (!%p124_p3, %s648_s11), 1023  ;;  %132 = sbr.rel (%p650_p4) target bundleno = 20 (0x14), region = 28 }
   0xe   : > { %s649_s12 = sshll.u32 %s1361_s11, 2  ;;  %vm133_vm0 = vcmask (!%p650_p4), 57344   ;;  %v830_v0 = vmov (!%p650_p4), 0.0  }
   0xf   : > { %s860_s15 = scalar_lea.vmem %s1357_s0, %s649_s12  ;;  %134 = vst.msk [vmem:[#allocation2] sm:$0x1] (!%p650_p4), %vm133_vm0, %v830_v0  ;;  %135 = vst.msk [vmem:[#allocation3] sm:$0x1] (!%p650_p4), %vm133_vm0, %v830_v0 }
  0x14 PF: > { %v655_v1 = vld [vmem:[%s860_s15] sm:$0xff]   ;;  %v782_v2 = vld [vmem:[%s860_s15 + $0x8] sm:$0xff]   ;;  %vm265_vm1 = vcmask 64512   ;;  %v783_v6 = vld [vmem:[%s860_s15 + $0x10] sm:$0xff]   ;;  %vm400_vm2 = vcmask 57344   ;;  %p651_p5 = scmp.ne.s32.totalorder %s852_s10, 15 }
  0x15   : > { %v865_v3 = vunpack.c.l.bf16 %v655_v1  ;;  %v867_v4 = vunpack.c.h.bf16 %v655_v1  ;;  %v869_v5 = vunpack.c.l.bf16 %v782_v2  ;;  %v872_v7 = vunpack.c.h.bf16 %v782_v2  ;;  %v784_v14 = vld [vmem:[%s860_s15 + $0x18] sm:$0xff]   ;;  %v785_v21 = vld [vmem:[%s860_s15 + $0x20] sm:$0xff]   ;;  %v786_v28 = vld [vmem:[%s860_s15 + $0x28] sm:$0xff]  }
  0x16   : > { %v880_v12 = vunpack.c.l.bf16 %v783_v6  ;;  %v885_v16 = vunpack.c.h.bf16 %v783_v6  ;;  %v889_v19 = vunpack.c.l.bf16 %v784_v14  ;;  %v894_v23 = vunpack.c.h.bf16 %v784_v14  ;;  %v787_v35 = vld [vmem:[%s860_s15 + $0x30] sm:$0xff]   ;;  %v788_v42 = vld [vmem:[%s860_s15 + $0x38] sm:$0xff]   ;;  %v789_v49 = vld [vmem:[%s860_s15 + $0x40] sm:$0xff]  }
  0x17   : > { %v266_v8 = vsel %vm265_vm1, %v865_v3, 0.0  ;;  %v267_v9 = vsel %vm265_vm1, %v867_v4, 0.0  ;;  %v269_v10 = vsel %vm265_vm1, %v869_v5, 0.0  ;;  %v271_v13 = vsel %vm265_vm1, %v872_v7, 0.0  ;;  %v790_v56 = vld [vmem:[%s860_s15 + $0x48] sm:$0xff]   ;;  %v791_v63 = vld [vmem:[%s860_s15 + $0x50] sm:$0xff]  }
  0x18   : > { %v268_v11 = vadd.f32 %v267_v9, %v266_v8  ;;  %v273_v17 = vsel %vm265_vm1, %v880_v12, 0.0  ;;  %v275_v20 = vsel %vm265_vm1, %v885_v16, 0.0  ;;  %v277_v24 = vsel %vm265_vm1, %v889_v19, 0.0  ;;  %v792_v14 = vld [vmem:[%s860_s15 + $0x58] sm:$0xff]  }
  0x19   : > { %v898_v26 = vunpack.c.l.bf16 %v785_v21  ;;  %v279_v27 = vsel %vm265_vm1, %v894_v23, 0.0  ;;  %v903_v30 = vunpack.c.h.bf16 %v785_v21  ;;  %v907_v33 = vunpack.c.l.bf16 %v786_v28 }
  0x1a   : > { %v270_v15 = vadd.f32 %v269_v10, %v268_v11  ;;  %v912_v37 = vunpack.c.h.bf16 %v786_v28  ;;  %v916_v40 = vunpack.c.l.bf16 %v787_v35  ;;  %v921_v44 = vunpack.c.h.bf16 %v787_v35 }
  0x1b   : > { %v281_v31 = vsel %vm265_vm1, %v898_v26, 0.0  ;;  %v283_v34 = vsel %vm265_vm1, %v903_v30, 0.0  ;;  %v285_v38 = vsel %vm265_vm1, %v907_v33, 0.0  ;;  %v925_v47 = vunpack.c.l.bf16 %v788_v42 }
  0x1c   : > { %v272_v18 = vadd.f32 %v271_v13, %v270_v15  ;;  %v287_v41 = vsel %vm265_vm1, %v912_v37, 0.0  ;;  %v289_v45 = vsel %vm265_vm1, %v916_v40, 0.0  ;;  %v291_v48 = vsel %vm265_vm1, %v921_v44, 0.0 }
  0x1d   : > { %v930_v51 = vunpack.c.h.bf16 %v788_v42  ;;  %v293_v52 = vsel %vm265_vm1, %v925_v47, 0.0  ;;  %v934_v54 = vunpack.c.l.bf16 %v789_v49  ;;  %v939_v58 = vunpack.c.h.bf16 %v789_v49  ;;  %v794_v42 = vld [vmem:[%s860_s15 + $0x68] sm:$0xff]  }
  0x1e   : > { %v274_v22 = vadd.f32 %v273_v17, %v272_v18  ;;  %v943_v61 = vunpack.c.l.bf16 %v790_v56  ;;  %v948_v1 = vunpack.c.h.bf16 %v790_v56  ;;  %v403_v6 = vmul.f32 %v865_v3, %v865_v3 }
  0x1f   : > { %v295_v55 = vsel %vm265_vm1, %v930_v51, 0.0  ;;  %v297_v59 = vsel %vm265_vm1, %v934_v54, 0.0  ;;  %v299_v62 = vsel %vm265_vm1, %v939_v58, 0.0  ;;  %v404_v9 = vmul.f32 %v867_v4, %v867_v4 }
  0x20   : > { %v276_v25 = vadd.f32 %v275_v20, %v274_v22  ;;  %v301_v2 = vsel %vm265_vm1, %v943_v61, 0.0  ;;  %v405_v10 = vmul.f32 %v869_v5, %v869_v5  ;;  %v958_v11 = vunpack.c.l.bf16 %v791_v63 }
  0x21   : > { %v303_v13 = vsel %vm265_vm1, %v948_v1, 0.0  ;;  %v406_v17 = vmul.f32 %v872_v7, %v872_v7  ;;  %v965_v18 = vunpack.c.h.bf16 %v791_v63  ;;  %v467_v4 = vsel %vm265_vm1, %v403_v6, 0.0 }
  0x22   : > { %v278_v29 = vadd.f32 %v277_v24, %v276_v25  ;;  %v305_v3 = vsel %vm265_vm1, %v958_v11, 0.0  ;;  %v407_v5 = vmul.f32 %v880_v12, %v880_v12  ;;  %v468_v21 = vsel %vm265_vm1, %v404_v9, 0.0 }
  0x23   : > { %v470_v22 = vsel %vm265_vm1, %v405_v10, 0.0  ;;  %v974_v24 = vunpack.c.l.bf16 %v792_v14  ;;  %v307_v7 = vsel %vm265_vm1, %v965_v18, 0.0  ;;  %v469_v25 = vadd.f32 %v468_v21, %v467_v4 }
  0x24   : > { %v280_v32 = vadd.f32 %v279_v27, %v278_v29  ;;  %v793_v27 = vld [vmem:[%s860_s15 + $0x60] sm:$0xff]   ;;  %v408_v29 = vmul.f32 %v885_v16, %v885_v16  ;;  %v1012_v63 = vunpack.c.h.bf16 %v794_v42  ;;  %v413_v6 = vmul.f32 %v907_v33, %v907_v33 }
  0x25   : > { %v309_v12 = vsel %vm265_vm1, %v974_v24, 0.0 }
  0x26   : > { %v282_v36 = vadd.f32 %v281_v31, %v280_v32  ;;  %v472_v31 = vsel %vm265_vm1, %v406_v17, 0.0  ;;  %v982_v32 = vunpack.c.h.bf16 %v792_v14  ;;  %v486_v21 = vsel %vm265_vm1, %v413_v6, 0.0 }
  0x28   : > { %v284_v39 = vadd.f32 %v283_v34, %v282_v36  ;;  %v471_v34 = vadd.f32 %v470_v22, %v469_v25  ;;  %v409_v36 = vmul.f32 %v889_v19, %v889_v19  ;;  %v311_v16 = vsel %vm265_vm1, %v982_v32, 0.0  ;;  %v797_v25 = vld [vmem:[%s860_s15 + $0x80] sm:$0xff]  }
  0x2a   : > { %v286_v43 = vadd.f32 %v285_v38, %v284_v39  ;;  %v474_v38 = vsel %vm265_vm1, %v407_v5, 0.0  ;;  %v989_v39 = vunpack.c.l.bf16 %v793_v27  ;;  %v415_v5 = vmul.f32 %v916_v40, %v916_v40 }
  0x2c   : > { %v288_v46 = vadd.f32 %v287_v41, %v286_v43  ;;  %v473_v41 = vadd.f32 %v472_v31, %v471_v34  ;;  %v313_v19 = vsel %vm265_vm1, %v989_v39, 0.0 }
  0x2e   : > { %v290_v50 = vadd.f32 %v289_v45, %v288_v46  ;;  %v410_v45 = vmul.f32 %v894_v23, %v894_v23  ;;  %v476_v46 = vsel %vm265_vm1, %v408_v29, 0.0  ;;  %v475_v49 = vadd.f32 %v474_v38, %v473_v41  ;;  %v798_v41 = vld [vmem:[%s860_s15 + $0x88] sm:$0xff]  }
  0x2f   : > { %v1049_v38 = vunpack.c.l.bf16 %v797_v25 }
  0x30   : > { %v292_v53 = vadd.f32 %v291_v48, %v290_v50  ;;  %v997_v48 = vunpack.c.h.bf16 %v793_v27  ;;  %v477_v56 = vadd.f32 %v476_v46, %v475_v49  ;;  %v1057_v46 = vunpack.c.h.bf16 %v797_v25 }
  0x32   : > { %v294_v57 = vadd.f32 %v293_v52, %v292_v53  ;;  %v411_v52 = vmul.f32 %v898_v26, %v898_v26  ;;  %v478_v53 = vsel %vm265_vm1, %v409_v36, 0.0  ;;  %v315_v23 = vsel %vm265_vm1, %v997_v48, 0.0 }
  0x33   : > { %v490_v36 = vsel %vm265_vm1, %v415_v5, 0.0 }
  0x34   : > { %v296_v60 = vadd.f32 %v295_v55, %v294_v57  ;;  %v1004_v55 = vunpack.c.l.bf16 %v794_v42  ;;  %v795_v57 = vld [vmem:[%s860_s15 + $0x70] sm:$0xff]  }
  0x35   : > { %v1019_v9 = vunpack.c.l.bf16 %v795_v57 }
  0x36   : > { %v298_v0 = vadd.f32 %v297_v59, %v296_v60  ;;  %v412_v60 = vmul.f32 %v903_v30, %v903_v30  ;;  %v317_v26 = vsel %vm265_vm1, %v1004_v55, 0.0  ;;  %v319_v30 = vsel %vm265_vm1, %v1012_v63, 0.0 }
  0x37   : > { %v321_v33 = vsel %vm265_vm1, %v1019_v9, 0.0 }
  0x38   : > { %v300_v8 = vadd.f32 %v299_v62, %v298_v0  ;;  %v480_v62 = vsel %vm265_vm1, %v410_v45, 0.0  ;;  %v479_v0 = vadd.f32 %v478_v53, %v477_v56  ;;  %v484_v17 = vsel %vm265_vm1, %v412_v60, 0.0  ;;  %v799_v56 = vld [vmem:[%s860_s15 + $0x90] sm:$0xff]  }
  0x39   : > { %v1064_v53 = vunpack.c.l.bf16 %v798_v41 }
  0x3a   : > { %v302_v15 = vadd.f32 %v301_v2, %v300_v8  ;;  %v482_v8 = vsel %vm265_vm1, %v411_v52, 0.0  ;;  %v481_v10 = vadd.f32 %v480_v62, %v479_v0  ;;  %v1072_v62 = vunpack.c.h.bf16 %v798_v41 }
  0x3c   : > { %v304_v20 = vadd.f32 %v303_v13, %v302_v15  ;;  %v796_v13 = vld [vmem:[%s860_s15 + $0x78] sm:$0xff]   ;;  %v414_v15 = vmul.f32 %v912_v37, %v912_v37  ;;  %v483_v4 = vadd.f32 %v482_v8, %v481_v10  ;;  %v1079_v8 = vunpack.c.l.bf16 %v799_v56 }
  0x3d   : > { %v1034_v22 = vunpack.c.l.bf16 %v796_v13  ;;  %v1042_v31 = vunpack.c.h.bf16 %v796_v13  ;;  %v800_v10 = vld [vmem:[%s860_s15 + $0x98] sm:$0xff]  }
  0x3e   : > { %v306_v28 = vadd.f32 %v305_v3, %v304_v20  ;;  %v1027_v3 = vunpack.c.h.bf16 %v795_v57  ;;  %v488_v29 = vsel %vm265_vm1, %v414_v15, 0.0 }
  0x3f   : > { %v325_v40 = vsel %vm265_vm1, %v1034_v22, 0.0 }
  0x40   : > { %v308_v35 = vadd.f32 %v307_v7, %v306_v28  ;;  %v323_v37 = vsel %vm265_vm1, %v1027_v3, 0.0  ;;  %v485_v7 = vadd.f32 %v484_v17, %v483_v4  ;;  %v416_v28 = vmul.f32 %v921_v44, %v921_v44 }
  0x41   : > { %v327_v44 = vsel %vm265_vm1, %v1042_v31, 0.0  ;;  %v1087_v17 = vunpack.c.h.bf16 %v799_v56 }
  0x42   : > { %v310_v43 = vadd.f32 %v309_v12, %v308_v35  ;;  %v487_v12 = vadd.f32 %v486_v21, %v485_v7  ;;  %v417_v35 = vmul.f32 %v925_v47, %v925_v47  ;;  %v492_v45 = vsel %vm265_vm1, %v416_v28, 0.0  ;;  %v801_v7 = vld [vmem:[%s860_s15 + $0xa0] sm:$0xff]  }
  0x43   : > { %v329_v47 = vsel %vm265_vm1, %v1049_v38, 0.0  ;;  %v1094_v21 = vunpack.c.l.bf16 %v800_v10 }
  0x44   : > { %v312_v50 = vadd.f32 %v311_v16, %v310_v43  ;;  %v489_v16 = vadd.f32 %v488_v29, %v487_v12  ;;  %v418_v43 = vmul.f32 %v930_v51, %v930_v51  ;;  %v494_v52 = vsel %vm265_vm1, %v417_v35, 0.0 }
  0x45   : > { %v331_v51 = vsel %vm265_vm1, %v1057_v46, 0.0  ;;  %v1102_v29 = vunpack.c.h.bf16 %v800_v10 }
  0x46   : > { %v314_v59 = vadd.f32 %v313_v19, %v312_v50  ;;  %v491_v19 = vadd.f32 %v490_v36, %v489_v16  ;;  %v419_v50 = vmul.f32 %v934_v54, %v934_v54  ;;  %v496_v60 = vsel %vm265_vm1, %v418_v43, 0.0  ;;  %v802_v16 = vld [vmem:[%s860_s15 + $0xa8] sm:$0xff]  }
  0x47   : > { %v333_v54 = vsel %vm265_vm1, %v1064_v53, 0.0  ;;  %v1109_v36 = vunpack.c.l.bf16 %v801_v7 }
  0x48   : > { %v316_v2 = vadd.f32 %v315_v23, %v314_v59  ;;  %v493_v23 = vadd.f32 %v492_v45, %v491_v19  ;;  %v420_v59 = vmul.f32 %v939_v58, %v939_v58  ;;  %v498_v6 = vsel %vm265_vm1, %v419_v50, 0.0 }
  0x49   : > { %v335_v58 = vsel %vm265_vm1, %v1072_v62, 0.0  ;;  %v1117_v45 = vunpack.c.h.bf16 %v801_v7 }
  0x4a   : > { %v318_v14 = vadd.f32 %v317_v26, %v316_v2  ;;  %v495_v26 = vadd.f32 %v494_v52, %v493_v23  ;;  %v421_v2 = vmul.f32 %v943_v61, %v943_v61  ;;  %v500_v15 = vsel %vm265_vm1, %v420_v59, 0.0  ;;  %v803_v23 = vld [vmem:[%s860_s15 + $0xb0] sm:$0xff]  }
  0x4b   : > { %v337_v61 = vsel %vm265_vm1, %v1079_v8, 0.0  ;;  %v1124_v52 = vunpack.c.l.bf16 %v802_v16 }
  0x4c   : > { %v320_v20 = vadd.f32 %v319_v30, %v318_v14  ;;  %v497_v30 = vadd.f32 %v496_v60, %v495_v26  ;;  %v422_v14 = vmul.f32 %v948_v1, %v948_v1  ;;  %v502_v5 = vsel %vm265_vm1, %v421_v2, 0.0 }
  0x4d   : > { %v339_v1 = vsel %vm265_vm1, %v1087_v17, 0.0  ;;  %v1132_v60 = vunpack.c.h.bf16 %v802_v16 }
  0x4e   : > { %v322_v27 = vadd.f32 %v321_v33, %v320_v20  ;;  %v499_v33 = vadd.f32 %v498_v6, %v497_v30  ;;  %v423_v20 = vmul.f32 %v958_v11, %v958_v11  ;;  %v504_v28 = vsel %vm265_vm1, %v422_v14, 0.0  ;;  %v804_v30 = vld [vmem:[%s860_s15 + $0xb8] sm:$0xff]  }
  0x4f   : > { %v341_v11 = vsel %vm265_vm1, %v1094_v21, 0.0  ;;  %v1139_v6 = vunpack.c.l.bf16 %v803_v23 }
  0x50   : > { %v324_v34 = vadd.f32 %v323_v37, %v322_v27  ;;  %v501_v37 = vadd.f32 %v500_v15, %v499_v33  ;;  %v424_v27 = vmul.f32 %v965_v18, %v965_v18  ;;  %v506_v35 = vsel %vm265_vm1, %v423_v20, 0.0 }
  0x51   : > { %v343_v18 = vsel %vm265_vm1, %v1102_v29, 0.0  ;;  %v1147_v15 = vunpack.c.h.bf16 %v803_v23 }
  0x52   : > { %v326_v42 = vadd.f32 %v325_v40, %v324_v34  ;;  %v503_v40 = vadd.f32 %v502_v5, %v501_v37  ;;  %v425_v34 = vmul.f32 %v974_v24, %v974_v24  ;;  %v508_v43 = vsel %vm265_vm1, %v424_v27, 0.0  ;;  %v805_v37 = vld [vmem:[%s860_s15 + $0xc0] sm:$0xff]  }
  0x53   : > { %v345_v24 = vsel %vm265_vm1, %v1109_v36, 0.0  ;;  %v1154_v5 = vunpack.c.l.bf16 %v804_v30 }
  0x54   : > { %v328_v49 = vadd.f32 %v327_v44, %v326_v42  ;;  %v505_v44 = vadd.f32 %v504_v28, %v503_v40  ;;  %v426_v42 = vmul.f32 %v982_v32, %v982_v32  ;;  %v510_v50 = vsel %vm265_vm1, %v425_v34, 0.0 }
  0x55   : > { %v347_v32 = vsel %vm265_vm1, %v1117_v45, 0.0  ;;  %v1162_v28 = vunpack.c.h.bf16 %v804_v30 }
  0x56   : > { %v330_v57 = vadd.f32 %v329_v47, %v328_v49  ;;  %v507_v47 = vadd.f32 %v506_v35, %v505_v44  ;;  %v427_v49 = vmul.f32 %v989_v39, %v989_v39  ;;  %v512_v59 = vsel %vm265_vm1, %v426_v42, 0.0  ;;  %v806_v44 = vld [vmem:[%s860_s15 + $0xc8] sm:$0xff]  }
  0x57   : > { %v349_v39 = vsel %vm265_vm1, %v1124_v52, 0.0  ;;  %v1169_v35 = vunpack.c.l.bf16 %v805_v37 }
  0x58   : > { %v332_v0 = vadd.f32 %v331_v51, %v330_v57  ;;  %v509_v51 = vadd.f32 %v508_v43, %v507_v47  ;;  %v428_v57 = vmul.f32 %v997_v48, %v997_v48  ;;  %v514_v2 = vsel %vm265_vm1, %v427_v49, 0.0 }
  0x59   : > { %v351_v48 = vsel %vm265_vm1, %v1132_v60, 0.0  ;;  %v1177_v43 = vunpack.c.h.bf16 %v805_v37 }
  0x5a   : > { %v334_v13 = vadd.f32 %v333_v54, %v332_v0  ;;  %v511_v54 = vadd.f32 %v510_v50, %v509_v51  ;;  %v429_v0 = vmul.f32 %v1004_v55, %v1004_v55  ;;  %v516_v14 = vsel %vm265_vm1, %v428_v57, 0.0  ;;  %v807_v51 = vld [vmem:[%s860_s15 + $0xd0] sm:$0xff]  }
  0x5b   : > { %v353_v55 = vsel %vm265_vm1, %v1139_v6, 0.0  ;;  %v1184_v50 = vunpack.c.l.bf16 %v806_v44 }
  0x5c   : > { %v336_v4 = vadd.f32 %v335_v58, %v334_v13  ;;  %v513_v58 = vadd.f32 %v512_v59, %v511_v54  ;;  %v430_v13 = vmul.f32 %v1012_v63, %v1012_v63  ;;  %v518_v20 = vsel %vm265_vm1, %v429_v0, 0.0 }
  0x5d   : > { %v355_v63 = vsel %vm265_vm1, %v1147_v15, 0.0  ;;  %v1192_v59 = vunpack.c.h.bf16 %v806_v44 }
  0x5e   : > { %v338_v25 = vadd.f32 %v337_v61, %v336_v4  ;;  %v515_v61 = vadd.f32 %v514_v2, %v513_v58  ;;  %v431_v4 = vmul.f32 %v1019_v9, %v1019_v9  ;;  %v520_v27 = vsel %vm265_vm1, %v430_v13, 0.0  ;;  %v808_v58 = vld [vmem:[%s860_s15 + $0xd8] sm:$0xff]  }
  0x5f   : > { %v357_v9 = vsel %vm265_vm1, %v1154_v5, 0.0  ;;  %v1199_v2 = vunpack.c.l.bf16 %v807_v51 }
  0x60   : > { %v340_v12 = vadd.f32 %v339_v1, %v338_v25  ;;  %v517_v1 = vadd.f32 %v516_v14, %v515_v61  ;;  %v432_v25 = vmul.f32 %v1027_v3, %v1027_v3  ;;  %v522_v34 = vsel %vm265_vm1, %v431_v4, 0.0 }
  0x61   : > { %v359_v3 = vsel %vm265_vm1, %v1162_v28, 0.0  ;;  %v1207_v14 = vunpack.c.h.bf16 %v807_v51 }
  0x62   : > { %v342_v41 = vadd.f32 %v341_v11, %v340_v12  ;;  %v519_v11 = vadd.f32 %v518_v20, %v517_v1  ;;  %v433_v12 = vmul.f32 %v1034_v22, %v1034_v22  ;;  %v524_v42 = vsel %vm265_vm1, %v432_v25, 0.0  ;;  %v809_v1 = vld [vmem:[%s860_s15 + $0xe0] sm:$0xff]  }
  0x63   : > { %v361_v22 = vsel %vm265_vm1, %v1169_v35, 0.0  ;;  %v1214_v20 = vunpack.c.l.bf16 %v808_v58 }
  0x64   : > { %v344_v19 = vadd.f32 %v343_v18, %v342_v41  ;;  %v521_v18 = vadd.f32 %v520_v27, %v519_v11  ;;  %v434_v41 = vmul.f32 %v1042_v31, %v1042_v31  ;;  %v526_v49 = vsel %vm265_vm1, %v433_v12, 0.0 }
  0x65   : > { %v363_v31 = vsel %vm265_vm1, %v1177_v43, 0.0  ;;  %v1222_v27 = vunpack.c.h.bf16 %v808_v58 }
  0x66   : > { %v346_v56 = vadd.f32 %v345_v24, %v344_v19  ;;  %v523_v24 = vadd.f32 %v522_v34, %v521_v18  ;;  %v435_v19 = vmul.f32 %v1049_v38, %v1049_v38  ;;  %v528_v57 = vsel %vm265_vm1, %v434_v41, 0.0  ;;  %v810_v18 = vld [vmem:[%s860_s15 + $0xe8] sm:$0xff]  }
  0x67   : > { %v365_v38 = vsel %vm265_vm1, %v1184_v50, 0.0  ;;  %v1229_v34 = vunpack.c.l.bf16 %v809_v1 }
  0x68   : > { %v348_v26 = vadd.f32 %v347_v32, %v346_v56  ;;  %v525_v32 = vadd.f32 %v524_v42, %v523_v24  ;;  %v436_v56 = vmul.f32 %v1057_v46, %v1057_v46  ;;  %v530_v0 = vsel %vm265_vm1, %v435_v19, 0.0 }
  0x69   : > { %v367_v46 = vsel %vm265_vm1, %v1192_v59, 0.0  ;;  %v1237_v42 = vunpack.c.h.bf16 %v809_v1  ;;  %v448_v1 = vmul.f32 %v1147_v15, %v1147_v15  ;;  %v450_v15 = vmul.f32 %v1162_v28, %v1162_v28 }
  0x6a   : > { %v350_v10 = vadd.f32 %v349_v39, %v348_v26  ;;  %v527_v39 = vadd.f32 %v526_v49, %v525_v32  ;;  %v437_v26 = vmul.f32 %v1064_v53, %v1064_v53  ;;  %v532_v13 = vsel %vm265_vm1, %v436_v56, 0.0  ;;  %v811_v32 = vld [vmem:[%s860_s15 + $0xf0] sm:$0xff]  }
  0x6b   : > { %v369_v53 = vsel %vm265_vm1, %v1199_v2, 0.0  ;;  %v1244_v49 = vunpack.c.l.bf16 %v810_v18  ;;  %v453_v28 = vmul.f32 %v1184_v50, %v1184_v50  ;;  %v456_v50 = vmul.f32 %v1207_v14, %v1207_v14 }
  0x6c   : > { %v352_v33 = vadd.f32 %v351_v48, %v350_v10  ;;  %v529_v48 = vadd.f32 %v528_v57, %v527_v39  ;;  %v438_v10 = vmul.f32 %v1072_v62, %v1072_v62  ;;  %v534_v4 = vsel %vm265_vm1, %v437_v26, 0.0 }
  0x6d   : > { %v371_v62 = vsel %vm265_vm1, %v1207_v14, 0.0  ;;  %v1252_v57 = vunpack.c.h.bf16 %v810_v18  ;;  %v459_v14 = vmul.f32 %v1229_v34, %v1229_v34 }
  0x6e   : > { %v354_v7 = vadd.f32 %v353_v55, %v352_v33  ;;  %v531_v55 = vadd.f32 %v530_v0, %v529_v48  ;;  %v439_v33 = vmul.f32 %v1079_v8, %v1079_v8  ;;  %v536_v25 = vsel %vm265_vm1, %v438_v10, 0.0  ;;  %v812_v48 = vld [vmem:[%s860_s15 + $0xf8] sm:$0xff]  }
  0x6f   : > { %v373_v8 = vsel %vm265_vm1, %v1214_v20, 0.0  ;;  %v1259_v0 = vunpack.c.l.bf16 %v811_v32 }
  0x70   : > { %v356_v40 = vadd.f32 %v355_v63, %v354_v7  ;;  %v533_v63 = vadd.f32 %v532_v13, %v531_v55  ;;  %v440_v7 = vmul.f32 %v1087_v17, %v1087_v17  ;;  %v538_v12 = vsel %vm265_vm1, %v439_v33, 0.0 }
  0x71   : > { %v375_v17 = vsel %vm265_vm1, %v1222_v27, 0.0  ;;  %v1267_v13 = vunpack.c.h.bf16 %v811_v32 }
  0x72   : > { %v358_v16 = vadd.f32 %v357_v9, %v356_v40  ;;  %v535_v9 = vadd.f32 %v534_v4, %v533_v63  ;;  %v441_v40 = vmul.f32 %v1094_v21, %v1094_v21  ;;  %v540_v41 = vsel %vm265_vm1, %v440_v7, 0.0 }
  0x73   : > { %v377_v21 = vsel %vm265_vm1, %v1229_v34, 0.0  ;;  %v1274_v4 = vunpack.c.l.bf16 %v812_v48  ;;  %v1281_v7 = vunpack.c.h.bf16 %v812_v48 }
  0x74   : > { %v360_v47 = vadd.f32 %v359_v3, %v358_v16  ;;  %v537_v3 = vadd.f32 %v536_v25, %v535_v9  ;;  %v442_v16 = vmul.f32 %v1102_v29, %v1102_v29  ;;  %v542_v19 = vsel %vm265_vm1, %v441_v40, 0.0 }
  0x75   : > { %v379_v29 = vsel %vm265_vm1, %v1237_v42, 0.0  ;;  %v389_v25 = vsel %vm265_vm1, %v1274_v4, 0.0  ;;  %v449_v9 = vmul.f32 %v1154_v5, %v1154_v5  ;;  %v391_v40 = vsel %vm265_vm1, %v1281_v7, 0.0 }
  0x76   : > { %v362_v23 = vadd.f32 %v361_v22, %v360_v47  ;;  %v539_v22 = vadd.f32 %v538_v12, %v537_v3  ;;  %v443_v47 = vmul.f32 %v1109_v36, %v1109_v36  ;;  %v544_v56 = vsel %vm265_vm1, %v442_v16, 0.0 }
  0x77   : > { %v381_v36 = vsel %vm265_vm1, %v1244_v49, 0.0  ;;  %v556_v3 = vsel %vm265_vm1, %v448_v1, 0.0  ;;  %v451_v16 = vmul.f32 %v1169_v35, %v1169_v35  ;;  %v454_v35 = vmul.f32 %v1192_v59, %v1192_v59 }
  0x78   : > { %v364_v54 = vadd.f32 %v363_v31, %v362_v23  ;;  %v541_v31 = vadd.f32 %v540_v41, %v539_v22  ;;  %v444_v23 = vmul.f32 %v1117_v45, %v1117_v45  ;;  %v546_v26 = vsel %vm265_vm1, %v443_v47, 0.0 }
  0x79   : > { %v558_v41 = vsel %vm265_vm1, %v449_v9, 0.0  ;;  %v452_v22 = vmul.f32 %v1177_v43, %v1177_v43  ;;  %v455_v43 = vmul.f32 %v1199_v2, %v1199_v2  ;;  %v457_v59 = vmul.f32 %v1214_v20, %v1214_v20 }
  0x7a   : > { %v366_v30 = vadd.f32 %v365_v38, %v364_v54  ;;  %v543_v38 = vadd.f32 %v542_v19, %v541_v31  ;;  %v445_v54 = vmul.f32 %v1124_v52, %v1124_v52  ;;  %v548_v10 = vsel %vm265_vm1, %v444_v23, 0.0 }
  0x7b   : > { %v385_v52 = vsel %vm265_vm1, %v1259_v0, 0.0  ;;  %v570_v48 = vsel %vm265_vm1, %v455_v43, 0.0  ;;  %v460_v20 = vmul.f32 %v1237_v42, %v1237_v42  ;;  %v465_v9 = vmul.f32 %v1274_v4, %v1274_v4 }
  0x7c   : > { %v368_v61 = vadd.f32 %v367_v46, %v366_v30  ;;  %v383_v46 = vsel %vm265_vm1, %v1252_v57, 0.0  ;;  %v545_v45 = vadd.f32 %v544_v56, %v543_v38  ;;  %v446_v30 = vmul.f32 %v1132_v60, %v1132_v60 }
  0x7d   : > { %v550_v33 = vsel %vm265_vm1, %v445_v54, 0.0  ;;  %v568_v54 = vsel %vm265_vm1, %v454_v35, 0.0  ;;  %v580_v34 = vsel %vm265_vm1, %v460_v20, 0.0 }
  0x7e   : > { %v370_v37 = vadd.f32 %v369_v53, %v368_v61  ;;  %v547_v53 = vadd.f32 %v546_v26, %v545_v45  ;;  %v447_v61 = vmul.f32 %v1139_v6, %v1139_v6  ;;  %v264_v26 = vld [vmem:[#allocation2] sm:$0x1] }
  0x80   : > { %v372_v11 = vadd.f32 %v371_v62, %v370_v37  ;;  %v387_v62 = vsel %vm265_vm1, %v1267_v13, 0.0  ;;  %v549_v60 = vadd.f32 %v548_v10, %v547_v53  ;;  %v552_v37 = vsel %vm265_vm1, %v446_v30, 0.0 }
  0x81   : > { %v458_v30 = vmul.f32 %v1222_v27, %v1222_v27  ;;  %v572_v10 = vsel %vm265_vm1, %v456_v50, 0.0  ;;  %v574_v53 = vsel %vm265_vm1, %v457_v59, 0.0  ;;  %v461_v27 = vmul.f32 %v1244_v49, %v1244_v49 }
  0x82   : > { %v374_v44 = vadd.f32 %v373_v8, %v372_v11  ;;  %v551_v6 = vadd.f32 %v550_v33, %v549_v60  ;;  %v554_v11 = vsel %vm265_vm1, %v447_v61, 0.0 }
  0x83   : > { %v576_v61 = vsel %vm265_vm1, %v458_v30, 0.0  ;;  %v582_v42 = vsel %vm265_vm1, %v461_v27, 0.0 }
  0x84   : > { %v376_v24 = vadd.f32 %v375_v17, %v374_v44  ;;  %v553_v12 = vadd.f32 %v552_v37, %v551_v6  ;;  %v463_v37 = vmul.f32 %v1259_v0, %v1259_v0  ;;  %v464_v6 = vmul.f32 %v1267_v13, %v1267_v13 }
  0x86   : > { %v378_v51 = vadd.f32 %v377_v21, %v376_v24  ;;  %v555_v18 = vadd.f32 %v554_v11, %v553_v12  ;;  %v560_v24 = vsel %vm265_vm1, %v450_v15, 0.0  ;;  %v588_v0 = vsel %vm265_vm1, %v464_v6, 0.0 }
  0x88   : > { %v380_v39 = vadd.f32 %v379_v29, %v378_v51  ;;  %v557_v5 = vadd.f32 %v556_v3, %v555_v18  ;;  %v562_v29 = vsel %vm265_vm1, %v451_v16, 0.0  ;;  %v564_v51 = vsel %vm265_vm1, %v452_v22, 0.0 }
  0x8a   : > { %v382_v58 = vadd.f32 %v381_v36, %v380_v39  ;;  %v559_v47 = vadd.f32 %v558_v41, %v557_v5  ;;  %v566_v36 = vsel %vm265_vm1, %v453_v28, 0.0 }
  0x8c   : > { %v384_v55 = vadd.f32 %v383_v46, %v382_v58  ;;  %v561_v31 = vadd.f32 %v560_v24, %v559_v47 }
  0x8e   : > { %v386_v63 = vadd.f32 %v385_v52, %v384_v55  ;;  %v563_v23 = vadd.f32 %v562_v29, %v561_v31 }
  0x90   : > { %v388_v8 = vadd.f32 %v387_v62, %v386_v63  ;;  %v565_v38 = vadd.f32 %v564_v51, %v563_v23  ;;  %v578_v62 = vsel %vm265_vm1, %v459_v14, 0.0  ;;  %v462_v63 = vmul.f32 %v1252_v57, %v1252_v57 }
  0x91   : > { %v586_v57 = vsel %vm265_vm1, %v463_v37, 0.0 }
  0x92   : > { %v390_v17 = vadd.f32 %v389_v25, %v388_v8  ;;  %v567_v46 = vadd.f32 %v566_v36, %v565_v38  ;;  %v584_v49 = vsel %vm265_vm1, %v462_v63, 0.0 }
  0x94   : > { %v392_v44 = vadd.f32 %v391_v40, %v390_v17  ;;  %v569_v58 = vadd.f32 %v568_v54, %v567_v46  ;;  %v466_v40 = vmul.f32 %v1281_v7, %v1281_v7  ;;  %v590_v17 = vsel %vm265_vm1, %v465_v9, 0.0 }
  0x96   : > { %v393_v21 = vrot.slane %v392_v44, 4  ;;  %v571_v52 = vadd.f32 %v570_v48, %v569_v58  ;;  %v592_v13 = vsel %vm265_vm1, %v466_v40, 0.0 }
  0x98   : > { %v394_v19 = vadd.f32 %v393_v21, %v392_v44  ;;  %v573_v55 = vadd.f32 %v572_v10, %v571_v52  ;;  %v402_v21 = vld [vmem:[#allocation3] sm:$0x1] }
  0x9a   : > { %v395_v32 = vrot.slane %v394_v19, 2  ;;  %v575_v33 = vadd.f32 %v574_v53, %v573_v55 }
  0x9c   : > { %v396_v56 = vadd.f32 %v395_v32, %v394_v19  ;;  %v577_v60 = vadd.f32 %v576_v61, %v575_v33 }
  0x9e   : > { %v397_v39 = vrot.slane %v396_v56, 1  ;;  %v579_v1 = vadd.f32 %v578_v62, %v577_v60 }
  0xa0   : > { %v398_v45 = vadd.f32 %v397_v39, %v396_v56  ;;  %v581_v25 = vadd.f32 %v580_v34, %v579_v1 }
  0xa2   : > { %v399_v2 = vadd.f32 %v398_v45, %v264_v26  ;;  %v583_v8 = vadd.f32 %v582_v42, %v581_v25 }
  0xa4   : > { %401 = vst.msk [vmem:[#allocation2] sm:$0x1] %vm400_vm2, %v399_v2  ;;  %v585_v11 = vadd.f32 %v584_v49, %v583_v8 }
  0xa6   : > { %v587_v12 = vadd.f32 %v586_v57, %v585_v11 }
  0xa8   : > { %v589_v15 = vadd.f32 %v588_v0, %v587_v12 }
  0xaa   : > { %v591_v3 = vadd.f32 %v590_v17, %v589_v15 }
  0xab   : > { %v606_v7 = vld [vmem:[#allocation2] sm:$0x1] (!%p651_p5) }
  0xac   : > { %v593_v18 = vadd.f32 %v592_v13, %v591_v3  ;;  %607 = vst.msk [vmem:[%s1358_s1] sm:$0x1] (!%p651_p5), %vm400_vm2, %v606_v7 }
  0xae   : > { %v594_v44 = vrot.slane %v593_v18, 4 }
  0xb0   : > { %v595_v16 = vadd.f32 %v594_v44, %v593_v18 }
  0xb2   : > { %v596_v41 = vrot.slane %v595_v16, 2 }
  0xb4   : > { %v597_v4 = vadd.f32 %v596_v41, %v595_v16 }
  0xb6   : > { %v598_v5 = vrot.slane %v597_v4, 1  ;;  %605 = sbr.rel (%p651_p5) target bundleno = 197 (0xc5), region = 32 }
  0xb8   : > { %v599_v22 = vadd.f32 %v598_v5, %v597_v4 }
  0xba   : > { %v600_v24 = vadd.f32 %v599_v22, %v402_v21 }
  0xbc   : > { %601 = vst.msk [vmem:[#allocation3] sm:$0x1] %vm400_vm2, %v600_v24 }
  0xc3   : > { %v608_v47 = vld [vmem:[#allocation3] sm:$0x1] }
  0xc4   : > { %609 = vst.msk [vmem:[%s1359_s2] sm:$0x1] %vm400_vm2, %v608_v47 }
  0xc5 PF: > { %s13_s9 = sadd.s32 1, %s828_s9  }
  0xc6   : > { %p10_p6 = scmp.ge.s32.totalorder %s13_s9, 18  }
  0xc8   :  { %12 = sbr.rel (!%p10_p6) target bundleno = 1 (0x1), region = 66 }

// kernel: cond_cnn_generator_forward.23
= control target key start
LH: loop header
LB: loop body
LE: loop exit
PB: predicated region body
PF: predicated region fallthrough
CT: control target
= control target key end

     0   :  { %s1859_s9 = smov 0   ;;  %s1861_s10 = smov 0   ;;  %s2313_s0 = inlined_call_operand.vmem [shape: bf16[8192,72], index: 0, kind: input, shape index: {}]   ;;  %s2314_s1 = inlined_call_operand.vmem [shape: bf16[72,1], index: 1, kind: input, shape index: {}]   ;;  %s2315_s2 = inlined_call_operand.vmem [shape: f32[8192,1], index: 2, kind: output, shape index: {}]  }
   0x1   :  { %s1863_s11 = smov 0  }
   0x2 LB: > { %s31_s12 = sadd.s32 1, %s1837_s10  ;;  %p1430_p0 = scmp.ge.s32.totalorder %s1841_s11, 1  ;;  %s1841_s11 = sphi %s1863_s11, %s12_s11   ;;  %s1837_s10 = sphi %s1861_s10, %s2317_s10   ;;  %s1833_s9 = sphi %s1859_s9, %s2316_s9  }
   0x3   : > { %p33_p1 = scmp.ge.s32.totalorder %s31_s12, 16  ;;  %p155_p2 = scmp.lt.s32.totalorder %s1841_s11, 17 }
   0x5   : > { %s2319_s12 = smov (%p33_p1, %s31_s12), 0  ;;  %p156_p3 = pnand %p1430_p0, %p155_p2 }
   0x6   : > { %v1654_v0 = vld [vmem:[%s2314_s1] sm:$0xff] (!%p156_p3)   ;;  %v1883_v1 = vld [vmem:[%s2314_s1 + $0x8] sm:$0xff] (!%p156_p3)   ;;  %s1431_s17 = sshll.u32 (!%p156_p3), %s1833_s9, 6  ;;  %v1890_v2 = vld [vmem:[%s2314_s1 + $0x10] sm:$0xff] (!%p156_p3)   ;;  %vm223_vm0 = vcmask (!%p156_p3), 7168   ;;  %v1843_v3 = vmov (!%p156_p3), 0.0  }
   0x7   : > { %159 = sbr.rel (%p156_p3) target bundleno = 327 (0x147), region = 28  ;;  %1543 = vmatprep.subr.bf16.mxu0 (!%p156_p3), %v1654_v0  ;;  %1617 = vmatprep.subr.bf16.mxu1 (!%p156_p3), %v1654_v0  ;;  %p192_p4 = scmp.lt.s32.totalorder (!%p156_p3), %s1431_s17, 1023  ;;  %226 = vst.msk [vmem:[#allocation2 + $0x10] sm:$0xff] (!%p156_p3), %vm223_vm0, %v1843_v3  ;;  %224 = vst.msk [vmem:[#allocation2] sm:$0xff] (!%p156_p3), %vm223_vm0, %v1843_v3  ;;  %v1657_v4 = vld [vmem:[%s2314_s1 + $0x18] sm:$0xff] (!%p156_p3)   ;;  %vm612_vm1 = vcmask (!%p156_p3), 588800  }
   0x8   : > { %1544 = vmatpush3.bf16.msra.mxu0 (!%p156_p3), %v1654_v0  ;;  %1622 = vmatpush3.bf16.msra.mxu1 (!%p156_p3), %v1654_v0  ;;  %225 = vst.msk [vmem:[#allocation2 + $0x8] sm:$0xff] (!%p156_p3), %vm223_vm0, %v1843_v3  ;;  %227 = vst.msk [vmem:[#allocation2 + $0x18] sm:$0xff] (!%p156_p3), %vm223_vm0, %v1843_v3  ;;  %v1658_v7 = vld [vmem:[%s2314_s1 + $0x20] ss:$0 sps:$4 sm:$0xff] (!%p156_p3)   ;;  %vm709_vm2 = vcmask (!%p156_p3), 1043456  }
   0x9   : > { %1545 = vmatprep.subr.bf16.mxu0 (!%p156_p3), %v1883_v1  ;;  %1618 = vmatprep.subr.bf16.mxu1 (!%p156_p3), %v1883_v1  ;;  %228 = vst.msk [vmem:[#allocation2 + $0x20] sm:$0xff] (!%p156_p3), %vm223_vm0, %v1843_v3  ;;  %229 = vst.msk [vmem:[#allocation2 + $0x28] sm:$0xff] (!%p156_p3), %vm223_vm0, %v1843_v3  ;;  %v711_v8 = vsel (!%p156_p3), %vm709_vm2, %v1658_v7, 0 }
   0xa   : > { %230 = vst.msk [vmem:[#allocation2 + $0x30] sm:$0xff] (!%p156_p3), %vm223_vm0, %v1843_v3  ;;  %231 = vst.msk [vmem:[#allocation2 + $0x38] sm:$0xff] (!%p156_p3), %vm223_vm0, %v1843_v3 }
   0xb   : > { %232 = vst.msk [vmem:[#allocation2 + $0x40] sm:$0xff] (!%p156_p3), %vm223_vm0, %v1843_v3  ;;  %233 = vst.msk [vmem:[#allocation2 + $0x48] sm:$0xff] (!%p156_p3), %vm223_vm0, %v1843_v3 }
   0xc   : > { %234 = vst.msk [vmem:[#allocation2 + $0x50] sm:$0xff] (!%p156_p3), %vm223_vm0, %v1843_v3  ;;  %235 = vst.msk [vmem:[#allocation2 + $0x58] sm:$0xff] (!%p156_p3), %vm223_vm0, %v1843_v3  ;;  %1546 = vmatpush3.bf16.msra.mxu0 (!%p156_p3), %v1883_v1  ;;  %1623 = vmatpush3.bf16.msra.mxu1 (!%p156_p3), %v1883_v1 }
   0xd   : > { %236 = vst.msk [vmem:[#allocation2 + $0x60] sm:$0xff] (!%p156_p3), %vm223_vm0, %v1843_v3  ;;  %237 = vst.msk [vmem:[#allocation2 + $0x68] sm:$0xff] (!%p156_p3), %vm223_vm0, %v1843_v3  ;;  %1547 = vmatprep.subr.bf16.mxu0 (!%p156_p3), %v1890_v2  ;;  %1619 = vmatprep.subr.bf16.mxu1 (!%p156_p3), %v1890_v2 }
   0xe   : > { %s2321_s17 = smov (!%p192_p4, %s1431_s17), 1023  ;;  %238 = vst.msk [vmem:[#allocation2 + $0x70] sm:$0xff] %vm223_vm0, %v1843_v3  ;;  %239 = vst.msk [vmem:[#allocation2 + $0x78] sm:$0xff] %vm223_vm0, %v1843_v3  ;;  %v290_v39 = vld [vmem:[#allocation2 + $0x10] sm:$0xff]  ;;  %v288_v41 = vld [vmem:[#allocation2] sm:$0xff] }
   0xf   : > { %s1432_s20 = sshll.u32 %s2321_s17, 2  ;;  %240 = vst.msk [vmem:[#allocation2 + $0x80] sm:$0xff] %vm223_vm0, %v1843_v3  ;;  %241 = vst.msk [vmem:[#allocation2 + $0x88] sm:$0xff] %vm223_vm0, %v1843_v3  ;;  %v291_v45 = vld [vmem:[#allocation2 + $0x18] sm:$0xff]  ;;  %v289_v51 = vld [vmem:[#allocation2 + $0x8] sm:$0xff]  ;;  %s1434_s28 = sshll.u32 %s2321_s17, 3 }
  0x10   : > { %242 = vst.msk [vmem:[#allocation2 + $0x90] sm:$0xff] %vm223_vm0, %v1843_v3  ;;  %243 = vst.msk [vmem:[#allocation2 + $0x98] sm:$0xff] %vm223_vm0, %v1843_v3  ;;  %s2033_s25 = scalar_lea.vmem %s2313_s0, %s1432_s20  ;;  %1548 = vmatpush3.bf16.msra.mxu0 %v1890_v2  ;;  %1624 = vmatpush3.bf16.msra.mxu1 %v1890_v2  ;;  %v292_v1 = vld [vmem:[#allocation2 + $0x20] sm:$0xff]  ;;  %s2126_s3 = scalar_lea.vmem %s2315_s2, %s1434_s28 }
  0x11   : > { %244 = vst.msk [vmem:[#allocation2 + $0xa0] sm:$0xff] %vm223_vm0, %v1843_v3  ;;  %245 = vst.msk [vmem:[#allocation2 + $0xa8] sm:$0xff] %vm223_vm0, %v1843_v3  ;;  %v1659_v5 = vld [vmem:[%s2033_s25] sm:$0xff]   ;;  %1549 = vmatprep.subr.bf16.mxu0 %v1657_v4  ;;  %1620 = vmatprep.subr.bf16.mxu1 %v1657_v4  ;;  %v1661_v9 = vld [vmem:[%s2033_s25 + $0x8] sm:$0xff]  }
  0x12   : > { %246 = vst.msk [vmem:[#allocation2 + $0xb0] sm:$0xff] %vm223_vm0, %v1843_v3  ;;  %247 = vst.msk [vmem:[#allocation2 + $0xb8] sm:$0xff] %vm223_vm0, %v1843_v3  ;;  %v1660_v6 = vld [vmem:[%s2033_s25 + $0x80] sm:$0xff]   ;;  %1553 = vmatprep.mubr.msk.bf16.mxu0 %vm612_vm1, %v1659_v5  ;;  %v1662_v10 = vld [vmem:[%s2033_s25 + $0x88] sm:$0xff]  }
  0x13   : > { %248 = vst.msk [vmem:[#allocation2 + $0xc0] sm:$0xff] %vm223_vm0, %v1843_v3  ;;  %249 = vst.msk [vmem:[#allocation2 + $0xc8] sm:$0xff] %vm223_vm0, %v1843_v3  ;;  %1585 = vmatprep.mubr.msk.bf16.mxu1 %vm612_vm1, %v1660_v6  ;;  %v1663_v11 = vld [vmem:[%s2033_s25 + $0x10] sm:$0xff]   ;;  %v1665_v13 = vld [vmem:[%s2033_s25 + $0x18] sm:$0xff]  }
  0x14   : > { %250 = vst.msk [vmem:[#allocation2 + $0xd0] sm:$0xff] %vm223_vm0, %v1843_v3  ;;  %251 = vst.msk [vmem:[#allocation2 + $0xd8] sm:$0xff] %vm223_vm0, %v1843_v3  ;;  %1550 = vmatpush3.bf16.msra.mxu0 %v1657_v4  ;;  %1625 = vmatpush3.bf16.msra.mxu1 %v1657_v4  ;;  %v1664_v12 = vld [vmem:[%s2033_s25 + $0x90] sm:$0xff]   ;;  %v1666_v14 = vld [vmem:[%s2033_s25 + $0x98] sm:$0xff]  }
  0x15   : > { %252 = vst.msk [vmem:[#allocation2 + $0xe0] sm:$0xff] %vm223_vm0, %v1843_v3  ;;  %253 = vst.msk [vmem:[#allocation2 + $0xe8] sm:$0xff] %vm223_vm0, %v1843_v3  ;;  %1627 = vmatprep.subr.msk.bf16.mxu0 %vm709_vm2, %v1658_v7  ;;  %1628 = vmatprep.subr.msk.bf16.mxu1 %vm709_vm2, %v1658_v7  ;;  %v1667_v15 = vld [vmem:[%s2033_s25 + $0x20] sm:$0xff]   ;;  %v1669_v17 = vld [vmem:[%s2033_s25 + $0x28] sm:$0xff]  }
  0x16   : > { %254 = vst.msk [vmem:[#allocation2 + $0xf0] sm:$0xff] %vm223_vm0, %v1843_v3  ;;  %255 = vst.msk [vmem:[#allocation2 + $0xf8] sm:$0xff] %vm223_vm0, %v1843_v3  ;;  %v1668_v16 = vld [vmem:[%s2033_s25 + $0xa0] sm:$0xff]   ;;  %v1670_v18 = vld [vmem:[%s2033_s25 + $0xa8] sm:$0xff]  }
  0x17   : > { %256 = vst.msk [vmem:[#allocation2 + $0x100] sm:$0xff] %vm223_vm0, %v1843_v3  ;;  %257 = vst.msk [vmem:[#allocation2 + $0x108] sm:$0xff] %vm223_vm0, %v1843_v3  ;;  %v1671_v19 = vld [vmem:[%s2033_s25 + $0x30] sm:$0xff]   ;;  %v1673_v21 = vld [vmem:[%s2033_s25 + $0x38] sm:$0xff]  }
  0x18   : > { %258 = vst.msk [vmem:[#allocation2 + $0x110] sm:$0xff] %vm223_vm0, %v1843_v3  ;;  %259 = vst.msk [vmem:[#allocation2 + $0x118] sm:$0xff] %vm223_vm0, %v1843_v3  ;;  %1552 = vmatpush3.bf16.msra.mxu0 %v711_v8  ;;  %1626 = vmatpush3.bf16.msra.mxu1 %v711_v8  ;;  %v1672_v20 = vld [vmem:[%s2033_s25 + $0xb0] sm:$0xff]   ;;  %v1674_v22 = vld [vmem:[%s2033_s25 + $0xb8] sm:$0xff]  }
  0x19   : > { %260 = vst.msk [vmem:[#allocation2 + $0x120] sm:$0xff] %vm223_vm0, %v1843_v3  ;;  %261 = vst.msk [vmem:[#allocation2 + $0x128] sm:$0xff] %vm223_vm0, %v1843_v3  ;;  %v1675_v23 = vld [vmem:[%s2033_s25 + $0x40] sm:$0xff]   ;;  %v1677_v25 = vld [vmem:[%s2033_s25 + $0x48] sm:$0xff]  }
  0x1a   : > { %262 = vst.msk [vmem:[#allocation2 + $0x130] sm:$0xff] %vm223_vm0, %v1843_v3  ;;  %263 = vst.msk [vmem:[#allocation2 + $0x138] sm:$0xff] %vm223_vm0, %v1843_v3  ;;  %v1676_v24 = vld [vmem:[%s2033_s25 + $0xc0] sm:$0xff]   ;;  %v1678_v26 = vld [vmem:[%s2033_s25 + $0xc8] sm:$0xff]  }
  0x1b   : > { %264 = vst.msk [vmem:[#allocation2 + $0x140] sm:$0xff] %vm223_vm0, %v1843_v3  ;;  %265 = vst.msk [vmem:[#allocation2 + $0x148] sm:$0xff] %vm223_vm0, %v1843_v3  ;;  %1554 = vmatmul.mubr.msk.bf16.vlgmr.msra.gmra.mrb[0].mxu0 %vm612_vm1, %v1661_v9  ;;  %1586 = vmatmul.mubr.msk.bf16.vlgmr.msra.gmra.mrb[0].mxu1 %vm612_vm1, %v1662_v10  ;;  %v1679_v27 = vld [vmem:[%s2033_s25 + $0x50] sm:$0xff]   ;;  %v1681_v29 = vld [vmem:[%s2033_s25 + $0x58] sm:$0xff]  }
  0x1c   : > { %266 = vst.msk [vmem:[#allocation2 + $0x150] sm:$0xff] %vm223_vm0, %v1843_v3  ;;  %267 = vst.msk [vmem:[#allocation2 + $0x158] sm:$0xff] %vm223_vm0, %v1843_v3  ;;  %1557 = vmatprep.mubr.msk.bf16.mxu0 %vm612_vm1, %v1663_v11  ;;  %1589 = vmatprep.mubr.msk.bf16.mxu1 %vm612_vm1, %v1664_v12  ;;  %v1680_v28 = vld [vmem:[%s2033_s25 + $0xd0] sm:$0xff]   ;;  %v1682_v30 = vld [vmem:[%s2033_s25 + $0xd8] sm:$0xff]  }
  0x1d   : > { %268 = vst.msk [vmem:[#allocation2 + $0x160] sm:$0xff] %vm223_vm0, %v1843_v3  ;;  %269 = vst.msk [vmem:[#allocation2 + $0x168] sm:$0xff] %vm223_vm0, %v1843_v3  ;;  %v1683_v31 = vld [vmem:[%s2033_s25 + $0x60] sm:$0xff]   ;;  %v1685_v33 = vld [vmem:[%s2033_s25 + $0x68] sm:$0xff]  }
  0x1e   : > { %270 = vst.msk [vmem:[#allocation2 + $0x170] sm:$0xff] %vm223_vm0, %v1843_v3  ;;  %271 = vst.msk [vmem:[#allocation2 + $0x178] sm:$0xff] %vm223_vm0, %v1843_v3  ;;  %v1684_v32 = vld [vmem:[%s2033_s25 + $0xe0] sm:$0xff]   ;;  %v1686_v34 = vld [vmem:[%s2033_s25 + $0xe8] sm:$0xff]  }
  0x1f   : > { %272 = vst.msk [vmem:[#allocation2 + $0x180] sm:$0xff] %vm223_vm0, %v1843_v3  ;;  %273 = vst.msk [vmem:[#allocation2 + $0x188] sm:$0xff] %vm223_vm0, %v1843_v3  ;;  %v1687_v35 = vld [vmem:[%s2033_s25 + $0x70] sm:$0xff]   ;;  %v1689_v37 = vld [vmem:[%s2033_s25 + $0x78] sm:$0xff]  }
  0x20   : > { %274 = vst.msk [vmem:[#allocation2 + $0x190] sm:$0xff] %vm223_vm0, %v1843_v3  ;;  %275 = vst.msk [vmem:[#allocation2 + $0x198] sm:$0xff] %vm223_vm0, %v1843_v3  ;;  %v1688_v36 = vld [vmem:[%s2033_s25 + $0xf0] sm:$0xff]   ;;  %v1690_v38 = vld [vmem:[%s2033_s25 + $0xf8] sm:$0xff]  }
  0x21   : > { %276 = vst.msk [vmem:[#allocation2 + $0x1a0] sm:$0xff] %vm223_vm0, %v1843_v3  ;;  %277 = vst.msk [vmem:[#allocation2 + $0x1a8] sm:$0xff] %vm223_vm0, %v1843_v3  ;;  %v322_v40 = vld [vmem:[#allocation2 + $0x110] sm:$0xff]  ;;  %v320_v42 = vld [vmem:[#allocation2 + $0x100] sm:$0xff] }
  0x22   : > { %278 = vst.msk [vmem:[#allocation2 + $0x1b0] sm:$0xff] %vm223_vm0, %v1843_v3  ;;  %279 = vst.msk [vmem:[#allocation2 + $0x1b8] sm:$0xff] %vm223_vm0, %v1843_v3  ;;  %v323_v46 = vld [vmem:[#allocation2 + $0x118] sm:$0xff]  ;;  %v321_v52 = vld [vmem:[#allocation2 + $0x108] sm:$0xff] }
  0x23   : > { %280 = vst.msk [vmem:[#allocation2 + $0x1c0] sm:$0xff] %vm223_vm0, %v1843_v3  ;;  %281 = vst.msk [vmem:[#allocation2 + $0x1c8] sm:$0xff] %vm223_vm0, %v1843_v3  ;;  %1558 = vmatmul.mubr.msk.bf16.gmra.mrb[4].mxu0 %vm612_vm1, %v1665_v13  ;;  %1590 = vmatmul.mubr.msk.bf16.gmra.mrb[4].mxu1 %vm612_vm1, %v1666_v14  ;;  %v294_v63 = vld [vmem:[#allocation2 + $0x30] sm:$0xff]  ;;  %v324_v2 = vld [vmem:[#allocation2 + $0x120] sm:$0xff] }
  0x24   : > { %282 = vst.msk [vmem:[#allocation2 + $0x1d0] sm:$0xff] %vm223_vm0, %v1843_v3  ;;  %283 = vst.msk [vmem:[#allocation2 + $0x1d8] sm:$0xff] %vm223_vm0, %v1843_v3  ;;  %1561 = vmatprep.mubr.msk.bf16.mxu0 %vm612_vm1, %v1667_v15  ;;  %1593 = vmatprep.mubr.msk.bf16.mxu1 %vm612_vm1, %v1668_v16  ;;  %v326_v0 = vld [vmem:[#allocation2 + $0x130] sm:$0xff]  ;;  %v295_v5 = vld [vmem:[#allocation2 + $0x38] sm:$0xff] }
  0x25   : > { %284 = vst.msk [vmem:[#allocation2 + $0x1e0] sm:$0xff] %vm223_vm0, %v1843_v3  ;;  %285 = vst.msk [vmem:[#allocation2 + $0x1e8] sm:$0xff] %vm223_vm0, %v1843_v3  ;;  %v327_v6 = vld [vmem:[#allocation2 + $0x138] sm:$0xff]  ;;  %v293_v11 = vld [vmem:[#allocation2 + $0x28] sm:$0xff] }
  0x26   : > { %286 = vst.msk [vmem:[#allocation2 + $0x1f0] sm:$0xff] %vm223_vm0, %v1843_v3  ;;  %287 = vst.msk [vmem:[#allocation2 + $0x1f8] sm:$0xff] %vm223_vm0, %v1843_v3  ;;  %v325_v12 = vld [vmem:[#allocation2 + $0x128] sm:$0xff] }
  0x2b   : > { %1562 = vmatmul.mubr.msk.bf16.gmra.mrb[8].mxu0 %vm612_vm1, %v1669_v17  ;;  %1594 = vmatmul.mubr.msk.bf16.gmra.mrb[8].mxu1 %vm612_vm1, %v1670_v18 }
  0x2c   : > { %1565 = vmatprep.mubr.msk.bf16.mxu0 %vm612_vm1, %v1671_v19  ;;  %1597 = vmatprep.mubr.msk.bf16.mxu1 %vm612_vm1, %v1672_v20 }
  0x33   : > { %1566 = vmatmul.mubr.msk.bf16.gmra.mrb[12].mxu0 %vm612_vm1, %v1673_v21  ;;  %1598 = vmatmul.mubr.msk.bf16.gmra.mrb[12].mxu1 %vm612_vm1, %v1674_v22 }
  0x34   : > { %1569 = vmatprep.mubr.msk.bf16.mxu0 %vm612_vm1, %v1675_v23  ;;  %1601 = vmatprep.mubr.msk.bf16.mxu1 %vm612_vm1, %v1676_v24 }
  0x3b   : > { %1570 = vmatmul.mubr.msk.bf16.gmra.mrb[16].mxu0 %vm612_vm1, %v1677_v25  ;;  %1602 = vmatmul.mubr.msk.bf16.gmra.mrb[16].mxu1 %vm612_vm1, %v1678_v26 }
  0x3c   : > { %1573 = vmatprep.mubr.msk.bf16.mxu0 %vm612_vm1, %v1679_v27  ;;  %1605 = vmatprep.mubr.msk.bf16.mxu1 %vm612_vm1, %v1680_v28 }
  0x43   : > { %1574 = vmatmul.mubr.msk.bf16.gmra.mrb[20].mxu0 %vm612_vm1, %v1681_v29  ;;  %1606 = vmatmul.mubr.msk.bf16.gmra.mrb[20].mxu1 %vm612_vm1, %v1682_v30  ;;  %v298_v30 = vld [vmem:[#allocation2 + $0x50] sm:$0xff] }
  0x44   : > { %1577 = vmatprep.mubr.msk.bf16.mxu0 %vm612_vm1, %v1683_v31  ;;  %1609 = vmatprep.mubr.msk.bf16.mxu1 %vm612_vm1, %v1684_v32  ;;  %v330_v31 = vld [vmem:[#allocation2 + $0x150] sm:$0xff] }
  0x4b   : > { %1578 = vmatmul.mubr.msk.bf16.gmra.mrb[24].mxu0 %vm612_vm1, %v1685_v33  ;;  %1610 = vmatmul.mubr.msk.bf16.gmra.mrb[24].mxu1 %vm612_vm1, %v1686_v34  ;;  %v296_v33 = vld [vmem:[#allocation2 + $0x40] sm:$0xff] }
  0x4c   : > { %1581 = vmatprep.mubr.msk.bf16.mxu0 %vm612_vm1, %v1687_v35  ;;  %1613 = vmatprep.mubr.msk.bf16.mxu1 %vm612_vm1, %v1688_v36  ;;  %v328_v34 = vld [vmem:[#allocation2 + $0x140] sm:$0xff] }
  0x53   : > { %1582 = vmatmul.mubr.msk.bf16.gmra.mrb[28].mxu0 %vm612_vm1, %v1689_v37  ;;  %1614 = vmatmul.mubr.msk.bf16.gmra.mrb[28].mxu1 %vm612_vm1, %v1690_v38  ;;  %v299_v37 = vld [vmem:[#allocation2 + $0x58] sm:$0xff] }
  0x54   : > { %v331_v38 = vld [vmem:[#allocation2 + $0x158] sm:$0xff] }
  0xee   : > { %v1555_v43 = vpop.f32.mrb[0].mxu0  ;;  %v1587_v44 = vpop.f32.mrb[0].mxu1 }
  0xef   : > { %v1004_v47 = vadd.f32 %v1555_v43, %v290_v39  ;;  %v1036_v48 = vadd.f32 %v1587_v44, %v322_v40  ;;  %v747_v49 = vpop.f32.mrb[1].mxu0  ;;  %v875_v50 = vpop.f32.mrb[1].mxu1  ;;  %v297_v43 = vld [vmem:[#allocation2 + $0x48] sm:$0xff] }
  0xf0   : > { %v1002_v53 = vadd.f32 %v747_v49, %v288_v41  ;;  %v1034_v54 = vadd.f32 %v875_v50, %v320_v42  ;;  %v1556_v55 = vpop.f32.mrb[2].mxu0  ;;  %v1588_v56 = vpop.f32.mrb[2].mxu1  ;;  %v329_v44 = vld [vmem:[#allocation2 + $0x148] sm:$0xff] }
  0xf1   : > { %1069 = vst.msk [vmem:[#allocation2 + $0x10] sm:$0xff] %vm223_vm0, %v1004_v47  ;;  %1101 = vst.msk [vmem:[#allocation2 + $0x110] sm:$0xff] %vm223_vm0, %v1036_v48  ;;  %v1005_v57 = vadd.f32 %v1556_v55, %v291_v45  ;;  %v1037_v58 = vadd.f32 %v1588_v56, %v323_v46  ;;  %v750_v59 = vpop.f32.mrb[3].mxu0  ;;  %v878_v60 = vpop.f32.mrb[3].mxu1 }
  0xf2   : > { %1067 = vst.msk [vmem:[#allocation2] sm:$0xff] %vm223_vm0, %v1002_v53  ;;  %1099 = vst.msk [vmem:[#allocation2 + $0x100] sm:$0xff] %vm223_vm0, %v1034_v54  ;;  %v1003_v61 = vadd.f32 %v750_v59, %v289_v51  ;;  %v1035_v62 = vadd.f32 %v878_v60, %v321_v52 }
  0xf3   : > { %1070 = vst.msk [vmem:[#allocation2 + $0x18] sm:$0xff] %vm223_vm0, %v1005_v57  ;;  %1102 = vst.msk [vmem:[#allocation2 + $0x118] sm:$0xff] %vm223_vm0, %v1037_v58 }
  0xf4   : > { %1068 = vst.msk [vmem:[#allocation2 + $0x8] sm:$0xff] %vm223_vm0, %v1003_v61  ;;  %1100 = vst.msk [vmem:[#allocation2 + $0x108] sm:$0xff] %vm223_vm0, %v1035_v62 }
  0xf6   : > { %v1559_v3 = vpop.f32.mrb[4].mxu0  ;;  %v1591_v4 = vpop.f32.mrb[4].mxu1 }
  0xf7   : > { %v1008_v7 = vadd.f32 %v1559_v3, %v294_v63  ;;  %v1040_v8 = vadd.f32 %v1591_v4, %v326_v0  ;;  %v763_v9 = vpop.f32.mrb[5].mxu0  ;;  %v891_v10 = vpop.f32.mrb[5].mxu1  ;;  %v302_v0 = vld [vmem:[#allocation2 + $0x70] sm:$0xff]  ;;  %v300_v4 = vld [vmem:[#allocation2 + $0x60] sm:$0xff] }
  0xf8   : > { %v1136_v13 = vld [vmem:[#allocation2 + $0x10] sm:$0xff]  ;;  %v1006_v15 = vadd.f32 %v763_v9, %v292_v1  ;;  %v1038_v16 = vadd.f32 %v891_v10, %v324_v2  ;;  %v1560_v17 = vpop.f32.mrb[6].mxu0  ;;  %v1592_v18 = vpop.f32.mrb[6].mxu1  ;;  %v303_v9 = vld [vmem:[#allocation2 + $0x78] sm:$0xff] }
  0xf9   : > { %v1168_v14 = vld [vmem:[#allocation2 + $0x110] sm:$0xff]  ;;  %1691 = vtanh.f32 %v1136_v13  ;;  %v1134_v19 = vld [vmem:[#allocation2] sm:$0xff]  ;;  %1073 = vst.msk [vmem:[#allocation2 + $0x30] sm:$0xff] %vm223_vm0, %v1008_v7  ;;  %1105 = vst.msk [vmem:[#allocation2 + $0x130] sm:$0xff] %vm223_vm0, %v1040_v8  ;;  %v1009_v21 = vadd.f32 %v1560_v17, %v295_v5  ;;  %v1041_v22 = vadd.f32 %v1592_v18, %v327_v6  ;;  %v766_v23 = vpop.f32.mrb[7].mxu0  ;;  %v894_v24 = vpop.f32.mrb[7].mxu1 }
  0xfa   : > { %v1166_v20 = vld [vmem:[#allocation2 + $0x100] sm:$0xff]  ;;  %1693 = vtanh.f32 %v1168_v14  ;;  %v1137_v25 = vld [vmem:[#allocation2 + $0x18] sm:$0xff]  ;;  %1071 = vst.msk [vmem:[#allocation2 + $0x20] sm:$0xff] %vm223_vm0, %v1006_v15  ;;  %1103 = vst.msk [vmem:[#allocation2 + $0x120] sm:$0xff] %vm223_vm0, %v1038_v16  ;;  %v1007_v26 = vadd.f32 %v766_v23, %v293_v11  ;;  %v1039_v27 = vadd.f32 %v894_v24, %v325_v12 }
  0xfb   : > { %1695 = vtanh.f32 %v1134_v19  ;;  %v1169_v28 = vld [vmem:[#allocation2 + $0x118] sm:$0xff]  ;;  %1074 = vst.msk [vmem:[#allocation2 + $0x38] sm:$0xff] %vm223_vm0, %v1009_v21  ;;  %1106 = vst.msk [vmem:[#allocation2 + $0x138] sm:$0xff] %vm223_vm0, %v1041_v22  ;;  %v1135_v29 = vld [vmem:[#allocation2 + $0x8] sm:$0xff] }
  0xfc   : > { %1697 = vtanh.f32 %v1166_v20  ;;  %1072 = vst.msk [vmem:[#allocation2 + $0x28] sm:$0xff] %vm223_vm0, %v1007_v26  ;;  %1104 = vst.msk [vmem:[#allocation2 + $0x128] sm:$0xff] %vm223_vm0, %v1039_v27  ;;  %v1167_v32 = vld [vmem:[#allocation2 + $0x108] sm:$0xff]  ;;  %v334_v1 = vld [vmem:[#allocation2 + $0x170] sm:$0xff] }
  0xfd   : > { %1699 = vtanh.f32 %v1137_v25  ;;  %v332_v5 = vld [vmem:[#allocation2 + $0x160] sm:$0xff]  ;;  %v335_v10 = vld [vmem:[#allocation2 + $0x178] sm:$0xff]  ;;  %v301_v16 = vld [vmem:[#allocation2 + $0x68] sm:$0xff] }
  0xfe   : > { %1701 = vtanh.f32 %v1169_v28  ;;  %v1563_v35 = vpop.f32.mrb[8].mxu0  ;;  %v1595_v36 = vpop.f32.mrb[8].mxu1  ;;  %v333_v17 = vld [vmem:[#allocation2 + $0x168] sm:$0xff] }
  0xff   : > { %1703 = vtanh.f32 %v1135_v29  ;;  %v1012_v39 = vadd.f32 %v1563_v35, %v298_v30  ;;  %v1044_v40 = vadd.f32 %v1595_v36, %v330_v31  ;;  %v779_v41 = vpop.f32.mrb[9].mxu0  ;;  %v907_v42 = vpop.f32.mrb[9].mxu1 }
 0x100   : > { %1705 = vtanh.f32 %v1167_v32  ;;  %v1140_v45 = vld [vmem:[#allocation2 + $0x30] sm:$0xff]  ;;  %v1010_v47 = vadd.f32 %v779_v41, %v296_v33  ;;  %v1042_v48 = vadd.f32 %v907_v42, %v328_v34  ;;  %v1564_v49 = vpop.f32.mrb[10].mxu0  ;;  %v1596_v50 = vpop.f32.mrb[10].mxu1 }
 0x101   : > { %v1172_v46 = vld [vmem:[#allocation2 + $0x130] sm:$0xff]  ;;  %1707 = vtanh.f32 %v1140_v45  ;;  %v1138_v51 = vld [vmem:[#allocation2 + $0x20] sm:$0xff]  ;;  %1077 = vst.msk [vmem:[#allocation2 + $0x50] sm:$0xff] %vm223_vm0, %v1012_v39  ;;  %1109 = vst.msk [vmem:[#allocation2 + $0x150] sm:$0xff] %vm223_vm0, %v1044_v40  ;;  %v1013_v53 = vadd.f32 %v1564_v49, %v299_v37  ;;  %v1045_v54 = vadd.f32 %v1596_v50, %v331_v38  ;;  %v782_v55 = vpop.f32.mrb[11].mxu0  ;;  %v910_v56 = vpop.f32.mrb[11].mxu1 }
 0x102   : > { %v1170_v52 = vld [vmem:[#allocation2 + $0x120] sm:$0xff]  ;;  %1709 = vtanh.f32 %v1172_v46  ;;  %v1141_v57 = vld [vmem:[#allocation2 + $0x38] sm:$0xff]  ;;  %1075 = vst.msk [vmem:[#allocation2 + $0x40] sm:$0xff] %vm223_vm0, %v1010_v47  ;;  %1107 = vst.msk [vmem:[#allocation2 + $0x140] sm:$0xff] %vm223_vm0, %v1042_v48  ;;  %v1011_v58 = vadd.f32 %v782_v55, %v297_v43  ;;  %v1043_v59 = vadd.f32 %v910_v56, %v329_v44 }
 0x103   : > { %v1692_v60 = vpop.eup %1691  ;;  %1711 = vtanh.f32 %v1138_v51  ;;  %v1173_v61 = vld [vmem:[#allocation2 + $0x138] sm:$0xff]  ;;  %1078 = vst.msk [vmem:[#allocation2 + $0x58] sm:$0xff] %vm223_vm0, %v1013_v53  ;;  %1110 = vst.msk [vmem:[#allocation2 + $0x158] sm:$0xff] %vm223_vm0, %v1045_v54  ;;  %v1139_v63 = vld [vmem:[#allocation2 + $0x28] sm:$0xff] }
 0x104   : > { %v1694_v62 = vpop.eup %1693  ;;  %1264 = vst.msk [vmem:[%s2126_s3 + $0x10] sm:$0xff] %vm223_vm0, %v1692_v60  ;;  %1713 = vtanh.f32 %v1170_v52  ;;  %1076 = vst.msk [vmem:[#allocation2 + $0x48] sm:$0xff] %vm223_vm0, %v1011_v58  ;;  %v1171_v3 = vld [vmem:[#allocation2 + $0x128] sm:$0xff]  ;;  %v306_v40 = vld [vmem:[#allocation2 + $0x90] sm:$0xff] }
 0x105   : > { %1108 = vst.msk [vmem:[#allocation2 + $0x148] sm:$0xff] %vm223_vm0, %v1043_v59  ;;  %v1696_v2 = vpop.eup %1695  ;;  %1296 = vst.msk [vmem:[%s2126_s3 + $0x110] sm:$0xff] %vm223_vm0, %v1694_v62  ;;  %1715 = vtanh.f32 %v1141_v57  ;;  %v338_v41 = vld [vmem:[#allocation2 + $0x190] sm:$0xff]  ;;  %v304_v44 = vld [vmem:[#allocation2 + $0x80] sm:$0xff] }
 0x106   : > { %v1698_v6 = vpop.eup %1697  ;;  %1262 = vst.msk [vmem:[%s2126_s3] sm:$0xff] %vm223_vm0, %v1696_v2  ;;  %1717 = vtanh.f32 %v1173_v61  ;;  %v1567_v7 = vpop.f32.mrb[12].mxu0  ;;  %v336_v45 = vld [vmem:[#allocation2 + $0x180] sm:$0xff]  ;;  %v307_v49 = vld [vmem:[#allocation2 + $0x98] sm:$0xff]  ;;  %v305_v56 = vld [vmem:[#allocation2 + $0x88] sm:$0xff] }
 0x107   : > { %v1599_v8 = vpop.f32.mrb[12].mxu1  ;;  %v1700_v11 = vpop.eup %1699  ;;  %1294 = vst.msk [vmem:[%s2126_s3 + $0x100] sm:$0xff] %vm223_vm0, %v1698_v6  ;;  %1719 = vtanh.f32 %v1139_v63  ;;  %v1016_v12 = vadd.f32 %v1567_v7, %v302_v0  ;;  %v339_v50 = vld [vmem:[#allocation2 + $0x198] sm:$0xff]  ;;  %v337_v57 = vld [vmem:[#allocation2 + $0x188] sm:$0xff] }
 0x108   : > { %v1048_v13 = vadd.f32 %v1599_v8, %v334_v1  ;;  %v795_v14 = vpop.f32.mrb[13].mxu0  ;;  %v923_v15 = vpop.f32.mrb[13].mxu1  ;;  %1265 = vst.msk [vmem:[%s2126_s3 + $0x18] sm:$0xff] %vm223_vm0, %v1700_v11  ;;  %1721 = vtanh.f32 %v1171_v3  ;;  %v1144_v19 = vld [vmem:[#allocation2 + $0x50] sm:$0xff] }
 0x109   : > { %v1702_v18 = vpop.eup %1701  ;;  %v1176_v20 = vld [vmem:[#allocation2 + $0x150] sm:$0xff]  ;;  %v1014_v21 = vadd.f32 %v795_v14, %v300_v4  ;;  %v1046_v22 = vadd.f32 %v923_v15, %v332_v5  ;;  %v1568_v23 = vpop.f32.mrb[14].mxu0  ;;  %1723 = vtanh.f32 %v1144_v19  ;;  %v1142_v26 = vld [vmem:[#allocation2 + $0x40] sm:$0xff]  ;;  %1081 = vst.msk [vmem:[#allocation2 + $0x70] sm:$0xff] %vm223_vm0, %v1016_v12 }
 0x10a   : > { %v1600_v24 = vpop.f32.mrb[14].mxu1  ;;  %v1704_v25 = vpop.eup %1703  ;;  %1297 = vst.msk [vmem:[%s2126_s3 + $0x118] sm:$0xff] %vm223_vm0, %v1702_v18  ;;  %v1174_v27 = vld [vmem:[#allocation2 + $0x140] sm:$0xff]  ;;  %1113 = vst.msk [vmem:[#allocation2 + $0x170] sm:$0xff] %vm223_vm0, %v1048_v13  ;;  %v1017_v28 = vadd.f32 %v1568_v23, %v303_v9  ;;  %1725 = vtanh.f32 %v1176_v20  ;;  %v1145_v33 = vld [vmem:[#allocation2 + $0x58] sm:$0xff] }
 0x10b   : > { %v1049_v29 = vadd.f32 %v1600_v24, %v335_v10  ;;  %v798_v30 = vpop.f32.mrb[15].mxu0  ;;  %v926_v31 = vpop.f32.mrb[15].mxu1  ;;  %1263 = vst.msk [vmem:[%s2126_s3 + $0x8] sm:$0xff] %vm223_vm0, %v1704_v25  ;;  %1079 = vst.msk [vmem:[#allocation2 + $0x60] sm:$0xff] %vm223_vm0, %v1014_v21  ;;  %1727 = vtanh.f32 %v1142_v26  ;;  %v1177_v37 = vld [vmem:[#allocation2 + $0x158] sm:$0xff]  ;;  %v1143_v39 = vld [vmem:[#allocation2 + $0x48] sm:$0xff] }
 0x10c   : > { %v1706_v32 = vpop.eup %1705  ;;  %1111 = vst.msk [vmem:[#allocation2 + $0x160] sm:$0xff] %vm223_vm0, %v1046_v22  ;;  %v1015_v34 = vadd.f32 %v798_v30, %v301_v16  ;;  %v1047_v35 = vadd.f32 %v926_v31, %v333_v17  ;;  %1082 = vst.msk [vmem:[#allocation2 + $0x78] sm:$0xff] %vm223_vm0, %v1017_v28  ;;  %1729 = vtanh.f32 %v1174_v27  ;;  %v1175_v43 = vld [vmem:[#allocation2 + $0x148] sm:$0xff]  ;;  %v310_v16 = vld [vmem:[#allocation2 + $0xb0] sm:$0xff] }
 0x10d   : > { %v1708_v36 = vpop.eup %1707  ;;  %1295 = vst.msk [vmem:[%s2126_s3 + $0x108] sm:$0xff] %vm223_vm0, %v1706_v32  ;;  %1114 = vst.msk [vmem:[#allocation2 + $0x178] sm:$0xff] %vm223_vm0, %v1049_v29  ;;  %1731 = vtanh.f32 %v1145_v33  ;;  %v342_v17 = vld [vmem:[#allocation2 + $0x1b0] sm:$0xff]  ;;  %v308_v20 = vld [vmem:[#allocation2 + $0xa0] sm:$0xff] }
 0x10e   : > { %v1710_v38 = vpop.eup %1709  ;;  %1268 = vst.msk [vmem:[%s2126_s3 + $0x30] sm:$0xff] %vm223_vm0, %v1708_v36  ;;  %1080 = vst.msk [vmem:[#allocation2 + $0x68] sm:$0xff] %vm223_vm0, %v1015_v34  ;;  %1733 = vtanh.f32 %v1177_v37  ;;  %v1571_v47 = vpop.f32.mrb[16].mxu0  ;;  %v340_v21 = vld [vmem:[#allocation2 + $0x1a0] sm:$0xff]  ;;  %v311_v25 = vld [vmem:[#allocation2 + $0xb8] sm:$0xff] }
 0x10f   : > { %1112 = vst.msk [vmem:[#allocation2 + $0x168] sm:$0xff] %vm223_vm0, %v1047_v35  ;;  %v1712_v42 = vpop.eup %1711  ;;  %1300 = vst.msk [vmem:[%s2126_s3 + $0x130] sm:$0xff] %vm223_vm0, %v1710_v38  ;;  %v1603_v48 = vpop.f32.mrb[16].mxu1  ;;  %1735 = vtanh.f32 %v1143_v39  ;;  %v1020_v52 = vadd.f32 %v1571_v47, %v306_v40  ;;  %v343_v26 = vld [vmem:[#allocation2 + $0x1b8] sm:$0xff]  ;;  %v309_v32 = vld [vmem:[#allocation2 + $0xa8] sm:$0xff] }
 0x110   : > { %v1714_v46 = vpop.eup %1713  ;;  %1266 = vst.msk [vmem:[%s2126_s3 + $0x20] sm:$0xff] %vm223_vm0, %v1712_v42  ;;  %v1052_v53 = vadd.f32 %v1603_v48, %v338_v41  ;;  %v811_v54 = vpop.f32.mrb[17].mxu0  ;;  %1737 = vtanh.f32 %v1175_v43  ;;  %v1148_v59 = vld [vmem:[#allocation2 + $0x70] sm:$0xff]  ;;  %v341_v33 = vld [vmem:[#allocation2 + $0x1a8] sm:$0xff] }
 0x111   : > { %v1716_v51 = vpop.eup %1715  ;;  %1298 = vst.msk [vmem:[%s2126_s3 + $0x120] sm:$0xff] %vm223_vm0, %v1714_v46  ;;  %v939_v55 = vpop.f32.mrb[17].mxu1  ;;  %v1180_v60 = vld [vmem:[#allocation2 + $0x170] sm:$0xff]  ;;  %v1018_v61 = vadd.f32 %v811_v54, %v304_v44  ;;  %1739 = vtanh.f32 %v1148_v59  ;;  %1085 = vst.msk [vmem:[#allocation2 + $0x90] sm:$0xff] %vm223_vm0, %v1020_v52 }
 0x112   : > { %v1718_v58 = vpop.eup %1717  ;;  %1269 = vst.msk [vmem:[%s2126_s3 + $0x38] sm:$0xff] %vm223_vm0, %v1716_v51  ;;  %v1050_v62 = vadd.f32 %v939_v55, %v336_v45  ;;  %v1572_v63 = vpop.f32.mrb[18].mxu0  ;;  %v1146_v2 = vld [vmem:[#allocation2 + $0x60] sm:$0xff]  ;;  %1117 = vst.msk [vmem:[#allocation2 + $0x190] sm:$0xff] %vm223_vm0, %v1052_v53  ;;  %1741 = vtanh.f32 %v1180_v60 }
 0x113   : > { %v1604_v0 = vpop.f32.mrb[18].mxu1  ;;  %v1720_v1 = vpop.eup %1719  ;;  %1301 = vst.msk [vmem:[%s2126_s3 + $0x138] sm:$0xff] %vm223_vm0, %v1718_v58  ;;  %v1178_v3 = vld [vmem:[#allocation2 + $0x160] sm:$0xff]  ;;  %v1021_v4 = vadd.f32 %v1572_v63, %v307_v49  ;;  %v1149_v9 = vld [vmem:[#allocation2 + $0x78] sm:$0xff]  ;;  %1083 = vst.msk [vmem:[#allocation2 + $0x80] sm:$0xff] %vm223_vm0, %v1018_v61  ;;  %1743 = vtanh.f32 %v1146_v2 }
 0x114   : > { %v1053_v5 = vadd.f32 %v1604_v0, %v339_v50  ;;  %v814_v6 = vpop.f32.mrb[19].mxu0  ;;  %v942_v7 = vpop.f32.mrb[19].mxu1  ;;  %1267 = vst.msk [vmem:[%s2126_s3 + $0x28] sm:$0xff] %vm223_vm0, %v1720_v1  ;;  %1115 = vst.msk [vmem:[#allocation2 + $0x180] sm:$0xff] %vm223_vm0, %v1050_v62  ;;  %v1181_v13 = vld [vmem:[#allocation2 + $0x178] sm:$0xff]  ;;  %1745 = vtanh.f32 %v1178_v3  ;;  %v312_v60 = vld [vmem:[#allocation2 + $0xc0] sm:$0xff] }
 0x115   : > { %v1722_v8 = vpop.eup %1721  ;;  %v1019_v10 = vadd.f32 %v814_v6, %v305_v56  ;;  %v1051_v11 = vadd.f32 %v942_v7, %v337_v57  ;;  %1086 = vst.msk [vmem:[#allocation2 + $0x98] sm:$0xff] %vm223_vm0, %v1021_v4  ;;  %v1147_v15 = vld [vmem:[#allocation2 + $0x68] sm:$0xff]  ;;  %1747 = vtanh.f32 %v1149_v9  ;;  %v314_v56 = vld [vmem:[#allocation2 + $0xd0] sm:$0xff]  ;;  %v344_v61 = vld [vmem:[#allocation2 + $0x1c0] sm:$0xff] }
 0x116   : > { %v1724_v12 = vpop.eup %1723  ;;  %1299 = vst.msk [vmem:[%s2126_s3 + $0x128] sm:$0xff] %vm223_vm0, %v1722_v8  ;;  %1118 = vst.msk [vmem:[#allocation2 + $0x198] sm:$0xff] %vm223_vm0, %v1053_v5  ;;  %v1179_v19 = vld [vmem:[#allocation2 + $0x168] sm:$0xff]  ;;  %1749 = vtanh.f32 %v1181_v13  ;;  %v1575_v23 = vpop.f32.mrb[20].mxu0  ;;  %v346_v57 = vld [vmem:[#allocation2 + $0x1d0] sm:$0xff] }
 0x117   : > { %v1726_v14 = vpop.eup %1725  ;;  %1272 = vst.msk [vmem:[%s2126_s3 + $0x50] sm:$0xff] %vm223_vm0, %v1724_v12  ;;  %1084 = vst.msk [vmem:[#allocation2 + $0x88] sm:$0xff] %vm223_vm0, %v1019_v10  ;;  %v1607_v24 = vpop.f32.mrb[20].mxu1  ;;  %1751 = vtanh.f32 %v1147_v15  ;;  %v1024_v28 = vadd.f32 %v1575_v23, %v310_v16  ;;  %v315_v1 = vld [vmem:[#allocation2 + $0xd8] sm:$0xff]  ;;  %v313_v8 = vld [vmem:[#allocation2 + $0xc8] sm:$0xff] }
 0x118   : > { %1116 = vst.msk [vmem:[#allocation2 + $0x188] sm:$0xff] %vm223_vm0, %v1051_v11  ;;  %v1728_v18 = vpop.eup %1727  ;;  %1304 = vst.msk [vmem:[%s2126_s3 + $0x150] sm:$0xff] %vm223_vm0, %v1726_v14  ;;  %v1056_v29 = vadd.f32 %v1607_v24, %v342_v17  ;;  %v827_v30 = vpop.f32.mrb[21].mxu0  ;;  %1753 = vtanh.f32 %v1179_v19  ;;  %v1152_v35 = vld [vmem:[#allocation2 + $0x90] sm:$0xff]  ;;  %v347_v2 = vld [vmem:[#allocation2 + $0x1d8] sm:$0xff] }
 0x119   : > { %v1730_v22 = vpop.eup %1729  ;;  %1270 = vst.msk [vmem:[%s2126_s3 + $0x40] sm:$0xff] %vm223_vm0, %v1728_v18  ;;  %v955_v31 = vpop.f32.mrb[21].mxu1  ;;  %v1184_v36 = vld [vmem:[#allocation2 + $0x190] sm:$0xff]  ;;  %v1022_v37 = vadd.f32 %v827_v30, %v308_v20  ;;  %1755 = vtanh.f32 %v1152_v35  ;;  %1089 = vst.msk [vmem:[#allocation2 + $0xb0] sm:$0xff] %vm223_vm0, %v1024_v28  ;;  %v345_v9 = vld [vmem:[#allocation2 + $0x1c8] sm:$0xff] }
 0x11a   : > { %v1732_v27 = vpop.eup %1731  ;;  %1302 = vst.msk [vmem:[%s2126_s3 + $0x140] sm:$0xff] %vm223_vm0, %v1730_v22  ;;  %v1054_v38 = vadd.f32 %v955_v31, %v340_v21  ;;  %v1576_v39 = vpop.f32.mrb[22].mxu0  ;;  %v1150_v42 = vld [vmem:[#allocation2 + $0x80] sm:$0xff]  ;;  %1121 = vst.msk [vmem:[#allocation2 + $0x1b0] sm:$0xff] %vm223_vm0, %v1056_v29  ;;  %1757 = vtanh.f32 %v1184_v36 }
 0x11b   : > { %v1734_v34 = vpop.eup %1733  ;;  %1273 = vst.msk [vmem:[%s2126_s3 + $0x58] sm:$0xff] %vm223_vm0, %v1732_v27  ;;  %v1608_v40 = vpop.f32.mrb[22].mxu1  ;;  %v1182_v43 = vld [vmem:[#allocation2 + $0x180] sm:$0xff]  ;;  %v1025_v44 = vadd.f32 %v1576_v39, %v311_v25  ;;  %1087 = vst.msk [vmem:[#allocation2 + $0xa0] sm:$0xff] %vm223_vm0, %v1022_v37  ;;  %1759 = vtanh.f32 %v1150_v42  ;;  %v351_v42 = vld [vmem:[#allocation2 + $0x1f8] sm:$0xff] }
 0x11c   : > { %v1736_v41 = vpop.eup %1735  ;;  %1305 = vst.msk [vmem:[%s2126_s3 + $0x158] sm:$0xff] %vm223_vm0, %v1734_v34  ;;  %v1057_v45 = vadd.f32 %v1608_v40, %v343_v26  ;;  %v830_v46 = vpop.f32.mrb[23].mxu0  ;;  %v1153_v49 = vld [vmem:[#allocation2 + $0x98] sm:$0xff]  ;;  %1119 = vst.msk [vmem:[#allocation2 + $0x1a0] sm:$0xff] %vm223_vm0, %v1054_v38  ;;  %1761 = vtanh.f32 %v1182_v43  ;;  %v316_v36 = vld [vmem:[#allocation2 + $0xe0] sm:$0xff] }
 0x11d   : > { %v958_v47 = vpop.f32.mrb[23].mxu1  ;;  %v1738_v48 = vpop.eup %1737  ;;  %1271 = vst.msk [vmem:[%s2126_s3 + $0x48] sm:$0xff] %vm223_vm0, %v1736_v41  ;;  %v1023_v50 = vadd.f32 %v830_v46, %v309_v32  ;;  %v1185_v53 = vld [vmem:[#allocation2 + $0x198] sm:$0xff]  ;;  %1090 = vst.msk [vmem:[#allocation2 + $0xb8] sm:$0xff] %vm223_vm0, %v1025_v44  ;;  %1763 = vtanh.f32 %v1153_v49  ;;  %v318_v32 = vld [vmem:[#allocation2 + $0xf0] sm:$0xff] }
 0x11e   : > { %v1055_v51 = vadd.f32 %v958_v47, %v341_v33  ;;  %v1740_v52 = vpop.eup %1739  ;;  %1303 = vst.msk [vmem:[%s2126_s3 + $0x148] sm:$0xff] %vm223_vm0, %v1738_v48  ;;  %1122 = vst.msk [vmem:[#allocation2 + $0x1b8] sm:$0xff] %vm223_vm0, %v1057_v45  ;;  %v1151_v55 = vld [vmem:[#allocation2 + $0x88] sm:$0xff]  ;;  %1765 = vtanh.f32 %v1185_v53  ;;  %v1579_v63 = vpop.f32.mrb[24].mxu0  ;;  %v350_v33 = vld [vmem:[#allocation2 + $0x1f0] sm:$0xff] }
 0x11f   : > { %v1742_v54 = vpop.eup %1741  ;;  %1276 = vst.msk [vmem:[%s2126_s3 + $0x70] sm:$0xff] %vm223_vm0, %v1740_v52  ;;  %1088 = vst.msk [vmem:[#allocation2 + $0xa8] sm:$0xff] %vm223_vm0, %v1023_v50  ;;  %v1183_v59 = vld [vmem:[#allocation2 + $0x188] sm:$0xff]  ;;  %v1611_v0 = vpop.f32.mrb[24].mxu1  ;;  %1767 = vtanh.f32 %v1151_v55  ;;  %v1028_v4 = vadd.f32 %v1579_v63, %v314_v56  ;;  %v348_v37 = vld [vmem:[#allocation2 + $0x1e0] sm:$0xff] }
 0x120   : > { %1120 = vst.msk [vmem:[#allocation2 + $0x1a8] sm:$0xff] %vm223_vm0, %v1055_v51  ;;  %v1744_v58 = vpop.eup %1743  ;;  %1308 = vst.msk [vmem:[%s2126_s3 + $0x170] sm:$0xff] %vm223_vm0, %v1742_v54  ;;  %v1060_v5 = vadd.f32 %v1611_v0, %v346_v57  ;;  %v843_v6 = vpop.f32.mrb[25].mxu0  ;;  %1769 = vtanh.f32 %v1183_v59  ;;  %v1156_v11 = vld [vmem:[#allocation2 + $0xb0] sm:$0xff]  ;;  %v319_v41 = vld [vmem:[#allocation2 + $0xf8] sm:$0xff] }
 0x121   : > { %v1746_v62 = vpop.eup %1745  ;;  %1274 = vst.msk [vmem:[%s2126_s3 + $0x60] sm:$0xff] %vm223_vm0, %v1744_v58  ;;  %v971_v7 = vpop.f32.mrb[25].mxu1  ;;  %v1188_v12 = vld [vmem:[#allocation2 + $0x1b0] sm:$0xff]  ;;  %v1026_v13 = vadd.f32 %v843_v6, %v312_v60  ;;  %1771 = vtanh.f32 %v1156_v11  ;;  %1093 = vst.msk [vmem:[#allocation2 + $0xd0] sm:$0xff] %vm223_vm0, %v1028_v4  ;;  %v317_v48 = vld [vmem:[#allocation2 + $0xe8] sm:$0xff] }
 0x122   : > { %v1748_v3 = vpop.eup %1747  ;;  %1306 = vst.msk [vmem:[%s2126_s3 + $0x160] sm:$0xff] %vm223_vm0, %v1746_v62  ;;  %v1058_v14 = vadd.f32 %v971_v7, %v344_v61  ;;  %v1580_v15 = vpop.f32.mrb[26].mxu0  ;;  %v1154_v18 = vld [vmem:[#allocation2 + $0xa0] sm:$0xff]  ;;  %1125 = vst.msk [vmem:[#allocation2 + $0x1d0] sm:$0xff] %vm223_vm0, %v1060_v5  ;;  %1773 = vtanh.f32 %v1188_v12  ;;  %v349_v49 = vld [vmem:[#allocation2 + $0x1e8] sm:$0xff] }
 0x123   : > { %v1750_v10 = vpop.eup %1749  ;;  %1277 = vst.msk [vmem:[%s2126_s3 + $0x78] sm:$0xff] %vm223_vm0, %v1748_v3  ;;  %v1612_v16 = vpop.f32.mrb[26].mxu1  ;;  %v1186_v19 = vld [vmem:[#allocation2 + $0x1a0] sm:$0xff]  ;;  %v1029_v20 = vadd.f32 %v1580_v15, %v315_v1  ;;  %1091 = vst.msk [vmem:[#allocation2 + $0xc0] sm:$0xff] %vm223_vm0, %v1026_v13  ;;  %1775 = vtanh.f32 %v1154_v18 }
 0x124   : > { %v1752_v17 = vpop.eup %1751  ;;  %1309 = vst.msk [vmem:[%s2126_s3 + $0x178] sm:$0xff] %vm223_vm0, %v1750_v10  ;;  %v1061_v21 = vadd.f32 %v1612_v16, %v347_v2  ;;  %v846_v22 = vpop.f32.mrb[27].mxu0  ;;  %v1157_v25 = vld [vmem:[#allocation2 + $0xb8] sm:$0xff]  ;;  %1123 = vst.msk [vmem:[#allocation2 + $0x1c0] sm:$0xff] %vm223_vm0, %v1058_v14  ;;  %1777 = vtanh.f32 %v1186_v19 }
 0x125   : > { %v974_v23 = vpop.f32.mrb[27].mxu1  ;;  %v1754_v24 = vpop.eup %1753  ;;  %1275 = vst.msk [vmem:[%s2126_s3 + $0x68] sm:$0xff] %vm223_vm0, %v1752_v17  ;;  %v1027_v26 = vadd.f32 %v846_v22, %v313_v8  ;;  %v1189_v29 = vld [vmem:[#allocation2 + $0x1b8] sm:$0xff]  ;;  %1094 = vst.msk [vmem:[#allocation2 + $0xd8] sm:$0xff] %vm223_vm0, %v1029_v20  ;;  %1779 = vtanh.f32 %v1157_v25 }
 0x126   : > { %v1059_v27 = vadd.f32 %v974_v23, %v345_v9  ;;  %v1756_v28 = vpop.eup %1755  ;;  %1307 = vst.msk [vmem:[%s2126_s3 + $0x168] sm:$0xff] %vm223_vm0, %v1754_v24  ;;  %1126 = vst.msk [vmem:[#allocation2 + $0x1d8] sm:$0xff] %vm223_vm0, %v1061_v21  ;;  %v1155_v31 = vld [vmem:[#allocation2 + $0xa8] sm:$0xff]  ;;  %1781 = vtanh.f32 %v1189_v29  ;;  %v1583_v39 = vpop.f32.mrb[28].mxu0 }
 0x127   : > { %v1758_v30 = vpop.eup %1757  ;;  %1280 = vst.msk [vmem:[%s2126_s3 + $0x90] sm:$0xff] %vm223_vm0, %v1756_v28  ;;  %1092 = vst.msk [vmem:[#allocation2 + $0xc8] sm:$0xff] %vm223_vm0, %v1027_v26  ;;  %v1187_v35 = vld [vmem:[#allocation2 + $0x1a8] sm:$0xff]  ;;  %v1615_v40 = vpop.f32.mrb[28].mxu1  ;;  %1783 = vtanh.f32 %v1155_v31  ;;  %v1032_v44 = vadd.f32 %v1583_v39, %v318_v32 }
 0x128   : > { %1124 = vst.msk [vmem:[#allocation2 + $0x1c8] sm:$0xff] %vm223_vm0, %v1059_v27  ;;  %v1760_v34 = vpop.eup %1759  ;;  %1312 = vst.msk [vmem:[%s2126_s3 + $0x190] sm:$0xff] %vm223_vm0, %v1758_v30  ;;  %v1064_v45 = vadd.f32 %v1615_v40, %v350_v33  ;;  %v859_v46 = vpop.f32.mrb[29].mxu0  ;;  %1785 = vtanh.f32 %v1187_v35  ;;  %v1160_v51 = vld [vmem:[#allocation2 + $0xd0] sm:$0xff] }
 0x129   : > { %v1762_v38 = vpop.eup %1761  ;;  %1278 = vst.msk [vmem:[%s2126_s3 + $0x80] sm:$0xff] %vm223_vm0, %v1760_v34  ;;  %v987_v47 = vpop.f32.mrb[29].mxu1  ;;  %v1192_v52 = vld [vmem:[#allocation2 + $0x1d0] sm:$0xff]  ;;  %v1030_v53 = vadd.f32 %v859_v46, %v316_v36  ;;  %1787 = vtanh.f32 %v1160_v51  ;;  %1097 = vst.msk [vmem:[#allocation2 + $0xf0] sm:$0xff] %vm223_vm0, %v1032_v44 }
 0x12a   : > { %v1764_v43 = vpop.eup %1763  ;;  %1310 = vst.msk [vmem:[%s2126_s3 + $0x180] sm:$0xff] %vm223_vm0, %v1762_v38  ;;  %v1062_v54 = vadd.f32 %v987_v47, %v348_v37  ;;  %v1584_v55 = vpop.f32.mrb[30].mxu0  ;;  %v1158_v58 = vld [vmem:[#allocation2 + $0xc0] sm:$0xff]  ;;  %1129 = vst.msk [vmem:[#allocation2 + $0x1f0] sm:$0xff] %vm223_vm0, %v1064_v45  ;;  %1789 = vtanh.f32 %v1192_v52 }
 0x12b   : > { %v1766_v50 = vpop.eup %1765  ;;  %1281 = vst.msk [vmem:[%s2126_s3 + $0x98] sm:$0xff] %vm223_vm0, %v1764_v43  ;;  %v1616_v56 = vpop.f32.mrb[30].mxu1  ;;  %v1190_v59 = vld [vmem:[#allocation2 + $0x1c0] sm:$0xff]  ;;  %v1033_v60 = vadd.f32 %v1584_v55, %v319_v41  ;;  %1095 = vst.msk [vmem:[#allocation2 + $0xe0] sm:$0xff] %vm223_vm0, %v1030_v53  ;;  %1791 = vtanh.f32 %v1158_v58 }
 0x12c   : > { %v1768_v57 = vpop.eup %1767  ;;  %1313 = vst.msk [vmem:[%s2126_s3 + $0x198] sm:$0xff] %vm223_vm0, %v1766_v50  ;;  %v1065_v61 = vadd.f32 %v1616_v56, %v351_v42  ;;  %v862_v62 = vpop.f32.mrb[31].mxu0  ;;  %v1161_v1 = vld [vmem:[#allocation2 + $0xd8] sm:$0xff]  ;;  %1127 = vst.msk [vmem:[#allocation2 + $0x1e0] sm:$0xff] %vm223_vm0, %v1062_v54  ;;  %1793 = vtanh.f32 %v1190_v59 }
 0x12d   : > { %v990_v63 = vpop.f32.mrb[31].mxu1  ;;  %v1770_v0 = vpop.eup %1769  ;;  %1279 = vst.msk [vmem:[%s2126_s3 + $0x88] sm:$0xff] %vm223_vm0, %v1768_v57  ;;  %v1031_v2 = vadd.f32 %v862_v62, %v317_v48  ;;  %v1193_v5 = vld [vmem:[#allocation2 + $0x1d8] sm:$0xff]  ;;  %1098 = vst.msk [vmem:[#allocation2 + $0xf8] sm:$0xff] %vm223_vm0, %v1033_v60  ;;  %1795 = vtanh.f32 %v1161_v1 }
 0x12e   : > { %v1063_v3 = vadd.f32 %v990_v63, %v349_v49  ;;  %v1772_v4 = vpop.eup %1771  ;;  %1311 = vst.msk [vmem:[%s2126_s3 + $0x188] sm:$0xff] %vm223_vm0, %v1770_v0  ;;  %1130 = vst.msk [vmem:[#allocation2 + $0x1f8] sm:$0xff] %vm223_vm0, %v1065_v61  ;;  %v1159_v7 = vld [vmem:[#allocation2 + $0xc8] sm:$0xff]  ;;  %1797 = vtanh.f32 %v1193_v5 }
 0x12f   : > { %v1774_v6 = vpop.eup %1773  ;;  %1284 = vst.msk [vmem:[%s2126_s3 + $0xb0] sm:$0xff] %vm223_vm0, %v1772_v4  ;;  %1096 = vst.msk [vmem:[#allocation2 + $0xe8] sm:$0xff] %vm223_vm0, %v1031_v2  ;;  %v1191_v9 = vld [vmem:[#allocation2 + $0x1c8] sm:$0xff]  ;;  %1799 = vtanh.f32 %v1159_v7 }
 0x130   : > { %1128 = vst.msk [vmem:[#allocation2 + $0x1e8] sm:$0xff] %vm223_vm0, %v1063_v3  ;;  %v1776_v8 = vpop.eup %1775  ;;  %1316 = vst.msk [vmem:[%s2126_s3 + $0x1b0] sm:$0xff] %vm223_vm0, %v1774_v6  ;;  %1801 = vtanh.f32 %v1191_v9  ;;  %v1164_v13 = vld [vmem:[#allocation2 + $0xf0] sm:$0xff] }
 0x131   : > { %v1778_v10 = vpop.eup %1777  ;;  %1282 = vst.msk [vmem:[%s2126_s3 + $0xa0] sm:$0xff] %vm223_vm0, %v1776_v8  ;;  %v1196_v14 = vld [vmem:[#allocation2 + $0x1f0] sm:$0xff]  ;;  %1803 = vtanh.f32 %v1164_v13 }
 0x132   : > { %v1780_v11 = vpop.eup %1779  ;;  %1314 = vst.msk [vmem:[%s2126_s3 + $0x1a0] sm:$0xff] %vm223_vm0, %v1778_v10  ;;  %v1162_v16 = vld [vmem:[#allocation2 + $0xe0] sm:$0xff]  ;;  %1805 = vtanh.f32 %v1196_v14 }
 0x133   : > { %v1782_v12 = vpop.eup %1781  ;;  %1285 = vst.msk [vmem:[%s2126_s3 + $0xb8] sm:$0xff] %vm223_vm0, %v1780_v11  ;;  %v1194_v17 = vld [vmem:[#allocation2 + $0x1e0] sm:$0xff]  ;;  %1807 = vtanh.f32 %v1162_v16 }
 0x134   : > { %v1784_v15 = vpop.eup %1783  ;;  %1317 = vst.msk [vmem:[%s2126_s3 + $0x1b8] sm:$0xff] %vm223_vm0, %v1782_v12  ;;  %v1165_v19 = vld [vmem:[#allocation2 + $0xf8] sm:$0xff]  ;;  %1809 = vtanh.f32 %v1194_v17 }
 0x135   : > { %v1786_v18 = vpop.eup %1785  ;;  %1283 = vst.msk [vmem:[%s2126_s3 + $0xa8] sm:$0xff] %vm223_vm0, %v1784_v15  ;;  %v1197_v21 = vld [vmem:[#allocation2 + $0x1f8] sm:$0xff]  ;;  %1811 = vtanh.f32 %v1165_v19 }
 0x136   : > { %v1788_v20 = vpop.eup %1787  ;;  %1315 = vst.msk [vmem:[%s2126_s3 + $0x1a8] sm:$0xff] %vm223_vm0, %v1786_v18  ;;  %v1163_v23 = vld [vmem:[#allocation2 + $0xe8] sm:$0xff]  ;;  %1813 = vtanh.f32 %v1197_v21 }
 0x137   : > { %v1790_v22 = vpop.eup %1789  ;;  %1288 = vst.msk [vmem:[%s2126_s3 + $0xd0] sm:$0xff] %vm223_vm0, %v1788_v20  ;;  %v1195_v25 = vld [vmem:[#allocation2 + $0x1e8] sm:$0xff]  ;;  %1815 = vtanh.f32 %v1163_v23 }
 0x138   : > { %v1792_v24 = vpop.eup %1791  ;;  %1320 = vst.msk [vmem:[%s2126_s3 + $0x1d0] sm:$0xff] %vm223_vm0, %v1790_v22  ;;  %1817 = vtanh.f32 %v1195_v25 }
 0x139   : > { %v1794_v26 = vpop.eup %1793  ;;  %1286 = vst.msk [vmem:[%s2126_s3 + $0xc0] sm:$0xff] %vm223_vm0, %v1792_v24 }
 0x13a   : > { %v1796_v27 = vpop.eup %1795  ;;  %1318 = vst.msk [vmem:[%s2126_s3 + $0x1c0] sm:$0xff] %vm223_vm0, %v1794_v26 }
 0x13b   : > { %v1798_v28 = vpop.eup %1797  ;;  %1289 = vst.msk [vmem:[%s2126_s3 + $0xd8] sm:$0xff] %vm223_vm0, %v1796_v27 }
 0x13c   : > { %v1800_v29 = vpop.eup %1799  ;;  %1321 = vst.msk [vmem:[%s2126_s3 + $0x1d8] sm:$0xff] %vm223_vm0, %v1798_v28 }
 0x13d   : > { %v1802_v30 = vpop.eup %1801  ;;  %1287 = vst.msk [vmem:[%s2126_s3 + $0xc8] sm:$0xff] %vm223_vm0, %v1800_v29 }
 0x13e   : > { %v1804_v31 = vpop.eup %1803  ;;  %1319 = vst.msk [vmem:[%s2126_s3 + $0x1c8] sm:$0xff] %vm223_vm0, %v1802_v30 }
 0x13f   : > { %v1806_v32 = vpop.eup %1805  ;;  %1292 = vst.msk [vmem:[%s2126_s3 + $0xf0] sm:$0xff] %vm223_vm0, %v1804_v31 }
 0x140   : > { %v1808_v33 = vpop.eup %1807  ;;  %1324 = vst.msk [vmem:[%s2126_s3 + $0x1f0] sm:$0xff] %vm223_vm0, %v1806_v32 }
 0x141   : > { %v1810_v34 = vpop.eup %1809  ;;  %1290 = vst.msk [vmem:[%s2126_s3 + $0xe0] sm:$0xff] %vm223_vm0, %v1808_v33 }
 0x142   : > { %v1812_v35 = vpop.eup %1811  ;;  %1322 = vst.msk [vmem:[%s2126_s3 + $0x1e0] sm:$0xff] %vm223_vm0, %v1810_v34 }
 0x143   : > { %v1814_v36 = vpop.eup %1813  ;;  %1293 = vst.msk [vmem:[%s2126_s3 + $0xf8] sm:$0xff] %vm223_vm0, %v1812_v35 }
 0x144   : > { %v1816_v37 = vpop.eup %1815  ;;  %1325 = vst.msk [vmem:[%s2126_s3 + $0x1f8] sm:$0xff] %vm223_vm0, %v1814_v36 }
 0x145   : > { %v1818_v38 = vpop.eup %1817  ;;  %1291 = vst.msk [vmem:[%s2126_s3 + $0xe8] sm:$0xff] %vm223_vm0, %v1816_v37 }
 0x146   : > { %1323 = vst.msk [vmem:[%s2126_s3 + $0x1e8] sm:$0xff] %vm223_vm0, %v1818_v38 }
 0x147 PF: > { %s12_s11 = sadd.s32 1, %s1841_s11   ;;  %s2316_s9 = smov %s1837_s10 }
 0x148   : > { %p9_p5 = scmp.ge.s32.totalorder %s12_s11, 18   ;;  %s2317_s10 = smov %s2319_s12 }
 0x14a   :  { %11 = sbr.rel (!%p9_p5) target bundleno = 2 (0x2), region = 69 }

</bundles_post_ra>
